<compile_context>
chip_gen: v5e
topology: v5e:2x2
jax: 0.10.0
libtpu: 0.0.40
codegen_flags: <defaults>
</compile_context>

<pallas_src>
from dataclasses import dataclass

import jax
import jax.numpy as jnp
from jax import lax
from jax.experimental import pallas as pl
from jax.experimental.pallas import tpu as pltpu  # noqa: F401  (kept for TPU-specific tuning hooks)


@dataclass
class Config:
    vocab_size: int = 64
    cw_size: int = 16
    n_embd: int = 32
    n_heads: int = 4
    p_dropout: float = 0.0  # identity dropout
    bias: bool = True


BLOCK_KEYS = ("ln1w", "ln1b", "wq", "bq", "wk", "bk", "wv", "bv",
              "wp", "bp", "ln2w", "ln2b", "w1", "b1", "w2", "b2")


def _layer_norm(x, w, b, eps=1e-5):
    mu = jnp.mean(x, axis=-1, keepdims=True)
    var = jnp.mean(jnp.square(x - mu), axis=-1, keepdims=True)
    return (x - mu) * lax.rsqrt(var + eps) * w + b


def make_lm_kernel(B, T, C, H, V, n_blocks):
    """Build the fully fused forward kernel (closure over static shapes)."""
    hs = C // H
    BT = B * T
    scale = float(C) ** -0.5          # reference scales by n_embd**-0.5, not head_size
    f32 = jnp.float32

    def kernel(idx_ref, tok_ref, pos_ref, *args):
        o_ref = args[-1]
        lm_w_ref, lm_b_ref = args[-3], args[-2]
        blk_refs = args[:-3]          # n_blocks * 16 parameter refs

        # ---- token + position embedding (one-hot gather; table stays in VMEM) ----
        ids = idx_ref[...]                                          # (BT, 1) int32
        vocab_iota = lax.broadcasted_iota(jnp.int32, (BT, V), 1)    # (BT, V)
        onehot = (vocab_iota == ids).astype(f32)
        x = jnp.dot(onehot, tok_ref[...], preferred_element_type=f32)   # (BT, C)
        pos = pos_ref[...][:T, :]                                   # (T, C) static slice
        x = (x.reshape(B, T, C) + pos[None, :, :]).reshape(BT, C)

        # ---- shared causal mask ----
        r = lax.broadcasted_iota(jnp.int32, (T, T), 0)
        c = lax.broadcasted_iota(jnp.int32, (T, T), 1)
        causal = (c <= r)[None, :, :]                               # (1, T, T)
        neg_big = jnp.float32(-1e30)                                # NaN-safe "-inf"

        # ---- transformer blocks (static unroll) ----
        for bi in range(n_blocks):
            (ln1w, ln1b, wq, bq, wk, bk, wv, bv, wp, bp,
             ln2w, ln2b, w1, b1, w2, b2) = blk_refs[bi * 16:(bi + 1) * 16]

            xn = _layer_norm(x, ln1w[...], ln1b[...])               # (BT, C)

            # fused Q/K/V: 3 full-width matmuls (heads are column blocks)
            q = jnp.dot(xn, wq[...], preferred_element_type=f32) + bq[...]
            k = jnp.dot(xn, wk[...], preferred_element_type=f32) + bk[...]
            v = jnp.dot(xn, wv[...], preferred_element_type=f32) + bv[...]
            q3 = q.reshape(B, T, C)
            k3 = k.reshape(B, T, C)
            v3 = v.reshape(B, T, C)
            wpv = wp[...]                                           # (C, C)

            # attention, batched over B; per-head output folded into the projection:
            #   concat(heads) @ Wp  ==  sum_h  head_h @ Wp[h*hs:(h+1)*hs, :]
            sa = jnp.zeros((BT, C), f32)
            for h in range(H):
                sl = slice(h * hs, (h + 1) * hs)
                qh, kh, vh = q3[:, :, sl], k3[:, :, sl], v3[:, :, sl]   # (B, T, hs)
                s = jnp.einsum('btd,bsd->bts', qh, kh,
                               preferred_element_type=f32) * scale     # (B, T, T)
                s = jnp.where(causal, s, neg_big)
                m = jnp.max(s, axis=-1, keepdims=True)
                e = jnp.exp(s - m)
                att = e / jnp.sum(e, axis=-1, keepdims=True)            # softmax(dim=-1)
                oh = jnp.einsum('bts,bsd->btd', att, vh,
                                preferred_element_type=f32)             # (B, T, hs)
                sa = sa + jnp.dot(oh.reshape(BT, hs), wpv[sl, :],
                                  preferred_element_type=f32)
            sa = sa + bp[...]
            # TODO(synk): dropout PRNG path not implemented (p_dropout == 0.0 -> identity).

            x = xn + sa                                             # residual from post-ln1
            xn2 = _layer_norm(x, ln2w[...], ln2b[...])
            hdn = jnp.maximum(
                jnp.dot(xn2, w1[...], preferred_element_type=f32) + b1[...], 0.0)
            ff = jnp.dot(hdn, w2[...], preferred_element_type=f32) + b2[...]
            x = xn2 + ff                                            # residual from post-ln2

        # ---- lm_head on the flattened (BT, V) slab ----
        o_ref[...] = jnp.dot(x, lm_w_ref[...],
                             preferred_element_type=f32) + lm_b_ref[...]

    return kernel


def language_model_forward(params, cfg: Config, idx, targets=None):
    B, T = idx.shape
    C, H, V = cfg.n_embd, cfg.n_heads, cfg.vocab_size
    n_blocks = len(params["blocks"])

    flat = []
    for p in params["blocks"]:
        flat.extend(p[k] for k in BLOCK_KEYS)

    idx2d = idx.reshape(B * T, 1).astype(jnp.int32)

    kernel = make_lm_kernel(B, T, C, H, V, n_blocks)
    logits = pl.pallas_call(
        kernel,
        out_shape=jax.ShapeDtypeStruct((B * T, V), jnp.float32),
        # No grid / BlockSpecs: every operand is a whole array resident in VMEM
        # (total parameter + activation footprint << VMEM on v5e/v6e/v7x).
    )(idx2d, params["tok_table"], params["pos_table"], *flat,
      params["lm_w"], params["lm_b"])

    logits = logits.reshape(B, T, V)
    losses = None
    # TODO(synk): cross_entropy loss path (targets is not None) is not needed for
    # the reference forward call used here (targets=None -> losses=None).
    return logits, losses


def init_params(key, cfg: Config):
    C, V = cfg.n_embd, cfg.vocab_size
    keys = iter(jax.random.split(key, 128))

    def w(shape, scale=0.02):
        return (scale * jax.random.normal(next(keys), shape)).astype(jnp.float32)

    blocks = []
    for _ in range(4):
        blocks.append(dict(
            ln1w=jnp.ones((1, C), jnp.float32), ln1b=jnp.zeros((1, C), jnp.float32),
            wq=w((C, C)), bq=w((1, C)),
            wk=w((C, C)), bk=w((1, C)),
            wv=w((C, C)), bv=w((1, C)),
            wp=w((C, C)), bp=w((1, C)),
            ln2w=jnp.ones((1, C), jnp.float32), ln2b=jnp.zeros((1, C), jnp.float32),
            w1=w((C, 4 * C)), b1=w((1, 4 * C)),
            w2=w((4 * C, C)), b2=w((1, C)),
        ))
    return dict(
        tok_table=w((V, C)),
        pos_table=w((cfg.cw_size, C)),
        blocks=blocks,
        lm_w=w((C, V)),
        lm_b=w((1, V)),
    )


if __name__ == "__main__":
    cfg = Config()
    root = jax.random.PRNGKey(0)
    pkey, dkey = jax.random.split(root)
    params = init_params(pkey, cfg)

    B, T = 2, 8  # T <= cw_size
    idx = jax.random.randint(dkey, (B, T), 0, cfg.vocab_size, dtype=jnp.int32)

    logits, losses = language_model_forward(params, cfg, idx)
    logits = jax.block_until_ready(logits)
    assert logits.shape == (B, T, cfg.vocab_size)
    assert losses is None
    print("KERNEL_OK")
</pallas_src>

<mosaic_0001>
module attributes {stable_mosaic.version = 11 : i64} {
  func.func @kernel(%arg0: memref<16x1xi32, #tpu.memory_space<vmem>>, %arg1: memref<64x32xf32, #tpu.memory_space<vmem>>, %arg2: memref<16x32xf32, #tpu.memory_space<vmem>>, %arg3: memref<1x32xf32, #tpu.memory_space<vmem>>, %arg4: memref<1x32xf32, #tpu.memory_space<vmem>>, %arg5: memref<32x32xf32, #tpu.memory_space<vmem>>, %arg6: memref<1x32xf32, #tpu.memory_space<vmem>>, %arg7: memref<32x32xf32, #tpu.memory_space<vmem>>, %arg8: memref<1x32xf32, #tpu.memory_space<vmem>>, %arg9: memref<32x32xf32, #tpu.memory_space<vmem>>, %arg10: memref<1x32xf32, #tpu.memory_space<vmem>>, %arg11: memref<32x32xf32, #tpu.memory_space<vmem>>, %arg12: memref<1x32xf32, #tpu.memory_space<vmem>>, %arg13: memref<1x32xf32, #tpu.memory_space<vmem>>, %arg14: memref<1x32xf32, #tpu.memory_space<vmem>>, %arg15: memref<32x128xf32, #tpu.memory_space<vmem>>, %arg16: memref<1x128xf32, #tpu.memory_space<vmem>>, %arg17: memref<128x32xf32, #tpu.memory_space<vmem>>, %arg18: memref<1x32xf32, #tpu.memory_space<vmem>>, %arg19: memref<1x32xf32, #tpu.memory_space<vmem>>, %arg20: memref<1x32xf32, #tpu.memory_space<vmem>>, %arg21: memref<32x32xf32, #tpu.memory_space<vmem>>, %arg22: memref<1x32xf32, #tpu.memory_space<vmem>>, %arg23: memref<32x32xf32, #tpu.memory_space<vmem>>, %arg24: memref<1x32xf32, #tpu.memory_space<vmem>>, %arg25: memref<32x32xf32, #tpu.memory_space<vmem>>, %arg26: memref<1x32xf32, #tpu.memory_space<vmem>>, %arg27: memref<32x32xf32, #tpu.memory_space<vmem>>, %arg28: memref<1x32xf32, #tpu.memory_space<vmem>>, %arg29: memref<1x32xf32, #tpu.memory_space<vmem>>, %arg30: memref<1x32xf32, #tpu.memory_space<vmem>>, %arg31: memref<32x128xf32, #tpu.memory_space<vmem>>, %arg32: memref<1x128xf32, #tpu.memory_space<vmem>>, %arg33: memref<128x32xf32, #tpu.memory_space<vmem>>, %arg34: memref<1x32xf32, #tpu.memory_space<vmem>>, %arg35: memref<1x32xf32, #tpu.memory_space<vmem>>, %arg36: memref<1x32xf32, #tpu.memory_space<vmem>>, %arg37: memref<32x32xf32, #tpu.memory_space<vmem>>, %arg38: memref<1x32xf32, #tpu.memory_space<vmem>>, %arg39: memref<32x32xf32, #tpu.memory_space<vmem>>, %arg40: memref<1x32xf32, #tpu.memory_space<vmem>>, %arg41: memref<32x32xf32, #tpu.memory_space<vmem>>, %arg42: memref<1x32xf32, #tpu.memory_space<vmem>>, %arg43: memref<32x32xf32, #tpu.memory_space<vmem>>, %arg44: memref<1x32xf32, #tpu.memory_space<vmem>>, %arg45: memref<1x32xf32, #tpu.memory_space<vmem>>, %arg46: memref<1x32xf32, #tpu.memory_space<vmem>>, %arg47: memref<32x128xf32, #tpu.memory_space<vmem>>, %arg48: memref<1x128xf32, #tpu.memory_space<vmem>>, %arg49: memref<128x32xf32, #tpu.memory_space<vmem>>, %arg50: memref<1x32xf32, #tpu.memory_space<vmem>>, %arg51: memref<1x32xf32, #tpu.memory_space<vmem>>, %arg52: memref<1x32xf32, #tpu.memory_space<vmem>>, %arg53: memref<32x32xf32, #tpu.memory_space<vmem>>, %arg54: memref<1x32xf32, #tpu.memory_space<vmem>>, %arg55: memref<32x32xf32, #tpu.memory_space<vmem>>, %arg56: memref<1x32xf32, #tpu.memory_space<vmem>>, %arg57: memref<32x32xf32, #tpu.memory_space<vmem>>, %arg58: memref<1x32xf32, #tpu.memory_space<vmem>>, %arg59: memref<32x32xf32, #tpu.memory_space<vmem>>, %arg60: memref<1x32xf32, #tpu.memory_space<vmem>>, %arg61: memref<1x32xf32, #tpu.memory_space<vmem>>, %arg62: memref<1x32xf32, #tpu.memory_space<vmem>>, %arg63: memref<32x128xf32, #tpu.memory_space<vmem>>, %arg64: memref<1x128xf32, #tpu.memory_space<vmem>>, %arg65: memref<128x32xf32, #tpu.memory_space<vmem>>, %arg66: memref<1x32xf32, #tpu.memory_space<vmem>>, %arg67: memref<32x64xf32, #tpu.memory_space<vmem>>, %arg68: memref<1x64xf32, #tpu.memory_space<vmem>>, %arg69: memref<16x64xf32, #tpu.memory_space<vmem>>) attributes {dimension_semantics = [], scalar_prefetch = 0 : i64, scratch_operands = 0 : i64, tpu.core_type = #tpu.core_type<tc>} {
    %c0 = arith.constant 0 : index
    %c0_0 = arith.constant 0 : index
    %0 = vector.load %arg0[%c0, %c0_0] : memref<16x1xi32, #tpu.memory_space<vmem>>, vector<16x1xi32>
    %1 = tpu.iota {dimensions = array<i32: 1>} : vector<16x64xi32>
    %2 = vector.broadcast %0 : vector<16x1xi32> to vector<16x64xi32>
    %3 = arith.cmpi eq, %1, %2 : vector<16x64xi32>
    %4 = arith.extui %3 : vector<16x64xi1> to vector<16x64xi32>
    %5 = arith.sitofp %4 : vector<16x64xi32> to vector<16x64xf32>
    %c0_1 = arith.constant 0 : index
    %c0_2 = arith.constant 0 : index
    %6 = vector.load %arg1[%c0_1, %c0_2] : memref<64x32xf32, #tpu.memory_space<vmem>>, vector<64x32xf32>
    %cst = arith.constant dense<0.000000e+00> : vector<16x32xf32>
    %7 = tpu.matmul %5, %6, %cst {dimension_numbers = #tpu.dot_dimension_numbers<[1], [0], [0], [1], [0, 0, 1, 1], [], []>} : vector<16x64xf32>, vector<64x32xf32>, vector<16x32xf32> -> vector<16x32xf32>
    %c0_3 = arith.constant 0 : index
    %c0_4 = arith.constant 0 : index
    %8 = vector.load %arg2[%c0_3, %c0_4] : memref<16x32xf32, #tpu.memory_space<vmem>>, vector<16x32xf32>
    %9 = vector.extract_strided_slice %8 {offsets = [0, 0], sizes = [8, 32], strides = [1, 1]} : vector<16x32xf32> to vector<8x32xf32>
    %10 = vector.shape_cast %7 : vector<16x32xf32> to vector<2x8x32xf32>
    %11 = vector.shape_cast %9 : vector<8x32xf32> to vector<1x8x32xf32>
    %12 = vector.broadcast %11 : vector<1x8x32xf32> to vector<2x8x32xf32>
    %13 = arith.addf %10, %12 : vector<2x8x32xf32>
    %14 = vector.shape_cast %13 : vector<2x8x32xf32> to vector<16x32xf32>
    %15 = tpu.iota {dimensions = array<i32: 0>} : vector<8x8xi32>
    %16 = tpu.iota {dimensions = array<i32: 1>} : vector<8x8xi32>
    %17 = arith.cmpi sle, %16, %15 : vector<8x8xi32>
    %18 = vector.shape_cast %17 : vector<8x8xi1> to vector<1x8x8xi1>
    %c0_5 = arith.constant 0 : index
    %c0_6 = arith.constant 0 : index
    %19 = vector.load %arg3[%c0_5, %c0_6] : memref<1x32xf32, #tpu.memory_space<vmem>>, vector<1x32xf32>
    %c0_7 = arith.constant 0 : index
    %c0_8 = arith.constant 0 : index
    %20 = vector.load %arg4[%c0_7, %c0_8] : memref<1x32xf32, #tpu.memory_space<vmem>>, vector<1x32xf32>
    %cst_9 = arith.constant dense<0.000000e+00> : vector<16xf32>
    %21 = vector.multi_reduction <add>, %14, %cst_9 [1] : vector<16x32xf32> to vector<16xf32>
    %22 = vector.shape_cast %21 : vector<16xf32> to vector<16x1xf32>
    %cst_10 = arith.constant 3.200000e+01 : f32
    %23 = vector.broadcast %cst_10 : f32 to vector<16x1xf32>
    %24 = arith.divf %22, %23 : vector<16x1xf32>
    %25 = vector.broadcast %24 : vector<16x1xf32> to vector<16x32xf32>
    %26 = arith.subf %14, %25 : vector<16x32xf32>
    %27 = arith.mulf %26, %26 : vector<16x32xf32>
    %cst_11 = arith.constant dense<0.000000e+00> : vector<16xf32>
    %28 = vector.multi_reduction <add>, %27, %cst_11 [1] : vector<16x32xf32> to vector<16xf32>
    %29 = vector.shape_cast %28 : vector<16xf32> to vector<16x1xf32>
    %cst_12 = arith.constant 3.200000e+01 : f32
    %30 = vector.broadcast %cst_12 : f32 to vector<16x1xf32>
    %31 = arith.divf %29, %30 : vector<16x1xf32>
    %32 = vector.broadcast %24 : vector<16x1xf32> to vector<16x32xf32>
    %33 = arith.subf %14, %32 : vector<16x32xf32>
    %cst_13 = arith.constant 9.99999974E-6 : f32
    %34 = vector.broadcast %cst_13 : f32 to vector<16x1xf32>
    %35 = arith.addf %31, %34 : vector<16x1xf32>
    %36 = math.rsqrt %35 : vector<16x1xf32>
    %37 = vector.broadcast %36 : vector<16x1xf32> to vector<16x32xf32>
    %38 = arith.mulf %33, %37 : vector<16x32xf32>
    %39 = vector.broadcast %19 : vector<1x32xf32> to vector<16x32xf32>
    %40 = arith.mulf %38, %39 : vector<16x32xf32>
    %41 = vector.broadcast %20 : vector<1x32xf32> to vector<16x32xf32>
    %42 = arith.addf %40, %41 : vector<16x32xf32>
    %c0_14 = arith.constant 0 : index
    %c0_15 = arith.constant 0 : index
    %43 = vector.load %arg5[%c0_14, %c0_15] : memref<32x32xf32, #tpu.memory_space<vmem>>, vector<32x32xf32>
    %cst_16 = arith.constant dense<0.000000e+00> : vector<16x32xf32>
    %44 = tpu.matmul %42, %43, %cst_16 {dimension_numbers = #tpu.dot_dimension_numbers<[1], [0], [0], [1], [0, 0, 1, 1], [], []>} : vector<16x32xf32>, vector<32x32xf32>, vector<16x32xf32> -> vector<16x32xf32>
    %c0_17 = arith.constant 0 : index
    %c0_18 = arith.constant 0 : index
    %45 = vector.load %arg6[%c0_17, %c0_18] : memref<1x32xf32, #tpu.memory_space<vmem>>, vector<1x32xf32>
    %46 = vector.broadcast %45 : vector<1x32xf32> to vector<16x32xf32>
    %47 = arith.addf %44, %46 : vector<16x32xf32>
    %c0_19 = arith.constant 0 : index
    %c0_20 = arith.constant 0 : index
    %48 = vector.load %arg7[%c0_19, %c0_20] : memref<32x32xf32, #tpu.memory_space<vmem>>, vector<32x32xf32>
    %cst_21 = arith.constant dense<0.000000e+00> : vector<16x32xf32>
    %49 = tpu.matmul %42, %48, %cst_21 {dimension_numbers = #tpu.dot_dimension_numbers<[1], [0], [0], [1], [0, 0, 1, 1], [], []>} : vector<16x32xf32>, vector<32x32xf32>, vector<16x32xf32> -> vector<16x32xf32>
    %c0_22 = arith.constant 0 : index
    %c0_23 = arith.constant 0 : index
    %50 = vector.load %arg8[%c0_22, %c0_23] : memref<1x32xf32, #tpu.memory_space<vmem>>, vector<1x32xf32>
    %51 = vector.broadcast %50 : vector<1x32xf32> to vector<16x32xf32>
    %52 = arith.addf %49, %51 : vector<16x32xf32>
    %c0_24 = arith.constant 0 : index
    %c0_25 = arith.constant 0 : index
    %53 = vector.load %arg9[%c0_24, %c0_25] : memref<32x32xf32, #tpu.memory_space<vmem>>, vector<32x32xf32>
    %cst_26 = arith.constant dense<0.000000e+00> : vector<16x32xf32>
    %54 = tpu.matmul %42, %53, %cst_26 {dimension_numbers = #tpu.dot_dimension_numbers<[1], [0], [0], [1], [0, 0, 1, 1], [], []>} : vector<16x32xf32>, vector<32x32xf32>, vector<16x32xf32> -> vector<16x32xf32>
    %c0_27 = arith.constant 0 : index
    %c0_28 = arith.constant 0 : index
    %55 = vector.load %arg10[%c0_27, %c0_28] : memref<1x32xf32, #tpu.memory_space<vmem>>, vector<1x32xf32>
    %56 = vector.broadcast %55 : vector<1x32xf32> to vector<16x32xf32>
    %57 = arith.addf %54, %56 : vector<16x32xf32>
    %58 = vector.shape_cast %47 : vector<16x32xf32> to vector<2x8x32xf32>
    %59 = vector.shape_cast %52 : vector<16x32xf32> to vector<2x8x32xf32>
    %60 = vector.shape_cast %57 : vector<16x32xf32> to vector<2x8x32xf32>
    %c0_29 = arith.constant 0 : index
    %c0_30 = arith.constant 0 : index
    %61 = vector.load %arg11[%c0_29, %c0_30] : memref<32x32xf32, #tpu.memory_space<vmem>>, vector<32x32xf32>
    %cst_31 = arith.constant 0.000000e+00 : f32
    %62 = vector.broadcast %cst_31 : f32 to vector<16x32xf32>
    %63 = vector.extract_strided_slice %58 {offsets = [0, 0, 0], sizes = [2, 8, 8], strides = [1, 1, 1]} : vector<2x8x32xf32> to vector<2x8x8xf32>
    %64 = vector.extract_strided_slice %59 {offsets = [0, 0, 0], sizes = [2, 8, 8], strides = [1, 1, 1]} : vector<2x8x32xf32> to vector<2x8x8xf32>
    %65 = vector.extract_strided_slice %60 {offsets = [0, 0, 0], sizes = [2, 8, 8], strides = [1, 1, 1]} : vector<2x8x32xf32> to vector<2x8x8xf32>
    "tpu.trace_start"() <{level = 10 : i32, message = "btd,bsd->bts"}> : () -> ()
    %cst_32 = arith.constant dense<0.000000e+00> : vector<2x8x8xf32>
    %66 = tpu.matmul %63, %64, %cst_32 {dimension_numbers = #tpu.dot_dimension_numbers<[2], [2], [1], [1], [0, 0, 0, 1, 1, 1], [0], [0]>} : vector<2x8x8xf32>, vector<2x8x8xf32>, vector<2x8x8xf32> -> vector<2x8x8xf32>
    "tpu.trace_stop"() : () -> ()
    %cst_33 = arith.constant 0.176776692 : f32
    %67 = vector.broadcast %cst_33 : f32 to vector<2x8x8xf32>
    %68 = arith.mulf %66, %67 : vector<2x8x8xf32>
    %cst_34 = arith.constant -1.000000e+30 : f32
    %69 = vector.shape_cast %18 : vector<1x8x8xi1> to vector<1x8x8xi1>
    %70 = vector.broadcast %69 : vector<1x8x8xi1> to vector<2x8x8xi1>
    %71 = vector.broadcast %cst_34 : f32 to vector<2x8x8xf32>
    %72 = arith.select %70, %68, %71 : vector<2x8x8xi1>, vector<2x8x8xf32>
    %cst_35 = arith.constant dense<0xFF800000> : vector<2x8xf32>
    %73 = vector.multi_reduction <maximumf>, %72, %cst_35 [2] : vector<2x8x8xf32> to vector<2x8xf32>
    %74 = vector.shape_cast %73 : vector<2x8xf32> to vector<2x8x1xf32>
    %75 = vector.broadcast %74 : vector<2x8x1xf32> to vector<2x8x8xf32>
    %76 = arith.subf %72, %75 : vector<2x8x8xf32>
    %77 = math.exp %76 : vector<2x8x8xf32>
    %cst_36 = arith.constant dense<0.000000e+00> : vector<2x8xf32>
    %78 = vector.multi_reduction <add>, %77, %cst_36 [2] : vector<2x8x8xf32> to vector<2x8xf32>
    %79 = vector.shape_cast %78 : vector<2x8xf32> to vector<2x8x1xf32>
    %80 = vector.broadcast %79 : vector<2x8x1xf32> to vector<2x8x8xf32>
    %81 = arith.divf %77, %80 : vector<2x8x8xf32>
    "tpu.trace_start"() <{level = 10 : i32, message = "bts,bsd->btd"}> : () -> ()
    %cst_37 = arith.constant dense<0.000000e+00> : vector<2x8x8xf32>
    %82 = tpu.matmul %81, %65, %cst_37 {dimension_numbers = #tpu.dot_dimension_numbers<[2], [1], [1], [2], [0, 0, 0, 1, 1, 2], [0], [0]>} : vector<2x8x8xf32>, vector<2x8x8xf32>, vector<2x8x8xf32> -> vector<2x8x8xf32>
    "tpu.trace_stop"() : () -> ()
    %83 = vector.shape_cast %82 : vector<2x8x8xf32> to vector<16x8xf32>
    %84 = vector.extract_strided_slice %61 {offsets = [0, 0], sizes = [8, 32], strides = [1, 1]} : vector<32x32xf32> to vector<8x32xf32>
    %cst_38 = arith.constant dense<0.000000e+00> : vector<16x32xf32>
    %85 = tpu.matmul %83, %84, %cst_38 {dimension_numbers = #tpu.dot_dimension_numbers<[1], [0], [0], [1], [0, 0, 1, 1], [], []>} : vector<16x8xf32>, vector<8x32xf32>, vector<16x32xf32> -> vector<16x32xf32>
    %86 = arith.addf %62, %85 : vector<16x32xf32>
    %87 = vector.extract_strided_slice %58 {offsets = [0, 0, 8], sizes = [2, 8, 8], strides = [1, 1, 1]} : vector<2x8x32xf32> to vector<2x8x8xf32>
    %88 = vector.extract_strided_slice %59 {offsets = [0, 0, 8], sizes = [2, 8, 8], strides = [1, 1, 1]} : vector<2x8x32xf32> to vector<2x8x8xf32>
    %89 = vector.extract_strided_slice %60 {offsets = [0, 0, 8], sizes = [2, 8, 8], strides = [1, 1, 1]} : vector<2x8x32xf32> to vector<2x8x8xf32>
    "tpu.trace_start"() <{level = 10 : i32, message = "btd,bsd->bts"}> : () -> ()
    %cst_39 = arith.constant dense<0.000000e+00> : vector<2x8x8xf32>
    %90 = tpu.matmul %87, %88, %cst_39 {dimension_numbers = #tpu.dot_dimension_numbers<[2], [2], [1], [1], [0, 0, 0, 1, 1, 1], [0], [0]>} : vector<2x8x8xf32>, vector<2x8x8xf32>, vector<2x8x8xf32> -> vector<2x8x8xf32>
    "tpu.trace_stop"() : () -> ()
    %cst_40 = arith.constant 0.176776692 : f32
    %91 = vector.broadcast %cst_40 : f32 to vector<2x8x8xf32>
    %92 = arith.mulf %90, %91 : vector<2x8x8xf32>
    %cst_41 = arith.constant -1.000000e+30 : f32
    %93 = vector.shape_cast %18 : vector<1x8x8xi1> to vector<1x8x8xi1>
    %94 = vector.broadcast %93 : vector<1x8x8xi1> to vector<2x8x8xi1>
    %95 = vector.broadcast %cst_41 : f32 to vector<2x8x8xf32>
    %96 = arith.select %94, %92, %95 : vector<2x8x8xi1>, vector<2x8x8xf32>
    %cst_42 = arith.constant dense<0xFF800000> : vector<2x8xf32>
    %97 = vector.multi_reduction <maximumf>, %96, %cst_42 [2] : vector<2x8x8xf32> to vector<2x8xf32>
    %98 = vector.shape_cast %97 : vector<2x8xf32> to vector<2x8x1xf32>
    %99 = vector.broadcast %98 : vector<2x8x1xf32> to vector<2x8x8xf32>
    %100 = arith.subf %96, %99 : vector<2x8x8xf32>
    %101 = math.exp %100 : vector<2x8x8xf32>
    %cst_43 = arith.constant dense<0.000000e+00> : vector<2x8xf32>
    %102 = vector.multi_reduction <add>, %101, %cst_43 [2] : vector<2x8x8xf32> to vector<2x8xf32>
    %103 = vector.shape_cast %102 : vector<2x8xf32> to vector<2x8x1xf32>
    %104 = vector.broadcast %103 : vector<2x8x1xf32> to vector<2x8x8xf32>
    %105 = arith.divf %101, %104 : vector<2x8x8xf32>
    "tpu.trace_start"() <{level = 10 : i32, message = "bts,bsd->btd"}> : () -> ()
    %cst_44 = arith.constant dense<0.000000e+00> : vector<2x8x8xf32>
    %106 = tpu.matmul %105, %89, %cst_44 {dimension_numbers = #tpu.dot_dimension_numbers<[2], [1], [1], [2], [0, 0, 0, 1, 1, 2], [0], [0]>} : vector<2x8x8xf32>, vector<2x8x8xf32>, vector<2x8x8xf32> -> vector<2x8x8xf32>
    "tpu.trace_stop"() : () -> ()
    %107 = vector.shape_cast %106 : vector<2x8x8xf32> to vector<16x8xf32>
    %108 = vector.extract_strided_slice %61 {offsets = [8, 0], sizes = [8, 32], strides = [1, 1]} : vector<32x32xf32> to vector<8x32xf32>
    %cst_45 = arith.constant dense<0.000000e+00> : vector<16x32xf32>
    %109 = tpu.matmul %107, %108, %cst_45 {dimension_numbers = #tpu.dot_dimension_numbers<[1], [0], [0], [1], [0, 0, 1, 1], [], []>} : vector<16x8xf32>, vector<8x32xf32>, vector<16x32xf32> -> vector<16x32xf32>
    %110 = arith.addf %86, %109 : vector<16x32xf32>
    %111 = vector.extract_strided_slice %58 {offsets = [0, 0, 16], sizes = [2, 8, 8], strides = [1, 1, 1]} : vector<2x8x32xf32> to vector<2x8x8xf32>
    %112 = vector.extract_strided_slice %59 {offsets = [0, 0, 16], sizes = [2, 8, 8], strides = [1, 1, 1]} : vector<2x8x32xf32> to vector<2x8x8xf32>
    %113 = vector.extract_strided_slice %60 {offsets = [0, 0, 16], sizes = [2, 8, 8], strides = [1, 1, 1]} : vector<2x8x32xf32> to vector<2x8x8xf32>
    "tpu.trace_start"() <{level = 10 : i32, message = "btd,bsd->bts"}> : () -> ()
    %cst_46 = arith.constant dense<0.000000e+00> : vector<2x8x8xf32>
    %114 = tpu.matmul %111, %112, %cst_46 {dimension_numbers = #tpu.dot_dimension_numbers<[2], [2], [1], [1], [0, 0, 0, 1, 1, 1], [0], [0]>} : vector<2x8x8xf32>, vector<2x8x8xf32>, vector<2x8x8xf32> -> vector<2x8x8xf32>
    "tpu.trace_stop"() : () -> ()
    %cst_47 = arith.constant 0.176776692 : f32
    %115 = vector.broadcast %cst_47 : f32 to vector<2x8x8xf32>
    %116 = arith.mulf %114, %115 : vector<2x8x8xf32>
    %cst_48 = arith.constant -1.000000e+30 : f32
    %117 = vector.shape_cast %18 : vector<1x8x8xi1> to vector<1x8x8xi1>
    %118 = vector.broadcast %117 : vector<1x8x8xi1> to vector<2x8x8xi1>
    %119 = vector.broadcast %cst_48 : f32 to vector<2x8x8xf32>
    %120 = arith.select %118, %116, %119 : vector<2x8x8xi1>, vector<2x8x8xf32>
    %cst_49 = arith.constant dense<0xFF800000> : vector<2x8xf32>
    %121 = vector.multi_reduction <maximumf>, %120, %cst_49 [2] : vector<2x8x8xf32> to vector<2x8xf32>
    %122 = vector.shape_cast %121 : vector<2x8xf32> to vector<2x8x1xf32>
    %123 = vector.broadcast %122 : vector<2x8x1xf32> to vector<2x8x8xf32>
    %124 = arith.subf %120, %123 : vector<2x8x8xf32>
    %125 = math.exp %124 : vector<2x8x8xf32>
    %cst_50 = arith.constant dense<0.000000e+00> : vector<2x8xf32>
    %126 = vector.multi_reduction <add>, %125, %cst_50 [2] : vector<2x8x8xf32> to vector<2x8xf32>
    %127 = vector.shape_cast %126 : vector<2x8xf32> to vector<2x8x1xf32>
    %128 = vector.broadcast %127 : vector<2x8x1xf32> to vector<2x8x8xf32>
    %129 = arith.divf %125, %128 : vector<2x8x8xf32>
    "tpu.trace_start"() <{level = 10 : i32, message = "bts,bsd->btd"}> : () -> ()
    %cst_51 = arith.constant dense<0.000000e+00> : vector<2x8x8xf32>
    %130 = tpu.matmul %129, %113, %cst_51 {dimension_numbers = #tpu.dot_dimension_numbers<[2], [1], [1], [2], [0, 0, 0, 1, 1, 2], [0], [0]>} : vector<2x8x8xf32>, vector<2x8x8xf32>, vector<2x8x8xf32> -> vector<2x8x8xf32>
    "tpu.trace_stop"() : () -> ()
    %131 = vector.shape_cast %130 : vector<2x8x8xf32> to vector<16x8xf32>
    %132 = vector.extract_strided_slice %61 {offsets = [16, 0], sizes = [8, 32], strides = [1, 1]} : vector<32x32xf32> to vector<8x32xf32>
    %cst_52 = arith.constant dense<0.000000e+00> : vector<16x32xf32>
    %133 = tpu.matmul %131, %132, %cst_52 {dimension_numbers = #tpu.dot_dimension_numbers<[1], [0], [0], [1], [0, 0, 1, 1], [], []>} : vector<16x8xf32>, vector<8x32xf32>, vector<16x32xf32> -> vector<16x32xf32>
    %134 = arith.addf %110, %133 : vector<16x32xf32>
    %135 = vector.extract_strided_slice %58 {offsets = [0, 0, 24], sizes = [2, 8, 8], strides = [1, 1, 1]} : vector<2x8x32xf32> to vector<2x8x8xf32>
    %136 = vector.extract_strided_slice %59 {offsets = [0, 0, 24], sizes = [2, 8, 8], strides = [1, 1, 1]} : vector<2x8x32xf32> to vector<2x8x8xf32>
    %137 = vector.extract_strided_slice %60 {offsets = [0, 0, 24], sizes = [2, 8, 8], strides = [1, 1, 1]} : vector<2x8x32xf32> to vector<2x8x8xf32>
    "tpu.trace_start"() <{level = 10 : i32, message = "btd,bsd->bts"}> : () -> ()
    %cst_53 = arith.constant dense<0.000000e+00> : vector<2x8x8xf32>
    %138 = tpu.matmul %135, %136, %cst_53 {dimension_numbers = #tpu.dot_dimension_numbers<[2], [2], [1], [1], [0, 0, 0, 1, 1, 1], [0], [0]>} : vector<2x8x8xf32>, vector<2x8x8xf32>, vector<2x8x8xf32> -> vector<2x8x8xf32>
    "tpu.trace_stop"() : () -> ()
    %cst_54 = arith.constant 0.176776692 : f32
    %139 = vector.broadcast %cst_54 : f32 to vector<2x8x8xf32>
    %140 = arith.mulf %138, %139 : vector<2x8x8xf32>
    %cst_55 = arith.constant -1.000000e+30 : f32
    %141 = vector.shape_cast %18 : vector<1x8x8xi1> to vector<1x8x8xi1>
    %142 = vector.broadcast %141 : vector<1x8x8xi1> to vector<2x8x8xi1>
    %143 = vector.broadcast %cst_55 : f32 to vector<2x8x8xf32>
    %144 = arith.select %142, %140, %143 : vector<2x8x8xi1>, vector<2x8x8xf32>
    %cst_56 = arith.constant dense<0xFF800000> : vector<2x8xf32>
    %145 = vector.multi_reduction <maximumf>, %144, %cst_56 [2] : vector<2x8x8xf32> to vector<2x8xf32>
    %146 = vector.shape_cast %145 : vector<2x8xf32> to vector<2x8x1xf32>
    %147 = vector.broadcast %146 : vector<2x8x1xf32> to vector<2x8x8xf32>
    %148 = arith.subf %144, %147 : vector<2x8x8xf32>
    %149 = math.exp %148 : vector<2x8x8xf32>
    %cst_57 = arith.constant dense<0.000000e+00> : vector<2x8xf32>
    %150 = vector.multi_reduction <add>, %149, %cst_57 [2] : vector<2x8x8xf32> to vector<2x8xf32>
    %151 = vector.shape_cast %150 : vector<2x8xf32> to vector<2x8x1xf32>
    %152 = vector.broadcast %151 : vector<2x8x1xf32> to vector<2x8x8xf32>
    %153 = arith.divf %149, %152 : vector<2x8x8xf32>
    "tpu.trace_start"() <{level = 10 : i32, message = "bts,bsd->btd"}> : () -> ()
    %cst_58 = arith.constant dense<0.000000e+00> : vector<2x8x8xf32>
    %154 = tpu.matmul %153, %137, %cst_58 {dimension_numbers = #tpu.dot_dimension_numbers<[2], [1], [1], [2], [0, 0, 0, 1, 1, 2], [0], [0]>} : vector<2x8x8xf32>, vector<2x8x8xf32>, vector<2x8x8xf32> -> vector<2x8x8xf32>
    "tpu.trace_stop"() : () -> ()
    %155 = vector.shape_cast %154 : vector<2x8x8xf32> to vector<16x8xf32>
    %156 = vector.extract_strided_slice %61 {offsets = [24, 0], sizes = [8, 32], strides = [1, 1]} : vector<32x32xf32> to vector<8x32xf32>
    %cst_59 = arith.constant dense<0.000000e+00> : vector<16x32xf32>
    %157 = tpu.matmul %155, %156, %cst_59 {dimension_numbers = #tpu.dot_dimension_numbers<[1], [0], [0], [1], [0, 0, 1, 1], [], []>} : vector<16x8xf32>, vector<8x32xf32>, vector<16x32xf32> -> vector<16x32xf32>
    %158 = arith.addf %134, %157 : vector<16x32xf32>
    %c0_60 = arith.constant 0 : index
    %c0_61 = arith.constant 0 : index
    %159 = vector.load %arg12[%c0_60, %c0_61] : memref<1x32xf32, #tpu.memory_space<vmem>>, vector<1x32xf32>
    %160 = vector.broadcast %159 : vector<1x32xf32> to vector<16x32xf32>
    %161 = arith.addf %158, %160 : vector<16x32xf32>
    %162 = arith.addf %42, %161 : vector<16x32xf32>
    %c0_62 = arith.constant 0 : index
    %c0_63 = arith.constant 0 : index
    %163 = vector.load %arg13[%c0_62, %c0_63] : memref<1x32xf32, #tpu.memory_space<vmem>>, vector<1x32xf32>
    %c0_64 = arith.constant 0 : index
    %c0_65 = arith.constant 0 : index
    %164 = vector.load %arg14[%c0_64, %c0_65] : memref<1x32xf32, #tpu.memory_space<vmem>>, vector<1x32xf32>
    %cst_66 = arith.constant dense<0.000000e+00> : vector<16xf32>
    %165 = vector.multi_reduction <add>, %162, %cst_66 [1] : vector<16x32xf32> to vector<16xf32>
    %166 = vector.shape_cast %165 : vector<16xf32> to vector<16x1xf32>
    %cst_67 = arith.constant 3.200000e+01 : f32
    %167 = vector.broadcast %cst_67 : f32 to vector<16x1xf32>
    %168 = arith.divf %166, %167 : vector<16x1xf32>
    %169 = vector.broadcast %168 : vector<16x1xf32> to vector<16x32xf32>
    %170 = arith.subf %162, %169 : vector<16x32xf32>
    %171 = arith.mulf %170, %170 : vector<16x32xf32>
    %cst_68 = arith.constant dense<0.000000e+00> : vector<16xf32>
    %172 = vector.multi_reduction <add>, %171, %cst_68 [1] : vector<16x32xf32> to vector<16xf32>
    %173 = vector.shape_cast %172 : vector<16xf32> to vector<16x1xf32>
    %cst_69 = arith.constant 3.200000e+01 : f32
    %174 = vector.broadcast %cst_69 : f32 to vector<16x1xf32>
    %175 = arith.divf %173, %174 : vector<16x1xf32>
    %176 = vector.broadcast %168 : vector<16x1xf32> to vector<16x32xf32>
    %177 = arith.subf %162, %176 : vector<16x32xf32>
    %cst_70 = arith.constant 9.99999974E-6 : f32
    %178 = vector.broadcast %cst_70 : f32 to vector<16x1xf32>
    %179 = arith.addf %175, %178 : vector<16x1xf32>
    %180 = math.rsqrt %179 : vector<16x1xf32>
    %181 = vector.broadcast %180 : vector<16x1xf32> to vector<16x32xf32>
    %182 = arith.mulf %177, %181 : vector<16x32xf32>
    %183 = vector.broadcast %163 : vector<1x32xf32> to vector<16x32xf32>
    %184 = arith.mulf %182, %183 : vector<16x32xf32>
    %185 = vector.broadcast %164 : vector<1x32xf32> to vector<16x32xf32>
    %186 = arith.addf %184, %185 : vector<16x32xf32>
    %c0_71 = arith.constant 0 : index
    %c0_72 = arith.constant 0 : index
    %187 = vector.load %arg15[%c0_71, %c0_72] : memref<32x128xf32, #tpu.memory_space<vmem>>, vector<32x128xf32>
    %cst_73 = arith.constant dense<0.000000e+00> : vector<16x128xf32>
    %188 = tpu.matmul %186, %187, %cst_73 {dimension_numbers = #tpu.dot_dimension_numbers<[1], [0], [0], [1], [0, 0, 1, 1], [], []>} : vector<16x32xf32>, vector<32x128xf32>, vector<16x128xf32> -> vector<16x128xf32>
    %c0_74 = arith.constant 0 : index
    %c0_75 = arith.constant 0 : index
    %189 = vector.load %arg16[%c0_74, %c0_75] : memref<1x128xf32, #tpu.memory_space<vmem>>, vector<1x128xf32>
    %190 = vector.broadcast %189 : vector<1x128xf32> to vector<16x128xf32>
    %191 = arith.addf %188, %190 : vector<16x128xf32>
    %cst_76 = arith.constant 0.000000e+00 : f32
    %192 = vector.broadcast %cst_76 : f32 to vector<16x128xf32>
    %193 = arith.maximumf %191, %192 : vector<16x128xf32>
    %c0_77 = arith.constant 0 : index
    %c0_78 = arith.constant 0 : index
    %194 = vector.load %arg17[%c0_77, %c0_78] : memref<128x32xf32, #tpu.memory_space<vmem>>, vector<128x32xf32>
    %cst_79 = arith.constant dense<0.000000e+00> : vector<16x32xf32>
    %195 = tpu.matmul %193, %194, %cst_79 {dimension_numbers = #tpu.dot_dimension_numbers<[1], [0], [0], [1], [0, 0, 1, 1], [], []>} : vector<16x128xf32>, vector<128x32xf32>, vector<16x32xf32> -> vector<16x32xf32>
    %c0_80 = arith.constant 0 : index
    %c0_81 = arith.constant 0 : index
    %196 = vector.load %arg18[%c0_80, %c0_81] : memref<1x32xf32, #tpu.memory_space<vmem>>, vector<1x32xf32>
    %197 = vector.broadcast %196 : vector<1x32xf32> to vector<16x32xf32>
    %198 = arith.addf %195, %197 : vector<16x32xf32>
    %199 = arith.addf %186, %198 : vector<16x32xf32>
    %c0_82 = arith.constant 0 : index
    %c0_83 = arith.constant 0 : index
    %200 = vector.load %arg19[%c0_82, %c0_83] : memref<1x32xf32, #tpu.memory_space<vmem>>, vector<1x32xf32>
    %c0_84 = arith.constant 0 : index
    %c0_85 = arith.constant 0 : index
    %201 = vector.load %arg20[%c0_84, %c0_85] : memref<1x32xf32, #tpu.memory_space<vmem>>, vector<1x32xf32>
    %cst_86 = arith.constant dense<0.000000e+00> : vector<16xf32>
    %202 = vector.multi_reduction <add>, %199, %cst_86 [1] : vector<16x32xf32> to vector<16xf32>
    %203 = vector.shape_cast %202 : vector<16xf32> to vector<16x1xf32>
    %cst_87 = arith.constant 3.200000e+01 : f32
    %204 = vector.broadcast %cst_87 : f32 to vector<16x1xf32>
    %205 = arith.divf %203, %204 : vector<16x1xf32>
    %206 = vector.broadcast %205 : vector<16x1xf32> to vector<16x32xf32>
    %207 = arith.subf %199, %206 : vector<16x32xf32>
    %208 = arith.mulf %207, %207 : vector<16x32xf32>
    %cst_88 = arith.constant dense<0.000000e+00> : vector<16xf32>
    %209 = vector.multi_reduction <add>, %208, %cst_88 [1] : vector<16x32xf32> to vector<16xf32>
    %210 = vector.shape_cast %209 : vector<16xf32> to vector<16x1xf32>
    %cst_89 = arith.constant 3.200000e+01 : f32
    %211 = vector.broadcast %cst_89 : f32 to vector<16x1xf32>
    %212 = arith.divf %210, %211 : vector<16x1xf32>
    %213 = vector.broadcast %205 : vector<16x1xf32> to vector<16x32xf32>
    %214 = arith.subf %199, %213 : vector<16x32xf32>
    %cst_90 = arith.constant 9.99999974E-6 : f32
    %215 = vector.broadcast %cst_90 : f32 to vector<16x1xf32>
    %216 = arith.addf %212, %215 : vector<16x1xf32>
    %217 = math.rsqrt %216 : vector<16x1xf32>
    %218 = vector.broadcast %217 : vector<16x1xf32> to vector<16x32xf32>
    %219 = arith.mulf %214, %218 : vector<16x32xf32>
    %220 = vector.broadcast %200 : vector<1x32xf32> to vector<16x32xf32>
    %221 = arith.mulf %219, %220 : vector<16x32xf32>
    %222 = vector.broadcast %201 : vector<1x32xf32> to vector<16x32xf32>
    %223 = arith.addf %221, %222 : vector<16x32xf32>
    %c0_91 = arith.constant 0 : index
    %c0_92 = arith.constant 0 : index
    %224 = vector.load %arg21[%c0_91, %c0_92] : memref<32x32xf32, #tpu.memory_space<vmem>>, vector<32x32xf32>
    %cst_93 = arith.constant dense<0.000000e+00> : vector<16x32xf32>
    %225 = tpu.matmul %223, %224, %cst_93 {dimension_numbers = #tpu.dot_dimension_numbers<[1], [0], [0], [1], [0, 0, 1, 1], [], []>} : vector<16x32xf32>, vector<32x32xf32>, vector<16x32xf32> -> vector<16x32xf32>
    %c0_94 = arith.constant 0 : index
    %c0_95 = arith.constant 0 : index
    %226 = vector.load %arg22[%c0_94, %c0_95] : memref<1x32xf32, #tpu.memory_space<vmem>>, vector<1x32xf32>
    %227 = vector.broadcast %226 : vector<1x32xf32> to vector<16x32xf32>
    %228 = arith.addf %225, %227 : vector<16x32xf32>
    %c0_96 = arith.constant 0 : index
    %c0_97 = arith.constant 0 : index
    %229 = vector.load %arg23[%c0_96, %c0_97] : memref<32x32xf32, #tpu.memory_space<vmem>>, vector<32x32xf32>
    %cst_98 = arith.constant dense<0.000000e+00> : vector<16x32xf32>
    %230 = tpu.matmul %223, %229, %cst_98 {dimension_numbers = #tpu.dot_dimension_numbers<[1], [0], [0], [1], [0, 0, 1, 1], [], []>} : vector<16x32xf32>, vector<32x32xf32>, vector<16x32xf32> -> vector<16x32xf32>
    %c0_99 = arith.constant 0 : index
    %c0_100 = arith.constant 0 : index
    %231 = vector.load %arg24[%c0_99, %c0_100] : memref<1x32xf32, #tpu.memory_space<vmem>>, vector<1x32xf32>
    %232 = vector.broadcast %231 : vector<1x32xf32> to vector<16x32xf32>
    %233 = arith.addf %230, %232 : vector<16x32xf32>
    %c0_101 = arith.constant 0 : index
    %c0_102 = arith.constant 0 : index
    %234 = vector.load %arg25[%c0_101, %c0_102] : memref<32x32xf32, #tpu.memory_space<vmem>>, vector<32x32xf32>
    %cst_103 = arith.constant dense<0.000000e+00> : vector<16x32xf32>
    %235 = tpu.matmul %223, %234, %cst_103 {dimension_numbers = #tpu.dot_dimension_numbers<[1], [0], [0], [1], [0, 0, 1, 1], [], []>} : vector<16x32xf32>, vector<32x32xf32>, vector<16x32xf32> -> vector<16x32xf32>
    %c0_104 = arith.constant 0 : index
    %c0_105 = arith.constant 0 : index
    %236 = vector.load %arg26[%c0_104, %c0_105] : memref<1x32xf32, #tpu.memory_space<vmem>>, vector<1x32xf32>
    %237 = vector.broadcast %236 : vector<1x32xf32> to vector<16x32xf32>
    %238 = arith.addf %235, %237 : vector<16x32xf32>
    %239 = vector.shape_cast %228 : vector<16x32xf32> to vector<2x8x32xf32>
    %240 = vector.shape_cast %233 : vector<16x32xf32> to vector<2x8x32xf32>
    %241 = vector.shape_cast %238 : vector<16x32xf32> to vector<2x8x32xf32>
    %c0_106 = arith.constant 0 : index
    %c0_107 = arith.constant 0 : index
    %242 = vector.load %arg27[%c0_106, %c0_107] : memref<32x32xf32, #tpu.memory_space<vmem>>, vector<32x32xf32>
    %cst_108 = arith.constant 0.000000e+00 : f32
    %243 = vector.broadcast %cst_108 : f32 to vector<16x32xf32>
    %244 = vector.extract_strided_slice %239 {offsets = [0, 0, 0], sizes = [2, 8, 8], strides = [1, 1, 1]} : vector<2x8x32xf32> to vector<2x8x8xf32>
    %245 = vector.extract_strided_slice %240 {offsets = [0, 0, 0], sizes = [2, 8, 8], strides = [1, 1, 1]} : vector<2x8x32xf32> to vector<2x8x8xf32>
    %246 = vector.extract_strided_slice %241 {offsets = [0, 0, 0], sizes = [2, 8, 8], strides = [1, 1, 1]} : vector<2x8x32xf32> to vector<2x8x8xf32>
    "tpu.trace_start"() <{level = 10 : i32, message = "btd,bsd->bts"}> : () -> ()
    %cst_109 = arith.constant dense<0.000000e+00> : vector<2x8x8xf32>
    %247 = tpu.matmul %244, %245, %cst_109 {dimension_numbers = #tpu.dot_dimension_numbers<[2], [2], [1], [1], [0, 0, 0, 1, 1, 1], [0], [0]>} : vector<2x8x8xf32>, vector<2x8x8xf32>, vector<2x8x8xf32> -> vector<2x8x8xf32>
    "tpu.trace_stop"() : () -> ()
    %cst_110 = arith.constant 0.176776692 : f32
    %248 = vector.broadcast %cst_110 : f32 to vector<2x8x8xf32>
    %249 = arith.mulf %247, %248 : vector<2x8x8xf32>
    %cst_111 = arith.constant -1.000000e+30 : f32
    %250 = vector.shape_cast %18 : vector<1x8x8xi1> to vector<1x8x8xi1>
    %251 = vector.broadcast %250 : vector<1x8x8xi1> to vector<2x8x8xi1>
    %252 = vector.broadcast %cst_111 : f32 to vector<2x8x8xf32>
    %253 = arith.select %251, %249, %252 : vector<2x8x8xi1>, vector<2x8x8xf32>
    %cst_112 = arith.constant dense<0xFF800000> : vector<2x8xf32>
    %254 = vector.multi_reduction <maximumf>, %253, %cst_112 [2] : vector<2x8x8xf32> to vector<2x8xf32>
    %255 = vector.shape_cast %254 : vector<2x8xf32> to vector<2x8x1xf32>
    %256 = vector.broadcast %255 : vector<2x8x1xf32> to vector<2x8x8xf32>
    %257 = arith.subf %253, %256 : vector<2x8x8xf32>
    %258 = math.exp %257 : vector<2x8x8xf32>
    %cst_113 = arith.constant dense<0.000000e+00> : vector<2x8xf32>
    %259 = vector.multi_reduction <add>, %258, %cst_113 [2] : vector<2x8x8xf32> to vector<2x8xf32>
    %260 = vector.shape_cast %259 : vector<2x8xf32> to vector<2x8x1xf32>
    %261 = vector.broadcast %260 : vector<2x8x1xf32> to vector<2x8x8xf32>
    %262 = arith.divf %258, %261 : vector<2x8x8xf32>
    "tpu.trace_start"() <{level = 10 : i32, message = "bts,bsd->btd"}> : () -> ()
    %cst_114 = arith.constant dense<0.000000e+00> : vector<2x8x8xf32>
    %263 = tpu.matmul %262, %246, %cst_114 {dimension_numbers = #tpu.dot_dimension_numbers<[2], [1], [1], [2], [0, 0, 0, 1, 1, 2], [0], [0]>} : vector<2x8x8xf32>, vector<2x8x8xf32>, vector<2x8x8xf32> -> vector<2x8x8xf32>
    "tpu.trace_stop"() : () -> ()
    %264 = vector.shape_cast %263 : vector<2x8x8xf32> to vector<16x8xf32>
    %265 = vector.extract_strided_slice %242 {offsets = [0, 0], sizes = [8, 32], strides = [1, 1]} : vector<32x32xf32> to vector<8x32xf32>
    %cst_115 = arith.constant dense<0.000000e+00> : vector<16x32xf32>
    %266 = tpu.matmul %264, %265, %cst_115 {dimension_numbers = #tpu.dot_dimension_numbers<[1], [0], [0], [1], [0, 0, 1, 1], [], []>} : vector<16x8xf32>, vector<8x32xf32>, vector<16x32xf32> -> vector<16x32xf32>
    %267 = arith.addf %243, %266 : vector<16x32xf32>
    %268 = vector.extract_strided_slice %239 {offsets = [0, 0, 8], sizes = [2, 8, 8], strides = [1, 1, 1]} : vector<2x8x32xf32> to vector<2x8x8xf32>
    %269 = vector.extract_strided_slice %240 {offsets = [0, 0, 8], sizes = [2, 8, 8], strides = [1, 1, 1]} : vector<2x8x32xf32> to vector<2x8x8xf32>
    %270 = vector.extract_strided_slice %241 {offsets = [0, 0, 8], sizes = [2, 8, 8], strides = [1, 1, 1]} : vector<2x8x32xf32> to vector<2x8x8xf32>
    "tpu.trace_start"() <{level = 10 : i32, message = "btd,bsd->bts"}> : () -> ()
    %cst_116 = arith.constant dense<0.000000e+00> : vector<2x8x8xf32>
    %271 = tpu.matmul %268, %269, %cst_116 {dimension_numbers = #tpu.dot_dimension_numbers<[2], [2], [1], [1], [0, 0, 0, 1, 1, 1], [0], [0]>} : vector<2x8x8xf32>, vector<2x8x8xf32>, vector<2x8x8xf32> -> vector<2x8x8xf32>
    "tpu.trace_stop"() : () -> ()
    %cst_117 = arith.constant 0.176776692 : f32
    %272 = vector.broadcast %cst_117 : f32 to vector<2x8x8xf32>
    %273 = arith.mulf %271, %272 : vector<2x8x8xf32>
    %cst_118 = arith.constant -1.000000e+30 : f32
    %274 = vector.shape_cast %18 : vector<1x8x8xi1> to vector<1x8x8xi1>
    %275 = vector.broadcast %274 : vector<1x8x8xi1> to vector<2x8x8xi1>
    %276 = vector.broadcast %cst_118 : f32 to vector<2x8x8xf32>
    %277 = arith.select %275, %273, %276 : vector<2x8x8xi1>, vector<2x8x8xf32>
    %cst_119 = arith.constant dense<0xFF800000> : vector<2x8xf32>
    %278 = vector.multi_reduction <maximumf>, %277, %cst_119 [2] : vector<2x8x8xf32> to vector<2x8xf32>
    %279 = vector.shape_cast %278 : vector<2x8xf32> to vector<2x8x1xf32>
    %280 = vector.broadcast %279 : vector<2x8x1xf32> to vector<2x8x8xf32>
    %281 = arith.subf %277, %280 : vector<2x8x8xf32>
    %282 = math.exp %281 : vector<2x8x8xf32>
    %cst_120 = arith.constant dense<0.000000e+00> : vector<2x8xf32>
    %283 = vector.multi_reduction <add>, %282, %cst_120 [2] : vector<2x8x8xf32> to vector<2x8xf32>
    %284 = vector.shape_cast %283 : vector<2x8xf32> to vector<2x8x1xf32>
    %285 = vector.broadcast %284 : vector<2x8x1xf32> to vector<2x8x8xf32>
    %286 = arith.divf %282, %285 : vector<2x8x8xf32>
    "tpu.trace_start"() <{level = 10 : i32, message = "bts,bsd->btd"}> : () -> ()
    %cst_121 = arith.constant dense<0.000000e+00> : vector<2x8x8xf32>
    %287 = tpu.matmul %286, %270, %cst_121 {dimension_numbers = #tpu.dot_dimension_numbers<[2], [1], [1], [2], [0, 0, 0, 1, 1, 2], [0], [0]>} : vector<2x8x8xf32>, vector<2x8x8xf32>, vector<2x8x8xf32> -> vector<2x8x8xf32>
    "tpu.trace_stop"() : () -> ()
    %288 = vector.shape_cast %287 : vector<2x8x8xf32> to vector<16x8xf32>
    %289 = vector.extract_strided_slice %242 {offsets = [8, 0], sizes = [8, 32], strides = [1, 1]} : vector<32x32xf32> to vector<8x32xf32>
    %cst_122 = arith.constant dense<0.000000e+00> : vector<16x32xf32>
    %290 = tpu.matmul %288, %289, %cst_122 {dimension_numbers = #tpu.dot_dimension_numbers<[1], [0], [0], [1], [0, 0, 1, 1], [], []>} : vector<16x8xf32>, vector<8x32xf32>, vector<16x32xf32> -> vector<16x32xf32>
    %291 = arith.addf %267, %290 : vector<16x32xf32>
    %292 = vector.extract_strided_slice %239 {offsets = [0, 0, 16], sizes = [2, 8, 8], strides = [1, 1, 1]} : vector<2x8x32xf32> to vector<2x8x8xf32>
    %293 = vector.extract_strided_slice %240 {offsets = [0, 0, 16], sizes = [2, 8, 8], strides = [1, 1, 1]} : vector<2x8x32xf32> to vector<2x8x8xf32>
    %294 = vector.extract_strided_slice %241 {offsets = [0, 0, 16], sizes = [2, 8, 8], strides = [1, 1, 1]} : vector<2x8x32xf32> to vector<2x8x8xf32>
    "tpu.trace_start"() <{level = 10 : i32, message = "btd,bsd->bts"}> : () -> ()
    %cst_123 = arith.constant dense<0.000000e+00> : vector<2x8x8xf32>
    %295 = tpu.matmul %292, %293, %cst_123 {dimension_numbers = #tpu.dot_dimension_numbers<[2], [2], [1], [1], [0, 0, 0, 1, 1, 1], [0], [0]>} : vector<2x8x8xf32>, vector<2x8x8xf32>, vector<2x8x8xf32> -> vector<2x8x8xf32>
    "tpu.trace_stop"() : () -> ()
    %cst_124 = arith.constant 0.176776692 : f32
    %296 = vector.broadcast %cst_124 : f32 to vector<2x8x8xf32>
    %297 = arith.mulf %295, %296 : vector<2x8x8xf32>
    %cst_125 = arith.constant -1.000000e+30 : f32
    %298 = vector.shape_cast %18 : vector<1x8x8xi1> to vector<1x8x8xi1>
    %299 = vector.broadcast %298 : vector<1x8x8xi1> to vector<2x8x8xi1>
    %300 = vector.broadcast %cst_125 : f32 to vector<2x8x8xf32>
    %301 = arith.select %299, %297, %300 : vector<2x8x8xi1>, vector<2x8x8xf32>
    %cst_126 = arith.constant dense<0xFF800000> : vector<2x8xf32>
    %302 = vector.multi_reduction <maximumf>, %301, %cst_126 [2] : vector<2x8x8xf32> to vector<2x8xf32>
    %303 = vector.shape_cast %302 : vector<2x8xf32> to vector<2x8x1xf32>
    %304 = vector.broadcast %303 : vector<2x8x1xf32> to vector<2x8x8xf32>
    %305 = arith.subf %301, %304 : vector<2x8x8xf32>
    %306 = math.exp %305 : vector<2x8x8xf32>
    %cst_127 = arith.constant dense<0.000000e+00> : vector<2x8xf32>
    %307 = vector.multi_reduction <add>, %306, %cst_127 [2] : vector<2x8x8xf32> to vector<2x8xf32>
    %308 = vector.shape_cast %307 : vector<2x8xf32> to vector<2x8x1xf32>
    %309 = vector.broadcast %308 : vector<2x8x1xf32> to vector<2x8x8xf32>
    %310 = arith.divf %306, %309 : vector<2x8x8xf32>
    "tpu.trace_start"() <{level = 10 : i32, message = "bts,bsd->btd"}> : () -> ()
    %cst_128 = arith.constant dense<0.000000e+00> : vector<2x8x8xf32>
    %311 = tpu.matmul %310, %294, %cst_128 {dimension_numbers = #tpu.dot_dimension_numbers<[2], [1], [1], [2], [0, 0, 0, 1, 1, 2], [0], [0]>} : vector<2x8x8xf32>, vector<2x8x8xf32>, vector<2x8x8xf32> -> vector<2x8x8xf32>
    "tpu.trace_stop"() : () -> ()
    %312 = vector.shape_cast %311 : vector<2x8x8xf32> to vector<16x8xf32>
    %313 = vector.extract_strided_slice %242 {offsets = [16, 0], sizes = [8, 32], strides = [1, 1]} : vector<32x32xf32> to vector<8x32xf32>
    %cst_129 = arith.constant dense<0.000000e+00> : vector<16x32xf32>
    %314 = tpu.matmul %312, %313, %cst_129 {dimension_numbers = #tpu.dot_dimension_numbers<[1], [0], [0], [1], [0, 0, 1, 1], [], []>} : vector<16x8xf32>, vector<8x32xf32>, vector<16x32xf32> -> vector<16x32xf32>
    %315 = arith.addf %291, %314 : vector<16x32xf32>
    %316 = vector.extract_strided_slice %239 {offsets = [0, 0, 24], sizes = [2, 8, 8], strides = [1, 1, 1]} : vector<2x8x32xf32> to vector<2x8x8xf32>
    %317 = vector.extract_strided_slice %240 {offsets = [0, 0, 24], sizes = [2, 8, 8], strides = [1, 1, 1]} : vector<2x8x32xf32> to vector<2x8x8xf32>
    %318 = vector.extract_strided_slice %241 {offsets = [0, 0, 24], sizes = [2, 8, 8], strides = [1, 1, 1]} : vector<2x8x32xf32> to vector<2x8x8xf32>
    "tpu.trace_start"() <{level = 10 : i32, message = "btd,bsd->bts"}> : () -> ()
    %cst_130 = arith.constant dense<0.000000e+00> : vector<2x8x8xf32>
    %319 = tpu.matmul %316, %317, %cst_130 {dimension_numbers = #tpu.dot_dimension_numbers<[2], [2], [1], [1], [0, 0, 0, 1, 1, 1], [0], [0]>} : vector<2x8x8xf32>, vector<2x8x8xf32>, vector<2x8x8xf32> -> vector<2x8x8xf32>
    "tpu.trace_stop"() : () -> ()
    %cst_131 = arith.constant 0.176776692 : f32
    %320 = vector.broadcast %cst_131 : f32 to vector<2x8x8xf32>
    %321 = arith.mulf %319, %320 : vector<2x8x8xf32>
    %cst_132 = arith.constant -1.000000e+30 : f32
    %322 = vector.shape_cast %18 : vector<1x8x8xi1> to vector<1x8x8xi1>
    %323 = vector.broadcast %322 : vector<1x8x8xi1> to vector<2x8x8xi1>
    %324 = vector.broadcast %cst_132 : f32 to vector<2x8x8xf32>
    %325 = arith.select %323, %321, %324 : vector<2x8x8xi1>, vector<2x8x8xf32>
    %cst_133 = arith.constant dense<0xFF800000> : vector<2x8xf32>
    %326 = vector.multi_reduction <maximumf>, %325, %cst_133 [2] : vector<2x8x8xf32> to vector<2x8xf32>
    %327 = vector.shape_cast %326 : vector<2x8xf32> to vector<2x8x1xf32>
    %328 = vector.broadcast %327 : vector<2x8x1xf32> to vector<2x8x8xf32>
    %329 = arith.subf %325, %328 : vector<2x8x8xf32>
    %330 = math.exp %329 : vector<2x8x8xf32>
    %cst_134 = arith.constant dense<0.000000e+00> : vector<2x8xf32>
    %331 = vector.multi_reduction <add>, %330, %cst_134 [2] : vector<2x8x8xf32> to vector<2x8xf32>
    %332 = vector.shape_cast %331 : vector<2x8xf32> to vector<2x8x1xf32>
    %333 = vector.broadcast %332 : vector<2x8x1xf32> to vector<2x8x8xf32>
    %334 = arith.divf %330, %333 : vector<2x8x8xf32>
    "tpu.trace_start"() <{level = 10 : i32, message = "bts,bsd->btd"}> : () -> ()
    %cst_135 = arith.constant dense<0.000000e+00> : vector<2x8x8xf32>
    %335 = tpu.matmul %334, %318, %cst_135 {dimension_numbers = #tpu.dot_dimension_numbers<[2], [1], [1], [2], [0, 0, 0, 1, 1, 2], [0], [0]>} : vector<2x8x8xf32>, vector<2x8x8xf32>, vector<2x8x8xf32> -> vector<2x8x8xf32>
    "tpu.trace_stop"() : () -> ()
    %336 = vector.shape_cast %335 : vector<2x8x8xf32> to vector<16x8xf32>
    %337 = vector.extract_strided_slice %242 {offsets = [24, 0], sizes = [8, 32], strides = [1, 1]} : vector<32x32xf32> to vector<8x32xf32>
    %cst_136 = arith.constant dense<0.000000e+00> : vector<16x32xf32>
    %338 = tpu.matmul %336, %337, %cst_136 {dimension_numbers = #tpu.dot_dimension_numbers<[1], [0], [0], [1], [0, 0, 1, 1], [], []>} : vector<16x8xf32>, vector<8x32xf32>, vector<16x32xf32> -> vector<16x32xf32>
    %339 = arith.addf %315, %338 : vector<16x32xf32>
    %c0_137 = arith.constant 0 : index
    %c0_138 = arith.constant 0 : index
    %340 = vector.load %arg28[%c0_137, %c0_138] : memref<1x32xf32, #tpu.memory_space<vmem>>, vector<1x32xf32>
    %341 = vector.broadcast %340 : vector<1x32xf32> to vector<16x32xf32>
    %342 = arith.addf %339, %341 : vector<16x32xf32>
    %343 = arith.addf %223, %342 : vector<16x32xf32>
    %c0_139 = arith.constant 0 : index
    %c0_140 = arith.constant 0 : index
    %344 = vector.load %arg29[%c0_139, %c0_140] : memref<1x32xf32, #tpu.memory_space<vmem>>, vector<1x32xf32>
    %c0_141 = arith.constant 0 : index
    %c0_142 = arith.constant 0 : index
    %345 = vector.load %arg30[%c0_141, %c0_142] : memref<1x32xf32, #tpu.memory_space<vmem>>, vector<1x32xf32>
    %cst_143 = arith.constant dense<0.000000e+00> : vector<16xf32>
    %346 = vector.multi_reduction <add>, %343, %cst_143 [1] : vector<16x32xf32> to vector<16xf32>
    %347 = vector.shape_cast %346 : vector<16xf32> to vector<16x1xf32>
    %cst_144 = arith.constant 3.200000e+01 : f32
    %348 = vector.broadcast %cst_144 : f32 to vector<16x1xf32>
    %349 = arith.divf %347, %348 : vector<16x1xf32>
    %350 = vector.broadcast %349 : vector<16x1xf32> to vector<16x32xf32>
    %351 = arith.subf %343, %350 : vector<16x32xf32>
    %352 = arith.mulf %351, %351 : vector<16x32xf32>
    %cst_145 = arith.constant dense<0.000000e+00> : vector<16xf32>
    %353 = vector.multi_reduction <add>, %352, %cst_145 [1] : vector<16x32xf32> to vector<16xf32>
    %354 = vector.shape_cast %353 : vector<16xf32> to vector<16x1xf32>
    %cst_146 = arith.constant 3.200000e+01 : f32
    %355 = vector.broadcast %cst_146 : f32 to vector<16x1xf32>
    %356 = arith.divf %354, %355 : vector<16x1xf32>
    %357 = vector.broadcast %349 : vector<16x1xf32> to vector<16x32xf32>
    %358 = arith.subf %343, %357 : vector<16x32xf32>
    %cst_147 = arith.constant 9.99999974E-6 : f32
    %359 = vector.broadcast %cst_147 : f32 to vector<16x1xf32>
    %360 = arith.addf %356, %359 : vector<16x1xf32>
    %361 = math.rsqrt %360 : vector<16x1xf32>
    %362 = vector.broadcast %361 : vector<16x1xf32> to vector<16x32xf32>
    %363 = arith.mulf %358, %362 : vector<16x32xf32>
    %364 = vector.broadcast %344 : vector<1x32xf32> to vector<16x32xf32>
    %365 = arith.mulf %363, %364 : vector<16x32xf32>
    %366 = vector.broadcast %345 : vector<1x32xf32> to vector<16x32xf32>
    %367 = arith.addf %365, %366 : vector<16x32xf32>
    %c0_148 = arith.constant 0 : index
    %c0_149 = arith.constant 0 : index
    %368 = vector.load %arg31[%c0_148, %c0_149] : memref<32x128xf32, #tpu.memory_space<vmem>>, vector<32x128xf32>
    %cst_150 = arith.constant dense<0.000000e+00> : vector<16x128xf32>
    %369 = tpu.matmul %367, %368, %cst_150 {dimension_numbers = #tpu.dot_dimension_numbers<[1], [0], [0], [1], [0, 0, 1, 1], [], []>} : vector<16x32xf32>, vector<32x128xf32>, vector<16x128xf32> -> vector<16x128xf32>
    %c0_151 = arith.constant 0 : index
    %c0_152 = arith.constant 0 : index
    %370 = vector.load %arg32[%c0_151, %c0_152] : memref<1x128xf32, #tpu.memory_space<vmem>>, vector<1x128xf32>
    %371 = vector.broadcast %370 : vector<1x128xf32> to vector<16x128xf32>
    %372 = arith.addf %369, %371 : vector<16x128xf32>
    %cst_153 = arith.constant 0.000000e+00 : f32
    %373 = vector.broadcast %cst_153 : f32 to vector<16x128xf32>
    %374 = arith.maximumf %372, %373 : vector<16x128xf32>
    %c0_154 = arith.constant 0 : index
    %c0_155 = arith.constant 0 : index
    %375 = vector.load %arg33[%c0_154, %c0_155] : memref<128x32xf32, #tpu.memory_space<vmem>>, vector<128x32xf32>
    %cst_156 = arith.constant dense<0.000000e+00> : vector<16x32xf32>
    %376 = tpu.matmul %374, %375, %cst_156 {dimension_numbers = #tpu.dot_dimension_numbers<[1], [0], [0], [1], [0, 0, 1, 1], [], []>} : vector<16x128xf32>, vector<128x32xf32>, vector<16x32xf32> -> vector<16x32xf32>
    %c0_157 = arith.constant 0 : index
    %c0_158 = arith.constant 0 : index
    %377 = vector.load %arg34[%c0_157, %c0_158] : memref<1x32xf32, #tpu.memory_space<vmem>>, vector<1x32xf32>
    %378 = vector.broadcast %377 : vector<1x32xf32> to vector<16x32xf32>
    %379 = arith.addf %376, %378 : vector<16x32xf32>
    %380 = arith.addf %367, %379 : vector<16x32xf32>
    %c0_159 = arith.constant 0 : index
    %c0_160 = arith.constant 0 : index
    %381 = vector.load %arg35[%c0_159, %c0_160] : memref<1x32xf32, #tpu.memory_space<vmem>>, vector<1x32xf32>
    %c0_161 = arith.constant 0 : index
    %c0_162 = arith.constant 0 : index
    %382 = vector.load %arg36[%c0_161, %c0_162] : memref<1x32xf32, #tpu.memory_space<vmem>>, vector<1x32xf32>
    %cst_163 = arith.constant dense<0.000000e+00> : vector<16xf32>
    %383 = vector.multi_reduction <add>, %380, %cst_163 [1] : vector<16x32xf32> to vector<16xf32>
    %384 = vector.shape_cast %383 : vector<16xf32> to vector<16x1xf32>
    %cst_164 = arith.constant 3.200000e+01 : f32
    %385 = vector.broadcast %cst_164 : f32 to vector<16x1xf32>
    %386 = arith.divf %384, %385 : vector<16x1xf32>
    %387 = vector.broadcast %386 : vector<16x1xf32> to vector<16x32xf32>
    %388 = arith.subf %380, %387 : vector<16x32xf32>
    %389 = arith.mulf %388, %388 : vector<16x32xf32>
    %cst_165 = arith.constant dense<0.000000e+00> : vector<16xf32>
    %390 = vector.multi_reduction <add>, %389, %cst_165 [1] : vector<16x32xf32> to vector<16xf32>
    %391 = vector.shape_cast %390 : vector<16xf32> to vector<16x1xf32>
    %cst_166 = arith.constant 3.200000e+01 : f32
    %392 = vector.broadcast %cst_166 : f32 to vector<16x1xf32>
    %393 = arith.divf %391, %392 : vector<16x1xf32>
    %394 = vector.broadcast %386 : vector<16x1xf32> to vector<16x32xf32>
    %395 = arith.subf %380, %394 : vector<16x32xf32>
    %cst_167 = arith.constant 9.99999974E-6 : f32
    %396 = vector.broadcast %cst_167 : f32 to vector<16x1xf32>
    %397 = arith.addf %393, %396 : vector<16x1xf32>
    %398 = math.rsqrt %397 : vector<16x1xf32>
    %399 = vector.broadcast %398 : vector<16x1xf32> to vector<16x32xf32>
    %400 = arith.mulf %395, %399 : vector<16x32xf32>
    %401 = vector.broadcast %381 : vector<1x32xf32> to vector<16x32xf32>
    %402 = arith.mulf %400, %401 : vector<16x32xf32>
    %403 = vector.broadcast %382 : vector<1x32xf32> to vector<16x32xf32>
    %404 = arith.addf %402, %403 : vector<16x32xf32>
    %c0_168 = arith.constant 0 : index
    %c0_169 = arith.constant 0 : index
    %405 = vector.load %arg37[%c0_168, %c0_169] : memref<32x32xf32, #tpu.memory_space<vmem>>, vector<32x32xf32>
    %cst_170 = arith.constant dense<0.000000e+00> : vector<16x32xf32>
    %406 = tpu.matmul %404, %405, %cst_170 {dimension_numbers = #tpu.dot_dimension_numbers<[1], [0], [0], [1], [0, 0, 1, 1], [], []>} : vector<16x32xf32>, vector<32x32xf32>, vector<16x32xf32> -> vector<16x32xf32>
    %c0_171 = arith.constant 0 : index
    %c0_172 = arith.constant 0 : index
    %407 = vector.load %arg38[%c0_171, %c0_172] : memref<1x32xf32, #tpu.memory_space<vmem>>, vector<1x32xf32>
    %408 = vector.broadcast %407 : vector<1x32xf32> to vector<16x32xf32>
    %409 = arith.addf %406, %408 : vector<16x32xf32>
    %c0_173 = arith.constant 0 : index
    %c0_174 = arith.constant 0 : index
    %410 = vector.load %arg39[%c0_173, %c0_174] : memref<32x32xf32, #tpu.memory_space<vmem>>, vector<32x32xf32>
    %cst_175 = arith.constant dense<0.000000e+00> : vector<16x32xf32>
    %411 = tpu.matmul %404, %410, %cst_175 {dimension_numbers = #tpu.dot_dimension_numbers<[1], [0], [0], [1], [0, 0, 1, 1], [], []>} : vector<16x32xf32>, vector<32x32xf32>, vector<16x32xf32> -> vector<16x32xf32>
    %c0_176 = arith.constant 0 : index
    %c0_177 = arith.constant 0 : index
    %412 = vector.load %arg40[%c0_176, %c0_177] : memref<1x32xf32, #tpu.memory_space<vmem>>, vector<1x32xf32>
    %413 = vector.broadcast %412 : vector<1x32xf32> to vector<16x32xf32>
    %414 = arith.addf %411, %413 : vector<16x32xf32>
    %c0_178 = arith.constant 0 : index
    %c0_179 = arith.constant 0 : index
    %415 = vector.load %arg41[%c0_178, %c0_179] : memref<32x32xf32, #tpu.memory_space<vmem>>, vector<32x32xf32>
    %cst_180 = arith.constant dense<0.000000e+00> : vector<16x32xf32>
    %416 = tpu.matmul %404, %415, %cst_180 {dimension_numbers = #tpu.dot_dimension_numbers<[1], [0], [0], [1], [0, 0, 1, 1], [], []>} : vector<16x32xf32>, vector<32x32xf32>, vector<16x32xf32> -> vector<16x32xf32>
    %c0_181 = arith.constant 0 : index
    %c0_182 = arith.constant 0 : index
    %417 = vector.load %arg42[%c0_181, %c0_182] : memref<1x32xf32, #tpu.memory_space<vmem>>, vector<1x32xf32>
    %418 = vector.broadcast %417 : vector<1x32xf32> to vector<16x32xf32>
    %419 = arith.addf %416, %418 : vector<16x32xf32>
    %420 = vector.shape_cast %409 : vector<16x32xf32> to vector<2x8x32xf32>
    %421 = vector.shape_cast %414 : vector<16x32xf32> to vector<2x8x32xf32>
    %422 = vector.shape_cast %419 : vector<16x32xf32> to vector<2x8x32xf32>
    %c0_183 = arith.constant 0 : index
    %c0_184 = arith.constant 0 : index
    %423 = vector.load %arg43[%c0_183, %c0_184] : memref<32x32xf32, #tpu.memory_space<vmem>>, vector<32x32xf32>
    %cst_185 = arith.constant 0.000000e+00 : f32
    %424 = vector.broadcast %cst_185 : f32 to vector<16x32xf32>
    %425 = vector.extract_strided_slice %420 {offsets = [0, 0, 0], sizes = [2, 8, 8], strides = [1, 1, 1]} : vector<2x8x32xf32> to vector<2x8x8xf32>
    %426 = vector.extract_strided_slice %421 {offsets = [0, 0, 0], sizes = [2, 8, 8], strides = [1, 1, 1]} : vector<2x8x32xf32> to vector<2x8x8xf32>
    %427 = vector.extract_strided_slice %422 {offsets = [0, 0, 0], sizes = [2, 8, 8], strides = [1, 1, 1]} : vector<2x8x32xf32> to vector<2x8x8xf32>
    "tpu.trace_start"() <{level = 10 : i32, message = "btd,bsd->bts"}> : () -> ()
    %cst_186 = arith.constant dense<0.000000e+00> : vector<2x8x8xf32>
    %428 = tpu.matmul %425, %426, %cst_186 {dimension_numbers = #tpu.dot_dimension_numbers<[2], [2], [1], [1], [0, 0, 0, 1, 1, 1], [0], [0]>} : vector<2x8x8xf32>, vector<2x8x8xf32>, vector<2x8x8xf32> -> vector<2x8x8xf32>
    "tpu.trace_stop"() : () -> ()
    %cst_187 = arith.constant 0.176776692 : f32
    %429 = vector.broadcast %cst_187 : f32 to vector<2x8x8xf32>
    %430 = arith.mulf %428, %429 : vector<2x8x8xf32>
    %cst_188 = arith.constant -1.000000e+30 : f32
    %431 = vector.shape_cast %18 : vector<1x8x8xi1> to vector<1x8x8xi1>
    %432 = vector.broadcast %431 : vector<1x8x8xi1> to vector<2x8x8xi1>
    %433 = vector.broadcast %cst_188 : f32 to vector<2x8x8xf32>
    %434 = arith.select %432, %430, %433 : vector<2x8x8xi1>, vector<2x8x8xf32>
    %cst_189 = arith.constant dense<0xFF800000> : vector<2x8xf32>
    %435 = vector.multi_reduction <maximumf>, %434, %cst_189 [2] : vector<2x8x8xf32> to vector<2x8xf32>
    %436 = vector.shape_cast %435 : vector<2x8xf32> to vector<2x8x1xf32>
    %437 = vector.broadcast %436 : vector<2x8x1xf32> to vector<2x8x8xf32>
    %438 = arith.subf %434, %437 : vector<2x8x8xf32>
    %439 = math.exp %438 : vector<2x8x8xf32>
    %cst_190 = arith.constant dense<0.000000e+00> : vector<2x8xf32>
    %440 = vector.multi_reduction <add>, %439, %cst_190 [2] : vector<2x8x8xf32> to vector<2x8xf32>
    %441 = vector.shape_cast %440 : vector<2x8xf32> to vector<2x8x1xf32>
    %442 = vector.broadcast %441 : vector<2x8x1xf32> to vector<2x8x8xf32>
    %443 = arith.divf %439, %442 : vector<2x8x8xf32>
    "tpu.trace_start"() <{level = 10 : i32, message = "bts,bsd->btd"}> : () -> ()
    %cst_191 = arith.constant dense<0.000000e+00> : vector<2x8x8xf32>
    %444 = tpu.matmul %443, %427, %cst_191 {dimension_numbers = #tpu.dot_dimension_numbers<[2], [1], [1], [2], [0, 0, 0, 1, 1, 2], [0], [0]>} : vector<2x8x8xf32>, vector<2x8x8xf32>, vector<2x8x8xf32> -> vector<2x8x8xf32>
    "tpu.trace_stop"() : () -> ()
    %445 = vector.shape_cast %444 : vector<2x8x8xf32> to vector<16x8xf32>
    %446 = vector.extract_strided_slice %423 {offsets = [0, 0], sizes = [8, 32], strides = [1, 1]} : vector<32x32xf32> to vector<8x32xf32>
    %cst_192 = arith.constant dense<0.000000e+00> : vector<16x32xf32>
    %447 = tpu.matmul %445, %446, %cst_192 {dimension_numbers = #tpu.dot_dimension_numbers<[1], [0], [0], [1], [0, 0, 1, 1], [], []>} : vector<16x8xf32>, vector<8x32xf32>, vector<16x32xf32> -> vector<16x32xf32>
    %448 = arith.addf %424, %447 : vector<16x32xf32>
    %449 = vector.extract_strided_slice %420 {offsets = [0, 0, 8], sizes = [2, 8, 8], strides = [1, 1, 1]} : vector<2x8x32xf32> to vector<2x8x8xf32>
    %450 = vector.extract_strided_slice %421 {offsets = [0, 0, 8], sizes = [2, 8, 8], strides = [1, 1, 1]} : vector<2x8x32xf32> to vector<2x8x8xf32>
    %451 = vector.extract_strided_slice %422 {offsets = [0, 0, 8], sizes = [2, 8, 8], strides = [1, 1, 1]} : vector<2x8x32xf32> to vector<2x8x8xf32>
    "tpu.trace_start"() <{level = 10 : i32, message = "btd,bsd->bts"}> : () -> ()
    %cst_193 = arith.constant dense<0.000000e+00> : vector<2x8x8xf32>
    %452 = tpu.matmul %449, %450, %cst_193 {dimension_numbers = #tpu.dot_dimension_numbers<[2], [2], [1], [1], [0, 0, 0, 1, 1, 1], [0], [0]>} : vector<2x8x8xf32>, vector<2x8x8xf32>, vector<2x8x8xf32> -> vector<2x8x8xf32>
    "tpu.trace_stop"() : () -> ()
    %cst_194 = arith.constant 0.176776692 : f32
    %453 = vector.broadcast %cst_194 : f32 to vector<2x8x8xf32>
    %454 = arith.mulf %452, %453 : vector<2x8x8xf32>
    %cst_195 = arith.constant -1.000000e+30 : f32
    %455 = vector.shape_cast %18 : vector<1x8x8xi1> to vector<1x8x8xi1>
    %456 = vector.broadcast %455 : vector<1x8x8xi1> to vector<2x8x8xi1>
    %457 = vector.broadcast %cst_195 : f32 to vector<2x8x8xf32>
    %458 = arith.select %456, %454, %457 : vector<2x8x8xi1>, vector<2x8x8xf32>
    %cst_196 = arith.constant dense<0xFF800000> : vector<2x8xf32>
    %459 = vector.multi_reduction <maximumf>, %458, %cst_196 [2] : vector<2x8x8xf32> to vector<2x8xf32>
    %460 = vector.shape_cast %459 : vector<2x8xf32> to vector<2x8x1xf32>
    %461 = vector.broadcast %460 : vector<2x8x1xf32> to vector<2x8x8xf32>
    %462 = arith.subf %458, %461 : vector<2x8x8xf32>
    %463 = math.exp %462 : vector<2x8x8xf32>
    %cst_197 = arith.constant dense<0.000000e+00> : vector<2x8xf32>
    %464 = vector.multi_reduction <add>, %463, %cst_197 [2] : vector<2x8x8xf32> to vector<2x8xf32>
    %465 = vector.shape_cast %464 : vector<2x8xf32> to vector<2x8x1xf32>
    %466 = vector.broadcast %465 : vector<2x8x1xf32> to vector<2x8x8xf32>
    %467 = arith.divf %463, %466 : vector<2x8x8xf32>
    "tpu.trace_start"() <{level = 10 : i32, message = "bts,bsd->btd"}> : () -> ()
    %cst_198 = arith.constant dense<0.000000e+00> : vector<2x8x8xf32>
    %468 = tpu.matmul %467, %451, %cst_198 {dimension_numbers = #tpu.dot_dimension_numbers<[2], [1], [1], [2], [0, 0, 0, 1, 1, 2], [0], [0]>} : vector<2x8x8xf32>, vector<2x8x8xf32>, vector<2x8x8xf32> -> vector<2x8x8xf32>
    "tpu.trace_stop"() : () -> ()
    %469 = vector.shape_cast %468 : vector<2x8x8xf32> to vector<16x8xf32>
    %470 = vector.extract_strided_slice %423 {offsets = [8, 0], sizes = [8, 32], strides = [1, 1]} : vector<32x32xf32> to vector<8x32xf32>
    %cst_199 = arith.constant dense<0.000000e+00> : vector<16x32xf32>
    %471 = tpu.matmul %469, %470, %cst_199 {dimension_numbers = #tpu.dot_dimension_numbers<[1], [0], [0], [1], [0, 0, 1, 1], [], []>} : vector<16x8xf32>, vector<8x32xf32>, vector<16x32xf32> -> vector<16x32xf32>
    %472 = arith.addf %448, %471 : vector<16x32xf32>
    %473 = vector.extract_strided_slice %420 {offsets = [0, 0, 16], sizes = [2, 8, 8], strides = [1, 1, 1]} : vector<2x8x32xf32> to vector<2x8x8xf32>
    %474 = vector.extract_strided_slice %421 {offsets = [0, 0, 16], sizes = [2, 8, 8], strides = [1, 1, 1]} : vector<2x8x32xf32> to vector<2x8x8xf32>
    %475 = vector.extract_strided_slice %422 {offsets = [0, 0, 16], sizes = [2, 8, 8], strides = [1, 1, 1]} : vector<2x8x32xf32> to vector<2x8x8xf32>
    "tpu.trace_start"() <{level = 10 : i32, message = "btd,bsd->bts"}> : () -> ()
    %cst_200 = arith.constant dense<0.000000e+00> : vector<2x8x8xf32>
    %476 = tpu.matmul %473, %474, %cst_200 {dimension_numbers = #tpu.dot_dimension_numbers<[2], [2], [1], [1], [0, 0, 0, 1, 1, 1], [0], [0]>} : vector<2x8x8xf32>, vector<2x8x8xf32>, vector<2x8x8xf32> -> vector<2x8x8xf32>
    "tpu.trace_stop"() : () -> ()
    %cst_201 = arith.constant 0.176776692 : f32
    %477 = vector.broadcast %cst_201 : f32 to vector<2x8x8xf32>
    %478 = arith.mulf %476, %477 : vector<2x8x8xf32>
    %cst_202 = arith.constant -1.000000e+30 : f32
    %479 = vector.shape_cast %18 : vector<1x8x8xi1> to vector<1x8x8xi1>
    %480 = vector.broadcast %479 : vector<1x8x8xi1> to vector<2x8x8xi1>
    %481 = vector.broadcast %cst_202 : f32 to vector<2x8x8xf32>
    %482 = arith.select %480, %478, %481 : vector<2x8x8xi1>, vector<2x8x8xf32>
    %cst_203 = arith.constant dense<0xFF800000> : vector<2x8xf32>
    %483 = vector.multi_reduction <maximumf>, %482, %cst_203 [2] : vector<2x8x8xf32> to vector<2x8xf32>
    %484 = vector.shape_cast %483 : vector<2x8xf32> to vector<2x8x1xf32>
    %485 = vector.broadcast %484 : vector<2x8x1xf32> to vector<2x8x8xf32>
    %486 = arith.subf %482, %485 : vector<2x8x8xf32>
    %487 = math.exp %486 : vector<2x8x8xf32>
    %cst_204 = arith.constant dense<0.000000e+00> : vector<2x8xf32>
    %488 = vector.multi_reduction <add>, %487, %cst_204 [2] : vector<2x8x8xf32> to vector<2x8xf32>
    %489 = vector.shape_cast %488 : vector<2x8xf32> to vector<2x8x1xf32>
    %490 = vector.broadcast %489 : vector<2x8x1xf32> to vector<2x8x8xf32>
    %491 = arith.divf %487, %490 : vector<2x8x8xf32>
    "tpu.trace_start"() <{level = 10 : i32, message = "bts,bsd->btd"}> : () -> ()
    %cst_205 = arith.constant dense<0.000000e+00> : vector<2x8x8xf32>
    %492 = tpu.matmul %491, %475, %cst_205 {dimension_numbers = #tpu.dot_dimension_numbers<[2], [1], [1], [2], [0, 0, 0, 1, 1, 2], [0], [0]>} : vector<2x8x8xf32>, vector<2x8x8xf32>, vector<2x8x8xf32> -> vector<2x8x8xf32>
    "tpu.trace_stop"() : () -> ()
    %493 = vector.shape_cast %492 : vector<2x8x8xf32> to vector<16x8xf32>
    %494 = vector.extract_strided_slice %423 {offsets = [16, 0], sizes = [8, 32], strides = [1, 1]} : vector<32x32xf32> to vector<8x32xf32>
    %cst_206 = arith.constant dense<0.000000e+00> : vector<16x32xf32>
    %495 = tpu.matmul %493, %494, %cst_206 {dimension_numbers = #tpu.dot_dimension_numbers<[1], [0], [0], [1], [0, 0, 1, 1], [], []>} : vector<16x8xf32>, vector<8x32xf32>, vector<16x32xf32> -> vector<16x32xf32>
    %496 = arith.addf %472, %495 : vector<16x32xf32>
    %497 = vector.extract_strided_slice %420 {offsets = [0, 0, 24], sizes = [2, 8, 8], strides = [1, 1, 1]} : vector<2x8x32xf32> to vector<2x8x8xf32>
    %498 = vector.extract_strided_slice %421 {offsets = [0, 0, 24], sizes = [2, 8, 8], strides = [1, 1, 1]} : vector<2x8x32xf32> to vector<2x8x8xf32>
    %499 = vector.extract_strided_slice %422 {offsets = [0, 0, 24], sizes = [2, 8, 8], strides = [1, 1, 1]} : vector<2x8x32xf32> to vector<2x8x8xf32>
    "tpu.trace_start"() <{level = 10 : i32, message = "btd,bsd->bts"}> : () -> ()
    %cst_207 = arith.constant dense<0.000000e+00> : vector<2x8x8xf32>
    %500 = tpu.matmul %497, %498, %cst_207 {dimension_numbers = #tpu.dot_dimension_numbers<[2], [2], [1], [1], [0, 0, 0, 1, 1, 1], [0], [0]>} : vector<2x8x8xf32>, vector<2x8x8xf32>, vector<2x8x8xf32> -> vector<2x8x8xf32>
    "tpu.trace_stop"() : () -> ()
    %cst_208 = arith.constant 0.176776692 : f32
    %501 = vector.broadcast %cst_208 : f32 to vector<2x8x8xf32>
    %502 = arith.mulf %500, %501 : vector<2x8x8xf32>
    %cst_209 = arith.constant -1.000000e+30 : f32
    %503 = vector.shape_cast %18 : vector<1x8x8xi1> to vector<1x8x8xi1>
    %504 = vector.broadcast %503 : vector<1x8x8xi1> to vector<2x8x8xi1>
    %505 = vector.broadcast %cst_209 : f32 to vector<2x8x8xf32>
    %506 = arith.select %504, %502, %505 : vector<2x8x8xi1>, vector<2x8x8xf32>
    %cst_210 = arith.constant dense<0xFF800000> : vector<2x8xf32>
    %507 = vector.multi_reduction <maximumf>, %506, %cst_210 [2] : vector<2x8x8xf32> to vector<2x8xf32>
    %508 = vector.shape_cast %507 : vector<2x8xf32> to vector<2x8x1xf32>
    %509 = vector.broadcast %508 : vector<2x8x1xf32> to vector<2x8x8xf32>
    %510 = arith.subf %506, %509 : vector<2x8x8xf32>
    %511 = math.exp %510 : vector<2x8x8xf32>
    %cst_211 = arith.constant dense<0.000000e+00> : vector<2x8xf32>
    %512 = vector.multi_reduction <add>, %511, %cst_211 [2] : vector<2x8x8xf32> to vector<2x8xf32>
    %513 = vector.shape_cast %512 : vector<2x8xf32> to vector<2x8x1xf32>
    %514 = vector.broadcast %513 : vector<2x8x1xf32> to vector<2x8x8xf32>
    %515 = arith.divf %511, %514 : vector<2x8x8xf32>
    "tpu.trace_start"() <{level = 10 : i32, message = "bts,bsd->btd"}> : () -> ()
    %cst_212 = arith.constant dense<0.000000e+00> : vector<2x8x8xf32>
    %516 = tpu.matmul %515, %499, %cst_212 {dimension_numbers = #tpu.dot_dimension_numbers<[2], [1], [1], [2], [0, 0, 0, 1, 1, 2], [0], [0]>} : vector<2x8x8xf32>, vector<2x8x8xf32>, vector<2x8x8xf32> -> vector<2x8x8xf32>
    "tpu.trace_stop"() : () -> ()
    %517 = vector.shape_cast %516 : vector<2x8x8xf32> to vector<16x8xf32>
    %518 = vector.extract_strided_slice %423 {offsets = [24, 0], sizes = [8, 32], strides = [1, 1]} : vector<32x32xf32> to vector<8x32xf32>
    %cst_213 = arith.constant dense<0.000000e+00> : vector<16x32xf32>
    %519 = tpu.matmul %517, %518, %cst_213 {dimension_numbers = #tpu.dot_dimension_numbers<[1], [0], [0], [1], [0, 0, 1, 1], [], []>} : vector<16x8xf32>, vector<8x32xf32>, vector<16x32xf32> -> vector<16x32xf32>
    %520 = arith.addf %496, %519 : vector<16x32xf32>
    %c0_214 = arith.constant 0 : index
    %c0_215 = arith.constant 0 : index
    %521 = vector.load %arg44[%c0_214, %c0_215] : memref<1x32xf32, #tpu.memory_space<vmem>>, vector<1x32xf32>
    %522 = vector.broadcast %521 : vector<1x32xf32> to vector<16x32xf32>
    %523 = arith.addf %520, %522 : vector<16x32xf32>
    %524 = arith.addf %404, %523 : vector<16x32xf32>
    %c0_216 = arith.constant 0 : index
    %c0_217 = arith.constant 0 : index
    %525 = vector.load %arg45[%c0_216, %c0_217] : memref<1x32xf32, #tpu.memory_space<vmem>>, vector<1x32xf32>
    %c0_218 = arith.constant 0 : index
    %c0_219 = arith.constant 0 : index
    %526 = vector.load %arg46[%c0_218, %c0_219] : memref<1x32xf32, #tpu.memory_space<vmem>>, vector<1x32xf32>
    %cst_220 = arith.constant dense<0.000000e+00> : vector<16xf32>
    %527 = vector.multi_reduction <add>, %524, %cst_220 [1] : vector<16x32xf32> to vector<16xf32>
    %528 = vector.shape_cast %527 : vector<16xf32> to vector<16x1xf32>
    %cst_221 = arith.constant 3.200000e+01 : f32
    %529 = vector.broadcast %cst_221 : f32 to vector<16x1xf32>
    %530 = arith.divf %528, %529 : vector<16x1xf32>
    %531 = vector.broadcast %530 : vector<16x1xf32> to vector<16x32xf32>
    %532 = arith.subf %524, %531 : vector<16x32xf32>
    %533 = arith.mulf %532, %532 : vector<16x32xf32>
    %cst_222 = arith.constant dense<0.000000e+00> : vector<16xf32>
    %534 = vector.multi_reduction <add>, %533, %cst_222 [1] : vector<16x32xf32> to vector<16xf32>
    %535 = vector.shape_cast %534 : vector<16xf32> to vector<16x1xf32>
    %cst_223 = arith.constant 3.200000e+01 : f32
    %536 = vector.broadcast %cst_223 : f32 to vector<16x1xf32>
    %537 = arith.divf %535, %536 : vector<16x1xf32>
    %538 = vector.broadcast %530 : vector<16x1xf32> to vector<16x32xf32>
    %539 = arith.subf %524, %538 : vector<16x32xf32>
    %cst_224 = arith.constant 9.99999974E-6 : f32
    %540 = vector.broadcast %cst_224 : f32 to vector<16x1xf32>
    %541 = arith.addf %537, %540 : vector<16x1xf32>
    %542 = math.rsqrt %541 : vector<16x1xf32>
    %543 = vector.broadcast %542 : vector<16x1xf32> to vector<16x32xf32>
    %544 = arith.mulf %539, %543 : vector<16x32xf32>
    %545 = vector.broadcast %525 : vector<1x32xf32> to vector<16x32xf32>
    %546 = arith.mulf %544, %545 : vector<16x32xf32>
    %547 = vector.broadcast %526 : vector<1x32xf32> to vector<16x32xf32>
    %548 = arith.addf %546, %547 : vector<16x32xf32>
    %c0_225 = arith.constant 0 : index
    %c0_226 = arith.constant 0 : index
    %549 = vector.load %arg47[%c0_225, %c0_226] : memref<32x128xf32, #tpu.memory_space<vmem>>, vector<32x128xf32>
    %cst_227 = arith.constant dense<0.000000e+00> : vector<16x128xf32>
    %550 = tpu.matmul %548, %549, %cst_227 {dimension_numbers = #tpu.dot_dimension_numbers<[1], [0], [0], [1], [0, 0, 1, 1], [], []>} : vector<16x32xf32>, vector<32x128xf32>, vector<16x128xf32> -> vector<16x128xf32>
    %c0_228 = arith.constant 0 : index
    %c0_229 = arith.constant 0 : index
    %551 = vector.load %arg48[%c0_228, %c0_229] : memref<1x128xf32, #tpu.memory_space<vmem>>, vector<1x128xf32>
    %552 = vector.broadcast %551 : vector<1x128xf32> to vector<16x128xf32>
    %553 = arith.addf %550, %552 : vector<16x128xf32>
    %cst_230 = arith.constant 0.000000e+00 : f32
    %554 = vector.broadcast %cst_230 : f32 to vector<16x128xf32>
    %555 = arith.maximumf %553, %554 : vector<16x128xf32>
    %c0_231 = arith.constant 0 : index
    %c0_232 = arith.constant 0 : index
    %556 = vector.load %arg49[%c0_231, %c0_232] : memref<128x32xf32, #tpu.memory_space<vmem>>, vector<128x32xf32>
    %cst_233 = arith.constant dense<0.000000e+00> : vector<16x32xf32>
    %557 = tpu.matmul %555, %556, %cst_233 {dimension_numbers = #tpu.dot_dimension_numbers<[1], [0], [0], [1], [0, 0, 1, 1], [], []>} : vector<16x128xf32>, vector<128x32xf32>, vector<16x32xf32> -> vector<16x32xf32>
    %c0_234 = arith.constant 0 : index
    %c0_235 = arith.constant 0 : index
    %558 = vector.load %arg50[%c0_234, %c0_235] : memref<1x32xf32, #tpu.memory_space<vmem>>, vector<1x32xf32>
    %559 = vector.broadcast %558 : vector<1x32xf32> to vector<16x32xf32>
    %560 = arith.addf %557, %559 : vector<16x32xf32>
    %561 = arith.addf %548, %560 : vector<16x32xf32>
    %c0_236 = arith.constant 0 : index
    %c0_237 = arith.constant 0 : index
    %562 = vector.load %arg51[%c0_236, %c0_237] : memref<1x32xf32, #tpu.memory_space<vmem>>, vector<1x32xf32>
    %c0_238 = arith.constant 0 : index
    %c0_239 = arith.constant 0 : index
    %563 = vector.load %arg52[%c0_238, %c0_239] : memref<1x32xf32, #tpu.memory_space<vmem>>, vector<1x32xf32>
    %cst_240 = arith.constant dense<0.000000e+00> : vector<16xf32>
    %564 = vector.multi_reduction <add>, %561, %cst_240 [1] : vector<16x32xf32> to vector<16xf32>
    %565 = vector.shape_cast %564 : vector<16xf32> to vector<16x1xf32>
    %cst_241 = arith.constant 3.200000e+01 : f32
    %566 = vector.broadcast %cst_241 : f32 to vector<16x1xf32>
    %567 = arith.divf %565, %566 : vector<16x1xf32>
    %568 = vector.broadcast %567 : vector<16x1xf32> to vector<16x32xf32>
    %569 = arith.subf %561, %568 : vector<16x32xf32>
    %570 = arith.mulf %569, %569 : vector<16x32xf32>
    %cst_242 = arith.constant dense<0.000000e+00> : vector<16xf32>
    %571 = vector.multi_reduction <add>, %570, %cst_242 [1] : vector<16x32xf32> to vector<16xf32>
    %572 = vector.shape_cast %571 : vector<16xf32> to vector<16x1xf32>
    %cst_243 = arith.constant 3.200000e+01 : f32
    %573 = vector.broadcast %cst_243 : f32 to vector<16x1xf32>
    %574 = arith.divf %572, %573 : vector<16x1xf32>
    %575 = vector.broadcast %567 : vector<16x1xf32> to vector<16x32xf32>
    %576 = arith.subf %561, %575 : vector<16x32xf32>
    %cst_244 = arith.constant 9.99999974E-6 : f32
    %577 = vector.broadcast %cst_244 : f32 to vector<16x1xf32>
    %578 = arith.addf %574, %577 : vector<16x1xf32>
    %579 = math.rsqrt %578 : vector<16x1xf32>
    %580 = vector.broadcast %579 : vector<16x1xf32> to vector<16x32xf32>
    %581 = arith.mulf %576, %580 : vector<16x32xf32>
    %582 = vector.broadcast %562 : vector<1x32xf32> to vector<16x32xf32>
    %583 = arith.mulf %581, %582 : vector<16x32xf32>
    %584 = vector.broadcast %563 : vector<1x32xf32> to vector<16x32xf32>
    %585 = arith.addf %583, %584 : vector<16x32xf32>
    %c0_245 = arith.constant 0 : index
    %c0_246 = arith.constant 0 : index
    %586 = vector.load %arg53[%c0_245, %c0_246] : memref<32x32xf32, #tpu.memory_space<vmem>>, vector<32x32xf32>
    %cst_247 = arith.constant dense<0.000000e+00> : vector<16x32xf32>
    %587 = tpu.matmul %585, %586, %cst_247 {dimension_numbers = #tpu.dot_dimension_numbers<[1], [0], [0], [1], [0, 0, 1, 1], [], []>} : vector<16x32xf32>, vector<32x32xf32>, vector<16x32xf32> -> vector<16x32xf32>
    %c0_248 = arith.constant 0 : index
    %c0_249 = arith.constant 0 : index
    %588 = vector.load %arg54[%c0_248, %c0_249] : memref<1x32xf32, #tpu.memory_space<vmem>>, vector<1x32xf32>
    %589 = vector.broadcast %588 : vector<1x32xf32> to vector<16x32xf32>
    %590 = arith.addf %587, %589 : vector<16x32xf32>
    %c0_250 = arith.constant 0 : index
    %c0_251 = arith.constant 0 : index
    %591 = vector.load %arg55[%c0_250, %c0_251] : memref<32x32xf32, #tpu.memory_space<vmem>>, vector<32x32xf32>
    %cst_252 = arith.constant dense<0.000000e+00> : vector<16x32xf32>
    %592 = tpu.matmul %585, %591, %cst_252 {dimension_numbers = #tpu.dot_dimension_numbers<[1], [0], [0], [1], [0, 0, 1, 1], [], []>} : vector<16x32xf32>, vector<32x32xf32>, vector<16x32xf32> -> vector<16x32xf32>
    %c0_253 = arith.constant 0 : index
    %c0_254 = arith.constant 0 : index
    %593 = vector.load %arg56[%c0_253, %c0_254] : memref<1x32xf32, #tpu.memory_space<vmem>>, vector<1x32xf32>
    %594 = vector.broadcast %593 : vector<1x32xf32> to vector<16x32xf32>
    %595 = arith.addf %592, %594 : vector<16x32xf32>
    %c0_255 = arith.constant 0 : index
    %c0_256 = arith.constant 0 : index
    %596 = vector.load %arg57[%c0_255, %c0_256] : memref<32x32xf32, #tpu.memory_space<vmem>>, vector<32x32xf32>
    %cst_257 = arith.constant dense<0.000000e+00> : vector<16x32xf32>
    %597 = tpu.matmul %585, %596, %cst_257 {dimension_numbers = #tpu.dot_dimension_numbers<[1], [0], [0], [1], [0, 0, 1, 1], [], []>} : vector<16x32xf32>, vector<32x32xf32>, vector<16x32xf32> -> vector<16x32xf32>
    %c0_258 = arith.constant 0 : index
    %c0_259 = arith.constant 0 : index
    %598 = vector.load %arg58[%c0_258, %c0_259] : memref<1x32xf32, #tpu.memory_space<vmem>>, vector<1x32xf32>
    %599 = vector.broadcast %598 : vector<1x32xf32> to vector<16x32xf32>
    %600 = arith.addf %597, %599 : vector<16x32xf32>
    %601 = vector.shape_cast %590 : vector<16x32xf32> to vector<2x8x32xf32>
    %602 = vector.shape_cast %595 : vector<16x32xf32> to vector<2x8x32xf32>
    %603 = vector.shape_cast %600 : vector<16x32xf32> to vector<2x8x32xf32>
    %c0_260 = arith.constant 0 : index
    %c0_261 = arith.constant 0 : index
    %604 = vector.load %arg59[%c0_260, %c0_261] : memref<32x32xf32, #tpu.memory_space<vmem>>, vector<32x32xf32>
    %cst_262 = arith.constant 0.000000e+00 : f32
    %605 = vector.broadcast %cst_262 : f32 to vector<16x32xf32>
    %606 = vector.extract_strided_slice %601 {offsets = [0, 0, 0], sizes = [2, 8, 8], strides = [1, 1, 1]} : vector<2x8x32xf32> to vector<2x8x8xf32>
    %607 = vector.extract_strided_slice %602 {offsets = [0, 0, 0], sizes = [2, 8, 8], strides = [1, 1, 1]} : vector<2x8x32xf32> to vector<2x8x8xf32>
    %608 = vector.extract_strided_slice %603 {offsets = [0, 0, 0], sizes = [2, 8, 8], strides = [1, 1, 1]} : vector<2x8x32xf32> to vector<2x8x8xf32>
    "tpu.trace_start"() <{level = 10 : i32, message = "btd,bsd->bts"}> : () -> ()
    %cst_263 = arith.constant dense<0.000000e+00> : vector<2x8x8xf32>
    %609 = tpu.matmul %606, %607, %cst_263 {dimension_numbers = #tpu.dot_dimension_numbers<[2], [2], [1], [1], [0, 0, 0, 1, 1, 1], [0], [0]>} : vector<2x8x8xf32>, vector<2x8x8xf32>, vector<2x8x8xf32> -> vector<2x8x8xf32>
    "tpu.trace_stop"() : () -> ()
    %cst_264 = arith.constant 0.176776692 : f32
    %610 = vector.broadcast %cst_264 : f32 to vector<2x8x8xf32>
    %611 = arith.mulf %609, %610 : vector<2x8x8xf32>
    %cst_265 = arith.constant -1.000000e+30 : f32
    %612 = vector.shape_cast %18 : vector<1x8x8xi1> to vector<1x8x8xi1>
    %613 = vector.broadcast %612 : vector<1x8x8xi1> to vector<2x8x8xi1>
    %614 = vector.broadcast %cst_265 : f32 to vector<2x8x8xf32>
    %615 = arith.select %613, %611, %614 : vector<2x8x8xi1>, vector<2x8x8xf32>
    %cst_266 = arith.constant dense<0xFF800000> : vector<2x8xf32>
    %616 = vector.multi_reduction <maximumf>, %615, %cst_266 [2] : vector<2x8x8xf32> to vector<2x8xf32>
    %617 = vector.shape_cast %616 : vector<2x8xf32> to vector<2x8x1xf32>
    %618 = vector.broadcast %617 : vector<2x8x1xf32> to vector<2x8x8xf32>
    %619 = arith.subf %615, %618 : vector<2x8x8xf32>
    %620 = math.exp %619 : vector<2x8x8xf32>
    %cst_267 = arith.constant dense<0.000000e+00> : vector<2x8xf32>
    %621 = vector.multi_reduction <add>, %620, %cst_267 [2] : vector<2x8x8xf32> to vector<2x8xf32>
    %622 = vector.shape_cast %621 : vector<2x8xf32> to vector<2x8x1xf32>
    %623 = vector.broadcast %622 : vector<2x8x1xf32> to vector<2x8x8xf32>
    %624 = arith.divf %620, %623 : vector<2x8x8xf32>
    "tpu.trace_start"() <{level = 10 : i32, message = "bts,bsd->btd"}> : () -> ()
    %cst_268 = arith.constant dense<0.000000e+00> : vector<2x8x8xf32>
    %625 = tpu.matmul %624, %608, %cst_268 {dimension_numbers = #tpu.dot_dimension_numbers<[2], [1], [1], [2], [0, 0, 0, 1, 1, 2], [0], [0]>} : vector<2x8x8xf32>, vector<2x8x8xf32>, vector<2x8x8xf32> -> vector<2x8x8xf32>
    "tpu.trace_stop"() : () -> ()
    %626 = vector.shape_cast %625 : vector<2x8x8xf32> to vector<16x8xf32>
    %627 = vector.extract_strided_slice %604 {offsets = [0, 0], sizes = [8, 32], strides = [1, 1]} : vector<32x32xf32> to vector<8x32xf32>
    %cst_269 = arith.constant dense<0.000000e+00> : vector<16x32xf32>
    %628 = tpu.matmul %626, %627, %cst_269 {dimension_numbers = #tpu.dot_dimension_numbers<[1], [0], [0], [1], [0, 0, 1, 1], [], []>} : vector<16x8xf32>, vector<8x32xf32>, vector<16x32xf32> -> vector<16x32xf32>
    %629 = arith.addf %605, %628 : vector<16x32xf32>
    %630 = vector.extract_strided_slice %601 {offsets = [0, 0, 8], sizes = [2, 8, 8], strides = [1, 1, 1]} : vector<2x8x32xf32> to vector<2x8x8xf32>
    %631 = vector.extract_strided_slice %602 {offsets = [0, 0, 8], sizes = [2, 8, 8], strides = [1, 1, 1]} : vector<2x8x32xf32> to vector<2x8x8xf32>
    %632 = vector.extract_strided_slice %603 {offsets = [0, 0, 8], sizes = [2, 8, 8], strides = [1, 1, 1]} : vector<2x8x32xf32> to vector<2x8x8xf32>
    "tpu.trace_start"() <{level = 10 : i32, message = "btd,bsd->bts"}> : () -> ()
    %cst_270 = arith.constant dense<0.000000e+00> : vector<2x8x8xf32>
    %633 = tpu.matmul %630, %631, %cst_270 {dimension_numbers = #tpu.dot_dimension_numbers<[2], [2], [1], [1], [0, 0, 0, 1, 1, 1], [0], [0]>} : vector<2x8x8xf32>, vector<2x8x8xf32>, vector<2x8x8xf32> -> vector<2x8x8xf32>
    "tpu.trace_stop"() : () -> ()
    %cst_271 = arith.constant 0.176776692 : f32
    %634 = vector.broadcast %cst_271 : f32 to vector<2x8x8xf32>
    %635 = arith.mulf %633, %634 : vector<2x8x8xf32>
    %cst_272 = arith.constant -1.000000e+30 : f32
    %636 = vector.shape_cast %18 : vector<1x8x8xi1> to vector<1x8x8xi1>
    %637 = vector.broadcast %636 : vector<1x8x8xi1> to vector<2x8x8xi1>
    %638 = vector.broadcast %cst_272 : f32 to vector<2x8x8xf32>
    %639 = arith.select %637, %635, %638 : vector<2x8x8xi1>, vector<2x8x8xf32>
    %cst_273 = arith.constant dense<0xFF800000> : vector<2x8xf32>
    %640 = vector.multi_reduction <maximumf>, %639, %cst_273 [2] : vector<2x8x8xf32> to vector<2x8xf32>
    %641 = vector.shape_cast %640 : vector<2x8xf32> to vector<2x8x1xf32>
    %642 = vector.broadcast %641 : vector<2x8x1xf32> to vector<2x8x8xf32>
    %643 = arith.subf %639, %642 : vector<2x8x8xf32>
    %644 = math.exp %643 : vector<2x8x8xf32>
    %cst_274 = arith.constant dense<0.000000e+00> : vector<2x8xf32>
    %645 = vector.multi_reduction <add>, %644, %cst_274 [2] : vector<2x8x8xf32> to vector<2x8xf32>
    %646 = vector.shape_cast %645 : vector<2x8xf32> to vector<2x8x1xf32>
    %647 = vector.broadcast %646 : vector<2x8x1xf32> to vector<2x8x8xf32>
    %648 = arith.divf %644, %647 : vector<2x8x8xf32>
    "tpu.trace_start"() <{level = 10 : i32, message = "bts,bsd->btd"}> : () -> ()
    %cst_275 = arith.constant dense<0.000000e+00> : vector<2x8x8xf32>
    %649 = tpu.matmul %648, %632, %cst_275 {dimension_numbers = #tpu.dot_dimension_numbers<[2], [1], [1], [2], [0, 0, 0, 1, 1, 2], [0], [0]>} : vector<2x8x8xf32>, vector<2x8x8xf32>, vector<2x8x8xf32> -> vector<2x8x8xf32>
    "tpu.trace_stop"() : () -> ()
    %650 = vector.shape_cast %649 : vector<2x8x8xf32> to vector<16x8xf32>
    %651 = vector.extract_strided_slice %604 {offsets = [8, 0], sizes = [8, 32], strides = [1, 1]} : vector<32x32xf32> to vector<8x32xf32>
    %cst_276 = arith.constant dense<0.000000e+00> : vector<16x32xf32>
    %652 = tpu.matmul %650, %651, %cst_276 {dimension_numbers = #tpu.dot_dimension_numbers<[1], [0], [0], [1], [0, 0, 1, 1], [], []>} : vector<16x8xf32>, vector<8x32xf32>, vector<16x32xf32> -> vector<16x32xf32>
    %653 = arith.addf %629, %652 : vector<16x32xf32>
    %654 = vector.extract_strided_slice %601 {offsets = [0, 0, 16], sizes = [2, 8, 8], strides = [1, 1, 1]} : vector<2x8x32xf32> to vector<2x8x8xf32>
    %655 = vector.extract_strided_slice %602 {offsets = [0, 0, 16], sizes = [2, 8, 8], strides = [1, 1, 1]} : vector<2x8x32xf32> to vector<2x8x8xf32>
    %656 = vector.extract_strided_slice %603 {offsets = [0, 0, 16], sizes = [2, 8, 8], strides = [1, 1, 1]} : vector<2x8x32xf32> to vector<2x8x8xf32>
    "tpu.trace_start"() <{level = 10 : i32, message = "btd,bsd->bts"}> : () -> ()
    %cst_277 = arith.constant dense<0.000000e+00> : vector<2x8x8xf32>
    %657 = tpu.matmul %654, %655, %cst_277 {dimension_numbers = #tpu.dot_dimension_numbers<[2], [2], [1], [1], [0, 0, 0, 1, 1, 1], [0], [0]>} : vector<2x8x8xf32>, vector<2x8x8xf32>, vector<2x8x8xf32> -> vector<2x8x8xf32>
    "tpu.trace_stop"() : () -> ()
    %cst_278 = arith.constant 0.176776692 : f32
    %658 = vector.broadcast %cst_278 : f32 to vector<2x8x8xf32>
    %659 = arith.mulf %657, %658 : vector<2x8x8xf32>
    %cst_279 = arith.constant -1.000000e+30 : f32
    %660 = vector.shape_cast %18 : vector<1x8x8xi1> to vector<1x8x8xi1>
    %661 = vector.broadcast %660 : vector<1x8x8xi1> to vector<2x8x8xi1>
    %662 = vector.broadcast %cst_279 : f32 to vector<2x8x8xf32>
    %663 = arith.select %661, %659, %662 : vector<2x8x8xi1>, vector<2x8x8xf32>
    %cst_280 = arith.constant dense<0xFF800000> : vector<2x8xf32>
    %664 = vector.multi_reduction <maximumf>, %663, %cst_280 [2] : vector<2x8x8xf32> to vector<2x8xf32>
    %665 = vector.shape_cast %664 : vector<2x8xf32> to vector<2x8x1xf32>
    %666 = vector.broadcast %665 : vector<2x8x1xf32> to vector<2x8x8xf32>
    %667 = arith.subf %663, %666 : vector<2x8x8xf32>
    %668 = math.exp %667 : vector<2x8x8xf32>
    %cst_281 = arith.constant dense<0.000000e+00> : vector<2x8xf32>
    %669 = vector.multi_reduction <add>, %668, %cst_281 [2] : vector<2x8x8xf32> to vector<2x8xf32>
    %670 = vector.shape_cast %669 : vector<2x8xf32> to vector<2x8x1xf32>
    %671 = vector.broadcast %670 : vector<2x8x1xf32> to vector<2x8x8xf32>
    %672 = arith.divf %668, %671 : vector<2x8x8xf32>
    "tpu.trace_start"() <{level = 10 : i32, message = "bts,bsd->btd"}> : () -> ()
    %cst_282 = arith.constant dense<0.000000e+00> : vector<2x8x8xf32>
    %673 = tpu.matmul %672, %656, %cst_282 {dimension_numbers = #tpu.dot_dimension_numbers<[2], [1], [1], [2], [0, 0, 0, 1, 1, 2], [0], [0]>} : vector<2x8x8xf32>, vector<2x8x8xf32>, vector<2x8x8xf32> -> vector<2x8x8xf32>
    "tpu.trace_stop"() : () -> ()
    %674 = vector.shape_cast %673 : vector<2x8x8xf32> to vector<16x8xf32>
    %675 = vector.extract_strided_slice %604 {offsets = [16, 0], sizes = [8, 32], strides = [1, 1]} : vector<32x32xf32> to vector<8x32xf32>
    %cst_283 = arith.constant dense<0.000000e+00> : vector<16x32xf32>
    %676 = tpu.matmul %674, %675, %cst_283 {dimension_numbers = #tpu.dot_dimension_numbers<[1], [0], [0], [1], [0, 0, 1, 1], [], []>} : vector<16x8xf32>, vector<8x32xf32>, vector<16x32xf32> -> vector<16x32xf32>
    %677 = arith.addf %653, %676 : vector<16x32xf32>
    %678 = vector.extract_strided_slice %601 {offsets = [0, 0, 24], sizes = [2, 8, 8], strides = [1, 1, 1]} : vector<2x8x32xf32> to vector<2x8x8xf32>
    %679 = vector.extract_strided_slice %602 {offsets = [0, 0, 24], sizes = [2, 8, 8], strides = [1, 1, 1]} : vector<2x8x32xf32> to vector<2x8x8xf32>
    %680 = vector.extract_strided_slice %603 {offsets = [0, 0, 24], sizes = [2, 8, 8], strides = [1, 1, 1]} : vector<2x8x32xf32> to vector<2x8x8xf32>
    "tpu.trace_start"() <{level = 10 : i32, message = "btd,bsd->bts"}> : () -> ()
    %cst_284 = arith.constant dense<0.000000e+00> : vector<2x8x8xf32>
    %681 = tpu.matmul %678, %679, %cst_284 {dimension_numbers = #tpu.dot_dimension_numbers<[2], [2], [1], [1], [0, 0, 0, 1, 1, 1], [0], [0]>} : vector<2x8x8xf32>, vector<2x8x8xf32>, vector<2x8x8xf32> -> vector<2x8x8xf32>
    "tpu.trace_stop"() : () -> ()
    %cst_285 = arith.constant 0.176776692 : f32
    %682 = vector.broadcast %cst_285 : f32 to vector<2x8x8xf32>
    %683 = arith.mulf %681, %682 : vector<2x8x8xf32>
    %cst_286 = arith.constant -1.000000e+30 : f32
    %684 = vector.shape_cast %18 : vector<1x8x8xi1> to vector<1x8x8xi1>
    %685 = vector.broadcast %684 : vector<1x8x8xi1> to vector<2x8x8xi1>
    %686 = vector.broadcast %cst_286 : f32 to vector<2x8x8xf32>
    %687 = arith.select %685, %683, %686 : vector<2x8x8xi1>, vector<2x8x8xf32>
    %cst_287 = arith.constant dense<0xFF800000> : vector<2x8xf32>
    %688 = vector.multi_reduction <maximumf>, %687, %cst_287 [2] : vector<2x8x8xf32> to vector<2x8xf32>
    %689 = vector.shape_cast %688 : vector<2x8xf32> to vector<2x8x1xf32>
    %690 = vector.broadcast %689 : vector<2x8x1xf32> to vector<2x8x8xf32>
    %691 = arith.subf %687, %690 : vector<2x8x8xf32>
    %692 = math.exp %691 : vector<2x8x8xf32>
    %cst_288 = arith.constant dense<0.000000e+00> : vector<2x8xf32>
    %693 = vector.multi_reduction <add>, %692, %cst_288 [2] : vector<2x8x8xf32> to vector<2x8xf32>
    %694 = vector.shape_cast %693 : vector<2x8xf32> to vector<2x8x1xf32>
    %695 = vector.broadcast %694 : vector<2x8x1xf32> to vector<2x8x8xf32>
    %696 = arith.divf %692, %695 : vector<2x8x8xf32>
    "tpu.trace_start"() <{level = 10 : i32, message = "bts,bsd->btd"}> : () -> ()
    %cst_289 = arith.constant dense<0.000000e+00> : vector<2x8x8xf32>
    %697 = tpu.matmul %696, %680, %cst_289 {dimension_numbers = #tpu.dot_dimension_numbers<[2], [1], [1], [2], [0, 0, 0, 1, 1, 2], [0], [0]>} : vector<2x8x8xf32>, vector<2x8x8xf32>, vector<2x8x8xf32> -> vector<2x8x8xf32>
    "tpu.trace_stop"() : () -> ()
    %698 = vector.shape_cast %697 : vector<2x8x8xf32> to vector<16x8xf32>
    %699 = vector.extract_strided_slice %604 {offsets = [24, 0], sizes = [8, 32], strides = [1, 1]} : vector<32x32xf32> to vector<8x32xf32>
    %cst_290 = arith.constant dense<0.000000e+00> : vector<16x32xf32>
    %700 = tpu.matmul %698, %699, %cst_290 {dimension_numbers = #tpu.dot_dimension_numbers<[1], [0], [0], [1], [0, 0, 1, 1], [], []>} : vector<16x8xf32>, vector<8x32xf32>, vector<16x32xf32> -> vector<16x32xf32>
    %701 = arith.addf %677, %700 : vector<16x32xf32>
    %c0_291 = arith.constant 0 : index
    %c0_292 = arith.constant 0 : index
    %702 = vector.load %arg60[%c0_291, %c0_292] : memref<1x32xf32, #tpu.memory_space<vmem>>, vector<1x32xf32>
    %703 = vector.broadcast %702 : vector<1x32xf32> to vector<16x32xf32>
    %704 = arith.addf %701, %703 : vector<16x32xf32>
    %705 = arith.addf %585, %704 : vector<16x32xf32>
    %c0_293 = arith.constant 0 : index
    %c0_294 = arith.constant 0 : index
    %706 = vector.load %arg61[%c0_293, %c0_294] : memref<1x32xf32, #tpu.memory_space<vmem>>, vector<1x32xf32>
    %c0_295 = arith.constant 0 : index
    %c0_296 = arith.constant 0 : index
    %707 = vector.load %arg62[%c0_295, %c0_296] : memref<1x32xf32, #tpu.memory_space<vmem>>, vector<1x32xf32>
    %cst_297 = arith.constant dense<0.000000e+00> : vector<16xf32>
    %708 = vector.multi_reduction <add>, %705, %cst_297 [1] : vector<16x32xf32> to vector<16xf32>
    %709 = vector.shape_cast %708 : vector<16xf32> to vector<16x1xf32>
    %cst_298 = arith.constant 3.200000e+01 : f32
    %710 = vector.broadcast %cst_298 : f32 to vector<16x1xf32>
    %711 = arith.divf %709, %710 : vector<16x1xf32>
    %712 = vector.broadcast %711 : vector<16x1xf32> to vector<16x32xf32>
    %713 = arith.subf %705, %712 : vector<16x32xf32>
    %714 = arith.mulf %713, %713 : vector<16x32xf32>
    %cst_299 = arith.constant dense<0.000000e+00> : vector<16xf32>
    %715 = vector.multi_reduction <add>, %714, %cst_299 [1] : vector<16x32xf32> to vector<16xf32>
    %716 = vector.shape_cast %715 : vector<16xf32> to vector<16x1xf32>
    %cst_300 = arith.constant 3.200000e+01 : f32
    %717 = vector.broadcast %cst_300 : f32 to vector<16x1xf32>
    %718 = arith.divf %716, %717 : vector<16x1xf32>
    %719 = vector.broadcast %711 : vector<16x1xf32> to vector<16x32xf32>
    %720 = arith.subf %705, %719 : vector<16x32xf32>
    %cst_301 = arith.constant 9.99999974E-6 : f32
    %721 = vector.broadcast %cst_301 : f32 to vector<16x1xf32>
    %722 = arith.addf %718, %721 : vector<16x1xf32>
    %723 = math.rsqrt %722 : vector<16x1xf32>
    %724 = vector.broadcast %723 : vector<16x1xf32> to vector<16x32xf32>
    %725 = arith.mulf %720, %724 : vector<16x32xf32>
    %726 = vector.broadcast %706 : vector<1x32xf32> to vector<16x32xf32>
    %727 = arith.mulf %725, %726 : vector<16x32xf32>
    %728 = vector.broadcast %707 : vector<1x32xf32> to vector<16x32xf32>
    %729 = arith.addf %727, %728 : vector<16x32xf32>
    %c0_302 = arith.constant 0 : index
    %c0_303 = arith.constant 0 : index
    %730 = vector.load %arg63[%c0_302, %c0_303] : memref<32x128xf32, #tpu.memory_space<vmem>>, vector<32x128xf32>
    %cst_304 = arith.constant dense<0.000000e+00> : vector<16x128xf32>
    %731 = tpu.matmul %729, %730, %cst_304 {dimension_numbers = #tpu.dot_dimension_numbers<[1], [0], [0], [1], [0, 0, 1, 1], [], []>} : vector<16x32xf32>, vector<32x128xf32>, vector<16x128xf32> -> vector<16x128xf32>
    %c0_305 = arith.constant 0 : index
    %c0_306 = arith.constant 0 : index
    %732 = vector.load %arg64[%c0_305, %c0_306] : memref<1x128xf32, #tpu.memory_space<vmem>>, vector<1x128xf32>
    %733 = vector.broadcast %732 : vector<1x128xf32> to vector<16x128xf32>
    %734 = arith.addf %731, %733 : vector<16x128xf32>
    %cst_307 = arith.constant 0.000000e+00 : f32
    %735 = vector.broadcast %cst_307 : f32 to vector<16x128xf32>
    %736 = arith.maximumf %734, %735 : vector<16x128xf32>
    %c0_308 = arith.constant 0 : index
    %c0_309 = arith.constant 0 : index
    %737 = vector.load %arg65[%c0_308, %c0_309] : memref<128x32xf32, #tpu.memory_space<vmem>>, vector<128x32xf32>
    %cst_310 = arith.constant dense<0.000000e+00> : vector<16x32xf32>
    %738 = tpu.matmul %736, %737, %cst_310 {dimension_numbers = #tpu.dot_dimension_numbers<[1], [0], [0], [1], [0, 0, 1, 1], [], []>} : vector<16x128xf32>, vector<128x32xf32>, vector<16x32xf32> -> vector<16x32xf32>
    %c0_311 = arith.constant 0 : index
    %c0_312 = arith.constant 0 : index
    %739 = vector.load %arg66[%c0_311, %c0_312] : memref<1x32xf32, #tpu.memory_space<vmem>>, vector<1x32xf32>
    %740 = vector.broadcast %739 : vector<1x32xf32> to vector<16x32xf32>
    %741 = arith.addf %738, %740 : vector<16x32xf32>
    %742 = arith.addf %729, %741 : vector<16x32xf32>
    %c0_313 = arith.constant 0 : index
    %c0_314 = arith.constant 0 : index
    %743 = vector.load %arg67[%c0_313, %c0_314] : memref<32x64xf32, #tpu.memory_space<vmem>>, vector<32x64xf32>
    %cst_315 = arith.constant dense<0.000000e+00> : vector<16x64xf32>
    %744 = tpu.matmul %742, %743, %cst_315 {dimension_numbers = #tpu.dot_dimension_numbers<[1], [0], [0], [1], [0, 0, 1, 1], [], []>} : vector<16x32xf32>, vector<32x64xf32>, vector<16x64xf32> -> vector<16x64xf32>
    %c0_316 = arith.constant 0 : index
    %c0_317 = arith.constant 0 : index
    %745 = vector.load %arg68[%c0_316, %c0_317] : memref<1x64xf32, #tpu.memory_space<vmem>>, vector<1x64xf32>
    %746 = vector.broadcast %745 : vector<1x64xf32> to vector<16x64xf32>
    %747 = arith.addf %744, %746 : vector<16x64xf32>
    %c0_318 = arith.constant 0 : index
    %c0_319 = arith.constant 0 : index
    %748 = vector.load %arg69[%c0_318, %c0_319] : memref<16x64xf32, #tpu.memory_space<vmem>>, vector<16x64xf32>
    tpu.vector_store %arg69[%c0_318, %c0_319], %747 {strides = array<i32>} : memref<16x64xf32, #tpu.memory_space<vmem>>, vector<16x64xf32>,
    return
  }
}

</mosaic_0001>

<bundles_post_ra>
// kernel: tpu_custom_call.1
= control target key start
LH: loop header
LB: loop body
LE: loop exit
PB: predicated region body
PF: predicated region fallthrough
CT: control target
= control target key end

     0   :  { %s6600_s6 = smov 1   ;;  %s6601_s10 = smov 2   ;;  %s8084_s0 = inlined_call_operand.smem [shape: u32[70], index: -1, kind: input, shape index: {}] }
   0x1   :  { %s6721_s5 = sld [smem:[%s8084_s0]]   ;;  %s6602_s14 = smov 3  }
   0x2   :  { %s6726_s9 = sld [smem:[%s8084_s0 + %s6600_s6]]   ;;  %s6603_s18 = smov 4  }
   0x3   :  { %s6731_s13 = sld [smem:[%s8084_s0 + %s6601_s10]]   ;;  %s6604_s22 = smov 5  }
   0x4   :  { %s6736_s17 = sld [smem:[%s8084_s0 + %s6602_s14]]   ;;  %s6605_s26 = smov 6  }
   0x5   :  { %s6741_s21 = sld [smem:[%s8084_s0 + %s6603_s18]]   ;;  %s6606_s30 = smov 7  }
   0x6   :  { %s6746_s25 = sld [smem:[%s8084_s0 + %s6604_s22]]   ;;  %s6607_s4 = smov 8  }
   0x7   :  { %8132 = sst [smem:[#allocation76_spill]] %s6721_s5  ;;  %s6608_s10 = smov 9  }
   0x8   :  { %8133 = sst [smem:[#allocation77_spill]] %s6726_s9  ;;  %s6609_s15 = smov 10  }
   0x9   :  { %8134 = sst [smem:[#allocation78_spill]] %s6731_s13  ;;  %s6610_s20 = smov 11  }
   0xa   :  { %8135 = sst [smem:[#allocation79_spill]] %s6736_s17  ;;  %s6612_s1 = smov 13  }
   0xb   :  { %8136 = sst [smem:[#allocation80_spill]] %s6741_s21  ;;  %s6613_s7 = smov 14  }
   0xc   :  { %8137 = sst [smem:[#allocation81_spill]] %s6746_s25  ;;  %s6615_s22 = smov 16  }
   0xd   :  { %s6751_s29 = sld [smem:[%s8084_s0 + %s6605_s26]]   ;;  %s6611_s26 = smov 12  }
   0xe   :  { %s6756_s3 = sld [smem:[%s8084_s0 + %s6606_s30]]   ;;  %s6616_s28 = smov 17  }
   0xf   :  { %s6761_s8 = sld [smem:[%s8084_s0 + %s6607_s4]]  }
  0x10   :  { %s6766_s14 = sld [smem:[%s8084_s0 + %s6608_s10]]  }
  0x11   :  { %s6771_s19 = sld [smem:[%s8084_s0 + %s6609_s15]]   ;;  %s6614_s15 = smov 15  }
  0x12   :  { %s6776_s24 = sld [smem:[%s8084_s0 + %s6610_s20]]  }
  0x13   :  { %s6781_s30 = sld [smem:[%s8084_s0 + %s6611_s26]]  }
  0x14   :  { %8138 = sst [smem:[#allocation82_spill]] %s6756_s3 }
  0x15   :  { %8139 = sst [smem:[#allocation83_spill]] %s6761_s8 }
  0x16   :  { %8140 = sst [smem:[#allocation84_spill]] %s6766_s14 }
  0x17   :  { %s6786_s6 = sld [smem:[%s8084_s0 + %s6612_s1]]  }
  0x18   :  { %8141 = sst [smem:[#allocation85_spill]] %s6776_s24 }
  0x19   :  { %8142 = sst [smem:[#allocation86_spill]] %s6781_s30 }
  0x1a   :  { %s6791_s12 = sld [smem:[%s8084_s0 + %s6613_s7]]   ;;  %s6617_s7 = smov 18  }
  0x1b   :  { %s6796_s20 = sld [smem:[%s8084_s0 + %s6614_s15]]   ;;  %s6618_s15 = smov 19  }
  0x1c   :  { %s6801_s27 = sld [smem:[%s8084_s0 + %s6615_s22]]   ;;  %s6619_s22 = smov 20  }
  0x1d   :  { %s6806_s4 = sld [smem:[%s8084_s0 + %s6616_s28]]   ;;  %s6620_s28 = smov 21  }
  0x1e   :  { %s6811_s24 = sld [smem:[%s8084_s0 + %s6617_s7]]   ;;  %s6621_s7 = smov 22  }
  0x1f   :  { %s6821_s14 = sld [smem:[%s8084_s0 + %s6619_s22]]   ;;  %s6623_s22 = smov 24  }
  0x20   :  { %8143 = sst [smem:[#allocation87_spill]] %s6791_s12 }
  0x21   :  { %8144 = sst [smem:[#allocation88_spill]] %s6796_s20 }
  0x22   :  { %s6816_s20 = sld [smem:[%s8084_s0 + %s6618_s15]]   ;;  %s6622_s15 = smov 23  }
  0x23   :  { %8145 = sst [smem:[#allocation89_spill]] %s6806_s4 }
  0x24   :  { %8146 = sst [smem:[#allocation90_spill]] %s6811_s24 }
  0x25   :  { %8147 = sst [smem:[#allocation91_spill]] %s6821_s14 }
  0x26   :  { %s6826_s4 = sld [smem:[%s8084_s0 + %s6620_s28]]   ;;  %s6624_s28 = smov 25  }
  0x27   :  { %s6831_s21 = sld [smem:[%s8084_s0 + %s6621_s7]]   ;;  %s6625_s7 = smov 26  }
  0x28   :  { %s6836_s17 = sld [smem:[%s8084_s0 + %s6622_s15]]   ;;  %s6626_s15 = smov 27  }
  0x29   :  { %s6841_s3 = sld [smem:[%s8084_s0 + %s6623_s22]]   ;;  %s6627_s22 = smov 28  }
  0x2a   :  { %s6851_s25 = sld [smem:[%s8084_s0 + %s6625_s7]]   ;;  %s6629_s7 = smov 30  }
  0x2b   :  { %s6861_s9 = sld [smem:[%s8084_s0 + %s6627_s22]]   ;;  %s6631_s22 = smov 32  }
  0x2c   :  { %8148 = sst [smem:[#allocation92_spill]] %s6826_s4 }
  0x2d   :  { %s6846_s4 = sld [smem:[%s8084_s0 + %s6624_s28]]   ;;  %s6628_s28 = smov 29  }
  0x2e   :  { %8149 = sst [smem:[#allocation93_spill]] %s6836_s17 }
  0x2f   :  { %8150 = sst [smem:[#allocation94_spill]] %s6841_s3 }
  0x30   :  { %s6856_s17 = sld [smem:[%s8084_s0 + %s6626_s15]]   ;;  %s6630_s15 = smov 31  }
  0x31   :  { %8153 = sst [smem:[#allocation97_spill]] %s6861_s9 }
  0x32   :  { %s6871_s5 = sld [smem:[%s8084_s0 + %s6629_s7]]   ;;  %s6633_s7 = smov 34  }
  0x33   :  { %8151 = sst [smem:[#allocation95_spill]] %s6846_s4 }
  0x34   :  { %s6866_s4 = sld [smem:[%s8084_s0 + %s6628_s28]]   ;;  %s6632_s28 = smov 33  }
  0x35   :  { %s6881_s9 = sld [smem:[%s8084_s0 + %s6631_s22]]   ;;  %s6635_s22 = smov 36  }
  0x36   :  { %8152 = sst [smem:[#allocation96_spill]] %s6856_s17 }
  0x37   :  { %s6876_s17 = sld [smem:[%s8084_s0 + %s6630_s15]]   ;;  %s6634_s15 = smov 35  }
  0x38   :  { %8155 = sst [smem:[#allocation99_spill]] %s6871_s5 }
  0x39   :  { %s6891_s5 = sld [smem:[%s8084_s0 + %s6633_s7]]   ;;  %s6637_s7 = smov 38  }
  0x3a   :  { %8154 = sst [smem:[#allocation98_spill]] %s6866_s4 }
  0x3b   :  { %s6886_s4 = sld [smem:[%s8084_s0 + %s6632_s28]]   ;;  %s6636_s28 = smov 37  }
  0x3c   :  { %s6901_s3 = sld [smem:[%s8084_s0 + %s6635_s22]]   ;;  %s6639_s22 = smov 40  }
  0x3d   :  { %8156 = sst [smem:[#allocation100_spill]] %s6876_s17 }
  0x3e   :  { %s6896_s17 = sld [smem:[%s8084_s0 + %s6634_s15]]   ;;  %s6638_s15 = smov 39  }
  0x3f   :  { %8158 = sst [smem:[#allocation102_spill]] %s6891_s5 }
  0x40   :  { %s6911_s5 = sld [smem:[%s8084_s0 + %s6637_s7]]   ;;  %s6641_s7 = smov 42  }
  0x41   :  { %8157 = sst [smem:[#allocation101_spill]] %s6886_s4 }
  0x42   :  { %8159 = sst [smem:[#allocation103_spill]] %s6901_s3 }
  0x43   :  { %s6906_s4 = sld [smem:[%s8084_s0 + %s6636_s28]]   ;;  %s6640_s28 = smov 41  }
  0x44   :  { %s6916_s14 = sld [smem:[%s8084_s0 + %s6638_s15]]   ;;  %s6642_s15 = smov 43  }
  0x45   :  { %s6921_s3 = sld [smem:[%s8084_s0 + %s6639_s22]]   ;;  %s6643_s22 = smov 44  }
  0x46   :  { %s6931_s24 = sld [smem:[%s8084_s0 + %s6641_s7]]   ;;  %s6645_s7 = smov 46  }
  0x47   :  { %s6951_s12 = sld [smem:[%s8084_s0 + %s6645_s7]]   ;;  %s6649_s7 = smov 50  }
  0x49   :  { %8160 = sst [smem:[#allocation104_spill]] %s6906_s4 }
  0x4a   :  { %8161 = sst [smem:[#allocation105_spill]] %s6916_s14 }
  0x4b   :  { %8162 = sst [smem:[#allocation106_spill]] %s6921_s3 }
  0x4c   :  { %s6926_s4 = sld [smem:[%s8084_s0 + %s6640_s28]]   ;;  %s6644_s28 = smov 45  }
  0x4d   :  { %s6936_s14 = sld [smem:[%s8084_s0 + %s6642_s15]]   ;;  %s6646_s15 = smov 47  }
  0x4e   :  { %s6941_s3 = sld [smem:[%s8084_s0 + %s6643_s22]]   ;;  %s6647_s22 = smov 48  }
  0x4f   :  { %8166 = sst [smem:[#allocation110_spill]] %s6951_s12 }
  0x50   :  { %s6971_s12 = sld [smem:[%s8084_s0 + %s6649_s7]]   ;;  %s6653_s7 = smov 54  }
  0x52   :  { %8163 = sst [smem:[#allocation107_spill]] %s6926_s4 }
  0x53   :  { %8164 = sst [smem:[#allocation108_spill]] %s6936_s14 }
  0x54   :  { %8165 = sst [smem:[#allocation109_spill]] %s6941_s3 }
  0x55   :  { %s6946_s4 = sld [smem:[%s8084_s0 + %s6644_s28]]   ;;  %s6648_s28 = smov 49  }
  0x56   :  { %s6956_s14 = sld [smem:[%s8084_s0 + %s6646_s15]]   ;;  %s6650_s15 = smov 51  }
  0x57   :  { %s6961_s3 = sld [smem:[%s8084_s0 + %s6647_s22]]   ;;  %s6651_s22 = smov 52  }
  0x58   :  { %s6966_s30 = sld [smem:[%s8084_s0 + %s6648_s28]]   ;;  %s6652_s28 = smov 53  }
  0x59   :  { %8169 = sst [smem:[#allocation113_spill]] %s6971_s12 }
  0x5a   :  { %s6981_s8 = sld [smem:[%s8084_s0 + %s6651_s22]]   ;;  %s6655_s22 = smov 56  }
  0x5b   :  { %s6991_s12 = sld [smem:[%s8084_s0 + %s6653_s7]]   ;;  %s6657_s7 = smov 58  }
  0x5c   :  { %8167 = sst [smem:[#allocation111_spill]] %s6956_s14 }
  0x5d   :  { %s6976_s14 = sld [smem:[%s8084_s0 + %s6650_s15]]   ;;  %s6654_s15 = smov 55  }
  0x5e   :  { %8168 = sst [smem:[#allocation112_spill]] %s6966_s30 }
  0x5f   :  { %s6986_s30 = sld [smem:[%s8084_s0 + %s6652_s28]]   ;;  %s6656_s28 = smov 57  }
  0x60   :  { %8170 = sst [smem:[#allocation114_spill]] %s6981_s8 }
  0x61   :  { %8172 = sst [smem:[#allocation116_spill]] %s6991_s12 }
  0x62   :  { %s6996_s13 = sld [smem:[%s8084_s0 + %s6654_s15]]   ;;  %s6658_s15 = smov 59  }
  0x63   :  { %s7001_s8 = sld [smem:[%s8084_s0 + %s6655_s22]]   ;;  %s6659_s22 = smov 60  }
  0x64   :  { %s7011_s12 = sld [smem:[%s8084_s0 + %s6657_s7]]   ;;  %s6661_s7 = smov 62  }
  0x65   :  { %8171 = sst [smem:[#allocation115_spill]] %s6986_s30 }
  0x66   :  { %s7006_s30 = sld [smem:[%s8084_s0 + %s6656_s28]]   ;;  %s6660_s28 = smov 61  }
  0x68   :  { %8173 = sst [smem:[#allocation117_spill]] %s6996_s13 }
  0x69   :  { %8174 = sst [smem:[#allocation118_spill]] %s7001_s8 }
  0x6a   :  { %8176 = sst [smem:[#allocation120_spill]] %s7011_s12 }
  0x6b   :  { %s7016_s13 = sld [smem:[%s8084_s0 + %s6658_s15]]   ;;  %s6662_s15 = smov 63  }
  0x6c   :  { %8175 = sst [smem:[#allocation119_spill]] %s7006_s30 }
  0x6d   :  { %s7021_s8 = sld [smem:[%s8084_s0 + %s6659_s22]]   ;;  %s6663_s22 = smov 64  }
  0x6e   :  { %s7026_s30 = sld [smem:[%s8084_s0 + %s6660_s28]]   ;;  %s6664_s28 = smov 65  }
  0x6f   :  { %s7031_s12 = sld [smem:[%s8084_s0 + %s6661_s7]]   ;;  %s6665_s7 = smov 66  }
  0x71   :  { %8177 = sst [smem:[#allocation121_spill]] %s7016_s13 }
  0x72   :  { %s7036_s13 = sld [smem:[%s8084_s0 + %s6662_s15]]   ;;  %s6666_s15 = smov 67  }
  0x73   :  { %8178 = sst [smem:[#allocation122_spill]] %s7021_s8 }
  0x74   :  { %8179 = sst [smem:[#allocation123_spill]] %s7026_s30 }
  0x75   :  { %8180 = sst [smem:[#allocation124_spill]] %s7031_s12 }
  0x76   :  { %s7041_s8 = sld [smem:[%s8084_s0 + %s6663_s22]]   ;;  %s6667_s22 = smov 68  }
  0x77   :  { %s7046_s30 = sld [smem:[%s8084_s0 + %s6664_s28]]   ;;  %s6668_s28 = smov 69  }
  0x78   :  { %8181 = sst [smem:[#allocation125_spill]] %s7036_s13 }
  0x79   :  { %s7051_s12 = sld [smem:[%s8084_s0 + %s6665_s7]]  }
  0x7a   :  { %s7056_s13 = sld [smem:[%s8084_s0 + %s6666_s15]]  }
  0x7c   :  { %8182 = sst [smem:[#allocation126_spill]] %s7041_s8 }
  0x7d   :  { %8183 = sst [smem:[#allocation127_spill]] %s7046_s30 }
  0x7e   :  { %s7061_s8 = sld [smem:[%s8084_s0 + %s6667_s22]]  }
  0x7f   :  { %s7066_s30 = sld [smem:[%s8084_s0 + %s6668_s28]]  }
  0x80   :  { %144 = vsyncpa [#allocation3], 0 }
  0x81   :  { %145 = vsyncpa [#allocation6], 0 }
  0x82   :  { %146 = vsyncpa [#allocation9], 0 }
  0x83   :  { %147 = vsyncpa [#allocation12], 0 }
  0x84   :  { %148 = vsyncpa [#allocation15], 0 }
  0x85   :  { %149 = vsyncpa [#allocation18], 0 }
  0x86   :  { %150 = vsyncpa [#allocation21], 0 }
  0x87   :  { %151 = vsyncpa [#allocation24], 0 }
  0x88   :  { %152 = vsyncpa [#allocation27], 0 }
  0x89   :  { %153 = vsyncpa [#allocation30], 0 }
  0x8a   :  { %154 = vsyncpa [#allocation33], 0 }
  0x8b   :  { %155 = vsyncpa [#allocation36], 0 }
  0x8c   :  { %156 = vsyncpa [#allocation39], 0 }
  0x8d   :  { %157 = vsyncpa [#allocation42], 0 }
  0x8e   :  { %158 = vsyncpa [#allocation45], 0 }
  0x8f   :  { %159 = vsyncpa [#allocation48], 0 }
  0x90   :  { %160 = vsyncpa [#allocation51], 0 }
  0x91   :  { %161 = vsyncpa [#allocation54], 0  ;;  %s191_s0 = sshll.u32 %s6751_s29, 4  ;;  %s192_s0 = int_to_ptr.hbm [resolvable:$true] %s191_s0 }
  0x92   :  { %162 = vsyncpa [#allocation4], 0  ;;  %s6669_s7 = smov [#allocation5]   ;;  %s217_s11 = sshll.u32 %s6771_s19, 4  ;;  %s218_s11 = int_to_ptr.hbm [resolvable:$true] %s217_s11 }
  0x93   :  { %s193_s10 = sshll.u32 %s6669_s7, 4  ;;  %s5698_s15 = sshra.s32 %s192_s0, 4  ;;  %s194_s10 = int_to_ptr.vmem [resolvable:$true] %s193_s10  ;;  %s5699_s15 = int_to_ptr.hbm [resolvable:$true] %s5698_s15 }
  0x94   :  { %s5700_s16 = scalar_lea.hbm %s5699_s15, 1  ;;  %s5702_s18 = scalar_lea.hbm %s6751_s29, 1 }
  0x95   :  { %p5701_p0 = scmp.ne.s32.totalorder %s5699_s15, %s5700_s16  ;;  %p5703_p1 = scmp.lt.s32.totalorder %s5699_s15, %s6751_s29 }
  0x96   :  { %p5704_p2 = scmp.lt.s32.totalorder %s5702_s18, %s5700_s16 }
  0x98   :  { %p5705_p3 = por %p5704_p2, %p5703_p1 }
  0x9a   :  { %p5706_p4 = pnand %p5705_p3, %p5701_p0 }
  0x9c   :  { %5709 = shalt.err (!%p5706_p4)
}
  0x9d   :  { %196 = dma.hbm_to_vmem [thread:$0]  %s192_s0, 16, %s194_s10, [#allocation6]  }
  0x9e   :  { %s6670_s22 = smov [#allocation8]   ;;  %s241_s26 = sshll.u32 %s6786_s6, 4  ;;  %s242_s26 = int_to_ptr.hbm [resolvable:$true] %s241_s26 }
  0x9f   :  { %s219_s23 = sshll.u32 %s6670_s22, 4  ;;  %s5722_s28 = sshra.s32 %s218_s11, 4  ;;  %s220_s23 = int_to_ptr.vmem [resolvable:$true] %s219_s23  ;;  %s5723_s28 = int_to_ptr.hbm [resolvable:$true] %s5722_s28 }
  0xa0   :  { %s5724_s1 = scalar_lea.hbm %s5723_s28, 1  ;;  %s5726_s2 = scalar_lea.hbm %s6771_s19, 1 }
  0xa1   :  { %p5725_p5 = scmp.ne.s32.totalorder %s5723_s28, %s5724_s1  ;;  %p5727_p6 = scmp.lt.s32.totalorder %s5723_s28, %s6771_s19 }
  0xa2   :  { %p5728_p7 = scmp.lt.s32.totalorder %s5726_s2, %s5724_s1 }
  0xa4   :  { %p5729_p8 = por %p5728_p7, %p5727_p6 }
  0xa6   :  { %p5730_p9 = pnand %p5729_p8, %p5725_p5 }
  0xa8   :  { %5733 = shalt.err (!%p5730_p9)
}
  0xa9   :  { %222 = dma.hbm_to_vmem [thread:$0]  %s218_s11, 16, %s220_s23, [#allocation9]  }
  0xaa   :  { %s265_s29 = sshll.u32 %s6801_s27, 4  ;;  %s6671_s0 = smov [#allocation11]   ;;  %s266_s29 = int_to_ptr.hbm [resolvable:$true] %s265_s29 }
  0xab   :  { %s243_s7 = sshll.u32 %s6671_s0, 4  ;;  %s5746_s10 = sshra.s32 %s242_s26, 4  ;;  %s244_s7 = int_to_ptr.vmem [resolvable:$true] %s243_s7  ;;  %s5747_s10 = int_to_ptr.hbm [resolvable:$true] %s5746_s10 }
  0xac   :  { %s5748_s15 = scalar_lea.hbm %s5747_s10, 1  ;;  %s5750_s16 = scalar_lea.hbm %s6786_s6, 1 }
  0xad   :  { %p5749_p10 = scmp.ne.s32.totalorder %s5747_s10, %s5748_s15  ;;  %p5751_p11 = scmp.lt.s32.totalorder %s5747_s10, %s6786_s6 }
  0xae   :  { %p5752_p12 = scmp.lt.s32.totalorder %s5750_s16, %s5748_s15 }
  0xb0   :  { %p5753_p13 = por %p5752_p12, %p5751_p11 }
  0xb2   :  { %p5754_p0 = pnand %p5753_p13, %p5749_p10 }
  0xb4   :  { %5757 = shalt.err (!%p5754_p0)
}
  0xb5   :  { %246 = dma.hbm_to_vmem [thread:$0]  %s242_s26, 16, %s244_s7, [#allocation12]  }
  0xb6   :  { %s6672_s19 = smov [#allocation14]   ;;  %s289_s18 = sshll.u32 %s6816_s20, 4  ;;  %s290_s18 = int_to_ptr.hbm [resolvable:$true] %s289_s18 }
  0xb7   :  { %s267_s11 = sshll.u32 %s6672_s19, 4  ;;  %s5770_s22 = sshra.s32 %s266_s29, 4  ;;  %s268_s11 = int_to_ptr.vmem [resolvable:$true] %s267_s11  ;;  %s5771_s22 = int_to_ptr.hbm [resolvable:$true] %s5770_s22 }
  0xb8   :  { %s5772_s23 = scalar_lea.hbm %s5771_s22, 1  ;;  %s5774_s28 = scalar_lea.hbm %s6801_s27, 1 }
  0xb9   :  { %p5773_p1 = scmp.ne.s32.totalorder %s5771_s22, %s5772_s23  ;;  %p5775_p2 = scmp.lt.s32.totalorder %s5771_s22, %s6801_s27 }
  0xba   :  { %p5776_p3 = scmp.lt.s32.totalorder %s5774_s28, %s5772_s23 }
  0xbc   :  { %p5777_p4 = por %p5776_p3, %p5775_p2 }
  0xbe   :  { %p5778_p5 = pnand %p5777_p4, %p5773_p1 }
  0xc0   :  { %5781 = shalt.err (!%p5778_p5)
}
  0xc1   :  { %270 = dma.hbm_to_vmem [thread:$0]  %s266_s29, 16, %s268_s11, [#allocation15]  }
  0xc2   :  { %s313_s6 = sshll.u32 %s6831_s21, 4  ;;  %s6673_s26 = smov [#allocation17]   ;;  %s314_s6 = int_to_ptr.hbm [resolvable:$true] %s313_s6 }
  0xc3   :  { %s291_s1 = sshll.u32 %s6673_s26, 4  ;;  %s5794_s2 = sshra.s32 %s290_s18, 4  ;;  %s292_s1 = int_to_ptr.vmem [resolvable:$true] %s291_s1  ;;  %s5795_s2 = int_to_ptr.hbm [resolvable:$true] %s5794_s2 }
  0xc4   :  { %s5796_s0 = scalar_lea.hbm %s5795_s2, 1  ;;  %s5798_s7 = scalar_lea.hbm %s6816_s20, 1 }
  0xc5   :  { %p5797_p6 = scmp.ne.s32.totalorder %s5795_s2, %s5796_s0  ;;  %p5799_p7 = scmp.lt.s32.totalorder %s5795_s2, %s6816_s20 }
  0xc6   :  { %p5800_p8 = scmp.lt.s32.totalorder %s5798_s7, %s5796_s0 }
  0xc8   :  { %p5801_p9 = por %p5800_p8, %p5799_p7 }
  0xca   :  { %p5802_p10 = pnand %p5801_p9, %p5797_p6 }
  0xcc   :  { %5805 = shalt.err (!%p5802_p10)
}
  0xcd   :  { %294 = dma.hbm_to_vmem [thread:$0]  %s290_s18, 16, %s292_s1, [#allocation18]  }
  0xce   :  { %s6674_s27 = smov [#allocation20]   ;;  %s339_s10 = sshll.u32 %s6851_s25, 4  ;;  %s340_s10 = int_to_ptr.hbm [resolvable:$true] %s339_s10 }
  0xcf   :  { %s315_s29 = sshll.u32 %s6674_s27, 4  ;;  %s5818_s15 = sshra.s32 %s314_s6, 4  ;;  %s316_s29 = int_to_ptr.vmem [resolvable:$true] %s315_s29  ;;  %s5819_s15 = int_to_ptr.hbm [resolvable:$true] %s5818_s15 }
  0xd0   :  { %s5820_s16 = scalar_lea.hbm %s5819_s15, 1  ;;  %s5822_s19 = scalar_lea.hbm %s6831_s21, 1 }
  0xd1   :  { %p5821_p11 = scmp.ne.s32.totalorder %s5819_s15, %s5820_s16  ;;  %p5823_p12 = scmp.lt.s32.totalorder %s5819_s15, %s6831_s21 }
  0xd2   :  { %p5824_p13 = scmp.lt.s32.totalorder %s5822_s19, %s5820_s16 }
  0xd4   :  { %p5825_p0 = por %p5824_p13, %p5823_p12 }
  0xd6   :  { %p5826_p1 = pnand %p5825_p0, %p5821_p11 }
  0xd8   :  { %5829 = shalt.err (!%p5826_p1)
}
  0xd9   :  { %318 = dma.hbm_to_vmem [thread:$0]  %s314_s6, 16, %s316_s29, [#allocation21]  }
  0xda   :  { %s369_s20 = sshll.u32 %s6881_s9, 4  ;;  %s6675_s11 = smov [#allocation23]   ;;  %s370_s20 = int_to_ptr.hbm [resolvable:$true] %s369_s20 }
  0xdb   :  { %s341_s18 = sshll.u32 %s6675_s11, 4  ;;  %s5842_s22 = sshra.s32 %s340_s10, 4  ;;  %s342_s18 = int_to_ptr.vmem [resolvable:$true] %s341_s18  ;;  %s5843_s22 = int_to_ptr.hbm [resolvable:$true] %s5842_s22 }
  0xdc   :  { %s5844_s23 = scalar_lea.hbm %s5843_s22, 1  ;;  %s5846_s28 = scalar_lea.hbm %s6851_s25, 1 }
  0xdd   :  { %p5845_p2 = scmp.ne.s32.totalorder %s5843_s22, %s5844_s23  ;;  %p5847_p3 = scmp.lt.s32.totalorder %s5843_s22, %s6851_s25 }
  0xde   :  { %p5848_p4 = scmp.lt.s32.totalorder %s5846_s28, %s5844_s23 }
  0xe0   :  { %p5849_p5 = por %p5848_p4, %p5847_p3 }
  0xe2   :  { %p5850_p6 = pnand %p5849_p5, %p5845_p2 }
  0xe4   :  { %5853 = shalt.err (!%p5850_p6)
}
  0xe5   :  { %344 = dma.hbm_to_vmem [thread:$0]  %s340_s10, 16, %s342_s18, [#allocation24]  }
  0xe6   :  { %s6676_s21 = smov [#allocation26]   ;;  %s393_s26 = sshll.u32 %s6896_s17, 4  ;;  %s394_s26 = int_to_ptr.hbm [resolvable:$true] %s393_s26 }
  0xe7   :  { %s371_s6 = sshll.u32 %s6676_s21, 4  ;;  %s5866_s1 = sshra.s32 %s370_s20, 4  ;;  %s372_s6 = int_to_ptr.vmem [resolvable:$true] %s371_s6  ;;  %s5867_s1 = int_to_ptr.hbm [resolvable:$true] %s5866_s1 }
  0xe8   :  { %s5868_s2 = scalar_lea.hbm %s5867_s1, 1  ;;  %s5870_s0 = scalar_lea.hbm %s6881_s9, 1 }
  0xe9   :  { %p5869_p7 = scmp.ne.s32.totalorder %s5867_s1, %s5868_s2  ;;  %p5871_p8 = scmp.lt.s32.totalorder %s5867_s1, %s6881_s9 }
  0xea   :  { %p5872_p9 = scmp.lt.s32.totalorder %s5870_s0, %s5868_s2 }
  0xec   :  { %p5873_p10 = por %p5872_p9, %p5871_p8 }
  0xee   :  { %p5874_p11 = pnand %p5873_p10, %p5869_p7 }
  0xf0   :  { %5877 = shalt.err (!%p5874_p11)
}
  0xf1   :  { %374 = dma.hbm_to_vmem [thread:$0]  %s370_s20, 16, %s372_s6, [#allocation27]  }
  0xf2   :  { %s417_s25 = sshll.u32 %s6911_s5, 4  ;;  %s6677_s7 = smov [#allocation29]   ;;  %s418_s25 = int_to_ptr.hbm [resolvable:$true] %s417_s25 }
  0xf3   :  { %s395_s27 = sshll.u32 %s6677_s7, 4  ;;  %s5890_s29 = sshra.s32 %s394_s26, 4  ;;  %s396_s27 = int_to_ptr.vmem [resolvable:$true] %s395_s27  ;;  %s5891_s29 = int_to_ptr.hbm [resolvable:$true] %s5890_s29 }
  0xf4   :  { %s5892_s10 = scalar_lea.hbm %s5891_s29, 1  ;;  %s5894_s15 = scalar_lea.hbm %s6896_s17, 1 }
  0xf5   :  { %p5893_p12 = scmp.ne.s32.totalorder %s5891_s29, %s5892_s10  ;;  %p5895_p13 = scmp.lt.s32.totalorder %s5891_s29, %s6896_s17 }
  0xf6   :  { %p5896_p0 = scmp.lt.s32.totalorder %s5894_s15, %s5892_s10 }
  0xf8   :  { %p5897_p1 = por %p5896_p0, %p5895_p13 }
  0xfa   :  { %p5898_p2 = pnand %p5897_p1, %p5893_p12 }
  0xfc   :  { %5901 = shalt.err (!%p5898_p2)
}
  0xfd   :  { %398 = dma.hbm_to_vmem [thread:$0]  %s394_s26, 16, %s396_s27, [#allocation30]  }
  0xfe   :  { %s6678_s9 = smov [#allocation32]   ;;  %s443_s19 = sshll.u32 %s6931_s24, 4  ;;  %s444_s19 = int_to_ptr.hbm [resolvable:$true] %s443_s19 }
  0xff   :  { %s419_s16 = sshll.u32 %s6678_s9, 4  ;;  %s5914_s20 = sshra.s32 %s418_s25, 4  ;;  %s420_s16 = int_to_ptr.vmem [resolvable:$true] %s419_s16  ;;  %s5915_s20 = int_to_ptr.hbm [resolvable:$true] %s5914_s20 }
 0x100   :  { %s5916_s11 = scalar_lea.hbm %s5915_s20, 1  ;;  %s5918_s18 = scalar_lea.hbm %s6911_s5, 1 }
 0x101   :  { %p5917_p3 = scmp.ne.s32.totalorder %s5915_s20, %s5916_s11  ;;  %p5919_p4 = scmp.lt.s32.totalorder %s5915_s20, %s6911_s5 }
 0x102   :  { %p5920_p5 = scmp.lt.s32.totalorder %s5918_s18, %s5916_s11 }
 0x104   :  { %p5921_p6 = por %p5920_p5, %p5919_p4 }
 0x106   :  { %p5922_p7 = pnand %p5921_p6, %p5917_p3 }
 0x108   :  { %5925 = shalt.err (!%p5922_p7)
}
 0x109   :  { %422 = dma.hbm_to_vmem [thread:$0]  %s418_s25, 16, %s420_s16, [#allocation33]  }
 0x10a   :  { %s467_s17 = sshll.u32 %s6946_s4, 4  ;;  %s6679_s22 = smov [#allocation35]   ;;  %s468_s17 = int_to_ptr.hbm [resolvable:$true] %s467_s17 }
 0x10b   :  { %s445_s23 = sshll.u32 %s6679_s22, 4  ;;  %s5938_s28 = sshra.s32 %s444_s19, 4  ;;  %s446_s23 = int_to_ptr.vmem [resolvable:$true] %s445_s23  ;;  %s5939_s28 = int_to_ptr.hbm [resolvable:$true] %s5938_s28 }
 0x10c   :  { %s5940_s21 = scalar_lea.hbm %s5939_s28, 1  ;;  %s5942_s6 = scalar_lea.hbm %s6931_s24, 1 }
 0x10d   :  { %p5941_p8 = scmp.ne.s32.totalorder %s5939_s28, %s5940_s21  ;;  %p5943_p9 = scmp.lt.s32.totalorder %s5939_s28, %s6931_s24 }
 0x10e   :  { %p5944_p10 = scmp.lt.s32.totalorder %s5942_s6, %s5940_s21 }
 0x110   :  { %p5945_p11 = por %p5944_p10, %p5943_p9 }
 0x112   :  { %p5946_p12 = pnand %p5945_p11, %p5941_p8 }
 0x114   :  { %5949 = shalt.err (!%p5946_p12)
}
 0x115   :  { %448 = dma.hbm_to_vmem [thread:$0]  %s444_s19, 16, %s446_s23, [#allocation36]  }
 0x116   :  { %s6680_s5 = smov [#allocation38]   ;;  %s491_s1 = sshll.u32 %s6961_s3, 4  ;;  %s492_s1 = int_to_ptr.hbm [resolvable:$true] %s491_s1 }
 0x117   :  { %s469_s26 = sshll.u32 %s6680_s5, 4  ;;  %s5962_s2 = sshra.s32 %s468_s17, 4  ;;  %s470_s26 = int_to_ptr.vmem [resolvable:$true] %s469_s26  ;;  %s5963_s2 = int_to_ptr.hbm [resolvable:$true] %s5962_s2 }
 0x118   :  { %s5964_s0 = scalar_lea.hbm %s5963_s2, 1  ;;  %s5966_s25 = scalar_lea.hbm %s6946_s4, 1 }
 0x119   :  { %p5965_p13 = scmp.ne.s32.totalorder %s5963_s2, %s5964_s0  ;;  %p5967_p0 = scmp.lt.s32.totalorder %s5963_s2, %s6946_s4 }
 0x11a   :  { %p5968_p1 = scmp.lt.s32.totalorder %s5966_s25, %s5964_s0 }
 0x11c   :  { %p5969_p2 = por %p5968_p1, %p5967_p0 }
 0x11e   :  { %p5970_p3 = pnand %p5969_p2, %p5965_p13 }
 0x120   :  { %5973 = shalt.err (!%p5970_p3)
}
 0x121   :  { %472 = dma.hbm_to_vmem [thread:$0]  %s468_s17, 16, %s470_s26, [#allocation39]  }
 0x122   :  { %s515_s24 = sshll.u32 %s6976_s14, 4  ;;  %s6681_s7 = smov [#allocation41]   ;;  %s516_s24 = int_to_ptr.hbm [resolvable:$true] %s515_s24 }
 0x123   :  { %s493_s27 = sshll.u32 %s6681_s7, 4  ;;  %s5986_s29 = sshra.s32 %s492_s1, 4  ;;  %s494_s27 = int_to_ptr.vmem [resolvable:$true] %s493_s27  ;;  %s5987_s29 = int_to_ptr.hbm [resolvable:$true] %s5986_s29 }
 0x124   :  { %s5988_s10 = scalar_lea.hbm %s5987_s29, 1  ;;  %s5990_s15 = scalar_lea.hbm %s6961_s3, 1 }
 0x125   :  { %p5989_p4 = scmp.ne.s32.totalorder %s5987_s29, %s5988_s10  ;;  %p5991_p5 = scmp.lt.s32.totalorder %s5987_s29, %s6961_s3 }
 0x126   :  { %p5992_p6 = scmp.lt.s32.totalorder %s5990_s15, %s5988_s10 }
 0x128   :  { %p5993_p7 = por %p5992_p6, %p5991_p5 }
 0x12a   :  { %p5994_p8 = pnand %p5993_p7, %p5989_p4 }
 0x12c   :  { %5997 = shalt.err (!%p5994_p8)
}
 0x12d   :  { %496 = dma.hbm_to_vmem [thread:$0]  %s492_s1, 16, %s494_s27, [#allocation42]  }
 0x12e   :  { %s8184_s4 = sld [smem:[#allocation116_spill]]  ;;  %s6682_s9 = smov [#allocation44]  }
 0x12f   :  { %s517_s16 = sshll.u32 %s6682_s9, 4  ;;  %s6010_s20 = sshra.s32 %s516_s24, 4  ;;  %s518_s16 = int_to_ptr.vmem [resolvable:$true] %s517_s16  ;;  %s6011_s20 = int_to_ptr.hbm [resolvable:$true] %s6010_s20 }
 0x130   :  { %s6012_s11 = scalar_lea.hbm %s6011_s20, 1  ;;  %s6014_s18 = scalar_lea.hbm %s6976_s14, 1 }
 0x131   :  { %p6013_p9 = scmp.ne.s32.totalorder %s6011_s20, %s6012_s11  ;;  %p6015_p10 = scmp.lt.s32.totalorder %s6011_s20, %s6976_s14 }
 0x132   :  { %p6016_p11 = scmp.lt.s32.totalorder %s6014_s18, %s6012_s11 }
 0x134   :  { %s539_s19 = sshll.u32 %s8184_s4, 4  ;;  %p6017_p12 = por %p6016_p11, %p6015_p10  ;;  %s540_s19 = int_to_ptr.hbm [resolvable:$true] %s539_s19 }
 0x136   :  { %p6018_p13 = pnand %p6017_p12, %p6013_p9 }
 0x138   :  { %6021 = shalt.err (!%p6018_p13)
}
 0x139   :  { %520 = dma.hbm_to_vmem [thread:$0]  %s516_s24, 16, %s518_s16, [#allocation45]  }
 0x13a   :  { %s8185_s3 = sld [smem:[#allocation120_spill]]  ;;  %s6683_s22 = smov [#allocation47]  }
 0x13b   :  { %s541_s23 = sshll.u32 %s6683_s22, 4  ;;  %s6034_s28 = sshra.s32 %s540_s19, 4  ;;  %s542_s23 = int_to_ptr.vmem [resolvable:$true] %s541_s23  ;;  %s6035_s28 = int_to_ptr.hbm [resolvable:$true] %s6034_s28 }
 0x13c   :  { %s6036_s21 = scalar_lea.hbm %s6035_s28, 1  ;;  %s6038_s6 = scalar_lea.hbm %s8184_s4, 1 }
 0x13d   :  { %p6037_p0 = scmp.ne.s32.totalorder %s6035_s28, %s6036_s21  ;;  %p6039_p1 = scmp.lt.s32.totalorder %s6035_s28, %s8184_s4 }
 0x13e   :  { %p6040_p2 = scmp.lt.s32.totalorder %s6038_s6, %s6036_s21 }
 0x140   :  { %s565_s17 = sshll.u32 %s8185_s3, 4  ;;  %p6041_p3 = por %p6040_p2, %p6039_p1  ;;  %s566_s17 = int_to_ptr.hbm [resolvable:$true] %s565_s17 }
 0x142   :  { %p6042_p4 = pnand %p6041_p3, %p6037_p0 }
 0x144   :  { %6045 = shalt.err (!%p6042_p4)
}
 0x145   :  { %544 = dma.hbm_to_vmem [thread:$0]  %s540_s19, 16, %s542_s23, [#allocation48]  }
 0x146   :  { %s8186_s14 = sld [smem:[#allocation123_spill]]  ;;  %s6684_s5 = smov [#allocation50]  }
 0x147   :  { %s567_s26 = sshll.u32 %s6684_s5, 4  ;;  %s6058_s2 = sshra.s32 %s566_s17, 4  ;;  %s568_s26 = int_to_ptr.vmem [resolvable:$true] %s567_s26  ;;  %s6059_s2 = int_to_ptr.hbm [resolvable:$true] %s6058_s2 }
 0x148   :  { %s6060_s0 = scalar_lea.hbm %s6059_s2, 1  ;;  %s6062_s25 = scalar_lea.hbm %s8185_s3, 1 }
 0x149   :  { %p6061_p5 = scmp.ne.s32.totalorder %s6059_s2, %s6060_s0  ;;  %p6063_p6 = scmp.lt.s32.totalorder %s6059_s2, %s8185_s3 }
 0x14a   :  { %p6064_p7 = scmp.lt.s32.totalorder %s6062_s25, %s6060_s0 }
 0x14c   :  { %s589_s1 = sshll.u32 %s8186_s14, 4  ;;  %p6065_p8 = por %p6064_p7, %p6063_p6  ;;  %s590_s1 = int_to_ptr.hbm [resolvable:$true] %s589_s1 }
 0x14e   :  { %p6066_p9 = pnand %p6065_p8, %p6061_p5 }
 0x150   :  { %6069 = shalt.err (!%p6066_p9)
}
 0x151   :  { %570 = dma.hbm_to_vmem [thread:$0]  %s566_s17, 16, %s568_s26, [#allocation51]  }
 0x152   :  { %s8187_s24 = sld [smem:[#allocation78_spill]]  ;;  %s6685_s27 = smov [#allocation53]  }
 0x153   :  { %s591_s29 = sshll.u32 %s6685_s27, 4  ;;  %s6082_s10 = sshra.s32 %s590_s1, 4  ;;  %s592_s29 = int_to_ptr.vmem [resolvable:$true] %s591_s29  ;;  %s6083_s10 = int_to_ptr.hbm [resolvable:$true] %s6082_s10 }
 0x154   :  { %s6084_s15 = scalar_lea.hbm %s6083_s10, 1  ;;  %s6086_s4 = scalar_lea.hbm %s8186_s14, 1 }
 0x155   :  { %p6085_p10 = scmp.ne.s32.totalorder %s6083_s10, %s6084_s15  ;;  %p6087_p11 = scmp.lt.s32.totalorder %s6083_s10, %s8186_s14 }
 0x156   :  { %p6088_p12 = scmp.lt.s32.totalorder %s6086_s4, %s6084_s15 }
 0x158   :  { %s171_s7 = sshll.u32 %s8187_s24, 4  ;;  %p6089_p13 = por %p6088_p12, %p6087_p11  ;;  %s7118_s7 = int_to_ptr.hbm [resolvable:$true] %s171_s7 }
 0x15a   :  { %p6090_p0 = pnand %p6089_p13, %p6085_p10 }
 0x15c   :  { %6093 = shalt.err (!%p6090_p0)
}
 0x15d   :  { %594 = dma.hbm_to_vmem [thread:$0]  %s590_s1, 16, %s592_s29, [#allocation54]  }
 0x15e   :  { %s6686_s9 = smov [#allocation2]   ;;  %s6106_s19 = sshra.s32 %s7118_s7, 4  ;;  %s6107_s19 = int_to_ptr.hbm [resolvable:$true] %s6106_s19 }
 0x15f   :  { %s173_s16 = sshll.u32 %s6686_s9, 4  ;;  %s6108_s20 = scalar_lea.hbm %s6107_s19, 16  ;;  %s174_s16 = int_to_ptr.vmem [resolvable:$true] %s173_s16 }
 0x160   :  { %p6109_p1 = scmp.ne.s32.totalorder %s6107_s19, %s6108_s20  ;;  %s6110_s11 = scalar_lea.hbm %s8187_s24, 16 }
 0x161   :  { %p6111_p2 = scmp.lt.s32.totalorder %s6107_s19, %s8187_s24  ;;  %p6112_p3 = scmp.lt.s32.totalorder %s6110_s11, %s6108_s20 }
 0x163   :  { %p6113_p4 = por %p6112_p3, %p6111_p2 }
 0x165   :  { %p6114_p5 = pnand %p6113_p4, %p6109_p1 }
 0x167   :  { %6117 = shalt.err (!%p6114_p5)
}
 0x168   :  { %s6687_s18 = smov 128   ;;  %s8188_s3 = sld [smem:[#allocation83_spill]] }
 0x169   :  { %s8189_s17 = sld [smem:[#allocation86_spill]]  ;;  %s6688_s22 = smov 8  }
 0x16a   :  { %179 = dma.hbm_to_vmem [thread:$0]  %s7118_s7, 256, %s174_s16, [#allocation3], %s6687_s18, %s6687_s18, %s6688_s22  }
 0x16b   :  { %s6689_s28 = smov [#allocation7]  }
 0x16c   :  { %s206_s21 = sshll.u32 %s6689_s28, 4  ;;  %s207_s21 = int_to_ptr.vmem [resolvable:$true] %s206_s21 }
 0x16e   :  { %s204_s23 = sshll.u32 %s8188_s3, 4  ;;  %s6134_s26 = scalar_lea.hbm %s8188_s3, 1  ;;  %s205_s23 = int_to_ptr.hbm [resolvable:$true] %s204_s23 }
 0x16f   :  { %s230_s6 = sshll.u32 %s8189_s17, 4  ;;  %s6130_s14 = sshra.s32 %s205_s23, 4  ;;  %s6131_s14 = int_to_ptr.hbm [resolvable:$true] %s6130_s14  ;;  %s231_s6 = int_to_ptr.hbm [resolvable:$true] %s230_s6 }
 0x170   :  { %s6132_s5 = scalar_lea.hbm %s6131_s14, 1  ;;  %p6135_p7 = scmp.lt.s32.totalorder %s6131_s14, %s8188_s3 }
 0x171   :  { %p6133_p6 = scmp.ne.s32.totalorder %s6131_s14, %s6132_s5  ;;  %p6136_p8 = scmp.lt.s32.totalorder %s6134_s26, %s6132_s5 }
 0x173   :  { %p6137_p9 = por %p6136_p8, %p6135_p7 }
 0x175   :  { %p6138_p10 = pnand %p6137_p9, %p6133_p6 }
 0x177   :  { %6141 = shalt.err (!%p6138_p10)
}
 0x178   :  { %209 = dma.hbm_to_vmem [thread:$0]  %s205_s23, 16, %s207_s21, [#allocation6]  }
 0x179   :  { %s8190_s1 = sld [smem:[#allocation87_spill]]  ;;  %s6690_s2 = smov [#allocation10]  }
 0x17a   :  { %s232_s0 = sshll.u32 %s6690_s2, 4  ;;  %s6154_s24 = sshra.s32 %s231_s6, 4  ;;  %s233_s0 = int_to_ptr.vmem [resolvable:$true] %s232_s0  ;;  %s6155_s24 = int_to_ptr.hbm [resolvable:$true] %s6154_s24 }
 0x17b   :  { %s6156_s7 = scalar_lea.hbm %s6155_s24, 1  ;;  %s6158_s27 = scalar_lea.hbm %s8189_s17, 1 }
 0x17c   :  { %p6157_p11 = scmp.ne.s32.totalorder %s6155_s24, %s6156_s7  ;;  %p6159_p12 = scmp.lt.s32.totalorder %s6155_s24, %s8189_s17 }
 0x17d   :  { %p6160_p13 = scmp.lt.s32.totalorder %s6158_s27, %s6156_s7 }
 0x17f   :  { %s252_s25 = sshll.u32 %s8190_s1, 4  ;;  %p6161_p0 = por %p6160_p13, %p6159_p12  ;;  %s253_s25 = int_to_ptr.hbm [resolvable:$true] %s252_s25 }
 0x181   :  { %p6162_p1 = pnand %p6161_p0, %p6157_p11 }
 0x183   :  { %6165 = shalt.err (!%p6162_p1)
}
 0x184   :  { %235 = dma.hbm_to_vmem [thread:$0]  %s231_s6, 16, %s233_s0, [#allocation9]  }
 0x185   :  { %s8191_s29 = sld [smem:[#allocation90_spill]]  ;;  %s6691_s15 = smov [#allocation13]  }
 0x186   :  { %s254_s4 = sshll.u32 %s6691_s15, 4  ;;  %s6178_s9 = sshra.s32 %s253_s25, 4  ;;  %s255_s4 = int_to_ptr.vmem [resolvable:$true] %s254_s4  ;;  %s6179_s9 = int_to_ptr.hbm [resolvable:$true] %s6178_s9 }
 0x187   :  { %s6180_s16 = scalar_lea.hbm %s6179_s9, 1  ;;  %s6182_s19 = scalar_lea.hbm %s8190_s1, 1 }
 0x188   :  { %p6181_p2 = scmp.ne.s32.totalorder %s6179_s9, %s6180_s16  ;;  %p6183_p3 = scmp.lt.s32.totalorder %s6179_s9, %s8190_s1 }
 0x189   :  { %p6184_p4 = scmp.lt.s32.totalorder %s6182_s19, %s6180_s16 }
 0x18b   :  { %s278_s10 = sshll.u32 %s8191_s29, 4  ;;  %p6185_p5 = por %p6184_p4, %p6183_p3  ;;  %s279_s10 = int_to_ptr.hbm [resolvable:$true] %s278_s10 }
 0x18d   :  { %p6186_p6 = pnand %p6185_p5, %p6181_p2 }
 0x18f   :  { %6189 = shalt.err (!%p6186_p6)
}
 0x190   :  { %257 = dma.hbm_to_vmem [thread:$0]  %s253_s25, 16, %s255_s4, [#allocation12]  }
 0x191   :  { %s8192_s20 = sld [smem:[#allocation91_spill]]  ;;  %s6692_s11 = smov [#allocation16]  }
 0x192   :  { %s280_s3 = sshll.u32 %s6692_s11, 4  ;;  %s6202_s23 = sshra.s32 %s279_s10, 4  ;;  %s281_s3 = int_to_ptr.vmem [resolvable:$true] %s280_s3  ;;  %s6203_s23 = int_to_ptr.hbm [resolvable:$true] %s6202_s23 }
 0x193   :  { %s6204_s28 = scalar_lea.hbm %s6203_s23, 1  ;;  %s6206_s21 = scalar_lea.hbm %s8191_s29, 1 }
 0x194   :  { %p6205_p7 = scmp.ne.s32.totalorder %s6203_s23, %s6204_s28  ;;  %p6207_p8 = scmp.lt.s32.totalorder %s6203_s23, %s8191_s29 }
 0x195   :  { %p6208_p9 = scmp.lt.s32.totalorder %s6206_s21, %s6204_s28 }
 0x197   :  { %s300_s17 = sshll.u32 %s8192_s20, 4  ;;  %p6209_p10 = por %p6208_p9, %p6207_p8  ;;  %s301_s17 = int_to_ptr.hbm [resolvable:$true] %s300_s17 }
 0x199   :  { %p6210_p11 = pnand %p6209_p10, %p6205_p7 }
 0x19b   :  { %6213 = shalt.err (!%p6210_p11)
}
 0x19c   :  { %283 = dma.hbm_to_vmem [thread:$0]  %s279_s10, 16, %s281_s3, [#allocation15]  }
 0x19d   :  { %s8193_s6 = sld [smem:[#allocation94_spill]]  ;;  %s6693_s5 = smov [#allocation19]  }
 0x19e   :  { %s302_s26 = sshll.u32 %s6693_s5, 4  ;;  %s6226_s1 = sshra.s32 %s301_s17, 4  ;;  %s303_s26 = int_to_ptr.vmem [resolvable:$true] %s302_s26  ;;  %s6227_s1 = int_to_ptr.hbm [resolvable:$true] %s6226_s1 }
 0x19f   :  { %s6228_s2 = scalar_lea.hbm %s6227_s1, 1  ;;  %s6230_s0 = scalar_lea.hbm %s8192_s20, 1 }
 0x1a0   :  { %p6229_p12 = scmp.ne.s32.totalorder %s6227_s1, %s6228_s2  ;;  %p6231_p13 = scmp.lt.s32.totalorder %s6227_s1, %s8192_s20 }
 0x1a1   :  { %p6232_p0 = scmp.lt.s32.totalorder %s6230_s0, %s6228_s2 }
 0x1a3   :  { %s326_s14 = sshll.u32 %s8193_s6, 4  ;;  %p6233_p1 = por %p6232_p0, %p6231_p13  ;;  %s327_s14 = int_to_ptr.hbm [resolvable:$true] %s326_s14 }
 0x1a5   :  { %p6234_p2 = pnand %p6233_p1, %p6229_p12 }
 0x1a7   :  { %6237 = shalt.err (!%p6234_p2)
}
 0x1a8   :  { %305 = dma.hbm_to_vmem [thread:$0]  %s301_s17, 16, %s303_s26, [#allocation18]  }
 0x1a9   :  { %s8194_s25 = sld [smem:[#allocation99_spill]]  ;;  %s6694_s24 = smov [#allocation22]  }
 0x1aa   :  { %s328_s7 = sshll.u32 %s6694_s24, 4  ;;  %s6250_s29 = sshra.s32 %s327_s14, 4  ;;  %s329_s7 = int_to_ptr.vmem [resolvable:$true] %s328_s7  ;;  %s6251_s29 = int_to_ptr.hbm [resolvable:$true] %s6250_s29 }
 0x1ab   :  { %s6252_s10 = scalar_lea.hbm %s6251_s29, 1  ;;  %s6254_s15 = scalar_lea.hbm %s8193_s6, 1 }
 0x1ac   :  { %p6253_p3 = scmp.ne.s32.totalorder %s6251_s29, %s6252_s10  ;;  %p6255_p4 = scmp.lt.s32.totalorder %s6251_s29, %s8193_s6 }
 0x1ad   :  { %p6256_p5 = scmp.lt.s32.totalorder %s6254_s15, %s6252_s10 }
 0x1af   :  { %s356_s27 = sshll.u32 %s8194_s25, 4  ;;  %p6257_p6 = por %p6256_p5, %p6255_p4  ;;  %s357_s27 = int_to_ptr.hbm [resolvable:$true] %s356_s27 }
 0x1b1   :  { %p6258_p7 = pnand %p6257_p6, %p6253_p3 }
 0x1b3   :  { %6261 = shalt.err (!%p6258_p7)
}
 0x1b4   :  { %331 = dma.hbm_to_vmem [thread:$0]  %s327_s14, 16, %s329_s7, [#allocation21]  }
 0x1b5   :  { %s8195_s4 = sld [smem:[#allocation102_spill]]  ;;  %s6695_s16 = smov [#allocation25]  }
 0x1b6   :  { %s358_s19 = sshll.u32 %s6695_s16, 4  ;;  %s6274_s20 = sshra.s32 %s357_s27, 4  ;;  %s359_s19 = int_to_ptr.vmem [resolvable:$true] %s358_s19  ;;  %s6275_s20 = int_to_ptr.hbm [resolvable:$true] %s6274_s20 }
 0x1b7   :  { %s6276_s11 = scalar_lea.hbm %s6275_s20, 1  ;;  %s6278_s3 = scalar_lea.hbm %s8194_s25, 1 }
 0x1b8   :  { %p6277_p8 = scmp.ne.s32.totalorder %s6275_s20, %s6276_s11  ;;  %p6279_p9 = scmp.lt.s32.totalorder %s6275_s20, %s8194_s25 }
 0x1b9   :  { %p6280_p10 = scmp.lt.s32.totalorder %s6278_s3, %s6276_s11 }
 0x1bb   :  { %s382_s9 = sshll.u32 %s8195_s4, 4  ;;  %p6281_p11 = por %p6280_p10, %p6279_p9  ;;  %s383_s9 = int_to_ptr.hbm [resolvable:$true] %s382_s9 }
 0x1bd   :  { %p6282_p12 = pnand %p6281_p11, %p6277_p8 }
 0x1bf   :  { %6285 = shalt.err (!%p6282_p12)
}
 0x1c0   :  { %361 = dma.hbm_to_vmem [thread:$0]  %s357_s27, 16, %s359_s19, [#allocation24]  }
 0x1c1   :  { %s8196_s17 = sld [smem:[#allocation103_spill]]  ;;  %s6696_s23 = smov [#allocation28]  }
 0x1c2   :  { %s384_s28 = sshll.u32 %s6696_s23, 4  ;;  %s6298_s6 = sshra.s32 %s383_s9, 4  ;;  %s385_s28 = int_to_ptr.vmem [resolvable:$true] %s384_s28  ;;  %s6299_s6 = int_to_ptr.hbm [resolvable:$true] %s6298_s6 }
 0x1c3   :  { %s6300_s14 = scalar_lea.hbm %s6299_s6, 1  ;;  %s6302_s5 = scalar_lea.hbm %s8195_s4, 1 }
 0x1c4   :  { %p6301_p13 = scmp.ne.s32.totalorder %s6299_s6, %s6300_s14  ;;  %p6303_p0 = scmp.lt.s32.totalorder %s6299_s6, %s8195_s4 }
 0x1c5   :  { %p6304_p1 = scmp.lt.s32.totalorder %s6302_s5, %s6300_s14 }
 0x1c7   :  { %s404_s21 = sshll.u32 %s8196_s17, 4  ;;  %p6305_p2 = por %p6304_p1, %p6303_p0  ;;  %s405_s21 = int_to_ptr.hbm [resolvable:$true] %s404_s21 }
 0x1c9   :  { %p6306_p3 = pnand %p6305_p2, %p6301_p13 }
 0x1cb   :  { %6309 = shalt.err (!%p6306_p3)
}
 0x1cc   :  { %387 = dma.hbm_to_vmem [thread:$0]  %s383_s9, 16, %s385_s28, [#allocation27]  }
 0x1cd   :  { %s8197_s26 = sld [smem:[#allocation106_spill]]  ;;  %s6697_s2 = smov [#allocation31]  }
 0x1ce   :  { %s406_s0 = sshll.u32 %s6697_s2, 4  ;;  %s6322_s25 = sshra.s32 %s405_s21, 4  ;;  %s407_s0 = int_to_ptr.vmem [resolvable:$true] %s406_s0  ;;  %s6323_s25 = int_to_ptr.hbm [resolvable:$true] %s6322_s25 }
 0x1cf   :  { %s6324_s24 = scalar_lea.hbm %s6323_s25, 1  ;;  %s6326_s7 = scalar_lea.hbm %s8196_s17, 1 }
 0x1d0   :  { %p6325_p4 = scmp.ne.s32.totalorder %s6323_s25, %s6324_s24  ;;  %p6327_p5 = scmp.lt.s32.totalorder %s6323_s25, %s8196_s17 }
 0x1d1   :  { %p6328_p6 = scmp.lt.s32.totalorder %s6326_s7, %s6324_s24 }
 0x1d3   :  { %s430_s1 = sshll.u32 %s8197_s26, 4  ;;  %p6329_p7 = por %p6328_p6, %p6327_p5  ;;  %s431_s1 = int_to_ptr.hbm [resolvable:$true] %s430_s1 }
 0x1d5   :  { %p6330_p8 = pnand %p6329_p7, %p6325_p4 }
 0x1d7   :  { %6333 = shalt.err (!%p6330_p8)
}
 0x1d8   :  { %409 = dma.hbm_to_vmem [thread:$0]  %s405_s21, 16, %s407_s0, [#allocation30]  }
 0x1d9   :  { %s8198_s27 = sld [smem:[#allocation109_spill]]  ;;  %s6698_s29 = smov [#allocation34]  }
 0x1da   :  { %s432_s10 = sshll.u32 %s6698_s29, 4  ;;  %s6346_s4 = sshra.s32 %s431_s1, 4  ;;  %s433_s10 = int_to_ptr.vmem [resolvable:$true] %s432_s10  ;;  %s6347_s4 = int_to_ptr.hbm [resolvable:$true] %s6346_s4 }
 0x1db   :  { %s6348_s9 = scalar_lea.hbm %s6347_s4, 1  ;;  %s6350_s16 = scalar_lea.hbm %s8197_s26, 1 }
 0x1dc   :  { %p6349_p9 = scmp.ne.s32.totalorder %s6347_s4, %s6348_s9  ;;  %p6351_p10 = scmp.lt.s32.totalorder %s6347_s4, %s8197_s26 }
 0x1dd   :  { %p6352_p11 = scmp.lt.s32.totalorder %s6350_s16, %s6348_s9 }
 0x1df   :  { %s456_s15 = sshll.u32 %s8198_s27, 4  ;;  %p6353_p12 = por %p6352_p11, %p6351_p10  ;;  %s457_s15 = int_to_ptr.hbm [resolvable:$true] %s456_s15 }
 0x1e1   :  { %p6354_p13 = pnand %p6353_p12, %p6349_p9 }
 0x1e3   :  { %6357 = shalt.err (!%p6354_p13)
}
 0x1e4   :  { %435 = dma.hbm_to_vmem [thread:$0]  %s431_s1, 16, %s433_s10, [#allocation33]  }
 0x1e5   :  { %s8199_s19 = sld [smem:[#allocation110_spill]]  ;;  %s6699_s11 = smov [#allocation37]  }
 0x1e6   :  { %s458_s3 = sshll.u32 %s6699_s11, 4  ;;  %s6370_s17 = sshra.s32 %s457_s15, 4  ;;  %s459_s3 = int_to_ptr.vmem [resolvable:$true] %s458_s3  ;;  %s6371_s17 = int_to_ptr.hbm [resolvable:$true] %s6370_s17 }
 0x1e7   :  { %s6372_s23 = scalar_lea.hbm %s6371_s17, 1  ;;  %s6374_s28 = scalar_lea.hbm %s8198_s27, 1 }
 0x1e8   :  { %p6373_p0 = scmp.ne.s32.totalorder %s6371_s17, %s6372_s23  ;;  %p6375_p1 = scmp.lt.s32.totalorder %s6371_s17, %s8198_s27 }
 0x1e9   :  { %p6376_p2 = scmp.lt.s32.totalorder %s6374_s28, %s6372_s23 }
 0x1eb   :  { %s478_s20 = sshll.u32 %s8199_s19, 4  ;;  %p6377_p3 = por %p6376_p2, %p6375_p1  ;;  %s479_s20 = int_to_ptr.hbm [resolvable:$true] %s478_s20 }
 0x1ed   :  { %p6378_p4 = pnand %p6377_p3, %p6373_p0 }
 0x1ef   :  { %6381 = shalt.err (!%p6378_p4)
}
 0x1f0   :  { %461 = dma.hbm_to_vmem [thread:$0]  %s457_s15, 16, %s459_s3, [#allocation36]  }
 0x1f1   :  { %s8200_s21 = sld [smem:[#allocation113_spill]]  ;;  %s6700_s6 = smov [#allocation40]  }
 0x1f2   :  { %s480_s14 = sshll.u32 %s6700_s6, 4  ;;  %s6394_s26 = sshra.s32 %s479_s20, 4  ;;  %s481_s14 = int_to_ptr.vmem [resolvable:$true] %s480_s14  ;;  %s6395_s26 = int_to_ptr.hbm [resolvable:$true] %s6394_s26 }
 0x1f3   :  { %s6396_s1 = scalar_lea.hbm %s6395_s26, 1  ;;  %s6398_s2 = scalar_lea.hbm %s8199_s19, 1 }
 0x1f4   :  { %p6397_p5 = scmp.ne.s32.totalorder %s6395_s26, %s6396_s1  ;;  %p6399_p6 = scmp.lt.s32.totalorder %s6395_s26, %s8199_s19 }
 0x1f5   :  { %p6400_p7 = scmp.lt.s32.totalorder %s6398_s2, %s6396_s1 }
 0x1f7   :  { %s504_s5 = sshll.u32 %s8200_s21, 4  ;;  %p6401_p8 = por %p6400_p7, %p6399_p6  ;;  %s505_s5 = int_to_ptr.hbm [resolvable:$true] %s504_s5 }
 0x1f9   :  { %p6402_p9 = pnand %p6401_p8, %p6397_p5 }
 0x1fb   :  { %6405 = shalt.err (!%p6402_p9)
}
 0x1fc   :  { %483 = dma.hbm_to_vmem [thread:$0]  %s479_s20, 16, %s481_s14, [#allocation39]  }
 0x1fd   :  { %s8201_s0 = sld [smem:[#allocation114_spill]]  ;;  %s6701_s24 = smov [#allocation43]  }
 0x1fe   :  { %s506_s7 = sshll.u32 %s6701_s24, 4  ;;  %s6418_s27 = sshra.s32 %s505_s5, 4  ;;  %s507_s7 = int_to_ptr.vmem [resolvable:$true] %s506_s7  ;;  %s6419_s27 = int_to_ptr.hbm [resolvable:$true] %s6418_s27 }
 0x1ff   :  { %s6420_s29 = scalar_lea.hbm %s6419_s27, 1  ;;  %s6422_s10 = scalar_lea.hbm %s8200_s21, 1 }
 0x200   :  { %p6421_p10 = scmp.ne.s32.totalorder %s6419_s27, %s6420_s29  ;;  %p6423_p11 = scmp.lt.s32.totalorder %s6419_s27, %s8200_s21 }
 0x201   :  { %p6424_p12 = scmp.lt.s32.totalorder %s6422_s10, %s6420_s29 }
 0x203   :  { %s526_s25 = sshll.u32 %s8201_s0, 4  ;;  %p6425_p13 = por %p6424_p12, %p6423_p11  ;;  %s527_s25 = int_to_ptr.hbm [resolvable:$true] %s526_s25 }
 0x205   :  { %p6426_p0 = pnand %p6425_p13, %p6421_p10 }
 0x207   :  { %6429 = shalt.err (!%p6426_p0)
}
 0x208   :  { %509 = dma.hbm_to_vmem [thread:$0]  %s505_s5, 16, %s507_s7, [#allocation42]  }
 0x209   :  { %s8202_s15 = sld [smem:[#allocation118_spill]]  ;;  %s6702_s4 = smov [#allocation46]  }
 0x20a   :  { %s528_s9 = sshll.u32 %s6702_s4, 4  ;;  %s6442_s19 = sshra.s32 %s527_s25, 4  ;;  %s529_s9 = int_to_ptr.vmem [resolvable:$true] %s528_s9  ;;  %s6443_s19 = int_to_ptr.hbm [resolvable:$true] %s6442_s19 }
 0x20b   :  { %s6444_s20 = scalar_lea.hbm %s6443_s19, 1  ;;  %s6446_s11 = scalar_lea.hbm %s8201_s0, 1 }
 0x20c   :  { %p6445_p1 = scmp.ne.s32.totalorder %s6443_s19, %s6444_s20  ;;  %p6447_p2 = scmp.lt.s32.totalorder %s6443_s19, %s8201_s0 }
 0x20d   :  { %p6448_p3 = scmp.lt.s32.totalorder %s6446_s11, %s6444_s20 }
 0x20f   :  { %s552_s16 = sshll.u32 %s8202_s15, 4  ;;  %p6449_p4 = por %p6448_p3, %p6447_p2  ;;  %s553_s16 = int_to_ptr.hbm [resolvable:$true] %s552_s16 }
 0x211   :  { %p6450_p5 = pnand %p6449_p4, %p6445_p1 }
 0x213   :  { %6453 = shalt.err (!%p6450_p5)
}
 0x214   :  { %531 = dma.hbm_to_vmem [thread:$0]  %s527_s25, 16, %s529_s9, [#allocation45]  }
 0x215   :  { %s8203_s3 = sld [smem:[#allocation122_spill]]  ;;  %s6703_s23 = smov [#allocation49]  }
 0x216   :  { %s554_s28 = sshll.u32 %s6703_s23, 4  ;;  %s6466_s21 = sshra.s32 %s553_s16, 4  ;;  %s555_s28 = int_to_ptr.vmem [resolvable:$true] %s554_s28  ;;  %s6467_s21 = int_to_ptr.hbm [resolvable:$true] %s6466_s21 }
 0x217   :  { %s6468_s6 = scalar_lea.hbm %s6467_s21, 1  ;;  %s6470_s14 = scalar_lea.hbm %s8202_s15, 1 }
 0x218   :  { %p6469_p6 = scmp.ne.s32.totalorder %s6467_s21, %s6468_s6  ;;  %p6471_p7 = scmp.lt.s32.totalorder %s6467_s21, %s8202_s15 }
 0x219   :  { %p6472_p8 = scmp.lt.s32.totalorder %s6470_s14, %s6468_s6 }
 0x21b   :  { %s578_s17 = sshll.u32 %s8203_s3, 4  ;;  %p6473_p9 = por %p6472_p8, %p6471_p7  ;;  %s579_s17 = int_to_ptr.hbm [resolvable:$true] %s578_s17 }
 0x21d   :  { %p6474_p10 = pnand %p6473_p9, %p6469_p6 }
 0x21f   :  { %6477 = shalt.err (!%p6474_p10)
}
 0x220   :  { %557 = dma.hbm_to_vmem [thread:$0]  %s553_s16, 16, %s555_s28, [#allocation48]  }
 0x221   :  { %s8204_s5 = sld [smem:[#allocation124_spill]]  ;;  %s6704_s26 = smov [#allocation52]  }
 0x222   :  { %s580_s1 = sshll.u32 %s6704_s26, 4  ;;  %s6490_s0 = sshra.s32 %s579_s17, 4  ;;  %s581_s1 = int_to_ptr.vmem [resolvable:$true] %s580_s1  ;;  %s6491_s0 = int_to_ptr.hbm [resolvable:$true] %s6490_s0 }
 0x223   :  { %s6492_s25 = scalar_lea.hbm %s6491_s0, 1  ;;  %s6494_s24 = scalar_lea.hbm %s8203_s3, 1 }
 0x224   :  { %p6493_p11 = scmp.ne.s32.totalorder %s6491_s0, %s6492_s25  ;;  %p6495_p12 = scmp.lt.s32.totalorder %s6491_s0, %s8203_s3 }
 0x225   :  { %p6496_p13 = scmp.lt.s32.totalorder %s6494_s24, %s6492_s25 }
 0x227   :  { %s600_s2 = sshll.u32 %s8204_s5, 4  ;;  %p6497_p0 = por %p6496_p13, %p6495_p12  ;;  %s601_s2 = int_to_ptr.hbm [resolvable:$true] %s600_s2 }
 0x229   :  { %p6498_p1 = pnand %p6497_p0, %p6493_p11 }
 0x22b   :  { %6501 = shalt.err (!%p6498_p1)
}
 0x22c   :  { %583 = dma.hbm_to_vmem [thread:$0]  %s579_s17, 16, %s581_s1, [#allocation51]  }
 0x22d   :  { %s6705_s7 = smov [#allocation55]   ;;  %s6514_s29 = sshra.s32 %s601_s2, 4  ;;  %s6515_s29 = int_to_ptr.hbm [resolvable:$true] %s6514_s29 }
 0x22e   :  { %s602_s27 = sshll.u32 %s6705_s7, 4  ;;  %s6516_s10 = scalar_lea.hbm %s6515_s29, 1  ;;  %s603_s27 = int_to_ptr.vmem [resolvable:$true] %s602_s27 }
 0x22f   :  { %p6517_p2 = scmp.ne.s32.totalorder %s6515_s29, %s6516_s10  ;;  %s6518_s15 = scalar_lea.hbm %s8204_s5, 1 }
 0x230   :  { %p6519_p3 = scmp.lt.s32.totalorder %s6515_s29, %s8204_s5  ;;  %p6520_p4 = scmp.lt.s32.totalorder %s6518_s15, %s6516_s10 }
 0x232   :  { %p6521_p5 = por %p6520_p4, %p6519_p3 }
 0x234   :  { %p6522_p6 = pnand %p6521_p5, %p6517_p2 }
 0x236   :  { %6525 = shalt.err (!%p6522_p6)
}
 0x237   :  { %605 = dma.hbm_to_vmem [thread:$0]  %s601_s2, 16, %s603_s27, [#allocation54]  }
 0x238   :  { %6562 = dma.done.wait [#allocation3], 256  }
 0x239   :  { %6563 = vsyncadd [#allocation3], 4294967040 }
 0x23a   :  { %6564 = dma.done.wait [#allocation6], 32  }
 0x23b   :  { %6565 = vsyncadd [#allocation6], 4294967264 }
 0x23c   :  { %6566 = dma.done.wait [#allocation9], 32  }
 0x23d   :  { %6567 = vsyncadd [#allocation9], 4294967264 }
 0x23e   :  { %6568 = dma.done.wait [#allocation12], 32  }
 0x23f   :  { %6569 = vsyncadd [#allocation12], 4294967264 }
 0x240   :  { %6570 = dma.done.wait [#allocation15], 32  }
 0x241   :  { %6571 = vsyncadd [#allocation15], 4294967264 }
 0x242   :  { %6572 = dma.done.wait [#allocation18], 32  }
 0x243   :  { %6573 = vsyncadd [#allocation18], 4294967264 }
 0x244   :  { %6574 = dma.done.wait [#allocation21], 32  }
 0x245   :  { %6575 = vsyncadd [#allocation21], 4294967264 }
 0x246   :  { %6576 = dma.done.wait [#allocation24], 32  }
 0x247   :  { %6577 = vsyncadd [#allocation24], 4294967264 }
 0x248   :  { %6578 = dma.done.wait [#allocation27], 32  }
 0x249   :  { %6579 = vsyncadd [#allocation27], 4294967264 }
 0x24a   :  { %6580 = dma.done.wait [#allocation30], 32  }
 0x24b   :  { %6581 = vsyncadd [#allocation30], 4294967264 }
 0x24c   :  { %6582 = dma.done.wait [#allocation33], 32  }
 0x24d   :  { %6583 = vsyncadd [#allocation33], 4294967264 }
 0x24e   :  { %6584 = dma.done.wait [#allocation36], 32  }
 0x24f   :  { %6585 = vsyncadd [#allocation36], 4294967264 }
 0x250   :  { %6586 = dma.done.wait [#allocation39], 32  }
 0x251   :  { %6587 = vsyncadd [#allocation39], 4294967264 }
 0x252   :  { %6588 = dma.done.wait [#allocation42], 32  }
 0x253   :  { %6589 = vsyncadd [#allocation42], 4294967264 }
 0x254   :  { %6590 = dma.done.wait [#allocation45], 32  }
 0x255   :  { %6591 = vsyncadd [#allocation45], 4294967264 }
 0x256   :  { %6592 = dma.done.wait [#allocation48], 32  }
 0x257   :  { %6593 = vsyncadd [#allocation48], 4294967264 }
 0x258   :  { %6594 = dma.done.wait [#allocation51], 32  }
 0x259   :  { %6595 = vsyncadd [#allocation51], 4294967264 }
 0x25a   :  { %6596 = dma.done.wait [#allocation54], 32  }
 0x25b   :  { %6597 = vsyncadd [#allocation54], 4294967264  ;;  %s8205_s4 = sld [smem:[#allocation76_spill]]  ;;  %v6706_v0 = vmov 0   ;;  %v760_v10 = vlaneseq  ;;  %vm782_vm0 = vcmask 523264   ;;  %v6707_v13 = vmov 0.0  }
 0x25c   :  { %s8206_s9 = sld [smem:[#allocation77_spill]]  ;;  %5488 = vset.pattern.permute.xlu0 %v6706_v0  ;;  %5489 = vset.pattern.permute.xlu1 %v6706_v0  ;;  %v7194_v15 = vld [vmem:[#allocation2] sm:$0xff]  ;;  %vm820_vm2 = vcmask 261120   ;;  %v6708_v19 = vmov 32.0   ;;  %v7230_v60 = vld [vmem:[#allocation5] ss:$0 sm:$0xff] }
 0x25d   :  { %v7190_v11 = vand.u32 127, %v760_v10  ;;  %5536 = vrcp.f32 %v6708_v19  ;;  %s8207_s16 = sld [smem:[#allocation81_spill]]  ;;  %v7232_v61 = vld [vmem:[#allocation7] ss:$0 sm:$0xff]  ;;  %vm985_vm8 = vcmask 64512   ;;  %s6709_s3 = smov 120  }
 0x25e   :  { %s8208_s19 = sld [smem:[#allocation82_spill]]  ;;  %s6710_s28 = smov 112  }
 0x25f   :  { %s8209_s20 = sld [smem:[#allocation79_spill]]  ;;  %s6711_s21 = smov 104  }
 0x260   :  { %s8210_s11 = sld [smem:[#allocation80_spill]] }
 0x261   :  { %v758_v1 = vld [vmem:[%s8205_s4] sm:$0xff]  ;;  %v759_v31 = vld [vmem:[%s8205_s4 + $0x8] sm:$0xff]  ;;  %s8211_s17 = sld [smem:[#allocation84_spill]] }
 0x262   :  { %v781_v2 = vld [vmem:[%s8206_s9 + $0x38] sm:$0xff]  ;;  %v780_v3 = vld [vmem:[%s8206_s9 + $0x30] sm:$0xff]  ;;  %763 = vperm.xlu0 %5488, %v758_v1   ;;  %v779_v4 = vld [vmem:[%s8206_s9 + $0x28] sm:$0xff]  ;;  %s8214_s23 = sld [smem:[#allocation85_spill]] }
 0x263   :  { %797 = vmatpush.msra.mxu0 %v781_v2  ;;  %v778_v5 = vld [vmem:[%s8206_s9 + $0x20] sm:$0xff]  ;;  %v777_v6 = vld [vmem:[%s8206_s9 + $0x18] sm:$0xff]  ;;  %v776_v7 = vld [vmem:[%s8206_s9 + $0x10] sm:$0xff]  ;;  %v5537_v20 = vpop.eup %5536  ;;  %s8215_s6 = sld [smem:[#allocation88_spill]] }
 0x264   :  { %v775_v8 = vld [vmem:[%s8206_s9 + $0x8] sm:$0xff]  ;;  %v774_v9 = vld [vmem:[%s8206_s9] sm:$0xff]  ;;  %v828_v21 = vmul.f32 32.0, %v5537_v20  ;;  %vm832_vm3 = vweird.f32 %v5537_v20  ;;  %v885_v32 = vld [vmem:[%s8207_s16 + $0x18] sm:$0xff]  ;;  %s8216_s14 = sld [smem:[#allocation89_spill]] }
 0x265   :  { %798 = vmatpush.msra.mxu0 %v780_v3  ;;  %v922_v33 = vld [vmem:[%s8208_s19 + $0x18] sm:$0xff]  ;;  %908 = vmatpush.msra.mxu3 %v885_v32  ;;  %v884_v34 = vld [vmem:[%s8207_s16 + $0x10] sm:$0xff]  ;;  %v883_v36 = vld [vmem:[%s8207_s16 + $0x8] sm:$0xff]  ;;  %s8217_s5 = sld [smem:[#allocation92_spill]] }
 0x266   :  { %v829_v22 = vsub.f32 1.0, %v828_v21  ;;  %939 = vmatpush.msra.mxu2 %v922_v33  ;;  %v921_v35 = vld [vmem:[%s8208_s19 + $0x10] sm:$0xff]  ;;  %v920_v37 = vld [vmem:[%s8208_s19 + $0x8] sm:$0xff]  ;;  %v882_v38 = vld [vmem:[%s8207_s16] sm:$0xff]  ;;  %s8218_s26 = sld [smem:[#allocation93_spill]] }
 0x267   :  { %799 = vmatpush.msra.mxu0 %v779_v4  ;;  %909 = vmatpush.msra.mxu3 %v884_v34  ;;  %v919_v39 = vld [vmem:[%s8208_s19] sm:$0xff]  ;;  %s8219_s1 = sld [smem:[#allocation95_spill]] }
 0x268   :  { %v830_v23 = vmul.f32 %v5537_v20, %v829_v22  ;;  %940 = vmatpush.msra.mxu2 %v921_v35  ;;  %v7213_v49 = vld [vmem:[%s8209_s20] ss:$0 sm:$0xff]  ;;  %s8220_s2 = sld [smem:[#allocation96_spill]] }
 0x269   :  { %800 = vmatpush.msra.mxu0 %v778_v5  ;;  %910 = vmatpush.msra.mxu3 %v883_v36  ;;  %v7216_v52 = vld [vmem:[%s8210_s11] ss:$0 sm:$0xff]  ;;  %s8221_s0 = sld [smem:[#allocation97_spill]] }
 0x26a   :  { %v831_v24 = vadd.f32 %v5537_v20, %v830_v23  ;;  %941 = vmatpush.msra.mxu2 %v920_v37  ;;  %s8222_s25 = sld [smem:[#allocation100_spill]] }
 0x26b   :  { %801 = vmatpush.msra.mxu0 %v777_v6  ;;  %911 = vmatpush.msra.mxu3 %v882_v38  ;;  %s8223_s24 = sld [smem:[#allocation101_spill]] }
 0x26c   :  { %v7198_v25 = vsel %vm832_vm3, %v5537_v20, %v831_v24  ;;  %942 = vmatpush.msra.mxu2 %v919_v39  ;;  %s8224_s7 = sld [smem:[#allocation98_spill]] }
 0x26d   :  { %802 = vmatpush.msra.mxu0 %v776_v7  ;;  %v816_v7 = vshrl.u32 %v760_v10, 7  ;;  %v950_v10 = vld [vmem:[%s8211_s17] sm:$0xff]  ;;  %s8225_s27 = sld [smem:[#allocation104_spill]] }
 0x26e   :  { %s8226_s29 = sld [smem:[#allocation105_spill]] }
 0x26f   :  { %803 = vmatpush.msra.mxu0 %v775_v8  ;;  %vm7250_vm9 = vcmp.le.s32.totalorder %v7190_v11, %v816_v7  ;;  %s8227_s10 = sld [smem:[#allocation107_spill]] }
 0x270   :  { %s8228_s15 = sld [smem:[#allocation108_spill]] }
 0x271   :  { %804 = vmatpush.msra.mxu0 %v774_v9  ;;  %s8229_s4 = sld [smem:[#allocation111_spill]] }
 0x272   :  { %s8230_s9 = sld [smem:[#allocation112_spill]] }
 0x273   :  { %s8231_s16 = sld [smem:[#allocation115_spill]] }
 0x274   :  { %s8232_s19 = sld [smem:[#allocation117_spill]] }
 0x275   :  { %s8233_s20 = sld [smem:[#allocation119_spill]] }
 0x276   :  { %s8234_s11 = sld [smem:[#allocation121_spill]] }
 0x2d4   :  { %v764_v12 = vpop.permute.xlu0 %763 }
 0x2d5   :  { %vm768_vm1 = vcmp.eq.s32.totalorder %v7190_v11, %v764_v12 }
 0x2d6   :  { %v5209_v14 = vsel %vm768_vm1, 1.0, %v6707_v13 }
 0x2d7   :  { %5211 = vmatmul.msk.f32.vlgmr.msra.gmra.mxu0 %vm782_vm0, %v5209_v14 }
 0x354   :  { %v806_v16 = vpop.f32.mrf.mxu0 }
 0x355   :  { %v813_v17 = vadd.f32 %v7194_v15, %v806_v16  ;;  %v952_v16 = vld [vmem:[%s8211_s17 + $0x10] sm:$0xff] }
 0x357   :  { %v821_v18 = vsel %vm820_vm2, %v813_v17, 0.0 }
 0x358   :  { %822 = vadd.xlane.f32.xlu0 %v821_v18 }
 0x3cb   :  { %v823_v26 = vpop.xlane.xlu0 %822 }
 0x3cc   :  { %v834_v27 = vmul.f32 %v7198_v25, %v823_v26 }
 0x3ce   :  { %v836_v28 = vsub.f32 %v813_v17, %v834_v27  ;;  %v951_v17 = vld [vmem:[%s8211_s17 + $0x8] sm:$0xff] }
 0x3d0   :  { %v838_v29 = vmul.f32 %v836_v28, %v836_v28 }
 0x3d2   :  { %v840_v30 = vsel %vm820_vm2, %v838_v29, 0.0 }
 0x3d3   :  { %841 = vadd.xlane.f32.xlu1 %v840_v30 }
 0x3ec   :  { %766 = vperm.xlu1 %5489, %v759_v31  }
 0x446   :  { %v842_v40 = vpop.xlane.xlu1 %841 }
 0x447   :  { %v846_v41 = vmul.f32 %v842_v40, %v7198_v25 }
 0x449   :  { %v848_v42 = vadd.f32 1e-05, %v846_v41 }
 0x44b   :  { %5538 = vrsqrt.f32 %v848_v42  ;;  %vm856_vm5 = vweird.f32 %v848_v42 }
 0x451   :  { %v5539_v43 = vpop.eup %5538 }
 0x452   :  { %v851_v44 = vmul.f32 %v5539_v43, %v848_v42  ;;  %vm857_vm4 = vweird.f32 %v5539_v43 }
 0x453   :  { %vm858_vm6 = vmor %vm856_vm5, %vm857_vm4 }
 0x454   :  { %v852_v45 = vmul.f32 %v5539_v43, %v851_v44 }
 0x456   :  { %v853_v46 = vmul.f32 0.5, %v852_v45 }
 0x458   :  { %v854_v47 = vsub.f32 1.5, %v853_v46 }
 0x45a   :  { %v855_v48 = vmul.f32 %v5539_v43, %v854_v47 }
 0x45c   :  { %v859_v50 = vsel %vm858_vm6, %v5539_v43, %v855_v48 }
 0x45d   :  { %v870_v51 = vmul.f32 %v859_v50, %v836_v28  ;;  %v5499_v50 = vld [vmem:[#allocation8] ss:$0 sm:$0xff] }
 0x45e   :  { %v767_v53 = vpop.permute.xlu1 %766 }
 0x45f   :  { %vm769_vm7 = vcmp.eq.s32.totalorder %v7190_v11, %v767_v53  ;;  %v875_v54 = vmul.f32 %v7213_v49, %v870_v51 }
 0x460   :  { %v5210_v55 = vsel %vm769_vm7, 1.0, %v6707_v13 }
 0x461   :  { %5212 = vmatmul.msk.f32.gmra.mxu0 %vm782_vm0, %v5210_v55  ;;  %v7222_v56 = vadd.f32 %v7216_v52, %v875_v54 }
 0x463   :  { %5213 = vmatmul.msk.f32.vlgmr.msra.gmra.mxu3 %vm820_vm2, %v7222_v56  ;;  %5215 = vmatmul.msk.f32.vlgmr.msra.gmra.mxu2 %vm820_vm2, %v7222_v56 }
 0x4de   :  { %v809_v57 = vpop.f32.mrf.mxu0 }
 0x4df   :  { %v814_v58 = vadd.f32 %v7194_v15, %v809_v57  ;;  %v953_v15 = vld [vmem:[%s8211_s17 + $0x18] sm:$0xff]  ;;  %s8236_s17 = sld [smem:[#allocation127_spill]] }
 0x4e0   :  { %970 = vmatpush.msrb.mxu3 %v953_v15 }
 0x4e1   :  { %v824_v59 = vsel %vm820_vm2, %v814_v58, 0.0 }
 0x4e2   :  { %825 = vadd.xlane.f32.xlu2 %v824_v59  ;;  %971 = vmatpush.msrb.mxu3 %v952_v16 }
 0x4e4   :  { %972 = vmatpush.msrb.mxu3 %v951_v17 }
 0x4e6   :  { %v913_v62 = vpop.f32.mrf.mxu3  ;;  %v944_v63 = vpop.f32.mrf.mxu2  ;;  %973 = vmatpush.msrb.mxu3 %v950_v10 }
 0x4e7   :  { %v7235_v0 = vadd.f32 %v7230_v60, %v913_v62  ;;  %v7238_v1 = vadd.f32 %v7232_v61, %v944_v63 }
 0x4e9   :  { %5219 = vmatpush.xpose.msk.msra.mxu1 %vm985_vm8, %v7238_v1  ;;  %1138 = vrot.lane.b32.xlu1 %v7235_v0, %s6709_s3 }
 0x4ec   :  { %5220 = vmatmul.msk.f32.vlgmr.msra.gmra.mxu1 %vm985_vm8, %v7235_v0 }
 0x555   :  { %v826_v2 = vpop.xlane.xlu2 %825 }
 0x556   :  { %v835_v3 = vmul.f32 %v7198_v25, %v826_v2 }
 0x558   :  { %v837_v4 = vsub.f32 %v814_v58, %v835_v3 }
 0x55a   :  { %v839_v5 = vmul.f32 %v837_v4, %v837_v4 }
 0x55b   :  { %v1139_v59 = vpop.permute.xlu1 %1138 }
 0x55c   :  { %v843_v6 = vsel %vm820_vm2, %v839_v5, 0.0 }
 0x55d   :  { %844 = vadd.xlane.f32.xlu2 %v843_v6 }
 0x569   :  { %v1009_v9 = vpop.f32.mrf.mxu1 }
 0x56a   :  { %v1038_v12 = vmul.f32 0.17677669, %v1009_v9 }
 0x56c   :  { %v1042_v13 = vsel %vm7250_vm9, %v1038_v12, -1e+30 }
 0x56d   :  { %v1044_v14 = vsel %vm985_vm8, %v1042_v13, -inf }
 0x56e   :  { %1045 = vmax.xlane.f32.xlu2 %v1044_v14 }
 0x5d0   :  { %v845_v18 = vpop.xlane.xlu2 %844 }
 0x5d1   :  { %v847_v11 = vmul.f32 %v845_v18, %v7198_v25 }
 0x5d3   :  { %v849_v19 = vadd.f32 1e-05, %v847_v11 }
 0x5d5   :  { %5540 = vrsqrt.f32 %v849_v19  ;;  %vm866_vm11 = vweird.f32 %v849_v19 }
 0x5db   :  { %v5541_v20 = vpop.eup %5540 }
 0x5dc   :  { %v861_v21 = vmul.f32 %v5541_v20, %v849_v19  ;;  %vm867_vm10 = vweird.f32 %v5541_v20 }
 0x5dd   :  { %vm868_vm12 = vmor %vm866_vm11, %vm867_vm10 }
 0x5de   :  { %v862_v22 = vmul.f32 %v5541_v20, %v861_v21 }
 0x5e0   :  { %v863_v23 = vmul.f32 0.5, %v862_v22 }
 0x5e1   :  { %v1046_v24 = vpop.xlane.xlu2 %1045 }
 0x5e2   :  { %v864_v26 = vsub.f32 1.5, %v863_v23  ;;  %v1050_v27 = vsub.f32 %v1042_v13, %v1046_v24 }
 0x5e4   :  { %v865_v28 = vmul.f32 %v5541_v20, %v864_v26  ;;  %v1052_v29 = vmul.f32 1.442695, %v1050_v27 }
 0x5e6   :  { %v869_v30 = vsel %vm868_vm12, %v5541_v20, %v865_v28  ;;  %5542 = vpow2.f32 %v1052_v29 }
 0x5e7   :  { %v871_v31 = vmul.f32 %v869_v30, %v837_v4 }
 0x5e9   :  { %v876_v32 = vmul.f32 %v7213_v49, %v871_v31 }
 0x5eb   :  { %v7264_v33 = vadd.f32 %v7216_v52, %v876_v32 }
 0x5ec   :  { %v5543_v34 = vpop.eup %5542 }
 0x5ed   :  { %5214 = vmatmul.msk.f32.gmra.mxu3 %vm820_vm2, %v7264_v33  ;;  %5216 = vmatmul.msk.f32.gmra.mxu2 %vm820_vm2, %v7264_v33  ;;  %v1056_v35 = vsel %vm985_vm8, %v5543_v34, 0.0 }
 0x5ee   :  { %1057 = vadd.xlane.f32.xlu2 %v1056_v35 }
 0x5f5   :  { %5217 = vmatmul.msk.f32.vlgmr.msrb.gmra.mxu3 %vm820_vm2, %v7222_v56 }
 0x5fd   :  { %5218 = vmatmul.msk.f32.gmra.mxu3 %vm820_vm2, %v7264_v33 }
 0x606   :  { %1140 = vrot.lane.b32.xlu2 %v7238_v1, %s6709_s3 }
 0x661   :  { %v1058_v36 = vpop.xlane.xlu2 %1057 }
 0x662   :  { %5544 = vrcp.f32 %v1058_v36  ;;  %v1073_v44 = vand.u32 2147483648, %v1058_v36  ;;  %vm1067_vm14 = vweird.f32 %v1058_v36  ;;  %v1071_v46 = vand.u32 2147483647, %v1058_v36 }
 0x664   :  { %v1074_v49 = vor.u32 1.1754944e-38, %v1073_v44  ;;  %vm1072_vm1 = vcmp.eq.f32.partialorder %v1071_v46, 8.507059e+37 }
 0x668   :  { %v5545_v37 = vpop.eup %5544 }
 0x669   :  { %v1063_v38 = vmul.f32 %v5545_v37, %v1058_v36  ;;  %vm1068_vm13 = vweird.f32 %v5545_v37  ;;  %v1141_v55 = vpop.permute.xlu2 %1140 }
 0x66a   :  { %vm1069_vm15 = vmor %vm1067_vm14, %vm1068_vm13 }
 0x66b   :  { %v1064_v39 = vsub.f32 1.0, %v1063_v38 }
 0x66d   :  { %v1065_v40 = vmul.f32 %v5545_v37, %v1064_v39 }
 0x66f   :  { %v1066_v41 = vadd.f32 %v5545_v37, %v1065_v40 }
 0x670   :  { %v916_v42 = vpop.f32.mrf.mxu3  ;;  %v947_v43 = vpop.f32.mrf.mxu2 }
 0x671   :  { %v7278_v45 = vadd.f32 %v7232_v61, %v947_v43  ;;  %v7285_v47 = vadd.f32 %v7230_v60, %v916_v42  ;;  %v1070_v48 = vsel %vm1069_vm15, %v5545_v37, %v1066_v41  ;;  %v981_v60 = vld [vmem:[%s8214_s23] sm:$0xff] }
 0x672   :  { %v1075_v51 = vsel %vm1072_vm1, %v1074_v49, %v1070_v48 }
 0x673   :  { %1168 = vrot.lane.b32.xlu1 %v7278_v45, %s6709_s3  ;;  %5221 = vmatpush.xpose.msk.msrb.mxu2 %vm985_vm8, %v7278_v45  ;;  %v1076_v54 = vmul.f32 %v5543_v34, %v1075_v51 }
 0x676   :  { %5222 = vmatmul.msk.f32.vlgmr.msrb.gmra.mxu2 %vm985_vm8, %v7285_v47 }
 0x678   :  { %v975_v52 = vpop.f32.mrf.mxu3 }
 0x679   :  { %v7289_v53 = vadd.f32 %v5499_v50, %v975_v52 }
 0x67b   :  { %1110 = vmatpush.msrb.mxu1 %v7289_v53  ;;  %1166 = vrot.lane.b32.xlu1 %v7285_v47, %s6709_s3 }
 0x67c   :  { %5223 = vmatmul.msk.f32.vlgmr.msrb.gmra.mxu1 %vm985_vm8, %v1076_v54 }
 0x67d   :  { %5225 = vmatpush.xpose.msk.msra.mxu1 %vm985_vm8, %v1141_v55 }
 0x680   :  { %v978_v57 = vpop.f32.mrf.mxu3 }
 0x681   :  { %v7296_v58 = vadd.f32 %v5499_v50, %v978_v57 }
 0x683   :  { %1133 = vmatpush.msrb.mxu0 %v7296_v58 }
 0x684   :  { %5226 = vmatmul.msk.f32.vlgmr.msra.gmra.mxu1 %vm985_vm8, %v1139_v59 }
 0x6e5   :  { %v1169_v61 = vpop.permute.xlu1 %1168 }
 0x6e6   :  { %5227 = vmatpush.xpose.msk.msra.mxu2 %vm985_vm8, %v1169_v61 }
 0x6ea   :  { %1350 = vmatpush.msrb.mxu2 %v981_v60 }
 0x6ed   :  { %v1167_v62 = vpop.permute.xlu1 %1166 }
 0x6ee   :  { %5228 = vmatmul.msk.f32.vlgmr.msra.gmra.mxu2 %vm985_vm8, %v1167_v62 }
 0x6f9   :  { %v1035_v63 = vpop.f32.mrf.mxu2  ;;  %v1112_v2 = vpop.f32.mrf.mxu1 }
 0x6fa   :  { %v1039_v3 = vmul.f32 0.17677669, %v1035_v63  ;;  %5233 = vmatmul.msk.f32.vlgmr.msrb.gmra.mxu2 %vm985_vm8, %v1112_v2 }
 0x6fc   :  { %v1043_v4 = vsel %vm7250_vm9, %v1039_v3, -1e+30 }
 0x6fd   :  { %v1047_v5 = vsel %vm985_vm8, %v1043_v4, -inf }
 0x6fe   :  { %1048 = vmax.xlane.f32.xlu0 %v1047_v5 }
 0x701   :  { %v1163_v6 = vpop.f32.mrf.mxu1 }
 0x702   :  { %v1194_v7 = vmul.f32 0.17677669, %v1163_v6 }
 0x704   :  { %v1196_v9 = vsel %vm7250_vm9, %v1194_v7, -1e+30 }
 0x705   :  { %v1198_v12 = vsel %vm985_vm8, %v1196_v9, -inf }
 0x706   :  { %1199 = vmax.xlane.f32.xlu2 %v1198_v12 }
 0x712   :  { %1247 = vrot.lane.b32.xlu0 %v7289_v53, %s6709_s3 }
 0x71a   :  { %1360 = vrot.lane.b32.xlu0 %v7238_v1, %s6710_s28 }
 0x771   :  { %v1049_v13 = vpop.xlane.xlu0 %1048  ;;  %v1191_v14 = vpop.f32.mrf.mxu2 }
 0x772   :  { %v1051_v15 = vsub.f32 %v1043_v4, %v1049_v13  ;;  %v1195_v16 = vmul.f32 0.17677669, %v1191_v14 }
 0x774   :  { %v1054_v17 = vmul.f32 1.442695, %v1051_v15  ;;  %v1197_v18 = vsel %vm7250_vm9, %v1195_v16, -1e+30 }
 0x775   :  { %v1201_v10 = vsel %vm985_vm8, %v1197_v18, -inf }
 0x776   :  { %5546 = vpow2.f32 %v1054_v17  ;;  %1202 = vmax.xlane.f32.xlu2 %v1201_v10 }
 0x779   :  { %v1200_v11 = vpop.xlane.xlu2 %1199 }
 0x77a   :  { %v1204_v19 = vsub.f32 %v1196_v9, %v1200_v11 }
 0x77c   :  { %v5547_v20 = vpop.eup %5546  ;;  %v1206_v21 = vmul.f32 1.442695, %v1204_v19 }
 0x77d   :  { %v1059_v22 = vsel %vm985_vm8, %v5547_v20, 0.0 }
 0x77e   :  { %5548 = vpow2.f32 %v1206_v21  ;;  %1060 = vadd.xlane.f32.xlu1 %v1059_v22 }
 0x784   :  { %v5549_v23 = vpop.eup %5548  ;;  %v1248_v24 = vpop.permute.xlu0 %1247 }
 0x785   :  { %1268 = vmatpush.msra.mxu3 %v1248_v24  ;;  %v1210_v26 = vsel %vm985_vm8, %v5549_v23, 0.0 }
 0x786   :  { %1211 = vadd.xlane.f32.xlu0 %v1210_v26 }
 0x78c   :  { %v1361_v27 = vpop.permute.xlu0 %1360 }
 0x78d   :  { %5235 = vmatpush.xpose.msk.msrb.mxu3 %vm985_vm8, %v1361_v27  ;;  %v7359_v27 = vpop.f32.mrf.mxu2 }
 0x78e   :  { %1388 = vrot.lane.b32.xlu2 %v7278_v45, %s6710_s28 }
 0x79a   :  { %1358 = vrot.lane.b32.xlu0 %v7235_v0, %s6710_s28 }
 0x7a2   :  { %1274 = vrot.lane.b32.xlu0 %v7296_v58, %s6709_s3 }
 0x7aa   :  { %1386 = vrot.lane.b32.xlu0 %v7285_v47, %s6710_s28 }
 0x7b2   :  { %1549 = vrot.lane.b32.xlu0 %v7235_v0, %s6711_s21 }
 0x7e9   :  { %v1203_v28 = vpop.xlane.xlu2 %1202 }
 0x7ea   :  { %v1205_v29 = vsub.f32 %v1197_v18, %v1203_v28 }
 0x7ec   :  { %v1208_v30 = vmul.f32 1.442695, %v1205_v29 }
 0x7ee   :  { %5550 = vpow2.f32 %v1208_v30 }
 0x7f1   :  { %v1061_v31 = vpop.xlane.xlu1 %1060  ;;  %v1389_v2 = vpop.permute.xlu2 %1388 }
 0x7f2   :  { %5552 = vrcp.f32 %v1061_v31  ;;  %v1088_v39 = vand.u32 2147483648, %v1061_v31  ;;  %v1086_v0 = vand.u32 2147483647, %v1061_v31  ;;  %vm1082_vm4 = vweird.f32 %v1061_v31 }
 0x7f4   :  { %v7330_v32 = vpop.eup %5550  ;;  %v1089_v43 = vor.u32 1.1754944e-38, %v1088_v39  ;;  %vm1087_vm6 = vcmp.eq.f32.partialorder %v1086_v0, 8.507059e+37 }
 0x7f5   :  { %v1213_v34 = vsel %vm985_vm8, %v7330_v32, 0.0 }
 0x7f6   :  { %1214 = vadd.xlane.f32.xlu1 %v1213_v34 }
 0x7f8   :  { %v5553_v35 = vpop.eup %5552 }
 0x7f9   :  { %v1078_v36 = vmul.f32 %v5553_v35, %v1061_v31  ;;  %v1212_v37 = vpop.xlane.xlu0 %1211  ;;  %vm1083_vm3 = vweird.f32 %v5553_v35 }
 0x7fa   :  { %5554 = vrcp.f32 %v1212_v37  ;;  %vm1084_vm5 = vmor %vm1082_vm4, %vm1083_vm3  ;;  %v1227_v51 = vand.u32 2147483648, %v1212_v37  ;;  %v1225_v54 = vand.u32 2147483647, %v1212_v37  ;;  %vm1221_vm10 = vweird.f32 %v1212_v37 }
 0x7fb   :  { %v1079_v38 = vsub.f32 1.0, %v1078_v36 }
 0x7fc   :  { %v1228_v57 = vor.u32 1.1754944e-38, %v1227_v51  ;;  %vm1226_vm12 = vcmp.eq.f32.partialorder %v1225_v54, 8.507059e+37 }
 0x7fd   :  { %v1080_v40 = vmul.f32 %v5553_v35, %v1079_v38 }
 0x7ff   :  { %v1081_v41 = vadd.f32 %v5553_v35, %v1080_v40 }
 0x800   :  { %v5555_v42 = vpop.eup %5554 }
 0x801   :  { %v1217_v44 = vmul.f32 %v5555_v42, %v1212_v37  ;;  %v1085_v46 = vsel %vm1084_vm5, %v5553_v35, %v1081_v41  ;;  %vm1222_vm7 = vweird.f32 %v5555_v42 }
 0x802   :  { %v1090_v48 = vsel %vm1087_vm6, %v1089_v43, %v1085_v46  ;;  %vm1223_vm11 = vmor %vm1221_vm10, %vm1222_vm7 }
 0x803   :  { %v1218_v49 = vsub.f32 1.0, %v1217_v44  ;;  %v1091_v50 = vmul.f32 %v5547_v20, %v1090_v48 }
 0x805   :  { %v1219_v52 = vmul.f32 %v5555_v42, %v1218_v49  ;;  %5224 = vmatmul.msk.f32.vlgmr.msrb.gmra.mxu0 %vm985_vm8, %v1091_v50 }
 0x807   :  { %v1220_v55 = vadd.f32 %v5555_v42, %v1219_v52 }
 0x809   :  { %v1224_v59 = vsel %vm1223_vm11, %v5555_v42, %v1220_v55 }
 0x80a   :  { %v1229_v60 = vsel %vm1226_vm12, %v1228_v57, %v1224_v59 }
 0x80b   :  { %v1230_v61 = vmul.f32 %v5549_v23, %v1229_v60 }
 0x80c   :  { %v1359_v62 = vpop.permute.xlu0 %1358 }
 0x80d   :  { %5229 = vmatmul.msk.f32.vlgmr.msra.gmra.mxu3 %vm985_vm8, %v1230_v61 }
 0x80f   :  { %1551 = vrot.lane.b32.xlu1 %v7238_v1, %s6711_s21  ;;  %v982_v1 = vld [vmem:[%s8214_s23 + $0x8] sm:$0xff] }
 0x810   :  { %1321 = vmatpush.msrb.mxu1 %v982_v1 }
 0x814   :  { %v1275_v63 = vpop.permute.xlu0 %1274 }
 0x815   :  { %1295 = vmatpush.msra.mxu0 %v1275_v63  ;;  %5236 = vmatmul.msk.f32.vlgmr.msrb.gmra.mxu3 %vm985_vm8, %v1359_v62 }
 0x817   :  { %5237 = vmatpush.xpose.msk.msrb.mxu0 %vm985_vm8, %v1389_v2  ;;  %1466 = vrot.lane.b32.xlu1 %v7289_v53, %s6710_s28 }
 0x81c   :  { %v1387_v16 = vpop.permute.xlu0 %1386 }
 0x81f   :  { %1579 = vrot.lane.b32.xlu1 %v7278_v45, %s6711_s21 }
 0x824   :  { %v1550_v11 = vpop.permute.xlu0 %1549 }
 0x827   :  { %1577 = vrot.lane.b32.xlu1 %v7285_v47, %s6711_s21 }
 0x869   :  { %v1215_v3 = vpop.xlane.xlu1 %1214 }
 0x86a   :  { %5556 = vrcp.f32 %v1215_v3  ;;  %v1242_v7 = vand.u32 2147483648, %v1215_v3  ;;  %v1240_v12 = vand.u32 2147483647, %v1215_v3  ;;  %vm1236_vm14 = vweird.f32 %v1215_v3 }
 0x86c   :  { %v1243_v14 = vor.u32 1.1754944e-38, %v1242_v7  ;;  %vm1241_vm1 = vcmp.eq.f32.partialorder %v1240_v12, 8.507059e+37 }
 0x870   :  { %v5557_v4 = vpop.eup %5556 }
 0x871   :  { %v1232_v5 = vmul.f32 %v5557_v4, %v1215_v3  ;;  %vm1237_vm13 = vweird.f32 %v5557_v4 }
 0x872   :  { %vm1238_vm15 = vmor %vm1236_vm14, %vm1237_vm13 }
 0x873   :  { %v1233_v6 = vsub.f32 1.0, %v1232_v5 }
 0x875   :  { %v1234_v9 = vmul.f32 %v5557_v4, %v1233_v6 }
 0x877   :  { %v1235_v13 = vadd.f32 %v5557_v4, %v1234_v9 }
 0x879   :  { %v1239_v15 = vsel %vm1238_vm15, %v5557_v4, %v1235_v13 }
 0x87a   :  { %v1244_v45 = vsel %vm1241_vm1, %v1243_v14, %v1239_v15 }
 0x87b   :  { %v1245_v47 = vmul.f32 %v7330_v32, %v1244_v45 }
 0x87d   :  { %5230 = vmatmul.msk.f32.vlgmr.msra.gmra.mxu0 %vm985_vm8, %v1245_v47 }
 0x881   :  { %v1552_v17 = vpop.permute.xlu1 %1551 }
 0x882   :  { %v1135_v18 = vpop.f32.mrf.mxu0  ;;  %5243 = vmatpush.xpose.msk.msra.mxu2 %vm985_vm8, %v1552_v17 }
 0x883   :  { %5234 = vmatmul.msk.f32.gmra.mxu2 %vm985_vm8, %v1135_v18 }
 0x885   :  { %5238 = vmatmul.msk.f32.vlgmr.msrb.gmra.mxu0 %vm985_vm8, %v1387_v16 }
 0x889   :  { %v1467_v10 = vpop.permute.xlu1 %1466 }
 0x88a   :  { %1487 = vmatpush.msra.mxu3 %v1467_v10 }
 0x88b   :  { %5244 = vmatmul.msk.f32.vlgmr.msra.gmra.mxu2 %vm985_vm8, %v1550_v11 }
 0x890   :  { %v1270_v19 = vpop.f32.mrf.mxu3 }
 0x891   :  { %5231 = vmatmul.msk.f32.vlgmr.msrb.gmra.mxu1 %vm985_vm8, %v1270_v19  ;;  %v1580_v20 = vpop.permute.xlu1 %1579 }
 0x892   :  { %5245 = vmatpush.xpose.msk.msrb.mxu3 %vm985_vm8, %v1580_v20 }
 0x898   :  { %v1383_v21 = vpop.f32.mrf.mxu3 }
 0x899   :  { %v1414_v22 = vmul.f32 0.17677669, %v1383_v21  ;;  %v1578_v42 = vpop.permute.xlu1 %1577 }
 0x89b   :  { %v1416_v23 = vsel %vm7250_vm9, %v1414_v22, -1e+30 }
 0x89c   :  { %v1418_v24 = vsel %vm985_vm8, %v1416_v23, -inf }
 0x89d   :  { %1419 = vmax.xlane.f32.xlu0 %v1418_v24 }
 0x8fa   :  { %v1297_v26 = vpop.f32.mrf.mxu0 }
 0x8fb   :  { %5232 = vmatmul.msk.f32.gmra.mxu1 %vm985_vm8, %v1297_v26 }
 0x902   :  { %v1411_v28 = vpop.f32.mrf.mxu0 }
 0x903   :  { %v1415_v29 = vmul.f32 0.17677669, %v1411_v28 }
 0x905   :  { %v1417_v30 = vsel %vm7250_vm9, %v1415_v29, -1e+30 }
 0x906   :  { %v7363_v31 = vpop.f32.mrf.mxu2  ;;  %v1421_v32 = vsel %vm985_vm8, %v1417_v30, -inf }
 0x907   :  { %1422 = vmax.xlane.f32.xlu1 %v1421_v32 }
 0x90e   :  { %v1574_v34 = vpop.f32.mrf.mxu2 }
 0x90f   :  { %v1605_v35 = vmul.f32 0.17677669, %v1574_v34 }
 0x910   :  { %v1420_v36 = vpop.xlane.xlu0 %1419 }
 0x911   :  { %v1424_v37 = vsub.f32 %v1416_v23, %v1420_v36  ;;  %v1607_v38 = vsel %vm7250_vm9, %v1605_v35, -1e+30 }
 0x912   :  { %v1609_v39 = vsel %vm985_vm8, %v1607_v38, -inf }
 0x913   :  { %v1426_v40 = vmul.f32 1.442695, %v1424_v37  ;;  %1610 = vmax.xlane.f32.xlu0 %v1609_v39 }
 0x915   :  { %5558 = vpow2.f32 %v1426_v40 }
 0x91b   :  { %v5559_v0 = vpop.eup %5558 }
 0x91c   :  { %v1430_v41 = vsel %vm985_vm8, %v5559_v0, 0.0 }
 0x91d   :  { %1431 = vadd.xlane.f32.xlu2 %v1430_v41 }
 0x97a   :  { %v1423_v43 = vpop.xlane.xlu1 %1422 }
 0x97b   :  { %v1425_v44 = vsub.f32 %v1417_v30, %v1423_v43 }
 0x97d   :  { %v1428_v46 = vmul.f32 1.442695, %v1425_v44 }
 0x97f   :  { %5560 = vpow2.f32 %v1428_v46 }
 0x985   :  { %v5561_v48 = vpop.eup %5560 }
 0x986   :  { %v1611_v49 = vpop.xlane.xlu0 %1610  ;;  %v1433_v50 = vsel %vm985_vm8, %v5561_v48, 0.0 }
 0x987   :  { %v1615_v51 = vsub.f32 %v1607_v38, %v1611_v49  ;;  %1434 = vadd.xlane.f32.xlu2 %v1433_v50  ;;  %v1323_v50 = vpop.f32.mrf.mxu1 }
 0x989   :  { %v1617_v52 = vmul.f32 1.442695, %v1615_v51 }
 0x98b   :  { %5562 = vpow2.f32 %v1617_v52 }
 0x98f   :  { %v7395_v51 = vpop.f32.mrf.mxu1 }
 0x990   :  { %v1432_v54 = vpop.xlane.xlu2 %1431 }
 0x991   :  { %v7371_v55 = vpop.eup %5562  ;;  %5564 = vrcp.f32 %v1432_v54  ;;  %v1447_v62 = vand.u32 2147483648, %v1432_v54  ;;  %v1445_v2 = vand.u32 2147483647, %v1432_v54  ;;  %vm1441_vm4 = vweird.f32 %v1432_v54 }
 0x992   :  { %v1621_v57 = vsel %vm985_vm8, %v7371_v55, 0.0 }
 0x993   :  { %1622 = vadd.xlane.f32.xlu0 %v1621_v57  ;;  %v1448_v4 = vor.u32 1.1754944e-38, %v1447_v62  ;;  %vm1446_vm6 = vcmp.eq.f32.partialorder %v1445_v2, 8.507059e+37  ;;  %v7398_v57 = vld [vmem:[#allocation10] ss:$0 sm:$0xff] }
 0x997   :  { %v5565_v59 = vpop.eup %5564 }
 0x998   :  { %v1437_v60 = vmul.f32 %v5565_v59, %v1432_v54  ;;  %vm1442_vm3 = vweird.f32 %v5565_v59  ;;  %v1353_v54 = vadd.f32 %v7359_v27, %v1323_v50  ;;  %v1847_v50 = vld [vmem:[%s8216_s14 + $0x20] sm:$0xff] }
 0x999   :  { %vm1443_vm5 = vmor %vm1441_vm4, %vm1442_vm3 }
 0x99a   :  { %v1438_v61 = vsub.f32 1.0, %v1437_v60 }
 0x99c   :  { %v1439_v63 = vmul.f32 %v5565_v59, %v1438_v61 }
 0x99e   :  { %v1440_v3 = vadd.f32 %v5565_v59, %v1439_v63 }
 0x99f   :  { %1492 = vrot.lane.b32.xlu2 %v7296_v58, %s6710_s28 }
 0x9a0   :  { %v1444_v1 = vsel %vm1443_vm5, %v5565_v59, %v1440_v3 }
 0x9a1   :  { %v1449_v5 = vsel %vm1446_vm6, %v1448_v4, %v1444_v1 }
 0x9a2   :  { %v1450_v6 = vmul.f32 %v5559_v0, %v1449_v5  ;;  %v984_v0 = vld [vmem:[%s8214_s23 + $0x18] sm:$0xff] }
 0x9a4   :  { %5239 = vmatmul.msk.f32.vlgmr.msra.gmra.mxu3 %vm985_vm8, %v1450_v6 }
 0x9a5   :  { %1730 = vmatpush.msra.mxu3 %v984_v0  ;;  %v1854_v0 = vld [vmem:[%s8216_s14 + $0x58] sm:$0xff] }
 0x9a7   :  { %1657 = vrot.lane.b32.xlu0 %v7289_v53, %s6711_s21  ;;  %v983_v53 = vld [vmem:[%s8214_s23 + $0x10] sm:$0xff]  ;;  %s8237_s23 = sld [smem:[#allocation126_spill]] }
 0x9a8   :  { %1539 = vmatpush.msra.mxu1 %v983_v53 }
 0x9ac   :  { %5246 = vmatmul.msk.f32.vlgmr.msrb.gmra.mxu3 %vm985_vm8, %v1578_v42 }
 0x9af   :  { %1683 = vrot.lane.b32.xlu0 %v7296_v58, %s6711_s21 }
 0x9fa   :  { %v1435_v7 = vpop.xlane.xlu2 %1434 }
 0x9fb   :  { %5566 = vrcp.f32 %v1435_v7  ;;  %v1462_v15 = vand.u32 2147483648, %v1435_v7  ;;  %v1460_v47 = vand.u32 2147483647, %v1435_v7  ;;  %vm1456_vm10 = vweird.f32 %v1435_v7 }
 0x9fd   :  { %v1463_v18 = vor.u32 1.1754944e-38, %v1462_v15  ;;  %vm1461_vm12 = vcmp.eq.f32.partialorder %v1460_v47, 8.507059e+37 }
 0xa01   :  { %v5567_v9 = vpop.eup %5566 }
 0xa02   :  { %v1452_v12 = vmul.f32 %v5567_v9, %v1435_v7  ;;  %v1493_v13 = vpop.permute.xlu2 %1492  ;;  %vm1457_vm7 = vweird.f32 %v5567_v9 }
 0xa03   :  { %1513 = vmatpush.msra.mxu0 %v1493_v13  ;;  %vm1458_vm11 = vmor %vm1456_vm10, %vm1457_vm7 }
 0xa04   :  { %v1453_v14 = vsub.f32 1.0, %v1452_v12 }
 0xa06   :  { %v1454_v45 = vmul.f32 %v5567_v9, %v1453_v14  ;;  %v1623_v16 = vpop.xlane.xlu0 %1622 }
 0xa07   :  { %5568 = vrcp.f32 %v1623_v16  ;;  %v1638_v22 = vand.u32 2147483648, %v1623_v16  ;;  %v1636_v24 = vand.u32 2147483647, %v1623_v16  ;;  %vm1632_vm14 = vweird.f32 %v1623_v16 }
 0xa08   :  { %v1455_v17 = vadd.f32 %v5567_v9, %v1454_v45 }
 0xa09   :  { %v1639_v28 = vor.u32 1.1754944e-38, %v1638_v22  ;;  %vm1637_vm1 = vcmp.eq.f32.partialorder %v1636_v24, 8.507059e+37 }
 0xa0a   :  { %v1459_v58 = vsel %vm1458_vm11, %v5567_v9, %v1455_v17  ;;  %v1807_v17 = vld [vmem:[%s8215_s6 + $0x18] sm:$0xff] }
 0xa0b   :  { %v1464_v10 = vsel %vm1461_vm12, %v1463_v18, %v1459_v58  ;;  %v1806_v18 = vld [vmem:[%s8215_s6 + $0x10] sm:$0xff]  ;;  %v1805_v58 = vld [vmem:[%s8215_s6 + $0x8] sm:$0xff] }
 0xa0c   :  { %v1465_v11 = vmul.f32 %v5561_v48, %v1464_v10  ;;  %v1804_v10 = vld [vmem:[%s8215_s6] sm:$0xff] }
 0xa0d   :  { %v5569_v19 = vpop.eup %5568 }
 0xa0e   :  { %v1628_v20 = vmul.f32 %v5569_v19, %v1623_v16  ;;  %5240 = vmatmul.msk.f32.vlgmr.msra.gmra.mxu0 %vm985_vm8, %v1465_v11  ;;  %vm1633_vm13 = vweird.f32 %v5569_v19 }
 0xa0f   :  { %vm1634_vm15 = vmor %vm1632_vm14, %vm1633_vm13 }
 0xa10   :  { %v1629_v21 = vsub.f32 1.0, %v1628_v20 }
 0xa12   :  { %v1630_v23 = vmul.f32 %v5569_v19, %v1629_v21 }
 0xa14   :  { %v1631_v26 = vadd.f32 %v5569_v19, %v1630_v23 }
 0xa16   :  { %v1635_v29 = vsel %vm1634_vm15, %v5569_v19, %v1631_v26 }
 0xa17   :  { %v1640_v30 = vsel %vm1637_vm1, %v1639_v28, %v1635_v29  ;;  %v7412_v29 = vld [vmem:[#allocation11] ss:$0 sm:$0xff] }
 0xa18   :  { %v1641_v32 = vmul.f32 %v7371_v55, %v1640_v30 }
 0xa19   :  { %v1658_v34 = vpop.permute.xlu0 %1657 }
 0xa1a   :  { %1678 = vmatpush.msrb.mxu0 %v1658_v34  ;;  %v7414_v34 = vld [vmem:[#allocation13] ss:$0 sm:$0xff] }
 0xa1b   :  { %5247 = vmatmul.msk.f32.vlgmr.msrb.gmra.mxu0 %vm985_vm8, %v1641_v32 }
 0xa1c   :  { %1830 = vmatpush.msra.mxu0 %v1807_v17 }
 0xa1e   :  { %1831 = vmatpush.msra.mxu0 %v1806_v18 }
 0xa20   :  { %1832 = vmatpush.msra.mxu0 %v1805_v58 }
 0xa21   :  { %v1684_v35 = vpop.permute.xlu0 %1683 }
 0xa22   :  { %1704 = vmatpush.msrb.mxu2 %v1684_v35  ;;  %1833 = vmatpush.msra.mxu0 %v1804_v10  ;;  %v1858_v35 = vld [vmem:[%s8216_s14 + $0x78] sm:$0xff] }
 0xa23   :  { %1863 = vmatpush.msrb.mxu1 %v1858_v35  ;;  %v1984_v35 = vld [vmem:[%s8218_s26 + $0x18] sm:$0xff] }
 0xa24   :  { %2001 = vmatpush.msrb.mxu3 %v1984_v35 }
 0xa27   :  { %v1489_v36 = vpop.f32.mrf.mxu3 }
 0xa28   :  { %5241 = vmatmul.msk.f32.vlgmr.msra.gmra.mxu1 %vm985_vm8, %v1489_v36  ;;  %v1857_v36 = vld [vmem:[%s8216_s14 + $0x70] sm:$0xff] }
 0xa29   :  { %1864 = vmatpush.msrb.mxu1 %v1857_v36  ;;  %v2015_v36 = vld [vmem:[%s8219_s1 + $0x18] sm:$0xff] }
 0xa2a   :  { %2032 = vmatpush.msrb.mxu0 %v2015_v36 }
 0xa2f   :  { %v1602_v37 = vpop.f32.mrf.mxu3 }
 0xa30   :  { %v1606_v38 = vmul.f32 0.17677669, %v1602_v37 }
 0xa32   :  { %v1608_v39 = vsel %vm7250_vm9, %v1606_v38, -1e+30  ;;  %v1856_v38 = vld [vmem:[%s8216_s14 + $0x68] sm:$0xff] }
 0xa33   :  { %v1612_v40 = vsel %vm985_vm8, %v1608_v39, -inf  ;;  %1865 = vmatpush.msrb.mxu1 %v1856_v38  ;;  %v1983_v38 = vld [vmem:[%s8218_s26 + $0x10] sm:$0xff] }
 0xa34   :  { %1613 = vmax.xlane.f32.xlu1 %v1612_v40  ;;  %v1855_v40 = vld [vmem:[%s8216_s14 + $0x60] sm:$0xff]  ;;  %2002 = vmatpush.msrb.mxu3 %v1983_v38 }
 0xa35   :  { %1866 = vmatpush.msrb.mxu1 %v1855_v40  ;;  %v1945_v40 = vld [vmem:[%s8217_s5 + $0x8] sm:$0xff] }
 0xa37   :  { %1867 = vmatpush.msrb.mxu1 %v1854_v0  ;;  %v1982_v0 = vld [vmem:[%s8218_s26 + $0x8] sm:$0xff] }
 0xa38   :  { %2003 = vmatpush.msrb.mxu3 %v1982_v0 }
 0xa8b   :  { %v1515_v41 = vpop.f32.mrf.mxu0 }
 0xa8c   :  { %5242 = vmatmul.msk.f32.gmra.mxu1 %vm985_vm8, %v1515_v41  ;;  %v1853_v41 = vld [vmem:[%s8216_s14 + $0x50] sm:$0xff] }
 0xa8d   :  { %1868 = vmatpush.msrb.mxu1 %v1853_v41  ;;  %v2013_v41 = vld [vmem:[%s8219_s1 + $0x8] sm:$0xff] }
 0xa98   :  { %v1680_v42 = vpop.f32.mrf.mxu0 }
 0xa99   :  { %5249 = vmatmul.msk.f32.vlgmr.msra.gmra.mxu3 %vm985_vm8, %v1680_v42  ;;  %v1852_v42 = vld [vmem:[%s8216_s14 + $0x48] sm:$0xff] }
 0xa9a   :  { %1869 = vmatpush.msrb.mxu1 %v1852_v42  ;;  %v1944_v42 = vld [vmem:[%s8217_s5] sm:$0xff] }
 0xaa5   :  { %v1541_v52 = vpop.f32.mrf.mxu1 }
 0xaa6   :  { %v1547_v55 = vadd.f32 %v1541_v52, %v1353_v54  ;;  %v1356_v52 = vadd.f32 %v7363_v31, %v7395_v51  ;;  %v1846_v54 = vld [vmem:[%s8216_s14 + $0x18] sm:$0xff]  ;;  %v1843_v31 = vld [vmem:[%s8216_s14] sm:$0xff] }
 0xaa7   :  { %v1614_v43 = vpop.xlane.xlu1 %1613  ;;  %v5503_v51 = vld [vmem:[#allocation14] ss:$0 sm:$0xff] }
 0xaa8   :  { %v1616_v44 = vsub.f32 %v1608_v39, %v1614_v43  ;;  %v1851_v43 = vld [vmem:[%s8216_s14 + $0x40] sm:$0xff] }
 0xaa9   :  { %1870 = vmatpush.msrb.mxu1 %v1851_v43  ;;  %v1981_v43 = vld [vmem:[%s8218_s26] sm:$0xff] }
 0xaaa   :  { %v1619_v46 = vmul.f32 1.442695, %v1616_v44  ;;  %v1850_v44 = vld [vmem:[%s8216_s14 + $0x38] sm:$0xff]  ;;  %2004 = vmatpush.msrb.mxu3 %v1981_v43 }
 0xaab   :  { %1871 = vmatpush.msrb.mxu1 %v1850_v44  ;;  %v2012_v44 = vld [vmem:[%s8219_s1] sm:$0xff] }
 0xaac   :  { %5570 = vpow2.f32 %v1619_v46  ;;  %v1849_v46 = vld [vmem:[%s8216_s14 + $0x30] sm:$0xff] }
 0xaad   :  { %1872 = vmatpush.msrb.mxu1 %v1849_v46 }
 0xab2   :  { %v5571_v48 = vpop.eup %5570 }
 0xab3   :  { %v1624_v49 = vsel %vm985_vm8, %v5571_v48, 0.0 }
 0xab4   :  { %1625 = vadd.xlane.f32.xlu2 %v1624_v49 }
 0xb09   :  { %v1544_v49 = vpop.f32.mrf.mxu1 }
 0xb1c   :  { %v1732_v59 = vpop.f32.mrf.mxu3 }
 0xb1d   :  { %v1738_v60 = vadd.f32 %v1732_v59, %v1547_v55  ;;  %v1548_v55 = vadd.f32 %v1544_v49, %v1356_v52 }
 0xb1f   :  { %v1744_v61 = vadd.f32 %v7398_v57, %v1738_v60 }
 0xb21   :  { %v1746_v62 = vadd.f32 %v1744_v61, %v7222_v56 }
 0xb23   :  { %v1750_v63 = vsel %vm820_vm2, %v1746_v62, 0.0 }
 0xb24   :  { %1751 = vadd.xlane.f32.xlu1 %v1750_v63 }
 0xb27   :  { %v1626_v2 = vpop.xlane.xlu2 %1625 }
 0xb28   :  { %5572 = vrcp.f32 %v1626_v2  ;;  %v1653_v5 = vand.u32 2147483648, %v1626_v2  ;;  %v1651_v27 = vand.u32 2147483647, %v1626_v2  ;;  %vm1647_vm4 = vweird.f32 %v1626_v2 }
 0xb2a   :  { %v1654_v9 = vor.u32 1.1754944e-38, %v1653_v5  ;;  %vm1652_vm6 = vcmp.eq.f32.partialorder %v1651_v27, 8.507059e+37 }
 0xb2e   :  { %v5573_v3 = vpop.eup %5572 }
 0xb2f   :  { %v1643_v4 = vmul.f32 %v5573_v3, %v1626_v2  ;;  %vm1648_vm3 = vweird.f32 %v5573_v3  ;;  %v1845_v2 = vld [vmem:[%s8216_s14 + $0x10] sm:$0xff] }
 0xb30   :  { %vm1649_vm5 = vmor %vm1647_vm4, %vm1648_vm3 }
 0xb31   :  { %v1644_v1 = vsub.f32 1.0, %v1643_v4 }
 0xb33   :  { %v1645_v6 = vmul.f32 %v5573_v3, %v1644_v1 }
 0xb35   :  { %v1646_v7 = vadd.f32 %v5573_v3, %v1645_v6 }
 0xb37   :  { %v1650_v12 = vsel %vm1649_vm5, %v5573_v3, %v1646_v7  ;;  %v1844_v3 = vld [vmem:[%s8216_s14 + $0x8] sm:$0xff] }
 0xb38   :  { %v1655_v56 = vsel %vm1652_vm6, %v1654_v9, %v1650_v12  ;;  %v7442_v9 = vld [vmem:[#allocation16] ss:$0 sm:$0xff] }
 0xb39   :  { %v1656_v13 = vmul.f32 %v5571_v48, %v1655_v56  ;;  %v1848_v48 = vld [vmem:[%s8216_s14 + $0x28] sm:$0xff] }
 0xb3a   :  { %1873 = vmatpush.msrb.mxu1 %v1848_v48 }
 0xb3b   :  { %5248 = vmatmul.msk.f32.vlgmr.msrb.gmra.mxu2 %vm985_vm8, %v1656_v13 }
 0xb3c   :  { %1874 = vmatpush.msrb.mxu1 %v1847_v50 }
 0xb3e   :  { %1875 = vmatpush.msrb.mxu1 %v1846_v54 }
 0xb40   :  { %1876 = vmatpush.msrb.mxu1 %v1845_v2  ;;  %v5506_v2 = vld [vmem:[#allocation19] ss:$0 sm:$0xff] }
 0xb42   :  { %1877 = vmatpush.msrb.mxu1 %v1844_v3 }
 0xb44   :  { %1878 = vmatpush.msrb.mxu1 %v1843_v31 }
 0xb97   :  { %v1752_v14 = vpop.xlane.xlu1 %1751 }
 0xb98   :  { %v1756_v15 = vmul.f32 %v1752_v14, %v7198_v25 }
 0xb9a   :  { %v1758_v45 = vsub.f32 %v1746_v62, %v1756_v15 }
 0xb9c   :  { %v1760_v47 = vmul.f32 %v1758_v45, %v1758_v45 }
 0xb9e   :  { %v1762_v16 = vsel %vm820_vm2, %v1760_v47, 0.0 }
 0xb9f   :  { %1763 = vadd.xlane.f32.xlu0 %v1762_v16 }
 0xbbe   :  { %v1706_v53 = vpop.f32.mrf.mxu2 }
 0xbbf   :  { %5250 = vmatmul.msk.f32.gmra.mxu3 %vm985_vm8, %v1706_v53 }
 0xc12   :  { %v1764_v11 = vpop.xlane.xlu0 %1763 }
 0xc13   :  { %v1768_v19 = vmul.f32 %v1764_v11, %v7198_v25 }
 0xc15   :  { %v1770_v20 = vadd.f32 1e-05, %v1768_v19 }
 0xc17   :  { %5574 = vrsqrt.f32 %v1770_v20  ;;  %vm1778_vm10 = vweird.f32 %v1770_v20 }
 0xc1d   :  { %v5575_v21 = vpop.eup %5574 }
 0xc1e   :  { %v1773_v22 = vmul.f32 %v5575_v21, %v1770_v20  ;;  %vm1779_vm7 = vweird.f32 %v5575_v21 }
 0xc1f   :  { %vm1780_vm11 = vmor %vm1778_vm10, %vm1779_vm7 }
 0xc20   :  { %v1774_v23 = vmul.f32 %v5575_v21, %v1773_v22 }
 0xc22   :  { %v1775_v24 = vmul.f32 0.5, %v1774_v23 }
 0xc24   :  { %v1776_v26 = vsub.f32 1.5, %v1775_v24 }
 0xc26   :  { %v1777_v28 = vmul.f32 %v5575_v21, %v1776_v26 }
 0xc28   :  { %v1781_v30 = vsel %vm1780_vm11, %v5575_v21, %v1777_v28 }
 0xc29   :  { %v1792_v32 = vmul.f32 %v1781_v30, %v1758_v45 }
 0xc2b   :  { %v1797_v37 = vmul.f32 %v7412_v29, %v1792_v32 }
 0xc2d   :  { %v1802_v39 = vadd.f32 %v7414_v34, %v1797_v37  ;;  %v1946_v37 = vld [vmem:[%s8217_s5 + $0x10] sm:$0xff] }
 0xc2f   :  { %5251 = vmatmul.msk.f32.vlgmr.msra.gmra.mxu0 %vm820_vm2, %v1802_v39 }
 0xc42   :  { %v1735_v59 = vpop.f32.mrf.mxu3 }
 0xc43   :  { %v1739_v60 = vadd.f32 %v1735_v59, %v1548_v55 }
 0xc45   :  { %v1745_v61 = vadd.f32 %v7398_v57, %v1739_v60 }
 0xc47   :  { %v1747_v62 = vadd.f32 %v1745_v61, %v7264_v33  ;;  %v5505_v61 = vld [vmem:[#allocation17] ss:$0 sm:$0xff] }
 0xc49   :  { %v1753_v63 = vsel %vm820_vm2, %v1747_v62, 0.0 }
 0xc4a   :  { %1754 = vadd.xlane.f32.xlu1 %v1753_v63 }
 0xcac   :  { %v1835_v4 = vpop.f32.mrf.mxu0 }
 0xcad   :  { %v1836_v1 = vadd.f32 %v5503_v51, %v1835_v4 }
 0xcaf   :  { %v1841_v5 = vmax.f32 %v1836_v1, 0.0 }
 0xcb1   :  { %1879 = vmatmul.f32.vlgmr.msrb.gmra.mxu1 %v1841_v5 }
 0xcbd   :  { %v1755_v6 = vpop.xlane.xlu1 %1754 }
 0xcbe   :  { %v1757_v27 = vmul.f32 %v1755_v6, %v7198_v25  ;;  %v5507_v6 = vld [vmem:[#allocation23] ss:$0 sm:$0xff] }
 0xcc0   :  { %v1759_v57 = vsub.f32 %v1747_v62, %v1757_v27 }
 0xcc2   :  { %v1761_v7 = vmul.f32 %v1759_v57, %v1759_v57 }
 0xcc4   :  { %v1765_v33 = vsel %vm820_vm2, %v1761_v7, 0.0  ;;  %v5508_v7 = vld [vmem:[#allocation20] ss:$0 sm:$0xff] }
 0xcc5   :  { %1766 = vadd.xlane.f32.xlu1 %v1765_v33  ;;  %v5509_v33 = vld [vmem:[#allocation22] ss:$0 sm:$0xff] }
 0xd2e   :  { %v1880_v12 = vpop.f32.mrf.mxu1 }
 0xd2f   :  { %v1881_v56 = vadd.f32 %v7442_v9, %v1880_v12 }
 0xd31   :  { %v1886_v13 = vadd.f32 %v1881_v56, %v1802_v39  ;;  %v2014_v39 = vld [vmem:[%s8219_s1 + $0x10] sm:$0xff] }
 0xd32   :  { %2033 = vmatpush.msrb.mxu0 %v2014_v39 }
 0xd33   :  { %v1890_v14 = vsel %vm820_vm2, %v1886_v13, 0.0 }
 0xd34   :  { %1891 = vadd.xlane.f32.xlu1 %v1890_v14  ;;  %2034 = vmatpush.msrb.mxu0 %v2013_v41 }
 0xd36   :  { %2035 = vmatpush.msrb.mxu0 %v2012_v44 }
 0xd38   :  { %v1767_v15 = vpop.xlane.xlu1 %1766 }
 0xd39   :  { %v1769_v45 = vmul.f32 %v1767_v15, %v7198_v25 }
 0xd3b   :  { %v1771_v47 = vadd.f32 1e-05, %v1769_v45 }
 0xd3d   :  { %5576 = vrsqrt.f32 %v1771_v47  ;;  %vm1788_vm13 = vweird.f32 %v1771_v47 }
 0xd43   :  { %v5577_v16 = vpop.eup %5576 }
 0xd44   :  { %v1783_v53 = vmul.f32 %v5577_v16, %v1771_v47  ;;  %vm1789_vm12 = vweird.f32 %v5577_v16 }
 0xd45   :  { %vm1790_vm14 = vmor %vm1788_vm13, %vm1789_vm12 }
 0xd46   :  { %v1784_v17 = vmul.f32 %v5577_v16, %v1783_v53 }
 0xd48   :  { %v1785_v18 = vmul.f32 0.5, %v1784_v17 }
 0xd4a   :  { %v1786_v58 = vsub.f32 1.5, %v1785_v18 }
 0xd4c   :  { %v1787_v10 = vmul.f32 %v5577_v16, %v1786_v58 }
 0xd4e   :  { %v1791_v11 = vsel %vm1790_vm14, %v5577_v16, %v1787_v10 }
 0xd4f   :  { %v1793_v19 = vmul.f32 %v1791_v11, %v1759_v57 }
 0xd51   :  { %v1798_v20 = vmul.f32 %v7412_v29, %v1793_v19 }
 0xd53   :  { %v1803_v21 = vadd.f32 %v7414_v34, %v1798_v20  ;;  %v1947_v34 = vld [vmem:[%s8217_s5 + $0x18] sm:$0xff] }
 0xd54   :  { %1970 = vmatpush.msra.mxu2 %v1947_v34 }
 0xd55   :  { %5252 = vmatmul.msk.f32.gmra.mxu0 %vm820_vm2, %v1803_v21 }
 0xd56   :  { %1971 = vmatpush.msra.mxu2 %v1946_v37 }
 0xd58   :  { %1972 = vmatpush.msra.mxu2 %v1945_v40 }
 0xd5a   :  { %1973 = vmatpush.msra.mxu2 %v1944_v42 }
 0xda7   :  { %v1892_v22 = vpop.xlane.xlu1 %1891 }
 0xda8   :  { %v1896_v23 = vmul.f32 %v1892_v22, %v7198_v25 }
 0xdaa   :  { %v1898_v24 = vsub.f32 %v1886_v13, %v1896_v23 }
 0xdac   :  { %v1900_v26 = vmul.f32 %v1898_v24, %v1898_v24 }
 0xdae   :  { %v1902_v28 = vsel %vm820_vm2, %v1900_v26, 0.0 }
 0xdaf   :  { %1903 = vadd.xlane.f32.xlu1 %v1902_v28 }
 0xdd2   :  { %v1838_v30 = vpop.f32.mrf.mxu0 }
 0xdd3   :  { %v1839_v32 = vadd.f32 %v5503_v51, %v1838_v30 }
 0xdd5   :  { %v1842_v29 = vmax.f32 %v1839_v32, 0.0 }
 0xdd7   :  { %1882 = vmatmul.f32.gmra.mxu1 %v1842_v29 }
 0xe22   :  { %v1904_v46 = vpop.xlane.xlu1 %1903 }
 0xe23   :  { %v1908_v48 = vmul.f32 %v1904_v46, %v7198_v25 }
 0xe25   :  { %v1910_v49 = vadd.f32 1e-05, %v1908_v48 }
 0xe27   :  { %5578 = vrsqrt.f32 %v1910_v49  ;;  %vm1918_vm1 = vweird.f32 %v1910_v49 }
 0xe2d   :  { %v5579_v50 = vpop.eup %5578 }
 0xe2e   :  { %v1913_v52 = vmul.f32 %v5579_v50, %v1910_v49  ;;  %vm1919_vm15 = vweird.f32 %v5579_v50 }
 0xe2f   :  { %vm1920_vm3 = vmor %vm1918_vm1, %vm1919_vm15 }
 0xe30   :  { %v1914_v54 = vmul.f32 %v5579_v50, %v1913_v52 }
 0xe32   :  { %v1915_v55 = vmul.f32 0.5, %v1914_v54 }
 0xe34   :  { %v1916_v59 = vsub.f32 1.5, %v1915_v55 }
 0xe36   :  { %v1917_v60 = vmul.f32 %v5579_v50, %v1916_v59 }
 0xe38   :  { %v1921_v62 = vsel %vm1920_vm3, %v5579_v50, %v1917_v60 }
 0xe39   :  { %v1932_v63 = vmul.f32 %v1921_v62, %v1898_v24 }
 0xe3b   :  { %v1937_v3 = vmul.f32 %v5505_v61, %v1932_v63 }
 0xe3d   :  { %v7465_v31 = vadd.f32 %v5506_v2, %v1937_v3 }
 0xe3f   :  { %5253 = vmatmul.msk.f32.vlgmr.msra.gmra.mxu2 %vm820_vm2, %v7465_v31  ;;  %5255 = vmatmul.msk.f32.vlgmr.msrb.gmra.mxu3 %vm820_vm2, %v7465_v31 }
 0xe40   :  { %5257 = vmatmul.msk.f32.vlgmr.msrb.gmra.mxu0 %vm820_vm2, %v7465_v31 }
 0xe54   :  { %v1883_v51 = vpop.f32.mrf.mxu1 }
 0xe55   :  { %v1884_v4 = vadd.f32 %v7442_v9, %v1883_v51 }
 0xe57   :  { %v1887_v1 = vadd.f32 %v1884_v4, %v1803_v21 }
 0xe59   :  { %v1893_v5 = vsel %vm820_vm2, %v1887_v1, 0.0 }
 0xe5a   :  { %1894 = vadd.xlane.f32.xlu2 %v1893_v5 }
 0xebd   :  { %v2037_v27 = vpop.f32.mrf.mxu0 }
 0xebe   :  { %v7475_v57 = vadd.f32 %v5507_v6, %v2037_v27 }
 0xec0   :  { %2169 = vmatpush.msra.mxu3 %v7475_v57 }
 0xec2   :  { %v1975_v12 = vpop.f32.mrf.mxu2  ;;  %v2006_v56 = vpop.f32.mrf.mxu3 }
 0xec3   :  { %v7478_v13 = vadd.f32 %v5508_v7, %v1975_v12  ;;  %v7480_v14 = vadd.f32 %v5509_v33, %v2006_v56 }
 0xec5   :  { %2199 = vrot.lane.b32.xlu2 %v7480_v14, %s6709_s3  ;;  %5259 = vmatpush.xpose.msk.msrb.mxu2 %vm985_vm8, %v7480_v14 }
 0xec6   :  { %2197 = vrot.lane.b32.xlu0 %v7478_v13, %s6709_s3 }
 0xecd   :  { %v1895_v9 = vpop.xlane.xlu2 %1894 }
 0xece   :  { %v1897_v15 = vmul.f32 %v1895_v9, %v7198_v25 }
 0xed0   :  { %v1899_v45 = vsub.f32 %v1887_v1, %v1897_v15 }
 0xed2   :  { %v1901_v47 = vmul.f32 %v1899_v45, %v1899_v45 }
 0xed4   :  { %v1905_v16 = vsel %vm820_vm2, %v1901_v47, 0.0 }
 0xed5   :  { %1906 = vadd.xlane.f32.xlu1 %v1905_v16 }
 0xf1f   :  { %v2200_v53 = vpop.permute.xlu2 %2199 }
 0xf20   :  { %5265 = vmatpush.xpose.msk.msra.mxu1 %vm985_vm8, %v2200_v53 }
 0xf38   :  { %v2198_v17 = vpop.permute.xlu0 %2197 }
 0xf39   :  { %5266 = vmatmul.msk.f32.vlgmr.msra.gmra.mxu1 %vm985_vm8, %v2198_v17 }
 0xf48   :  { %v1907_v18 = vpop.xlane.xlu1 %1906 }
 0xf49   :  { %v1909_v58 = vmul.f32 %v1907_v18, %v7198_v25 }
 0xf4b   :  { %v1911_v10 = vadd.f32 1e-05, %v1909_v58 }
 0xf4d   :  { %5580 = vrsqrt.f32 %v1911_v10  ;;  %vm1928_vm5 = vweird.f32 %v1911_v10 }
 0xf53   :  { %v5581_v11 = vpop.eup %5580 }
 0xf54   :  { %v1923_v19 = vmul.f32 %v5581_v11, %v1911_v10  ;;  %vm1929_vm4 = vweird.f32 %v5581_v11 }
 0xf55   :  { %vm1930_vm6 = vmor %vm1928_vm5, %vm1929_vm4 }
 0xf56   :  { %v1924_v20 = vmul.f32 %v5581_v11, %v1923_v19 }
 0xf58   :  { %v1925_v21 = vmul.f32 0.5, %v1924_v20 }
 0xf5a   :  { %v1926_v22 = vsub.f32 1.5, %v1925_v21 }
 0xf5c   :  { %v1927_v23 = vmul.f32 %v5581_v11, %v1926_v22 }
 0xf5e   :  { %v1931_v24 = vsel %vm1930_vm6, %v5581_v11, %v1927_v23 }
 0xf5f   :  { %v1933_v26 = vmul.f32 %v1931_v24, %v1899_v45 }
 0xf61   :  { %v1938_v28 = vmul.f32 %v5505_v61, %v1933_v26 }
 0xf63   :  { %v7493_v30 = vadd.f32 %v5506_v2, %v1938_v28 }
 0xf65   :  { %5254 = vmatmul.msk.f32.gmra.mxu2 %vm820_vm2, %v7493_v30  ;;  %5256 = vmatmul.msk.f32.gmra.mxu3 %vm820_vm2, %v7493_v30 }
 0xf66   :  { %5258 = vmatmul.msk.f32.gmra.mxu0 %vm820_vm2, %v7493_v30 }
 0xf6d   :  { %5260 = vmatmul.msk.f32.vlgmr.msrb.gmra.mxu2 %vm985_vm8, %v7478_v13 }
 0xfb6   :  { %v2222_v40 = vpop.f32.mrf.mxu1 }
 0xfb7   :  { %v2253_v42 = vmul.f32 0.17677669, %v2222_v40 }
 0xfb9   :  { %v2255_v43 = vsel %vm7250_vm9, %v2253_v42, -1e+30  ;;  %v2044_v42 = vld [vmem:[%s8220_s2 + $0x8] sm:$0xff] }
 0xfba   :  { %v2257_v44 = vsel %vm985_vm8, %v2255_v43, -inf  ;;  %2380 = vmatpush.msrb.mxu1 %v2044_v42 }
 0xfe3   :  { %v2040_v32 = vpop.f32.mrf.mxu0 }
 0xfe4   :  { %v7503_v29 = vadd.f32 %v5507_v6, %v2040_v32 }
 0xfe6   :  { %2192 = vmatpush.msra.mxu0 %v7503_v29 }
 0xfe8   :  { %v1978_v34 = vpop.f32.mrf.mxu2  ;;  %v2009_v35 = vpop.f32.mrf.mxu3 }
 0xfe9   :  { %v7506_v36 = vadd.f32 %v5509_v33, %v2009_v35  ;;  %v7512_v37 = vadd.f32 %v5508_v7, %v1978_v34 }
 0xfeb   :  { %2227 = vrot.lane.b32.xlu2 %v7506_v36, %s6709_s3  ;;  %5261 = vmatpush.xpose.msk.msra.mxu2 %vm985_vm8, %v7506_v36 }
 0xfee   :  { %5262 = vmatmul.msk.f32.vlgmr.msra.gmra.mxu2 %vm985_vm8, %v7512_v37 }
 0xff0   :  { %v2070_v38 = vpop.f32.mrf.mxu2 }
 0xff1   :  { %v2099_v39 = vmul.f32 0.17677669, %v2070_v38 }
 0xff3   :  { %2306 = vrot.lane.b32.xlu2 %v7475_v57, %s6709_s3  ;;  %v2101_v0 = vsel %vm7250_vm9, %v2099_v39, -1e+30 }
 0xff4   :  { %v2103_v41 = vsel %vm985_vm8, %v2101_v0, -inf }
 0xff5   :  { %2104 = vmax.xlane.f32.xlu1 %v2103_v41  ;;  %v2043_v41 = vld [vmem:[%s8220_s2] sm:$0xff] }
 0xffb   :  { %2419 = vrot.lane.b32.xlu2 %v7480_v14, %s6710_s28 }
 0xffd   :  { %2258 = vmax.xlane.f32.xlu1 %v2257_v44 }
0x1003   :  { %2417 = vrot.lane.b32.xlu2 %v7478_v13, %s6710_s28 }
0x1045   :  { %v2228_v46 = vpop.permute.xlu2 %2227 }
0x1046   :  { %5267 = vmatpush.xpose.msk.msrb.mxu2 %vm985_vm8, %v2228_v46 }
0x104a   :  { %2409 = vmatpush.msra.mxu2 %v2043_v41 }
0x104d   :  { %v2307_v48 = vpop.permute.xlu2 %2306 }
0x104e   :  { %2327 = vmatpush.msrb.mxu3 %v2307_v48 }
0x1055   :  { %v2420_v10 = vpop.permute.xlu2 %2419 }
0x105d   :  { %v2418_v28 = vpop.permute.xlu2 %2417 }
0x1068   :  { %v2105_v49 = vpop.xlane.xlu1 %2104 }
0x1069   :  { %v2109_v50 = vsub.f32 %v2101_v0, %v2105_v49 }
0x106b   :  { %v2111_v52 = vmul.f32 1.442695, %v2109_v50 }
0x106d   :  { %5582 = vpow2.f32 %v2111_v52 }
0x1070   :  { %v2259_v54 = vpop.xlane.xlu1 %2258 }
0x1071   :  { %v2263_v55 = vsub.f32 %v2255_v43, %v2259_v54  ;;  %v2096_v2 = vpop.f32.mrf.mxu2 }
0x1072   :  { %v2100_v3 = vmul.f32 0.17677669, %v2096_v2 }
0x1073   :  { %v5583_v59 = vpop.eup %5582  ;;  %v2265_v60 = vmul.f32 1.442695, %v2263_v55 }
0x1074   :  { %v2115_v61 = vsel %vm985_vm8, %v5583_v59, 0.0  ;;  %v2102_v51 = vsel %vm7250_vm9, %v2100_v3, -1e+30 }
0x1075   :  { %5584 = vpow2.f32 %v2265_v60  ;;  %2116 = vadd.xlane.f32.xlu1 %v2115_v61  ;;  %v2106_v4 = vsel %vm985_vm8, %v2102_v51, -inf }
0x107b   :  { %v5585_v62 = vpop.eup %5584 }
0x107c   :  { %v2269_v63 = vsel %vm985_vm8, %v5585_v62, 0.0 }
0x107d   :  { %2270 = vadd.xlane.f32.xlu0 %v2269_v63 }
0x108e   :  { %2225 = vrot.lane.b32.xlu1 %v7512_v37, %s6709_s3 }
0x10b8   :  { %2107 = vmax.xlane.f32.xlu1 %v2106_v4 }
0x10d1   :  { %2333 = vrot.lane.b32.xlu1 %v7503_v29, %s6709_s3 }
0x10d9   :  { %2525 = vrot.lane.b32.xlu1 %v7475_v57, %s6710_s28 }
0x10e1   :  { %2636 = vrot.lane.b32.xlu1 %v7512_v37, %s6711_s21 }
0x10e8   :  { %v2117_v1 = vpop.xlane.xlu1 %2116 }
0x10e9   :  { %5586 = vrcp.f32 %v2117_v1  ;;  %v2132_v33 = vand.u32 2147483648, %v2117_v1  ;;  %v2130_v56 = vand.u32 2147483647, %v2117_v1  ;;  %vm2126_vm10 = vweird.f32 %v2117_v1 }
0x10eb   :  { %v2133_v45 = vor.u32 1.1754944e-38, %v2132_v33  ;;  %vm2131_vm12 = vcmp.eq.f32.partialorder %v2130_v56, 8.507059e+37 }
0x10ef   :  { %v5587_v5 = vpop.eup %5586 }
0x10f0   :  { %v2122_v6 = vmul.f32 %v5587_v5, %v2117_v1  ;;  %v2271_v27 = vpop.xlane.xlu0 %2270  ;;  %vm2127_vm7 = vweird.f32 %v5587_v5 }
0x10f1   :  { %5588 = vrcp.f32 %v2271_v27  ;;  %vm2128_vm11 = vmor %vm2126_vm10, %vm2127_vm7  ;;  %v2286_v58 = vand.u32 2147483648, %v2271_v27  ;;  %v2284_v19 = vand.u32 2147483647, %v2271_v27  ;;  %vm2280_vm14 = vweird.f32 %v2271_v27 }
0x10f2   :  { %v2123_v7 = vsub.f32 1.0, %v2122_v6 }
0x10f3   :  { %v2287_v21 = vor.u32 1.1754944e-38, %v2286_v58  ;;  %vm2285_vm1 = vcmp.eq.f32.partialorder %v2284_v19, 8.507059e+37 }
0x10f4   :  { %v2124_v12 = vmul.f32 %v5587_v5, %v2123_v7 }
0x10f6   :  { %v2125_v9 = vadd.f32 %v5587_v5, %v2124_v12 }
0x10f7   :  { %v5589_v15 = vpop.eup %5588 }
0x10f8   :  { %v2129_v47 = vsel %vm2128_vm11, %v5587_v5, %v2125_v9  ;;  %v2276_v16 = vmul.f32 %v5589_v15, %v2271_v27  ;;  %vm2281_vm13 = vweird.f32 %v5589_v15 }
0x10f9   :  { %v2134_v53 = vsel %vm2131_vm12, %v2133_v45, %v2129_v47  ;;  %vm2282_vm15 = vmor %vm2280_vm14, %vm2281_vm13 }
0x10fa   :  { %v2277_v17 = vsub.f32 1.0, %v2276_v16  ;;  %v2135_v18 = vmul.f32 %v5583_v59, %v2134_v53 }
0x10fc   :  { %v2278_v11 = vmul.f32 %v5589_v15, %v2277_v17  ;;  %5263 = vmatmul.msk.f32.vlgmr.msra.gmra.mxu3 %vm985_vm8, %v2135_v18 }
0x10fd   :  { %5275 = vmatpush.xpose.msk.msra.mxu3 %vm985_vm8, %v2420_v10 }
0x10fe   :  { %v2279_v20 = vadd.f32 %v5589_v15, %v2278_v11 }
0x1100   :  { %v2283_v22 = vsel %vm2282_vm15, %v5589_v15, %v2279_v20  ;;  %v2226_v23 = vpop.permute.xlu1 %2225 }
0x1101   :  { %v2288_v24 = vsel %vm2285_vm1, %v2287_v21, %v2283_v22  ;;  %5268 = vmatmul.msk.f32.vlgmr.msrb.gmra.mxu2 %vm985_vm8, %v2226_v23 }
0x1102   :  { %v2289_v26 = vmul.f32 %v5585_v62, %v2288_v24 }
0x1104   :  { %5269 = vmatmul.msk.f32.vlgmr.msrb.gmra.mxu3 %vm985_vm8, %v2289_v26 }
0x110c   :  { %5276 = vmatmul.msk.f32.vlgmr.msra.gmra.mxu3 %vm985_vm8, %v2418_v28 }
0x112b   :  { %v2108_v32 = vpop.xlane.xlu1 %2107 }
0x112c   :  { %v2110_v34 = vsub.f32 %v2102_v51, %v2108_v32 }
0x112e   :  { %v2113_v35 = vmul.f32 1.442695, %v2110_v34 }
0x1130   :  { %5590 = vpow2.f32 %v2113_v35 }
0x1136   :  { %v5591_v38 = vpop.eup %5590 }
0x1137   :  { %v2118_v39 = vsel %vm985_vm8, %v5591_v38, 0.0 }
0x1138   :  { %2119 = vadd.xlane.f32.xlu2 %v2118_v39 }
0x1143   :  { %v2334_v40 = vpop.permute.xlu1 %2333 }
0x1144   :  { %2354 = vmatpush.msrb.mxu0 %v2334_v40 }
0x114b   :  { %v2526_v0 = vpop.permute.xlu1 %2525 }
0x114c   :  { %2546 = vmatpush.msrb.mxu3 %v2526_v0 }
0x1150   :  { %2610 = vrot.lane.b32.xlu2 %v7480_v14, %s6711_s21 }
0x1158   :  { %2608 = vrot.lane.b32.xlu2 %v7478_v13, %s6711_s21 }
0x117f   :  { %v2171_v43 = vpop.f32.mrf.mxu3 }
0x1180   :  { %5273 = vmatmul.msk.f32.vlgmr.msra.gmra.mxu2 %vm985_vm8, %v2171_v43 }
0x1184   :  { %v2250_v44 = vpop.f32.mrf.mxu2 }
0x1185   :  { %v2254_v46 = vmul.f32 0.17677669, %v2250_v44 }
0x1187   :  { %v2329_v48 = vpop.f32.mrf.mxu3  ;;  %v2256_v49 = vsel %vm7250_vm9, %v2254_v46, -1e+30 }
0x1188   :  { %5271 = vmatmul.msk.f32.vlgmr.msrb.gmra.mxu1 %vm985_vm8, %v2329_v48  ;;  %v2260_v14 = vsel %vm985_vm8, %v2256_v49, -inf }
0x1189   :  { %2261 = vmax.xlane.f32.xlu0 %v2260_v14 }
0x118f   :  { %v2442_v6 = vpop.f32.mrf.mxu3 }
0x1190   :  { %v2473_v33 = vmul.f32 0.17677669, %v2442_v6 }
0x1192   :  { %v2475_v12 = vsel %vm7250_vm9, %v2473_v33, -1e+30 }
0x1193   :  { %v2477_v9 = vsel %vm985_vm8, %v2475_v12, -inf }
0x119d   :  { %2447 = vrot.lane.b32.xlu0 %v7506_v36, %s6710_s28 }
0x11ab   :  { %v2120_v13 = vpop.xlane.xlu2 %2119 }
0x11ac   :  { %5592 = vrcp.f32 %v2120_v13  ;;  %v2147_v59 = vand.u32 2147483648, %v2120_v13  ;;  %v2145_v61 = vand.u32 2147483647, %v2120_v13  ;;  %vm2141_vm4 = vweird.f32 %v2120_v13 }
0x11ae   :  { %v2148_v63 = vor.u32 1.1754944e-38, %v2147_v59  ;;  %vm2146_vm6 = vcmp.eq.f32.partialorder %v2145_v61, 8.507059e+37 }
0x11b2   :  { %v5593_v50 = vpop.eup %5592 }
0x11b3   :  { %v2137_v52 = vmul.f32 %v5593_v50, %v2120_v13  ;;  %v2611_v54 = vpop.permute.xlu2 %2610  ;;  %vm2142_vm3 = vweird.f32 %v5593_v50 }
0x11b4   :  { %5283 = vmatpush.xpose.msk.msrb.mxu2 %vm985_vm8, %v2611_v54  ;;  %vm2143_vm5 = vmor %vm2141_vm4, %vm2142_vm3 }
0x11b5   :  { %v2138_v55 = vsub.f32 1.0, %v2137_v52 }
0x11b7   :  { %v2139_v60 = vmul.f32 %v5593_v50, %v2138_v55 }
0x11b9   :  { %v2140_v62 = vadd.f32 %v5593_v50, %v2139_v60 }
0x11bb   :  { %v2144_v2 = vsel %vm2143_vm5, %v5593_v50, %v2140_v62  ;;  %v2609_v45 = vpop.permute.xlu2 %2608 }
0x11bc   :  { %v2149_v3 = vsel %vm2146_vm6, %v2148_v63, %v2144_v2  ;;  %v2637_v63 = vpop.permute.xlu1 %2636 }
0x11bd   :  { %v2150_v51 = vmul.f32 %v5591_v38, %v2149_v3 }
0x11bf   :  { %5264 = vmatmul.msk.f32.vlgmr.msra.gmra.mxu0 %vm985_vm8, %v2150_v51 }
0x11fc   :  { %v2262_v4 = vpop.xlane.xlu0 %2261 }
0x11fd   :  { %v2264_v1 = vsub.f32 %v2256_v49, %v2262_v4 }
0x11ff   :  { %v2267_v5 = vmul.f32 1.442695, %v2264_v1 }
0x1201   :  { %5594 = vpow2.f32 %v2267_v5  ;;  %v2045_v5 = vld [vmem:[%s8220_s2 + $0x10] sm:$0xff] }
0x1202   :  { %2598 = vmatpush.msra.mxu1 %v2045_v5 }
0x1203   :  { %v7577_v34 = vpop.f32.mrf.mxu2 }
0x1205   :  { %v2382_v5 = vpop.f32.mrf.mxu1 }
0x1207   :  { %v5595_v27 = vpop.eup %5594 }
0x1208   :  { %v2272_v7 = vsel %vm985_vm8, %v5595_v27, 0.0 }
0x1209   :  { %2273 = vadd.xlane.f32.xlu0 %v2272_v7 }
0x120f   :  { %v2448_v56 = vpop.permute.xlu0 %2447 }
0x1210   :  { %5277 = vmatpush.xpose.msk.msra.mxu0 %vm985_vm8, %v2448_v56 }
0x1211   :  { %2478 = vmax.xlane.f32.xlu0 %v2477_v9 }
0x1225   :  { %2445 = vrot.lane.b32.xlu0 %v7512_v37, %s6710_s28 }
0x123c   :  { %v2194_v15 = vpop.f32.mrf.mxu0 }
0x123d   :  { %5274 = vmatmul.msk.f32.gmra.mxu2 %vm985_vm8, %v2194_v15 }
0x1245   :  { %5284 = vmatmul.msk.f32.vlgmr.msrb.gmra.mxu2 %vm985_vm8, %v2609_v45 }
0x127c   :  { %v2274_v47 = vpop.xlane.xlu0 %2273 }
0x127d   :  { %5596 = vrcp.f32 %v2274_v47  ;;  %v2301_v10 = vand.u32 2147483648, %v2274_v47  ;;  %v2299_v20 = vand.u32 2147483647, %v2274_v47  ;;  %vm2295_vm10 = vweird.f32 %v2274_v47 }
0x127f   :  { %v2302_v21 = vor.u32 1.1754944e-38, %v2301_v10  ;;  %vm2300_vm12 = vcmp.eq.f32.partialorder %v2299_v20, 8.507059e+37 }
0x1283   :  { %v5597_v16 = vpop.eup %5596 }
0x1284   :  { %v2291_v53 = vmul.f32 %v5597_v16, %v2274_v47  ;;  %v2479_v17 = vpop.xlane.xlu0 %2478  ;;  %vm2296_vm7 = vweird.f32 %v5597_v16 }
0x1285   :  { %v2483_v18 = vsub.f32 %v2475_v12, %v2479_v17  ;;  %vm2297_vm11 = vmor %vm2295_vm10, %vm2296_vm7 }
0x1286   :  { %v2292_v58 = vsub.f32 1.0, %v2291_v53 }
0x1287   :  { %v2485_v11 = vmul.f32 1.442695, %v2483_v18 }
0x1288   :  { %v2293_v19 = vmul.f32 %v5597_v16, %v2292_v58 }
0x1289   :  { %5598 = vpow2.f32 %v2485_v11 }
0x128a   :  { %v2294_v37 = vadd.f32 %v5597_v16, %v2293_v19 }
0x128c   :  { %v2298_v22 = vsel %vm2297_vm11, %v5597_v16, %v2294_v37 }
0x128d   :  { %v2303_v23 = vsel %vm2300_vm12, %v2302_v21, %v2298_v22 }
0x128e   :  { %v2304_v24 = vmul.f32 %v5595_v27, %v2303_v23 }
0x128f   :  { %v5599_v26 = vpop.eup %5598 }
0x1290   :  { %5270 = vmatmul.msk.f32.vlgmr.msrb.gmra.mxu0 %vm985_vm8, %v2304_v24  ;;  %v2489_v28 = vsel %vm985_vm8, %v5599_v26, 0.0 }
0x1291   :  { %2490 = vadd.xlane.f32.xlu0 %v2489_v28 }
0x1297   :  { %v2446_v32 = vpop.permute.xlu0 %2445 }
0x1298   :  { %5278 = vmatmul.msk.f32.vlgmr.msra.gmra.mxu0 %vm985_vm8, %v2446_v32 }
0x12a5   :  { %2638 = vrot.lane.b32.xlu0 %v7506_v36, %s6711_s21 }
0x12c0   :  { %v7579_v35 = vpop.f32.mrf.mxu2 }
0x12c8   :  { %v2633_v38 = vpop.f32.mrf.mxu2 }
0x12c9   :  { %v2664_v39 = vmul.f32 0.17677669, %v2633_v38 }
0x12cb   :  { %v2666_v40 = vsel %vm7250_vm9, %v2664_v39, -1e+30 }
0x12cc   :  { %v2668_v0 = vsel %vm985_vm8, %v2666_v40, -inf }
0x12cf   :  { %2669 = vmax.xlane.f32.xlu0 %v2668_v0 }
0x1304   :  { %v2491_v41 = vpop.xlane.xlu0 %2490 }
0x1305   :  { %5600 = vrcp.f32 %v2491_v41  ;;  %v2506_v36 = vand.u32 2147483648, %v2491_v41  ;;  %v2504_v49 = vand.u32 2147483647, %v2491_v41  ;;  %vm2500_vm14 = vweird.f32 %v2491_v41 }
0x1307   :  { %v2507_v13 = vor.u32 1.1754944e-38, %v2506_v36  ;;  %vm2505_vm1 = vcmp.eq.f32.partialorder %v2504_v49, 8.507059e+37 }
0x130b   :  { %v5601_v42 = vpop.eup %5600 }
0x130c   :  { %v2496_v43 = vmul.f32 %v5601_v42, %v2491_v41  ;;  %vm2501_vm13 = vweird.f32 %v5601_v42 }
0x130d   :  { %v2356_v44 = vpop.f32.mrf.mxu0  ;;  %vm2502_vm15 = vmor %vm2500_vm14, %vm2501_vm13 }
0x130e   :  { %v2497_v46 = vsub.f32 1.0, %v2496_v43  ;;  %5272 = vmatmul.msk.f32.gmra.mxu1 %vm985_vm8, %v2356_v44 }
0x1310   :  { %v2498_v48 = vmul.f32 %v5601_v42, %v2497_v46 }
0x1312   :  { %v2499_v14 = vadd.f32 %v5601_v42, %v2498_v48 }
0x1314   :  { %v2503_v50 = vsel %vm2502_vm15, %v5601_v42, %v2499_v14 }
0x1315   :  { %v2508_v52 = vsel %vm2505_vm1, %v2507_v13, %v2503_v50  ;;  %v2470_v54 = vpop.f32.mrf.mxu0  ;;  %v2046_v13 = vld [vmem:[%s8220_s2 + $0x18] sm:$0xff] }
0x1316   :  { %v2474_v55 = vmul.f32 0.17677669, %v2470_v54  ;;  %v2509_v59 = vmul.f32 %v5599_v26, %v2508_v52 }
0x1317   :  { %v2639_v60 = vpop.permute.xlu0 %2638 }
0x1318   :  { %5279 = vmatmul.msk.f32.vlgmr.msrb.gmra.mxu3 %vm985_vm8, %v2509_v59  ;;  %v2476_v61 = vsel %vm7250_vm9, %v2474_v55, -1e+30 }
0x1319   :  { %5285 = vmatpush.xpose.msk.msra.mxu3 %vm985_vm8, %v2639_v60  ;;  %v2480_v62 = vsel %vm985_vm8, %v2476_v61, -inf }
0x131a   :  { %2481 = vmax.xlane.f32.xlu2 %v2480_v62 }
0x131d   :  { %2789 = vmatpush.msrb.mxu3 %v2046_v13 }
0x1320   :  { %5286 = vmatmul.msk.f32.vlgmr.msra.gmra.mxu3 %vm985_vm8, %v2637_v63 }
0x1342   :  { %v2670_v2 = vpop.xlane.xlu0 %2669 }
0x1343   :  { %v2674_v3 = vsub.f32 %v2666_v40, %v2670_v2 }
0x1345   :  { %v2676_v51 = vmul.f32 1.442695, %v2674_v3 }
0x1347   :  { %5602 = vpow2.f32 %v2676_v51 }
0x134d   :  { %v7591_v4 = vpop.eup %5602 }
0x134e   :  { %v2680_v1 = vsel %vm985_vm8, %v7591_v4, 0.0 }
0x134f   :  { %2681 = vadd.xlane.f32.xlu0 %v2680_v1 }
0x1363   :  { %2716 = vrot.lane.b32.xlu0 %v7475_v57, %s6711_s21 }
0x138d   :  { %v2482_v6 = vpop.xlane.xlu2 %2481 }
0x138e   :  { %v2484_v27 = vsub.f32 %v2476_v61, %v2482_v6  ;;  %v2385_v6 = vpop.f32.mrf.mxu1 }
0x1390   :  { %v2487_v7 = vmul.f32 1.442695, %v2484_v27 }
0x1392   :  { %5604 = vpow2.f32 %v2487_v7  ;;  %v2412_v7 = vadd.f32 %v7577_v34, %v2382_v5  ;;  %v2904_v5 = vld [vmem:[%s8223_s24 + $0x10] sm:$0xff] }
0x1398   :  { %v5605_v33 = vpop.eup %5604 }
0x1399   :  { %v2492_v12 = vsel %vm985_vm8, %v5605_v33, 0.0 }
0x139a   :  { %2493 = vadd.xlane.f32.xlu2 %v2492_v12  ;;  %v5510_v12 = vld [vmem:[%s8221_s0] ss:$0 sm:$0xff] }
0x139b   :  { %v2548_v56 = vpop.f32.mrf.mxu3 }
0x139c   :  { %5281 = vmatmul.msk.f32.vlgmr.msra.gmra.mxu1 %vm985_vm8, %v2548_v56 }
0x13a3   :  { %v2661_v9 = vpop.f32.mrf.mxu3 }
0x13a4   :  { %v2665_v15 = vmul.f32 0.17677669, %v2661_v9 }
0x13a6   :  { %v2667_v45 = vsel %vm7250_vm9, %v2665_v15, -1e+30 }
0x13a7   :  { %v2671_v57 = vsel %vm985_vm8, %v2667_v45, -inf }
0x13a8   :  { %2672 = vmax.xlane.f32.xlu1 %v2671_v57 }
0x13b2   :  { %2551 = vrot.lane.b32.xlu2 %v7503_v29, %s6710_s28 }
0x13c2   :  { %v2682_v47 = vpop.xlane.xlu0 %2681 }
0x13c3   :  { %5606 = vrcp.f32 %v2682_v47  ;;  %v2697_v40 = vand.u32 2147483648, %v2682_v47  ;;  %vm2691_vm10 = vweird.f32 %v2682_v47  ;;  %v2695_v42 = vand.u32 2147483647, %v2682_v47 }
0x13c5   :  { %v2698_v46 = vor.u32 1.1754944e-38, %v2697_v40  ;;  %vm2696_vm12 = vcmp.eq.f32.partialorder %v2695_v42, 8.507059e+37  ;;  %v2914_v40 = vld [vmem:[%s8223_s24 + $0x60] sm:$0xff]  ;;  %v2911_v42 = vld [vmem:[%s8223_s24 + $0x48] sm:$0xff] }
0x13c9   :  { %v5607_v53 = vpop.eup %5606 }
0x13ca   :  { %v2687_v17 = vmul.f32 %v5607_v53, %v2682_v47  ;;  %vm2692_vm6 = vweird.f32 %v5607_v53 }
0x13cb   :  { %vm2693_vm11 = vmor %vm2691_vm10, %vm2692_vm6 }
0x13cc   :  { %v2688_v58 = vsub.f32 1.0, %v2687_v17 }
0x13ce   :  { %v2689_v21 = vmul.f32 %v5607_v53, %v2688_v58 }
0x13d0   :  { %v2690_v38 = vadd.f32 %v5607_v53, %v2689_v21 }
0x13d2   :  { %v2694_v44 = vsel %vm2693_vm11, %v5607_v53, %v2690_v38  ;;  %v2915_v38 = vld [vmem:[%s8223_s24 + $0x68] sm:$0xff] }
0x13d3   :  { %v2699_v36 = vsel %vm2696_vm12, %v2698_v46, %v2694_v44  ;;  %v2910_v44 = vld [vmem:[%s8223_s24 + $0x40] sm:$0xff] }
0x13d4   :  { %v2700_v14 = vmul.f32 %v7591_v4, %v2699_v36  ;;  %v2909_v36 = vld [vmem:[%s8223_s24 + $0x38] sm:$0xff] }
0x13d5   :  { %v2717_v19 = vpop.permute.xlu0 %2716 }
0x140d   :  { %v2494_v16 = vpop.xlane.xlu2 %2493 }
0x140e   :  { %5608 = vrcp.f32 %v2494_v16  ;;  %v2521_v37 = vand.u32 2147483648, %v2494_v16  ;;  %v2519_v23 = vand.u32 2147483647, %v2494_v16  ;;  %vm2515_vm4 = vweird.f32 %v2494_v16 }
0x1410   :  { %v2522_v28 = vor.u32 1.1754944e-38, %v2521_v37  ;;  %vm2520_vm7 = vcmp.eq.f32.partialorder %v2519_v23, 8.507059e+37  ;;  %v2865_v23 = vld [vmem:[%s8222_s25 + $0x10] sm:$0xff] }
0x1414   :  { %v5609_v18 = vpop.eup %5608 }
0x1415   :  { %v2511_v10 = vmul.f32 %v5609_v18, %v2494_v16  ;;  %v2552_v11 = vpop.permute.xlu2 %2551  ;;  %vm2516_vm3 = vweird.f32 %v5609_v18 }
0x1416   :  { %2572 = vmatpush.msrb.mxu0 %v2552_v11  ;;  %vm2517_vm5 = vmor %vm2515_vm4, %vm2516_vm3 }
0x1417   :  { %v2512_v20 = vsub.f32 1.0, %v2511_v10 }
0x1418   :  { %2737 = vmatpush.msra.mxu0 %v2717_v19 }
0x1419   :  { %v2513_v22 = vmul.f32 %v5609_v18, %v2512_v20  ;;  %v2600_v27 = vpop.f32.mrf.mxu1 }
0x141b   :  { %v2514_v24 = vadd.f32 %v5609_v18, %v2513_v22  ;;  %v2673_v26 = vpop.xlane.xlu1 %2672  ;;  %v2866_v22 = vld [vmem:[%s8222_s25 + $0x18] sm:$0xff] }
0x141c   :  { %v2675_v32 = vsub.f32 %v2667_v45, %v2673_v26  ;;  %v2917_v26 = vld [vmem:[%s8223_s24 + $0x78] sm:$0xff] }
0x141d   :  { %v2518_v39 = vsel %vm2517_vm5, %v5609_v18, %v2514_v24  ;;  %v2864_v24 = vld [vmem:[%s8222_s25 + $0x8] sm:$0xff]  ;;  %2922 = vmatpush.msrb.mxu1 %v2917_v26 }
0x141e   :  { %v2523_v0 = vsel %vm2520_vm7, %v2522_v28, %v2518_v39  ;;  %v2678_v41 = vmul.f32 1.442695, %v2675_v32  ;;  %v2916_v28 = vld [vmem:[%s8223_s24 + $0x70] sm:$0xff] }
0x141f   :  { %v2524_v43 = vmul.f32 %v5605_v33, %v2523_v0  ;;  %v2606_v33 = vadd.f32 %v2600_v27, %v2412_v7  ;;  %2923 = vmatpush.msrb.mxu1 %v2916_v28  ;;  %v2913_v0 = vld [vmem:[%s8223_s24 + $0x58] sm:$0xff]  ;;  %v2902_v27 = vld [vmem:[%s8223_s24] sm:$0xff] }
0x1420   :  { %5610 = vpow2.f32 %v2678_v41  ;;  %v2912_v41 = vld [vmem:[%s8223_s24 + $0x50] sm:$0xff] }
0x1421   :  { %5280 = vmatmul.msk.f32.vlgmr.msrb.gmra.mxu0 %vm985_vm8, %v2524_v43  ;;  %2924 = vmatpush.msrb.mxu1 %v2915_v38 }
0x1422   :  { %2889 = vmatpush.msrb.mxu0 %v2866_v22 }
0x1423   :  { %2925 = vmatpush.msrb.mxu1 %v2914_v40 }
0x1424   :  { %2890 = vmatpush.msrb.mxu0 %v2865_v23 }
0x1425   :  { %2926 = vmatpush.msrb.mxu1 %v2913_v0 }
0x1426   :  { %v5611_v48 = vpop.eup %5610  ;;  %2891 = vmatpush.msrb.mxu0 %v2864_v24 }
0x1427   :  { %v2683_v49 = vsel %vm985_vm8, %v5611_v48, 0.0  ;;  %2927 = vmatpush.msrb.mxu1 %v2912_v41  ;;  %v3006_v41 = vld [vmem:[%s8225_s27 + $0x18] sm:$0xff] }
0x1428   :  { %2684 = vadd.xlane.f32.xlu1 %v2683_v49  ;;  %v2908_v49 = vld [vmem:[%s8223_s24 + $0x30] sm:$0xff] }
0x1429   :  { %5287 = vmatmul.msk.f32.vlgmr.msra.gmra.mxu0 %vm985_vm8, %v2700_v14  ;;  %2928 = vmatpush.msrb.mxu1 %v2911_v42  ;;  %v3043_v42 = vld [vmem:[%s8226_s29 + $0x18] sm:$0xff] }
0x142a   :  { %3060 = vmatpush.msra.mxu3 %v3043_v42 }
0x142b   :  { %2929 = vmatpush.msrb.mxu1 %v2910_v44  ;;  %v3005_v44 = vld [vmem:[%s8225_s27 + $0x10] sm:$0xff] }
0x142d   :  { %2930 = vmatpush.msrb.mxu1 %v2909_v36  ;;  %v3073_v36 = vld [vmem:[%s8227_s10 + $0x10] sm:$0xff] }
0x142f   :  { %2931 = vmatpush.msrb.mxu1 %v2908_v49  ;;  %v3041_v49 = vld [vmem:[%s8226_s29 + $0x8] sm:$0xff] }
0x1441   :  { %2742 = vrot.lane.b32.xlu1 %v7503_v29, %s6711_s21 }
0x149b   :  { %v2685_v50 = vpop.xlane.xlu1 %2684 }
0x149c   :  { %5612 = vrcp.f32 %v2685_v50  ;;  %v2712_v63 = vand.u32 2147483648, %v2685_v50  ;;  %vm2706_vm14 = vweird.f32 %v2685_v50  ;;  %v2710_v29 = vand.u32 2147483647, %v2685_v50 }
0x149e   :  { %v2574_v52 = vpop.f32.mrf.mxu0  ;;  %v2713_v3 = vor.u32 1.1754944e-38, %v2712_v63  ;;  %vm2711_vm1 = vcmp.eq.f32.partialorder %v2710_v29, 8.507059e+37 }
0x149f   :  { %5282 = vmatmul.msk.f32.gmra.mxu1 %vm985_vm8, %v2574_v52  ;;  %v5511_v52 = vld [vmem:[%s8224_s7] ss:$0 sm:$0xff] }
0x14a2   :  { %v5613_v54 = vpop.eup %5612 }
0x14a3   :  { %v2702_v55 = vmul.f32 %v5613_v54, %v2685_v50  ;;  %vm2707_vm13 = vweird.f32 %v5613_v54 }
0x14a4   :  { %vm2708_vm15 = vmor %vm2706_vm14, %vm2707_vm13 }
0x14a5   :  { %v2703_v59 = vsub.f32 1.0, %v2702_v55 }
0x14a6   :  { %v2739_v60 = vpop.f32.mrf.mxu0 }
0x14a7   :  { %v2704_v61 = vmul.f32 %v5613_v54, %v2703_v59  ;;  %5289 = vmatmul.msk.f32.vlgmr.msrb.gmra.mxu3 %vm985_vm8, %v2739_v60  ;;  %v5512_v60 = vld [vmem:[#allocation25] ss:$0 sm:$0xff] }
0x14a9   :  { %v2705_v62 = vadd.f32 %v5613_v54, %v2704_v61 }
0x14ab   :  { %v2709_v2 = vsel %vm2708_vm15, %v5613_v54, %v2705_v62 }
0x14ac   :  { %v2714_v51 = vsel %vm2711_vm1, %v2713_v3, %v2709_v2 }
0x14ad   :  { %v2715_v1 = vmul.f32 %v5611_v48, %v2714_v51  ;;  %v2907_v51 = vld [vmem:[%s8223_s24 + $0x28] sm:$0xff] }
0x14ae   :  { %2932 = vmatpush.msrb.mxu1 %v2907_v51 }
0x14b3   :  { %v2743_v4 = vpop.permute.xlu1 %2742 }
0x14b4   :  { %2763 = vmatpush.msra.mxu2 %v2743_v4  ;;  %v2906_v4 = vld [vmem:[%s8223_s24 + $0x20] sm:$0xff] }
0x14b5   :  { %5288 = vmatmul.msk.f32.vlgmr.msra.gmra.mxu2 %vm985_vm8, %v2715_v1  ;;  %2933 = vmatpush.msrb.mxu1 %v2906_v4  ;;  %v2905_v1 = vld [vmem:[%s8223_s24 + $0x18] sm:$0xff] }
0x14b6   :  { %3029 = vmatpush.msrb.mxu2 %v3006_v41 }
0x14b7   :  { %2934 = vmatpush.msrb.mxu1 %v2905_v1 }
0x14b8   :  { %3030 = vmatpush.msrb.mxu2 %v3005_v44 }
0x14b9   :  { %2935 = vmatpush.msrb.mxu1 %v2904_v5  ;;  %v5516_v5 = vld [vmem:[#allocation31] ss:$0 sm:$0xff] }
0x151c   :  { %v2603_v58 = vpop.f32.mrf.mxu1 }
0x152a   :  { %v2791_v56 = vpop.f32.mrf.mxu3 }
0x152b   :  { %v2797_v9 = vadd.f32 %v2791_v56, %v2606_v33  ;;  %v5513_v56 = vld [vmem:[#allocation26] ss:$0 sm:$0xff] }
0x152d   :  { %v2803_v15 = vadd.f32 %v5510_v12, %v2797_v9 }
0x152f   :  { %v2805_v45 = vadd.f32 %v2803_v15, %v7465_v31  ;;  %v2415_v31 = vadd.f32 %v7579_v35, %v2385_v6  ;;  %v2863_v35 = vld [vmem:[%s8222_s25] sm:$0xff]  ;;  %v2903_v6 = vld [vmem:[%s8223_s24 + $0x8] sm:$0xff] }
0x1530   :  { %2892 = vmatpush.msrb.mxu0 %v2863_v35  ;;  %2936 = vmatpush.msrb.mxu1 %v2903_v6 }
0x1531   :  { %v2809_v57 = vsel %vm820_vm2, %v2805_v45, 0.0  ;;  %v2607_v10 = vadd.f32 %v2603_v58, %v2415_v31 }
0x1532   :  { %2810 = vadd.xlane.f32.xlu2 %v2809_v57  ;;  %2937 = vmatpush.msrb.mxu1 %v2902_v27 }
0x1538   :  { %v2765_v47 = vpop.f32.mrf.mxu2 }
0x1539   :  { %5290 = vmatmul.msk.f32.gmra.mxu3 %vm985_vm8, %v2765_v47 }
0x15a5   :  { %v2811_v16 = vpop.xlane.xlu2 %2810 }
0x15a6   :  { %v2815_v53 = vmul.f32 %v2811_v16, %v7198_v25 }
0x15a8   :  { %v2817_v17 = vsub.f32 %v2805_v45, %v2815_v53 }
0x15aa   :  { %v2819_v34 = vmul.f32 %v2817_v17, %v2817_v17 }
0x15ac   :  { %v2821_v18 = vsel %vm820_vm2, %v2819_v34, 0.0 }
0x15ad   :  { %2822 = vadd.xlane.f32.xlu1 %v2821_v18 }
0x15bc   :  { %v2794_v11 = vpop.f32.mrf.mxu3 }
0x15bd   :  { %v2798_v19 = vadd.f32 %v2794_v11, %v2607_v10  ;;  %v5514_v11 = vld [vmem:[#allocation28] ss:$0 sm:$0xff] }
0x15bf   :  { %v2804_v20 = vadd.f32 %v5510_v12, %v2798_v19 }
0x15c1   :  { %v2806_v37 = vadd.f32 %v2804_v20, %v7493_v30 }
0x15c3   :  { %v2812_v21 = vsel %vm820_vm2, %v2806_v37, 0.0 }
0x15c4   :  { %2813 = vadd.xlane.f32.xlu0 %v2812_v21 }
0x1620   :  { %v2823_v32 = vpop.xlane.xlu1 %2822 }
0x1621   :  { %v2827_v30 = vmul.f32 %v2823_v32, %v7198_v25 }
0x1623   :  { %v2829_v39 = vadd.f32 1e-05, %v2827_v30 }
0x1625   :  { %5614 = vrsqrt.f32 %v2829_v39  ;;  %vm2837_vm4 = vweird.f32 %v2829_v39 }
0x162b   :  { %v5615_v43 = vpop.eup %5614 }
0x162c   :  { %v2832_v46 = vmul.f32 %v5615_v43, %v2829_v39  ;;  %vm2838_vm3 = vweird.f32 %v5615_v43 }
0x162d   :  { %vm2839_vm5 = vmor %vm2837_vm4, %vm2838_vm3 }
0x162e   :  { %v2833_v48 = vmul.f32 %v5615_v43, %v2832_v46  ;;  %v3042_v46 = vld [vmem:[%s8226_s29 + $0x10] sm:$0xff] }
0x162f   :  { %3061 = vmatpush.msra.mxu3 %v3042_v46 }
0x1630   :  { %v2834_v14 = vmul.f32 0.5, %v2833_v48  ;;  %v3004_v48 = vld [vmem:[%s8225_s27 + $0x8] sm:$0xff] }
0x1631   :  { %3031 = vmatpush.msrb.mxu2 %v3004_v48  ;;  %3062 = vmatpush.msra.mxu3 %v3041_v49 }
0x1632   :  { %v2835_v13 = vsub.f32 1.5, %v2834_v14  ;;  %v3072_v14 = vld [vmem:[%s8227_s10 + $0x8] sm:$0xff] }
0x1634   :  { %v2836_v50 = vmul.f32 %v5615_v43, %v2835_v13  ;;  %v3003_v13 = vld [vmem:[%s8225_s27] sm:$0xff] }
0x1635   :  { %3032 = vmatpush.msrb.mxu2 %v3003_v13 }
0x1636   :  { %v2840_v54 = vsel %vm2839_vm5, %v5615_v43, %v2836_v50  ;;  %v3074_v43 = vld [vmem:[%s8227_s10 + $0x18] sm:$0xff]  ;;  %v3040_v50 = vld [vmem:[%s8226_s29] sm:$0xff] }
0x1637   :  { %v2851_v55 = vmul.f32 %v2840_v54, %v2817_v17  ;;  %v2814_v59 = vpop.xlane.xlu0 %2813  ;;  %3091 = vmatpush.msra.mxu0 %v3074_v43  ;;  %3063 = vmatpush.msra.mxu3 %v3040_v50 }
0x1638   :  { %v2816_v61 = vmul.f32 %v2814_v59, %v7198_v25 }
0x1639   :  { %v2856_v62 = vmul.f32 %v5511_v52, %v2851_v55  ;;  %3092 = vmatpush.msra.mxu0 %v3073_v36 }
0x163a   :  { %v2818_v63 = vsub.f32 %v2806_v37, %v2816_v61 }
0x163b   :  { %v2861_v29 = vadd.f32 %v5512_v60, %v2856_v62  ;;  %3093 = vmatpush.msra.mxu0 %v3072_v14 }
0x163c   :  { %v2820_v2 = vmul.f32 %v2818_v63, %v2818_v63 }
0x163d   :  { %5291 = vmatmul.msk.f32.vlgmr.msrb.gmra.mxu0 %vm820_vm2, %v2861_v29 }
0x163e   :  { %v2824_v3 = vsel %vm820_vm2, %v2820_v2, 0.0 }
0x163f   :  { %2825 = vadd.xlane.f32.xlu2 %v2824_v3  ;;  %v5515_v3 = vld [vmem:[#allocation29] ss:$0 sm:$0xff] }
0x16b2   :  { %v2826_v7 = vpop.xlane.xlu2 %2825 }
0x16b3   :  { %v2828_v33 = vmul.f32 %v2826_v7, %v7198_v25 }
0x16b5   :  { %v2830_v12 = vadd.f32 1e-05, %v2828_v33 }
0x16b7   :  { %5616 = vrsqrt.f32 %v2830_v12  ;;  %vm2847_vm7 = vweird.f32 %v2830_v12 }
0x16ba   :  { %v2894_v9 = vpop.f32.mrf.mxu0 }
0x16bb   :  { %v2895_v15 = vadd.f32 %v5513_v56, %v2894_v9 }
0x16bd   :  { %v5617_v45 = vpop.eup %5616  ;;  %v2900_v57 = vmax.f32 %v2895_v15, 0.0 }
0x16be   :  { %v2842_v47 = vmul.f32 %v5617_v45, %v2830_v12  ;;  %vm2848_vm6 = vweird.f32 %v5617_v45 }
0x16bf   :  { %2938 = vmatmul.f32.vlgmr.msrb.gmra.mxu1 %v2900_v57  ;;  %vm2849_vm10 = vmor %vm2847_vm7, %vm2848_vm6  ;;  %v5517_v57 = vld [vmem:[#allocation35] ss:$0 sm:$0xff] }
0x16c0   :  { %v2843_v16 = vmul.f32 %v5617_v45, %v2842_v47 }
0x16c2   :  { %v2844_v53 = vmul.f32 0.5, %v2843_v16 }
0x16c4   :  { %v2845_v17 = vsub.f32 1.5, %v2844_v53 }
0x16c6   :  { %v2846_v34 = vmul.f32 %v5617_v45, %v2845_v17  ;;  %v5518_v17 = vld [vmem:[#allocation32] ss:$0 sm:$0xff] }
0x16c8   :  { %v2850_v18 = vsel %vm2849_vm10, %v5617_v45, %v2846_v34  ;;  %v5519_v34 = vld [vmem:[#allocation34] ss:$0 sm:$0xff] }
0x16c9   :  { %v2852_v58 = vmul.f32 %v2850_v18, %v2818_v63 }
0x16cb   :  { %v2857_v31 = vmul.f32 %v5511_v52, %v2852_v58  ;;  %v3071_v52 = vld [vmem:[%s8227_s10] sm:$0xff] }
0x16cc   :  { %3094 = vmatpush.msra.mxu0 %v3071_v52 }
0x16cd   :  { %v2862_v10 = vadd.f32 %v5512_v60, %v2857_v31 }
0x16cf   :  { %5292 = vmatmul.msk.f32.gmra.mxu0 %vm820_vm2, %v2862_v10 }
0x173c   :  { %v2939_v19 = vpop.f32.mrf.mxu1 }
0x173d   :  { %v2940_v20 = vadd.f32 %v5514_v11, %v2939_v19 }
0x173f   :  { %v2945_v37 = vadd.f32 %v2940_v20, %v2861_v29 }
0x1741   :  { %v2949_v21 = vsel %vm820_vm2, %v2945_v37, 0.0 }
0x1742   :  { %2950 = vadd.xlane.f32.xlu0 %v2949_v21 }
0x174c   :  { %v2897_v22 = vpop.f32.mrf.mxu0 }
0x174d   :  { %v2898_v23 = vadd.f32 %v5513_v56, %v2897_v22 }
0x174f   :  { %v2901_v24 = vmax.f32 %v2898_v23, 0.0 }
0x1751   :  { %2941 = vmatmul.f32.gmra.mxu1 %v2901_v24 }
0x17b5   :  { %v2951_v35 = vpop.xlane.xlu0 %2950 }
0x17b6   :  { %v2955_v26 = vmul.f32 %v2951_v35, %v7198_v25 }
0x17b8   :  { %v2957_v28 = vsub.f32 %v2945_v37, %v2955_v26 }
0x17ba   :  { %v2959_v32 = vmul.f32 %v2957_v28, %v2957_v28 }
0x17bc   :  { %v2961_v30 = vsel %vm820_vm2, %v2959_v32, 0.0 }
0x17bd   :  { %2962 = vadd.xlane.f32.xlu1 %v2961_v30 }
0x17ce   :  { %v2942_v38 = vpop.f32.mrf.mxu1 }
0x17cf   :  { %v2943_v39 = vadd.f32 %v5514_v11, %v2942_v38 }
0x17d1   :  { %v2946_v40 = vadd.f32 %v2943_v39, %v2862_v10 }
0x17d3   :  { %v2952_v0 = vsel %vm820_vm2, %v2946_v40, 0.0 }
0x17d4   :  { %2953 = vadd.xlane.f32.xlu2 %v2952_v0 }
0x1830   :  { %v2963_v54 = vpop.xlane.xlu1 %2962 }
0x1831   :  { %v2967_v55 = vmul.f32 %v2963_v54, %v7198_v25 }
0x1833   :  { %v2969_v59 = vadd.f32 1e-05, %v2967_v55 }
0x1835   :  { %5618 = vrsqrt.f32 %v2969_v59  ;;  %vm2977_vm12 = vweird.f32 %v2969_v59 }
0x183b   :  { %v5619_v60 = vpop.eup %5618 }
0x183c   :  { %v2972_v61 = vmul.f32 %v5619_v60, %v2969_v59  ;;  %vm2978_vm11 = vweird.f32 %v5619_v60 }
0x183d   :  { %vm2979_vm13 = vmor %vm2977_vm12, %vm2978_vm11 }
0x183e   :  { %v2973_v62 = vmul.f32 %v5619_v60, %v2972_v61 }
0x1840   :  { %v2974_v63 = vmul.f32 0.5, %v2973_v62 }
0x1842   :  { %v2975_v29 = vsub.f32 1.5, %v2974_v63 }
0x1844   :  { %v2976_v2 = vmul.f32 %v5619_v60, %v2975_v29 }
0x1846   :  { %v2980_v51 = vsel %vm2979_vm13, %v5619_v60, %v2976_v2 }
0x1847   :  { %v2991_v4 = vmul.f32 %v2980_v51, %v2957_v28  ;;  %v2954_v1 = vpop.xlane.xlu2 %2953 }
0x1848   :  { %v2956_v6 = vmul.f32 %v2954_v1, %v7198_v25 }
0x1849   :  { %v2996_v27 = vmul.f32 %v5515_v3, %v2991_v4 }
0x184a   :  { %v2958_v7 = vsub.f32 %v2946_v40, %v2956_v6 }
0x184b   :  { %v7670_v33 = vadd.f32 %v5516_v5, %v2996_v27 }
0x184c   :  { %v2960_v12 = vmul.f32 %v2958_v7, %v2958_v7 }
0x184d   :  { %5293 = vmatmul.msk.f32.vlgmr.msrb.gmra.mxu2 %vm820_vm2, %v7670_v33  ;;  %5295 = vmatmul.msk.f32.vlgmr.msra.gmra.mxu3 %vm820_vm2, %v7670_v33 }
0x184e   :  { %5297 = vmatmul.msk.f32.vlgmr.msra.gmra.mxu0 %vm820_vm2, %v7670_v33  ;;  %v2964_v56 = vsel %vm820_vm2, %v2960_v12, 0.0 }
0x184f   :  { %2965 = vadd.xlane.f32.xlu0 %v2964_v56 }
0x18c2   :  { %v2966_v9 = vpop.xlane.xlu0 %2965 }
0x18c3   :  { %v2968_v15 = vmul.f32 %v2966_v9, %v7198_v25 }
0x18c5   :  { %v2970_v45 = vadd.f32 1e-05, %v2968_v15 }
0x18c7   :  { %5620 = vrsqrt.f32 %v2970_v45  ;;  %vm2987_vm15 = vweird.f32 %v2970_v45 }
0x18cb   :  { %v3096_v47 = vpop.f32.mrf.mxu0 }
0x18cc   :  { %v7680_v16 = vadd.f32 %v5517_v57, %v3096_v47 }
0x18cd   :  { %v5621_v53 = vpop.eup %5620 }
0x18ce   :  { %v2982_v18 = vmul.f32 %v5621_v53, %v2970_v45  ;;  %3228 = vmatpush.msrb.mxu3 %v7680_v16  ;;  %vm2988_vm14 = vweird.f32 %v5621_v53 }
0x18cf   :  { %vm2989_vm1 = vmor %vm2987_vm15, %vm2988_vm14 }
0x18d0   :  { %v2983_v58 = vmul.f32 %v5621_v53, %v2982_v18  ;;  %v3034_v31 = vpop.f32.mrf.mxu2  ;;  %v3065_v10 = vpop.f32.mrf.mxu3 }
0x18d1   :  { %v7683_v11 = vadd.f32 %v5518_v17, %v3034_v31  ;;  %v7685_v19 = vadd.f32 %v5519_v34, %v3065_v10 }
0x18d2   :  { %v2984_v20 = vmul.f32 0.5, %v2983_v58 }
0x18d3   :  { %3258 = vrot.lane.b32.xlu2 %v7685_v19, %s6709_s3  ;;  %5299 = vmatpush.xpose.msk.msra.mxu2 %vm985_vm8, %v7685_v19 }
0x18d4   :  { %v2985_v37 = vsub.f32 1.5, %v2984_v20  ;;  %3256 = vrot.lane.b32.xlu1 %v7683_v11, %s6709_s3 }
0x18d6   :  { %v2986_v21 = vmul.f32 %v5621_v53, %v2985_v37 }
0x18d8   :  { %v2990_v22 = vsel %vm2989_vm1, %v5621_v53, %v2986_v21 }
0x18d9   :  { %v2992_v23 = vmul.f32 %v2990_v22, %v2958_v7 }
0x18db   :  { %v2997_v24 = vmul.f32 %v5515_v3, %v2992_v23 }
0x18dd   :  { %v7693_v35 = vadd.f32 %v5516_v5, %v2997_v24 }
0x18df   :  { %5294 = vmatmul.msk.f32.gmra.mxu2 %vm820_vm2, %v7693_v35  ;;  %5296 = vmatmul.msk.f32.gmra.mxu3 %vm820_vm2, %v7693_v35 }
0x18e0   :  { %5298 = vmatmul.msk.f32.gmra.mxu0 %vm820_vm2, %v7693_v35 }
0x18e7   :  { %5300 = vmatmul.msk.f32.vlgmr.msra.gmra.mxu2 %vm985_vm8, %v7683_v11 }
0x192d   :  { %v3259_v26 = vpop.permute.xlu2 %3258 }
0x192e   :  { %5305 = vmatpush.xpose.msk.msra.mxu1 %vm985_vm8, %v3259_v26 }
0x1946   :  { %v3257_v28 = vpop.permute.xlu1 %3256 }
0x1947   :  { %5306 = vmatmul.msk.f32.vlgmr.msra.gmra.mxu1 %vm985_vm8, %v3257_v28 }
0x195d   :  { %v3099_v32 = vpop.f32.mrf.mxu0 }
0x195e   :  { %v7705_v30 = vadd.f32 %v5517_v57, %v3099_v32 }
0x1960   :  { %3251 = vmatpush.msrb.mxu0 %v7705_v30 }
0x1962   :  { %v3037_v38 = vpop.f32.mrf.mxu2  ;;  %v3068_v39 = vpop.f32.mrf.mxu3 }
0x1963   :  { %v7708_v40 = vadd.f32 %v5519_v34, %v3068_v39  ;;  %v7714_v0 = vadd.f32 %v5518_v17, %v3037_v38 }
0x1965   :  { %3286 = vrot.lane.b32.xlu0 %v7708_v40, %s6709_s3  ;;  %5301 = vmatpush.xpose.msk.msrb.mxu2 %vm985_vm8, %v7708_v40 }
0x1968   :  { %5302 = vmatmul.msk.f32.vlgmr.msrb.gmra.mxu2 %vm985_vm8, %v7714_v0 }
0x196a   :  { %v3129_v41 = vpop.f32.mrf.mxu2 }
0x196b   :  { %v3158_v42 = vmul.f32 0.17677669, %v3129_v41 }
0x196d   :  { %3284 = vrot.lane.b32.xlu0 %v7714_v0, %s6709_s3  ;;  %v3160_v43 = vsel %vm7250_vm9, %v3158_v42, -1e+30 }
0x196e   :  { %v3162_v44 = vsel %vm985_vm8, %v3160_v43, -inf }
0x196f   :  { %3163 = vmax.xlane.f32.xlu2 %v3162_v44 }
0x19c4   :  { %v3281_v46 = vpop.f32.mrf.mxu1 }
0x19c5   :  { %v3312_v36 = vmul.f32 0.17677669, %v3281_v46 }
0x19c7   :  { %v3314_v48 = vsel %vm7250_vm9, %v3312_v36, -1e+30 }
0x19c8   :  { %v3316_v49 = vsel %vm985_vm8, %v3314_v48, -inf }
0x19c9   :  { %3317 = vmax.xlane.f32.xlu0 %v3316_v49 }
0x19d7   :  { %v3287_v14 = vpop.permute.xlu0 %3286 }
0x19d8   :  { %5307 = vmatpush.xpose.msk.msra.mxu2 %vm985_vm8, %v3287_v14 }
0x19df   :  { %v3285_v13 = vpop.permute.xlu0 %3284 }
0x19e0   :  { %5308 = vmatmul.msk.f32.vlgmr.msra.gmra.mxu2 %vm985_vm8, %v3285_v13 }
0x19e2   :  { %v3164_v50 = vpop.xlane.xlu2 %3163 }
0x19e3   :  { %v3168_v52 = vsub.f32 %v3160_v43, %v3164_v50 }
0x19e5   :  { %v3170_v54 = vmul.f32 1.442695, %v3168_v52 }
0x19e7   :  { %5622 = vpow2.f32 %v3170_v54 }
0x19eb   :  { %v3155_v55 = vpop.f32.mrf.mxu2 }
0x19ec   :  { %v3159_v59 = vmul.f32 0.17677669, %v3155_v55 }
0x19ed   :  { %v5623_v60 = vpop.eup %5622 }
0x19ee   :  { %v3174_v61 = vsel %vm985_vm8, %v5623_v60, 0.0  ;;  %v3161_v62 = vsel %vm7250_vm9, %v3159_v59, -1e+30 }
0x19ef   :  { %3175 = vadd.xlane.f32.xlu2 %v3174_v61  ;;  %v3165_v63 = vsel %vm985_vm8, %v3161_v62, -inf }
0x19f0   :  { %3166 = vmax.xlane.f32.xlu1 %v3165_v63 }
0x1a07   :  { %3365 = vrot.lane.b32.xlu2 %v7680_v16, %s6709_s3 }
0x1a3c   :  { %v3318_v29 = vpop.xlane.xlu0 %3317 }
0x1a3d   :  { %v3322_v2 = vsub.f32 %v3314_v48, %v3318_v29 }
0x1a3f   :  { %v3324_v3 = vmul.f32 1.442695, %v3322_v2 }
0x1a41   :  { %5624 = vpow2.f32 %v3324_v3 }
0x1a47   :  { %v5625_v51 = vpop.eup %5624 }
0x1a48   :  { %v3328_v4 = vsel %vm985_vm8, %v5625_v51, 0.0 }
0x1a49   :  { %3329 = vadd.xlane.f32.xlu0 %v3328_v4 }
0x1a5d   :  { %3476 = vrot.lane.b32.xlu0 %v7683_v11, %s6710_s28 }
0x1a62   :  { %v3176_v1 = vpop.xlane.xlu2 %3175 }
0x1a63   :  { %5626 = vrcp.f32 %v3176_v1  ;;  %v3309_v5 = vpop.f32.mrf.mxu2  ;;  %v3167_v6 = vpop.xlane.xlu1 %3166  ;;  %v3191_v53 = vand.u32 2147483648, %v3176_v1  ;;  %v3189_v18 = vand.u32 2147483647, %v3176_v1  ;;  %vm3185_vm4 = vweird.f32 %v3176_v1 }
0x1a64   :  { %v3313_v27 = vmul.f32 0.17677669, %v3309_v5  ;;  %v3169_v7 = vsub.f32 %v3161_v62, %v3167_v6  ;;  %v3103_v6 = vld [vmem:[%s8228_s15 + $0x8] sm:$0xff] }
0x1a65   :  { %v3192_v10 = vor.u32 1.1754944e-38, %v3191_v53  ;;  %vm3190_vm6 = vcmp.eq.f32.partialorder %v3189_v18, 8.507059e+37  ;;  %3439 = vmatpush.msrb.mxu1 %v3103_v6 }
0x1a66   :  { %v3172_v12 = vmul.f32 1.442695, %v3169_v7  ;;  %v3315_v56 = vsel %vm7250_vm9, %v3313_v27, -1e+30 }
0x1a67   :  { %v3319_v9 = vsel %vm985_vm8, %v3315_v56, -inf }
0x1a68   :  { %5628 = vpow2.f32 %v3172_v12  ;;  %3320 = vmax.xlane.f32.xlu2 %v3319_v9 }
0x1a69   :  { %v5627_v15 = vpop.eup %5626 }
0x1a6a   :  { %v3181_v45 = vmul.f32 %v5627_v15, %v3176_v1  ;;  %v3366_v57 = vpop.permute.xlu2 %3365  ;;  %vm3186_vm3 = vweird.f32 %v5627_v15 }
0x1a6b   :  { %3386 = vmatpush.msra.mxu3 %v3366_v57  ;;  %vm3187_vm5 = vmor %vm3185_vm4, %vm3186_vm3 }
0x1a6c   :  { %v3182_v47 = vsub.f32 1.0, %v3181_v45 }
0x1a6e   :  { %v7740_v17 = vpop.eup %5628  ;;  %v3183_v34 = vmul.f32 %v5627_v15, %v3182_v47 }
0x1a6f   :  { %v3177_v58 = vsel %vm985_vm8, %v7740_v17, 0.0 }
0x1a70   :  { %v3184_v31 = vadd.f32 %v5627_v15, %v3183_v34  ;;  %3178 = vadd.xlane.f32.xlu1 %v3177_v58 }
0x1a72   :  { %v3188_v20 = vsel %vm3187_vm5, %v5627_v15, %v3184_v31 }
0x1a73   :  { %v3193_v37 = vsel %vm3190_vm6, %v3192_v10, %v3188_v20 }
0x1a74   :  { %v3194_v21 = vmul.f32 %v5623_v60, %v3193_v37 }
0x1a76   :  { %5303 = vmatmul.msk.f32.vlgmr.msrb.gmra.mxu3 %vm985_vm8, %v3194_v21 }
0x1a89   :  { %3478 = vrot.lane.b32.xlu1 %v7685_v19, %s6710_s28 }
0x1a91   :  { %3392 = vrot.lane.b32.xlu1 %v7705_v30, %s6709_s3 }
0x1a99   :  { %3506 = vrot.lane.b32.xlu1 %v7708_v40, %s6710_s28 }
0x1aa1   :  { %3669 = vrot.lane.b32.xlu1 %v7685_v19, %s6711_s21 }
0x1aa9   :  { %3504 = vrot.lane.b32.xlu1 %v7714_v0, %s6710_s28 }
0x1ab1   :  { %3667 = vrot.lane.b32.xlu1 %v7683_v11, %s6711_s21  ;;  %v3102_v11 = vld [vmem:[%s8228_s15] sm:$0xff] }
0x1ab2   :  { %3468 = vmatpush.msrb.mxu2 %v3102_v11 }
0x1abc   :  { %v3330_v22 = vpop.xlane.xlu0 %3329 }
0x1abd   :  { %5630 = vrcp.f32 %v3330_v22  ;;  %v3345_v28 = vand.u32 2147483648, %v3330_v22  ;;  %v3343_v38 = vand.u32 2147483647, %v3330_v22  ;;  %vm3339_vm10 = vweird.f32 %v3330_v22 }
0x1abf   :  { %v3346_v19 = vor.u32 1.1754944e-38, %v3345_v28  ;;  %vm3344_vm12 = vcmp.eq.f32.partialorder %v3343_v38, 8.507059e+37 }
0x1ac3   :  { %v5631_v23 = vpop.eup %5630 }
0x1ac4   :  { %v3335_v24 = vmul.f32 %v5631_v23, %v3330_v22  ;;  %vm3340_vm7 = vweird.f32 %v5631_v23 }
0x1ac5   :  { %vm3341_vm11 = vmor %vm3339_vm10, %vm3340_vm7 }
0x1ac6   :  { %v3336_v26 = vsub.f32 1.0, %v3335_v24 }
0x1ac8   :  { %v3337_v32 = vmul.f32 %v5631_v23, %v3336_v26 }
0x1aca   :  { %v3338_v39 = vadd.f32 %v5631_v23, %v3337_v32 }
0x1acc   :  { %v3342_v41 = vsel %vm3341_vm11, %v5631_v23, %v3338_v39 }
0x1acd   :  { %v3347_v42 = vsel %vm3344_vm12, %v3346_v19, %v3342_v41 }
0x1ace   :  { %v3348_v43 = vmul.f32 %v5625_v51, %v3347_v42 }
0x1acf   :  { %v3477_v51 = vpop.permute.xlu0 %3476 }
0x1ad0   :  { %5309 = vmatmul.msk.f32.vlgmr.msra.gmra.mxu3 %vm985_vm8, %v3348_v43 }
0x1adb   :  { %v3321_v44 = vpop.xlane.xlu2 %3320 }
0x1adc   :  { %v3323_v46 = vsub.f32 %v3315_v56, %v3321_v44 }
0x1ade   :  { %v3326_v36 = vmul.f32 1.442695, %v3323_v46 }
0x1ae0   :  { %5632 = vpow2.f32 %v3326_v36 }
0x1ae3   :  { %v3179_v48 = vpop.xlane.xlu1 %3178 }
0x1ae4   :  { %5634 = vrcp.f32 %v3179_v48  ;;  %v3206_v54 = vand.u32 2147483648, %v3179_v48  ;;  %v3204_v59 = vand.u32 2147483647, %v3179_v48  ;;  %vm3200_vm14 = vweird.f32 %v3179_v48 }
0x1ae6   :  { %v5633_v49 = vpop.eup %5632  ;;  %v3207_v61 = vor.u32 1.1754944e-38, %v3206_v54  ;;  %vm3205_vm1 = vcmp.eq.f32.partialorder %v3204_v59, 8.507059e+37 }
0x1ae7   :  { %v3331_v14 = vsel %vm985_vm8, %v5633_v49, 0.0 }
0x1ae8   :  { %3332 = vadd.xlane.f32.xlu0 %v3331_v14 }
0x1aea   :  { %v5635_v13 = vpop.eup %5634 }
0x1aeb   :  { %v3196_v50 = vmul.f32 %v5635_v13, %v3179_v48  ;;  %vm3201_vm13 = vweird.f32 %v5635_v13 }
0x1aec   :  { %vm3202_vm15 = vmor %vm3200_vm14, %vm3201_vm13 }
0x1aed   :  { %v3197_v52 = vsub.f32 1.0, %v3196_v50 }
0x1aef   :  { %v3198_v55 = vmul.f32 %v5635_v13, %v3197_v52 }
0x1af1   :  { %v3199_v60 = vadd.f32 %v5635_v13, %v3198_v55 }
0x1af3   :  { %v3203_v62 = vsel %vm3202_vm15, %v5635_v13, %v3199_v60 }
0x1af4   :  { %v3208_v63 = vsel %vm3205_vm1, %v3207_v61, %v3203_v62 }
0x1af5   :  { %v3209_v29 = vmul.f32 %v7740_v17, %v3208_v63 }
0x1af7   :  { %5304 = vmatmul.msk.f32.vlgmr.msrb.gmra.mxu0 %vm985_vm8, %v3209_v29 }
0x1af9   :  { %v3230_v2 = vpop.f32.mrf.mxu3 }
0x1afa   :  { %5313 = vmatmul.msk.f32.vlgmr.msrb.gmra.mxu2 %vm985_vm8, %v3230_v2 }
0x1afb   :  { %v3479_v3 = vpop.permute.xlu1 %3478 }
0x1afc   :  { %3584 = vrot.lane.b32.xlu0 %v7680_v16, %s6710_s28  ;;  %5315 = vmatpush.xpose.msk.msrb.mxu3 %vm985_vm8, %v3479_v3 }
0x1aff   :  { %5316 = vmatmul.msk.f32.vlgmr.msrb.gmra.mxu3 %vm985_vm8, %v3477_v51 }
0x1b03   :  { %v3393_v4 = vpop.permute.xlu1 %3392 }
0x1b04   :  { %3695 = vrot.lane.b32.xlu0 %v7714_v0, %s6711_s21  ;;  %3413 = vmatpush.msra.mxu0 %v3393_v4 }
0x1b0b   :  { %v3507_v1 = vpop.permute.xlu1 %3506 }
0x1b0c   :  { %5317 = vmatpush.xpose.msk.msrb.mxu0 %vm985_vm8, %v3507_v1 }
0x1b13   :  { %v3670_v5 = vpop.permute.xlu1 %3669 }
0x1b14   :  { %5323 = vmatpush.xpose.msk.msra.mxu2 %vm985_vm8, %v3670_v5 }
0x1b1b   :  { %v3505_v58 = vpop.permute.xlu1 %3504 }
0x1b23   :  { %v3668_v10 = vpop.permute.xlu1 %3667 }
0x1b53   :  { %v3388_v27 = vpop.f32.mrf.mxu3 }
0x1b54   :  { %5311 = vmatmul.msk.f32.vlgmr.msrb.gmra.mxu1 %vm985_vm8, %v3388_v27 }
0x1b5b   :  { %v3333_v7 = vpop.xlane.xlu0 %3332 }
0x1b5c   :  { %5636 = vrcp.f32 %v3333_v7  ;;  %v3360_v15 = vand.u32 2147483648, %v3333_v7  ;;  %v3358_v0 = vand.u32 2147483647, %v3333_v7  ;;  %vm3354_vm4 = vweird.f32 %v3333_v7 }
0x1b5e   :  { %v3361_v47 = vor.u32 1.1754944e-38, %v3360_v15  ;;  %vm3359_vm6 = vcmp.eq.f32.partialorder %v3358_v0, 8.507059e+37 }
0x1b62   :  { %v5637_v12 = vpop.eup %5636 }
0x1b63   :  { %v3350_v56 = vmul.f32 %v5637_v12, %v3333_v7  ;;  %vm3355_vm3 = vweird.f32 %v5637_v12 }
0x1b64   :  { %vm3356_vm5 = vmor %vm3354_vm4, %vm3355_vm3 }
0x1b65   :  { %v3351_v9 = vsub.f32 1.0, %v3350_v56  ;;  %v3104_v56 = vld [vmem:[%s8228_s15 + $0x10] sm:$0xff] }
0x1b66   :  { %3657 = vmatpush.msra.mxu1 %v3104_v56 }
0x1b67   :  { %v3352_v45 = vmul.f32 %v5637_v12, %v3351_v9 }
0x1b69   :  { %v3353_v57 = vadd.f32 %v5637_v12, %v3352_v45 }
0x1b6b   :  { %v3357_v53 = vsel %vm3356_vm5, %v5637_v12, %v3353_v57 }
0x1b6c   :  { %v3362_v17 = vsel %vm3359_vm6, %v3361_v47, %v3357_v53 }
0x1b6d   :  { %v3363_v34 = vmul.f32 %v5633_v49, %v3362_v17 }
0x1b6e   :  { %v3585_v18 = vpop.permute.xlu0 %3584 }
0x1b6f   :  { %5310 = vmatmul.msk.f32.vlgmr.msra.gmra.mxu0 %vm985_vm8, %v3363_v34  ;;  %3605 = vmatpush.msra.mxu3 %v3585_v18 }
0x1b74   :  { %v3253_v31 = vpop.f32.mrf.mxu0 }
0x1b75   :  { %5314 = vmatmul.msk.f32.gmra.mxu2 %vm985_vm8, %v3253_v31 }
0x1b76   :  { %v3696_v49 = vpop.permute.xlu0 %3695 }
0x1b77   :  { %5318 = vmatmul.msk.f32.vlgmr.msrb.gmra.mxu0 %vm985_vm8, %v3505_v58 }
0x1b7d   :  { %5324 = vmatmul.msk.f32.vlgmr.msra.gmra.mxu2 %vm985_vm8, %v3668_v10  ;;  %v7783_v24 = vpop.f32.mrf.mxu2 }
0x1b82   :  { %v3501_v20 = vpop.f32.mrf.mxu3 }
0x1b83   :  { %v3532_v37 = vmul.f32 0.17677669, %v3501_v20 }
0x1b85   :  { %v3534_v21 = vsel %vm7250_vm9, %v3532_v37, -1e+30 }
0x1b86   :  { %v3536_v22 = vsel %vm985_vm8, %v3534_v21, -inf }
0x1b87   :  { %3537 = vmax.xlane.f32.xlu2 %v3536_v22 }
0x1b9f   :  { %3697 = vrot.lane.b32.xlu2 %v7708_v40, %s6711_s21 }
0x1bec   :  { %v3415_v23 = vpop.f32.mrf.mxu0 }
0x1bed   :  { %5312 = vmatmul.msk.f32.gmra.mxu1 %vm985_vm8, %v3415_v23 }
0x1bf4   :  { %v3529_v26 = vpop.f32.mrf.mxu0 }
0x1bf5   :  { %v3533_v28 = vmul.f32 0.17677669, %v3529_v26 }
0x1bf7   :  { %v3535_v32 = vsel %vm7250_vm9, %v3533_v28, -1e+30 }
0x1bf8   :  { %v7787_v38 = vpop.f32.mrf.mxu2  ;;  %v3539_v39 = vsel %vm985_vm8, %v3535_v32, -inf }
0x1bf9   :  { %3540 = vmax.xlane.f32.xlu0 %v3539_v39 }
0x1bfa   :  { %v3538_v19 = vpop.xlane.xlu2 %3537 }
0x1bfb   :  { %v3542_v41 = vsub.f32 %v3534_v21, %v3538_v19 }
0x1bfd   :  { %v3544_v42 = vmul.f32 1.442695, %v3542_v41 }
0x1bff   :  { %5638 = vpow2.f32 %v3544_v42 }
0x1c00   :  { %v3692_v40 = vpop.f32.mrf.mxu2 }
0x1c01   :  { %v3723_v43 = vmul.f32 0.17677669, %v3692_v40 }
0x1c02   :  { %v3698_v11 = vpop.permute.xlu2 %3697 }
0x1c03   :  { %5325 = vmatpush.xpose.msk.msrb.mxu3 %vm985_vm8, %v3698_v11  ;;  %v3725_v44 = vsel %vm7250_vm9, %v3723_v43, -1e+30 }
0x1c04   :  { %v3727_v46 = vsel %vm985_vm8, %v3725_v44, -inf }
0x1c05   :  { %v5639_v36 = vpop.eup %5638  ;;  %3728 = vmax.xlane.f32.xlu2 %v3727_v46 }
0x1c06   :  { %v3548_v48 = vsel %vm985_vm8, %v5639_v36, 0.0 }
0x1c07   :  { %3549 = vadd.xlane.f32.xlu1 %v3548_v48 }
0x1c1d   :  { %3775 = vrot.lane.b32.xlu2 %v7680_v16, %s6711_s21 }
0x1c6c   :  { %v3541_v14 = vpop.xlane.xlu0 %3540 }
0x1c6d   :  { %v3543_v13 = vsub.f32 %v3535_v32, %v3541_v14 }
0x1c6f   :  { %v3546_v50 = vmul.f32 1.442695, %v3543_v13 }
0x1c71   :  { %5640 = vpow2.f32 %v3546_v50 }
0x1c77   :  { %v5641_v52 = vpop.eup %5640 }
0x1c78   :  { %v3729_v54 = vpop.xlane.xlu2 %3728  ;;  %v3551_v55 = vsel %vm985_vm8, %v5641_v52, 0.0 }
0x1c79   :  { %v3733_v59 = vsub.f32 %v3725_v44, %v3729_v54  ;;  %3552 = vadd.xlane.f32.xlu1 %v3551_v55  ;;  %v3441_v55 = vpop.f32.mrf.mxu1 }
0x1c7a   :  { %v3550_v60 = vpop.xlane.xlu1 %3549 }
0x1c7b   :  { %v3735_v61 = vmul.f32 1.442695, %v3733_v59  ;;  %5642 = vrcp.f32 %v3550_v60  ;;  %v3565_v3 = vand.u32 2147483648, %v3550_v60  ;;  %v3563_v4 = vand.u32 2147483647, %v3550_v60 }
0x1c7c   :  { %vm3559_vm10 = vweird.f32 %v3550_v60 }
0x1c7d   :  { %5644 = vpow2.f32 %v3735_v61  ;;  %v3566_v5 = vor.u32 1.1754944e-38, %v3565_v3  ;;  %vm3564_vm12 = vcmp.eq.f32.partialorder %v3563_v4, 8.507059e+37 }
0x1c80   :  { %v3776_v32 = vpop.permute.xlu2 %3775 }
0x1c81   :  { %v5643_v62 = vpop.eup %5642  ;;  %v7820_v59 = vpop.f32.mrf.mxu1 }
0x1c82   :  { %v3555_v63 = vmul.f32 %v5643_v62, %v3550_v60  ;;  %vm3560_vm7 = vweird.f32 %v5643_v62 }
0x1c83   :  { %v7798_v29 = vpop.eup %5644  ;;  %vm3561_vm11 = vmor %vm3559_vm10, %vm3560_vm7 }
0x1c84   :  { %v3556_v16 = vsub.f32 1.0, %v3555_v63  ;;  %v3739_v2 = vsel %vm985_vm8, %v7798_v29, 0.0  ;;  %v3471_v63 = vadd.f32 %v7783_v24, %v3441_v55 }
0x1c85   :  { %3740 = vadd.xlane.f32.xlu1 %v3739_v2  ;;  %v7823_v2 = vld [vmem:[#allocation37] ss:$0 sm:$0xff] }
0x1c86   :  { %v3557_v51 = vmul.f32 %v5643_v62, %v3556_v16 }
0x1c88   :  { %v3558_v1 = vadd.f32 %v5643_v62, %v3557_v51 }
0x1c8a   :  { %v3562_v6 = vsel %vm3561_vm11, %v5643_v62, %v3558_v1 }
0x1c8b   :  { %v3567_v27 = vsel %vm3564_vm12, %v3566_v5, %v3562_v6 }
0x1c8c   :  { %v3568_v7 = vmul.f32 %v5639_v36, %v3567_v27  ;;  %v3105_v36 = vld [vmem:[%s8228_s15 + $0x18] sm:$0xff] }
0x1c8e   :  { %5319 = vmatmul.msk.f32.vlgmr.msra.gmra.mxu3 %vm985_vm8, %v3568_v7 }
0x1c8f   :  { %3848 = vmatpush.msra.mxu3 %v3105_v36  ;;  %v5521_v36 = vld [vmem:[#allocation38] ss:$0 sm:$0xff] }
0x1c96   :  { %5326 = vmatmul.msk.f32.vlgmr.msrb.gmra.mxu3 %vm985_vm8, %v3696_v49 }
0x1c9e   :  { %3610 = vrot.lane.b32.xlu1 %v7705_v30, %s6710_s28 }
0x1ca6   :  { %3801 = vrot.lane.b32.xlu1 %v7705_v30, %s6711_s21 }
0x1cec   :  { %v3553_v12 = vpop.xlane.xlu1 %3552 }
0x1ced   :  { %5646 = vrcp.f32 %v3553_v12  ;;  %v3580_v18 = vand.u32 2147483648, %v3553_v12  ;;  %vm3574_vm14 = vweird.f32 %v3553_v12  ;;  %v3578_v58 = vand.u32 2147483647, %v3553_v12 }
0x1cef   :  { %v3581_v10 = vor.u32 1.1754944e-38, %v3580_v18  ;;  %vm3579_vm1 = vcmp.eq.f32.partialorder %v3578_v58, 8.507059e+37  ;;  %v3924_v18 = vld [vmem:[%s8229_s4 + $0x10] sm:$0xff]  ;;  %v3923_v58 = vld [vmem:[%s8229_s4 + $0x8] sm:$0xff] }
0x1cf3   :  { %v5647_v9 = vpop.eup %5646 }
0x1cf4   :  { %v3570_v45 = vmul.f32 %v5647_v9, %v3553_v12  ;;  %vm3575_vm13 = vweird.f32 %v5647_v9 }
0x1cf5   :  { %vm3576_vm15 = vmor %vm3574_vm14, %vm3575_vm13 }
0x1cf6   :  { %v3571_v0 = vsub.f32 1.0, %v3570_v45 }
0x1cf8   :  { %v3741_v15 = vpop.xlane.xlu1 %3740  ;;  %v3572_v47 = vmul.f32 %v5647_v9, %v3571_v0 }
0x1cf9   :  { %5648 = vrcp.f32 %v3741_v15  ;;  %v3756_v21 = vand.u32 2147483648, %v3741_v15  ;;  %vm3750_vm4 = vweird.f32 %v3741_v15  ;;  %v3754_v22 = vand.u32 2147483647, %v3741_v15 }
0x1cfa   :  { %v3573_v17 = vadd.f32 %v5647_v9, %v3572_v47 }
0x1cfb   :  { %v3757_v19 = vor.u32 1.1754944e-38, %v3756_v21  ;;  %vm3755_vm6 = vcmp.eq.f32.partialorder %v3754_v22, 8.507059e+37  ;;  %v3975_v21 = vld [vmem:[%s8230_s9 + $0x70] sm:$0xff]  ;;  %v3974_v22 = vld [vmem:[%s8230_s9 + $0x68] sm:$0xff] }
0x1cfc   :  { %v3577_v30 = vsel %vm3576_vm15, %v5647_v9, %v3573_v17 }
0x1cfd   :  { %v3582_v20 = vsel %vm3579_vm1, %v3581_v10, %v3577_v30  ;;  %v3922_v30 = vld [vmem:[%s8229_s4] sm:$0xff] }
0x1cfe   :  { %v3583_v26 = vmul.f32 %v5641_v52, %v3582_v20 }
0x1cff   :  { %v5649_v57 = vpop.eup %5648 }
0x1d00   :  { %v3746_v53 = vmul.f32 %v5649_v57, %v3741_v15  ;;  %vm3751_vm3 = vweird.f32 %v5649_v57 }
0x1d01   :  { %vm3752_vm5 = vmor %vm3750_vm4, %vm3751_vm3 }
0x1d02   :  { %v3747_v34 = vsub.f32 1.0, %v3746_v53 }
0x1d04   :  { %v3748_v31 = vmul.f32 %v5649_v57, %v3747_v34  ;;  %v3925_v34 = vld [vmem:[%s8229_s4 + $0x18] sm:$0xff] }
0x1d06   :  { %v3749_v37 = vadd.f32 %v5649_v57, %v3748_v31 }
0x1d08   :  { %v3753_v39 = vsel %vm3752_vm5, %v5649_v57, %v3749_v37  ;;  %v3976_v37 = vld [vmem:[%s8230_s9 + $0x78] sm:$0xff] }
0x1d09   :  { %v3758_v41 = vsel %vm3755_vm6, %v3757_v19, %v3753_v39  ;;  %3981 = vmatpush.msrb.mxu1 %v3976_v37  ;;  %v3970_v19 = vld [vmem:[%s8230_s9 + $0x48] sm:$0xff] }
0x1d0a   :  { %v3759_v42 = vmul.f32 %v7798_v29, %v3758_v41 }
0x1d0b   :  { %3982 = vmatpush.msrb.mxu1 %v3975_v21 }
0x1d0d   :  { %3983 = vmatpush.msrb.mxu1 %v3974_v22 }
0x1d10   :  { %v3611_v23 = vpop.permute.xlu1 %3610 }
0x1d11   :  { %v3607_v28 = vpop.f32.mrf.mxu3  ;;  %3631 = vmatpush.msra.mxu0 %v3611_v23  ;;  %v3973_v23 = vld [vmem:[%s8230_s9 + $0x60] sm:$0xff] }
0x1d12   :  { %5320 = vmatmul.msk.f32.vlgmr.msra.gmra.mxu0 %vm985_vm8, %v3583_v26  ;;  %5321 = vmatmul.msk.f32.vlgmr.msra.gmra.mxu1 %vm985_vm8, %v3607_v28  ;;  %v3972_v26 = vld [vmem:[%s8230_s9 + $0x58] sm:$0xff] }
0x1d13   :  { %3796 = vmatpush.msrb.mxu0 %v3776_v32  ;;  %3984 = vmatpush.msrb.mxu1 %v3973_v23  ;;  %v3971_v32 = vld [vmem:[%s8230_s9 + $0x50] sm:$0xff] }
0x1d15   :  { %3948 = vmatpush.msra.mxu0 %v3925_v34  ;;  %3985 = vmatpush.msrb.mxu1 %v3972_v26 }
0x1d17   :  { %3949 = vmatpush.msra.mxu0 %v3924_v18  ;;  %3986 = vmatpush.msrb.mxu1 %v3971_v32 }
0x1d18   :  { %v3802_v40 = vpop.permute.xlu1 %3801 }
0x1d19   :  { %v3720_v43 = vpop.f32.mrf.mxu3  ;;  %3822 = vmatpush.msrb.mxu2 %v3802_v40  ;;  %3950 = vmatpush.msra.mxu0 %v3923_v58 }
0x1d1a   :  { %v3724_v11 = vmul.f32 0.17677669, %v3720_v43  ;;  %5327 = vmatmul.msk.f32.vlgmr.msrb.gmra.mxu0 %vm985_vm8, %v3759_v42  ;;  %v3969_v42 = vld [vmem:[%s8230_s9 + $0x40] sm:$0xff]  ;;  %3987 = vmatpush.msrb.mxu1 %v3970_v19  ;;  %v3968_v43 = vld [vmem:[%s8230_s9 + $0x38] sm:$0xff] }
0x1d1b   :  { %3951 = vmatpush.msra.mxu0 %v3922_v30 }
0x1d1c   :  { %v3726_v44 = vsel %vm7250_vm9, %v3724_v11, -1e+30  ;;  %3988 = vmatpush.msrb.mxu1 %v3969_v42  ;;  %v4102_v42 = vld [vmem:[%s8232_s19 + $0x18] sm:$0xff] }
0x1d1d   :  { %v3730_v46 = vsel %vm985_vm8, %v3726_v44, -inf  ;;  %4119 = vmatpush.msrb.mxu3 %v4102_v42 }
0x1d1e   :  { %3731 = vmax.xlane.f32.xlu0 %v3730_v46  ;;  %3989 = vmatpush.msrb.mxu1 %v3968_v43  ;;  %v4064_v43 = vld [vmem:[%s8231_s16 + $0x10] sm:$0xff] }
0x1d8f   :  { %v3633_v48 = vpop.f32.mrf.mxu0  ;;  %v3659_v61 = vpop.f32.mrf.mxu1 }
0x1d90   :  { %5322 = vmatmul.msk.f32.gmra.mxu1 %vm985_vm8, %v3633_v48  ;;  %v3665_v16 = vadd.f32 %v3659_v61, %v3471_v63  ;;  %v3966_v48 = vld [vmem:[%s8230_s9 + $0x28] sm:$0xff] }
0x1d91   :  { %v3732_v49 = vpop.xlane.xlu0 %3731 }
0x1d92   :  { %v3734_v14 = vsub.f32 %v3726_v44, %v3732_v49  ;;  %v3967_v44 = vld [vmem:[%s8230_s9 + $0x30] sm:$0xff] }
0x1d93   :  { %3990 = vmatpush.msrb.mxu1 %v3967_v44  ;;  %v4132_v44 = vld [vmem:[%s8233_s20 + $0x10] sm:$0xff] }
0x1d94   :  { %v3737_v13 = vmul.f32 1.442695, %v3734_v14 }
0x1d95   :  { %3991 = vmatpush.msrb.mxu1 %v3966_v48  ;;  %v4131_v48 = vld [vmem:[%s8233_s20 + $0x8] sm:$0xff] }
0x1d96   :  { %5650 = vpow2.f32 %v3737_v13  ;;  %v5522_v13 = vld [vmem:[#allocation40] ss:$0 sm:$0xff] }
0x1d97   :  { %v3798_v50 = vpop.f32.mrf.mxu0 }
0x1d98   :  { %5329 = vmatmul.msk.f32.vlgmr.msra.gmra.mxu3 %vm985_vm8, %v3798_v50 }
0x1d9c   :  { %v5651_v52 = vpop.eup %5650 }
0x1d9d   :  { %v3742_v54 = vsel %vm985_vm8, %v5651_v52, 0.0 }
0x1d9e   :  { %3743 = vadd.xlane.f32.xlu0 %v3742_v54  ;;  %v3474_v54 = vadd.f32 %v7787_v38, %v7820_v59  ;;  %v3963_v38 = vld [vmem:[%s8230_s9 + $0x10] sm:$0xff]  ;;  %v3962_v59 = vld [vmem:[%s8230_s9 + $0x8] sm:$0xff] }
0x1e0d   :  { %v3662_v14 = vpop.f32.mrf.mxu1 }
0x1e11   :  { %v3744_v60 = vpop.xlane.xlu0 %3743 }
0x1e12   :  { %5652 = vrcp.f32 %v3744_v60  ;;  %v3771_v4 = vand.u32 2147483648, %v3744_v60  ;;  %v3769_v6 = vand.u32 2147483647, %v3744_v60  ;;  %vm3765_vm10 = vweird.f32 %v3744_v60 }
0x1e14   :  { %v3772_v12 = vor.u32 1.1754944e-38, %v3771_v4  ;;  %vm3770_vm12 = vcmp.eq.f32.partialorder %v3769_v6, 8.507059e+37  ;;  %v3961_v4 = vld [vmem:[%s8230_s9] sm:$0xff] }
0x1e15   :  { %v5523_v6 = vld [vmem:[#allocation41] ss:$0 sm:$0xff] }
0x1e18   :  { %v5653_v62 = vpop.eup %5652 }
0x1e19   :  { %v3761_v29 = vmul.f32 %v5653_v62, %v3744_v60  ;;  %vm3766_vm7 = vweird.f32 %v5653_v62  ;;  %v3666_v60 = vadd.f32 %v3662_v14, %v3474_v54  ;;  %v4099_v14 = vld [vmem:[%s8232_s19] sm:$0xff] }
0x1e1a   :  { %vm3767_vm11 = vmor %vm3765_vm10, %vm3766_vm7 }
0x1e1b   :  { %v3762_v3 = vsub.f32 1.0, %v3761_v29  ;;  %v3850_v51 = vpop.f32.mrf.mxu3 }
0x1e1c   :  { %v3856_v1 = vadd.f32 %v3850_v51, %v3665_v16  ;;  %v3964_v51 = vld [vmem:[%s8230_s9 + $0x18] sm:$0xff] }
0x1e1d   :  { %v3763_v5 = vmul.f32 %v5653_v62, %v3762_v3 }
0x1e1e   :  { %v3862_v27 = vadd.f32 %v7823_v2, %v3856_v1 }
0x1e1f   :  { %v3764_v7 = vadd.f32 %v5653_v62, %v3763_v5 }
0x1e20   :  { %v3864_v56 = vadd.f32 %v3862_v27, %v7670_v33 }
0x1e21   :  { %v3768_v24 = vsel %vm3767_vm11, %v5653_v62, %v3764_v7 }
0x1e22   :  { %v3773_v9 = vsel %vm3770_vm12, %v3772_v12, %v3768_v24  ;;  %v3868_v15 = vsel %vm820_vm2, %v3864_v56, 0.0 }
0x1e23   :  { %v3774_v45 = vmul.f32 %v5651_v52, %v3773_v9  ;;  %3869 = vadd.xlane.f32.xlu0 %v3868_v15  ;;  %v3965_v52 = vld [vmem:[%s8230_s9 + $0x20] sm:$0xff] }
0x1e24   :  { %3992 = vmatpush.msrb.mxu1 %v3965_v52 }
0x1e25   :  { %5328 = vmatmul.msk.f32.vlgmr.msrb.gmra.mxu2 %vm985_vm8, %v3774_v45  ;;  %v7862_v45 = vld [vmem:[#allocation43] ss:$0 sm:$0xff] }
0x1e26   :  { %3993 = vmatpush.msrb.mxu1 %v3964_v51  ;;  %v5526_v51 = vld [vmem:[#allocation46] ss:$0 sm:$0xff] }
0x1e28   :  { %3994 = vmatpush.msrb.mxu1 %v3963_v38 }
0x1e2a   :  { %3995 = vmatpush.msrb.mxu1 %v3962_v59 }
0x1e2c   :  { %3996 = vmatpush.msrb.mxu1 %v3961_v4 }
0x1e96   :  { %v3870_v0 = vpop.xlane.xlu0 %3869 }
0x1e97   :  { %v3874_v57 = vmul.f32 %v3870_v0, %v7198_v25 }
0x1e99   :  { %v3876_v47 = vsub.f32 %v3864_v56, %v3874_v57 }
0x1e9b   :  { %v3878_v53 = vmul.f32 %v3876_v47, %v3876_v47 }
0x1e9d   :  { %v3880_v33 = vsel %vm820_vm2, %v3878_v53, 0.0 }
0x1e9e   :  { %3881 = vadd.xlane.f32.xlu1 %v3880_v33 }
0x1ea8   :  { %v3824_v17 = vpop.f32.mrf.mxu2 }
0x1ea9   :  { %5330 = vmatmul.msk.f32.gmra.mxu3 %vm985_vm8, %v3824_v17 }
0x1f11   :  { %v3882_v31 = vpop.xlane.xlu1 %3881 }
0x1f12   :  { %v3886_v10 = vmul.f32 %v3882_v31, %v7198_v25 }
0x1f14   :  { %v3888_v20 = vadd.f32 1e-05, %v3886_v10 }
0x1f16   :  { %5654 = vrsqrt.f32 %v3888_v20  ;;  %vm3896_vm14 = vweird.f32 %v3888_v20 }
0x1f1c   :  { %v5655_v28 = vpop.eup %5654 }
0x1f1d   :  { %v3891_v39 = vmul.f32 %v5655_v28, %v3888_v20  ;;  %vm3897_vm13 = vweird.f32 %v5655_v28 }
0x1f1e   :  { %vm3898_vm15 = vmor %vm3896_vm14, %vm3897_vm13 }
0x1f1f   :  { %v3892_v41 = vmul.f32 %v5655_v28, %v3891_v39 }
0x1f21   :  { %v3893_v40 = vmul.f32 0.5, %v3892_v41  ;;  %v4065_v41 = vld [vmem:[%s8231_s16 + $0x18] sm:$0xff] }
0x1f22   :  { %4088 = vmatpush.msra.mxu2 %v4065_v41 }
0x1f23   :  { %v3894_v11 = vsub.f32 1.5, %v3893_v40  ;;  %v4133_v40 = vld [vmem:[%s8233_s20 + $0x18] sm:$0xff] }
0x1f24   :  { %4150 = vmatpush.msrb.mxu0 %v4133_v40  ;;  %4089 = vmatpush.msra.mxu2 %v4064_v43 }
0x1f25   :  { %v3895_v46 = vmul.f32 %v5655_v28, %v3894_v11  ;;  %v4101_v11 = vld [vmem:[%s8232_s19 + $0x10] sm:$0xff] }
0x1f26   :  { %4120 = vmatpush.msrb.mxu3 %v4101_v11  ;;  %4151 = vmatpush.msrb.mxu0 %v4132_v44 }
0x1f27   :  { %v3899_v49 = vsel %vm3898_vm15, %v5655_v28, %v3895_v46  ;;  %v4063_v46 = vld [vmem:[%s8231_s16 + $0x8] sm:$0xff] }
0x1f28   :  { %v3910_v50 = vmul.f32 %v3899_v49, %v3876_v47  ;;  %4090 = vmatpush.msra.mxu2 %v4063_v46  ;;  %v4062_v49 = vld [vmem:[%s8231_s16] sm:$0xff]  ;;  %4152 = vmatpush.msrb.mxu0 %v4131_v48 }
0x1f2a   :  { %v3915_v55 = vmul.f32 %v5521_v36, %v3910_v50  ;;  %4091 = vmatpush.msra.mxu2 %v4062_v49 }
0x1f2c   :  { %v3920_v61 = vadd.f32 %v5522_v13, %v3915_v55  ;;  %v3853_v62 = vpop.f32.mrf.mxu3 }
0x1f2d   :  { %v3857_v63 = vadd.f32 %v3853_v62, %v3666_v60 }
0x1f2e   :  { %5331 = vmatmul.msk.f32.vlgmr.msra.gmra.mxu0 %vm820_vm2, %v3920_v61 }
0x1f2f   :  { %v3863_v29 = vadd.f32 %v7823_v2, %v3857_v63 }
0x1f31   :  { %v3865_v16 = vadd.f32 %v3863_v29, %v7693_v35 }
0x1f33   :  { %v3871_v3 = vsel %vm820_vm2, %v3865_v16, 0.0 }
0x1f34   :  { %3872 = vadd.xlane.f32.xlu2 %v3871_v3 }
0x1fa7   :  { %v3873_v1 = vpop.xlane.xlu2 %3872 }
0x1fa8   :  { %v3875_v5 = vmul.f32 %v3873_v1, %v7198_v25 }
0x1faa   :  { %v3877_v27 = vsub.f32 %v3865_v16, %v3875_v5  ;;  %v5525_v16 = vld [vmem:[#allocation44] ss:$0 sm:$0xff] }
0x1fab   :  { %v3953_v7 = vpop.f32.mrf.mxu0 }
0x1fac   :  { %v3954_v2 = vadd.f32 %v5523_v6, %v3953_v7  ;;  %v3879_v12 = vmul.f32 %v3877_v27, %v3877_v27 }
0x1fae   :  { %v3959_v35 = vmax.f32 %v3954_v2, 0.0  ;;  %v3883_v56 = vsel %vm820_vm2, %v3879_v12, 0.0  ;;  %v5527_v12 = vld [vmem:[#allocation50] ss:$0 sm:$0xff] }
0x1faf   :  { %3884 = vadd.xlane.f32.xlu0 %v3883_v56 }
0x1fb0   :  { %3997 = vmatmul.f32.vlgmr.msrb.gmra.mxu1 %v3959_v35 }
0x2022   :  { %v3885_v24 = vpop.xlane.xlu0 %3884 }
0x2023   :  { %v3887_v9 = vmul.f32 %v3885_v24, %v7198_v25 }
0x2025   :  { %v3889_v15 = vadd.f32 1e-05, %v3887_v9 }
0x2027   :  { %5656 = vrsqrt.f32 %v3889_v15  ;;  %vm3906_vm3 = vweird.f32 %v3889_v15 }
0x202d   :  { %v5657_v0 = vpop.eup %5656  ;;  %v3998_v57 = vpop.f32.mrf.mxu1 }
0x202e   :  { %v3901_v47 = vmul.f32 %v5657_v0, %v3889_v15  ;;  %v3999_v53 = vadd.f32 %v7862_v45, %v3998_v57  ;;  %vm3907_vm1 = vweird.f32 %v5657_v0 }
0x202f   :  { %vm3908_vm4 = vmor %vm3906_vm3, %vm3907_vm1 }
0x2030   :  { %v3902_v33 = vmul.f32 %v5657_v0, %v3901_v47  ;;  %v4004_v17 = vadd.f32 %v3999_v53, %v3920_v61  ;;  %v5528_v47 = vld [vmem:[#allocation47] ss:$0 sm:$0xff] }
0x2032   :  { %v3903_v34 = vmul.f32 0.5, %v3902_v33  ;;  %v4008_v18 = vsel %vm820_vm2, %v4004_v17, 0.0 }
0x2033   :  { %4009 = vadd.xlane.f32.xlu0 %v4008_v18 }
0x2034   :  { %v3904_v58 = vsub.f32 1.5, %v3903_v34 }
0x2036   :  { %v3905_v30 = vmul.f32 %v5657_v0, %v3904_v58 }
0x2038   :  { %v3909_v31 = vsel %vm3908_vm4, %v5657_v0, %v3905_v30  ;;  %v5529_v0 = vld [vmem:[#allocation49] ss:$0 sm:$0xff] }
0x2039   :  { %v3911_v10 = vmul.f32 %v3909_v31, %v3877_v27 }
0x203b   :  { %v3916_v20 = vmul.f32 %v5521_v36, %v3911_v10  ;;  %v4100_v36 = vld [vmem:[%s8232_s19 + $0x8] sm:$0xff] }
0x203c   :  { %4121 = vmatpush.msrb.mxu3 %v4100_v36 }
0x203d   :  { %v3921_v37 = vadd.f32 %v5522_v13, %v3916_v20  ;;  %v4130_v13 = vld [vmem:[%s8233_s20] sm:$0xff] }
0x203e   :  { %4122 = vmatpush.msrb.mxu3 %v4099_v14  ;;  %4153 = vmatpush.msrb.mxu0 %v4130_v13 }
0x203f   :  { %5332 = vmatmul.msk.f32.gmra.mxu0 %vm820_vm2, %v3921_v37 }
0x20a6   :  { %v4010_v21 = vpop.xlane.xlu0 %4009 }
0x20a7   :  { %v4014_v22 = vmul.f32 %v4010_v21, %v7198_v25 }
0x20a9   :  { %v4016_v23 = vsub.f32 %v4004_v17, %v4014_v22 }
0x20ab   :  { %v4018_v26 = vmul.f32 %v4016_v23, %v4016_v23 }
0x20ad   :  { %v4020_v28 = vsel %vm820_vm2, %v4018_v26, 0.0 }
0x20ae   :  { %4021 = vadd.xlane.f32.xlu0 %v4020_v28 }
0x20bc   :  { %v3956_v32 = vpop.f32.mrf.mxu0 }
0x20bd   :  { %v3957_v39 = vadd.f32 %v5523_v6, %v3956_v32 }
0x20bf   :  { %v3960_v19 = vmax.f32 %v3957_v39, 0.0 }
0x20c1   :  { %4000 = vmatmul.f32.gmra.mxu1 %v3960_v19 }
0x2121   :  { %v4022_v50 = vpop.xlane.xlu0 %4021 }
0x2122   :  { %v4026_v52 = vmul.f32 %v4022_v50, %v7198_v25 }
0x2124   :  { %v4028_v54 = vadd.f32 1e-05, %v4026_v52 }
0x2126   :  { %5658 = vrsqrt.f32 %v4028_v54  ;;  %vm4036_vm6 = vweird.f32 %v4028_v54 }
0x212c   :  { %v5659_v55 = vpop.eup %5658 }
0x212d   :  { %v4031_v60 = vmul.f32 %v5659_v55, %v4028_v54  ;;  %vm4037_vm5 = vweird.f32 %v5659_v55 }
0x212e   :  { %vm4038_vm7 = vmor %vm4036_vm6, %vm4037_vm5 }
0x212f   :  { %v4032_v61 = vmul.f32 %v5659_v55, %v4031_v60 }
0x2131   :  { %v4033_v62 = vmul.f32 0.5, %v4032_v61 }
0x2133   :  { %v4034_v63 = vsub.f32 1.5, %v4033_v62 }
0x2135   :  { %v4035_v29 = vmul.f32 %v5659_v55, %v4034_v63 }
0x2137   :  { %v4039_v3 = vsel %vm4038_vm7, %v5659_v55, %v4035_v29 }
0x2138   :  { %v4050_v38 = vmul.f32 %v4039_v3, %v4016_v23 }
0x213a   :  { %v4055_v59 = vmul.f32 %v5525_v16, %v4050_v38 }
0x213c   :  { %v7882_v4 = vadd.f32 %v5526_v51, %v4055_v59 }
0x213e   :  { %v4001_v1 = vpop.f32.mrf.mxu1  ;;  %5333 = vmatmul.msk.f32.vlgmr.msra.gmra.mxu2 %vm820_vm2, %v7882_v4  ;;  %5335 = vmatmul.msk.f32.vlgmr.msrb.gmra.mxu3 %vm820_vm2, %v7882_v4 }
0x213f   :  { %v4002_v5 = vadd.f32 %v7862_v45, %v4001_v1  ;;  %5337 = vmatmul.msk.f32.vlgmr.msrb.gmra.mxu0 %vm820_vm2, %v7882_v4 }
0x2141   :  { %v4005_v6 = vadd.f32 %v4002_v5, %v3921_v37 }
0x2143   :  { %v4011_v27 = vsel %vm820_vm2, %v4005_v6, 0.0 }
0x2144   :  { %4012 = vadd.xlane.f32.xlu0 %v4011_v27 }
0x21b7   :  { %v4013_v7 = vpop.xlane.xlu0 %4012 }
0x21b8   :  { %v4015_v2 = vmul.f32 %v4013_v7, %v7198_v25 }
0x21ba   :  { %v4017_v35 = vsub.f32 %v4005_v6, %v4015_v2 }
0x21bc   :  { %v4155_v56 = vpop.f32.mrf.mxu0  ;;  %v4019_v24 = vmul.f32 %v4017_v35, %v4017_v35 }
0x21bd   :  { %v7893_v9 = vadd.f32 %v5527_v12, %v4155_v56 }
0x21be   :  { %v4023_v15 = vsel %vm820_vm2, %v4019_v24, 0.0 }
0x21bf   :  { %4287 = vmatpush.msra.mxu3 %v7893_v9  ;;  %4024 = vadd.xlane.f32.xlu0 %v4023_v15 }
0x21c1   :  { %v4124_v45 = vpop.f32.mrf.mxu3  ;;  %v4093_v53 = vpop.f32.mrf.mxu2 }
0x21c2   :  { %v7897_v57 = vadd.f32 %v5529_v0, %v4124_v45  ;;  %v7905_v33 = vadd.f32 %v5528_v47, %v4093_v53 }
0x21c4   :  { %4317 = vrot.lane.b32.xlu1 %v7897_v57, %s6709_s3  ;;  %5339 = vmatpush.xpose.msk.msrb.mxu2 %vm985_vm8, %v7897_v57 }
0x21cc   :  { %4424 = vrot.lane.b32.xlu1 %v7893_v9, %s6709_s3 }
0x21d3   :  { %4315 = vrot.lane.b32.xlu0 %v7905_v33, %s6709_s3 }
0x2232   :  { %v4025_v17 = vpop.xlane.xlu0 %4024 }
0x2233   :  { %v4027_v34 = vmul.f32 %v4025_v17, %v7198_v25 }
0x2235   :  { %v4029_v18 = vadd.f32 1e-05, %v4027_v34 }
0x2236   :  { %v4318_v58 = vpop.permute.xlu1 %4317 }
0x2237   :  { %5660 = vrsqrt.f32 %v4029_v18  ;;  %5345 = vmatpush.xpose.msk.msra.mxu1 %vm985_vm8, %v4318_v58  ;;  %vm4046_vm11 = vweird.f32 %v4029_v18 }
0x223d   :  { %v5661_v30 = vpop.eup %5660 }
0x223e   :  { %v4041_v31 = vmul.f32 %v5661_v30, %v4029_v18  ;;  %v4425_v10 = vpop.permute.xlu1 %4424  ;;  %vm4047_vm10 = vweird.f32 %v5661_v30 }
0x223f   :  { %4445 = vmatpush.msrb.mxu3 %v4425_v10  ;;  %vm4048_vm12 = vmor %vm4046_vm11, %vm4047_vm10 }
0x2240   :  { %v4042_v20 = vmul.f32 %v5661_v30, %v4041_v31 }
0x2242   :  { %v4043_v37 = vmul.f32 0.5, %v4042_v20 }
0x2244   :  { %v4044_v21 = vsub.f32 1.5, %v4043_v37 }
0x2245   :  { %v4316_v22 = vpop.permute.xlu0 %4315 }
0x2246   :  { %v4045_v23 = vmul.f32 %v5661_v30, %v4044_v21  ;;  %5346 = vmatmul.msk.f32.vlgmr.msra.gmra.mxu1 %vm985_vm8, %v4316_v22 }
0x2248   :  { %v4049_v26 = vsel %vm4048_vm12, %v5661_v30, %v4045_v23 }
0x2249   :  { %v4051_v28 = vmul.f32 %v4049_v26, %v4017_v35 }
0x224b   :  { %v4056_v32 = vmul.f32 %v5525_v16, %v4051_v28  ;;  %v4161_v28 = vld [vmem:[%s8234_s11] sm:$0xff] }
0x224d   :  { %v7912_v39 = vadd.f32 %v5526_v51, %v4056_v32 }
0x224f   :  { %5334 = vmatmul.msk.f32.gmra.mxu2 %vm820_vm2, %v7912_v39  ;;  %5336 = vmatmul.msk.f32.gmra.mxu3 %vm820_vm2, %v7912_v39 }
0x2250   :  { %5338 = vmatmul.msk.f32.gmra.mxu0 %vm820_vm2, %v7912_v39 }
0x2257   :  { %5340 = vmatmul.msk.f32.vlgmr.msrb.gmra.mxu2 %vm985_vm8, %v7905_v33 }
0x22c3   :  { %v4340_v36 = vpop.f32.mrf.mxu1 }
0x22c4   :  { %v4371_v14 = vmul.f32 0.17677669, %v4340_v36 }
0x22c6   :  { %v4373_v13 = vsel %vm7250_vm9, %v4371_v14, -1e+30 }
0x22c7   :  { %v4375_v50 = vsel %vm985_vm8, %v4373_v13, -inf }
0x22cd   :  { %v4158_v19 = vpop.f32.mrf.mxu0 }
0x22ce   :  { %v7922_v41 = vadd.f32 %v5527_v12, %v4158_v19 }
0x22d0   :  { %4310 = vmatpush.msra.mxu0 %v7922_v41 }
0x22d2   :  { %v4096_v42 = vpop.f32.mrf.mxu2  ;;  %v4127_v40 = vpop.f32.mrf.mxu3 }
0x22d3   :  { %v7925_v43 = vadd.f32 %v5528_v47, %v4096_v42  ;;  %v7927_v11 = vadd.f32 %v5529_v0, %v4127_v40 }
0x22d5   :  { %5341 = vmatpush.xpose.msk.msra.mxu2 %vm985_vm8, %v7927_v11  ;;  %4343 = vrot.lane.b32.xlu1 %v7925_v43, %s6709_s3 }
0x22d8   :  { %5342 = vmatmul.msk.f32.vlgmr.msra.gmra.mxu2 %vm985_vm8, %v7925_v43 }
0x22da   :  { %v4188_v44 = vpop.f32.mrf.mxu2 }
0x22db   :  { %v4217_v46 = vmul.f32 0.17677669, %v4188_v44 }
0x22dd   :  { %4537 = vrot.lane.b32.xlu1 %v7897_v57, %s6710_s28  ;;  %v4219_v48 = vsel %vm7250_vm9, %v4217_v46, -1e+30 }
0x22de   :  { %v4221_v49 = vsel %vm985_vm8, %v4219_v48, -inf }
0x22df   :  { %4222 = vmax.xlane.f32.xlu2 %v4221_v49 }
0x22e5   :  { %4535 = vrot.lane.b32.xlu1 %v7905_v33, %s6710_s28 }
0x22e7   :  { %4376 = vmax.xlane.f32.xlu2 %v4375_v50 }
0x2347   :  { %v4344_v12 = vpop.permute.xlu1 %4343 }
0x234f   :  { %v4538_v30 = vpop.permute.xlu1 %4537 }
0x2352   :  { %v4223_v52 = vpop.xlane.xlu2 %4222 }
0x2353   :  { %v4227_v54 = vsub.f32 %v4219_v48, %v4223_v52  ;;  %v4162_v48 = vld [vmem:[%s8234_s11 + $0x8] sm:$0xff] }
0x2354   :  { %4498 = vmatpush.msrb.mxu1 %v4162_v48 }
0x2355   :  { %v4229_v55 = vmul.f32 1.442695, %v4227_v54 }
0x2357   :  { %5662 = vpow2.f32 %v4229_v55  ;;  %v4536_v26 = vpop.permute.xlu1 %4535 }
0x235a   :  { %v4377_v60 = vpop.xlane.xlu2 %4376 }
0x235b   :  { %v4381_v61 = vsub.f32 %v4373_v13, %v4377_v60  ;;  %v4214_v51 = vpop.f32.mrf.mxu2 }
0x235c   :  { %v4218_v38 = vmul.f32 0.17677669, %v4214_v51 }
0x235d   :  { %v5663_v62 = vpop.eup %5662  ;;  %v4383_v63 = vmul.f32 1.442695, %v4381_v61 }
0x235e   :  { %v4233_v29 = vsel %vm985_vm8, %v5663_v62, 0.0  ;;  %v4220_v59 = vsel %vm7250_vm9, %v4218_v38, -1e+30 }
0x235f   :  { %5664 = vpow2.f32 %v4383_v63  ;;  %4234 = vadd.xlane.f32.xlu2 %v4233_v29  ;;  %v4224_v1 = vsel %vm985_vm8, %v4220_v59, -inf }
0x2365   :  { %v5665_v16 = vpop.eup %5664 }
0x2366   :  { %v4387_v3 = vsel %vm985_vm8, %v5665_v16, 0.0 }
0x2367   :  { %4388 = vadd.xlane.f32.xlu0 %v4387_v3 }
0x2377   :  { %4345 = vrot.lane.b32.xlu2 %v7927_v11, %s6709_s3 }
0x23a0   :  { %4225 = vmax.xlane.f32.xlu2 %v4224_v1 }
0x23b8   :  { %4451 = vrot.lane.b32.xlu2 %v7922_v41, %s6709_s3  ;;  %s8235_s3 = sld [smem:[#allocation125_spill]] }
0x23c0   :  { %4728 = vrot.lane.b32.xlu2 %v7897_v57, %s6711_s21 }
0x23c8   :  { %4756 = vrot.lane.b32.xlu2 %v7927_v11, %s6711_s21 }
0x23d2   :  { %v4235_v5 = vpop.xlane.xlu2 %4234 }
0x23d3   :  { %5666 = vrcp.f32 %v4235_v5  ;;  %v4250_v56 = vand.u32 2147483648, %v4235_v5  ;;  %v4248_v15 = vand.u32 2147483647, %v4235_v5  ;;  %vm4244_vm14 = vweird.f32 %v4235_v5 }
0x23d5   :  { %v4251_v57 = vor.u32 1.1754944e-38, %v4250_v56  ;;  %vm4249_vm1 = vcmp.eq.f32.partialorder %v4248_v15, 8.507059e+37 }
0x23d9   :  { %v5667_v6 = vpop.eup %5666 }
0x23da   :  { %v4240_v27 = vmul.f32 %v5667_v6, %v4235_v5  ;;  %v4389_v7 = vpop.xlane.xlu0 %4388  ;;  %v4346_v2 = vpop.permute.xlu2 %4345  ;;  %vm4245_vm13 = vweird.f32 %v5667_v6 }
0x23db   :  { %5668 = vrcp.f32 %v4389_v7  ;;  %5347 = vmatpush.xpose.msk.msrb.mxu2 %vm985_vm8, %v4346_v2  ;;  %vm4246_vm15 = vmor %vm4244_vm14, %vm4245_vm13  ;;  %v4404_v58 = vand.u32 2147483648, %v4389_v7  ;;  %v4402_v10 = vand.u32 2147483647, %v4389_v7  ;;  %vm4398_vm4 = vweird.f32 %v4389_v7 }
0x23dc   :  { %v4241_v35 = vsub.f32 1.0, %v4240_v27 }
0x23dd   :  { %v4405_v37 = vor.u32 1.1754944e-38, %v4404_v58  ;;  %vm4403_vm6 = vcmp.eq.f32.partialorder %v4402_v10, 8.507059e+37 }
0x23de   :  { %v4242_v24 = vmul.f32 %v5667_v6, %v4241_v35  ;;  %5348 = vmatmul.msk.f32.vlgmr.msrb.gmra.mxu2 %vm985_vm8, %v4344_v12 }
0x23df   :  { %4527 = vmatpush.msra.mxu2 %v4161_v28 }
0x23e0   :  { %v4243_v0 = vadd.f32 %v5667_v6, %v4242_v24 }
0x23e1   :  { %v5669_v45 = vpop.eup %5668 }
0x23e2   :  { %v4247_v47 = vsel %vm4246_vm15, %v5667_v6, %v4243_v0  ;;  %v4394_v53 = vmul.f32 %v5669_v45, %v4389_v7  ;;  %vm4399_vm3 = vweird.f32 %v5669_v45 }
0x23e3   :  { %v4252_v17 = vsel %vm4249_vm1, %v4251_v57, %v4247_v47  ;;  %vm4400_vm5 = vmor %vm4398_vm4, %vm4399_vm3 }
0x23e4   :  { %v4253_v34 = vmul.f32 %v5663_v62, %v4252_v17  ;;  %v4395_v18 = vsub.f32 1.0, %v4394_v53 }
0x23e6   :  { %v4396_v31 = vmul.f32 %v5669_v45, %v4395_v18  ;;  %5343 = vmatmul.msk.f32.vlgmr.msra.gmra.mxu3 %vm985_vm8, %v4253_v34 }
0x23e7   :  { %5355 = vmatpush.xpose.msk.msra.mxu3 %vm985_vm8, %v4538_v30 }
0x23e8   :  { %v4397_v20 = vadd.f32 %v5669_v45, %v4396_v31 }
0x23ea   :  { %v4401_v21 = vsel %vm4400_vm5, %v5669_v45, %v4397_v20 }
0x23eb   :  { %v4406_v22 = vsel %vm4403_vm6, %v4405_v37, %v4401_v21 }
0x23ec   :  { %v4407_v23 = vmul.f32 %v5665_v16, %v4406_v22 }
0x23ee   :  { %5349 = vmatmul.msk.f32.vlgmr.msrb.gmra.mxu3 %vm985_vm8, %v4407_v23 }
0x23f6   :  { %5356 = vmatmul.msk.f32.vlgmr.msra.gmra.mxu3 %vm985_vm8, %v4536_v26 }
0x2413   :  { %v4226_v32 = vpop.xlane.xlu2 %4225 }
0x2414   :  { %v4228_v19 = vsub.f32 %v4220_v59, %v4226_v32 }
0x2416   :  { %v4231_v42 = vmul.f32 1.442695, %v4228_v19 }
0x2418   :  { %5670 = vpow2.f32 %v4231_v42 }
0x241b   :  { %v4452_v40 = vpop.permute.xlu2 %4451 }
0x241c   :  { %4472 = vmatpush.msrb.mxu0 %v4452_v40 }
0x241e   :  { %v5671_v44 = vpop.eup %5670 }
0x241f   :  { %v4236_v46 = vsel %vm985_vm8, %v5671_v44, 0.0 }
0x2420   :  { %4237 = vadd.xlane.f32.xlu1 %v4236_v46 }
0x2423   :  { %v4729_v36 = vpop.permute.xlu2 %4728 }
0x2424   :  { %5363 = vmatpush.xpose.msk.msrb.mxu2 %vm985_vm8, %v4729_v36 }
0x242b   :  { %v4757_v15 = vpop.permute.xlu2 %4756 }
0x2439   :  { %4565 = vrot.lane.b32.xlu1 %v7927_v11, %s6710_s28 }
0x2441   :  { %4754 = vrot.lane.b32.xlu1 %v7925_v43, %s6711_s21 }
0x2461   :  { %v4368_v49 = vpop.f32.mrf.mxu2 }
0x2462   :  { %v4372_v14 = vmul.f32 0.17677669, %v4368_v49 }
0x2464   :  { %v4374_v13 = vsel %vm7250_vm9, %v4372_v14, -1e+30 }
0x2465   :  { %v4378_v50 = vsel %vm985_vm8, %v4374_v13, -inf }
0x2466   :  { %4379 = vmax.xlane.f32.xlu0 %v4378_v50 }
0x2469   :  { %v4289_v52 = vpop.f32.mrf.mxu3 }
0x246a   :  { %5353 = vmatmul.msk.f32.vlgmr.msra.gmra.mxu2 %vm985_vm8, %v4289_v52 }
0x2471   :  { %v4447_v54 = vpop.f32.mrf.mxu3 }
0x2472   :  { %5351 = vmatmul.msk.f32.vlgmr.msrb.gmra.mxu1 %vm985_vm8, %v4447_v54 }
0x2479   :  { %v4560_v7 = vpop.f32.mrf.mxu3 }
0x247a   :  { %4643 = vrot.lane.b32.xlu0 %v7893_v9, %s6710_s28  ;;  %v4591_v35 = vmul.f32 0.17677669, %v4560_v7 }
0x247c   :  { %v4593_v56 = vsel %vm7250_vm9, %v4591_v35, -1e+30 }
0x247d   :  { %v4595_v0 = vsel %vm985_vm8, %v4593_v56, -inf }
0x2493   :  { %v4238_v11 = vpop.xlane.xlu1 %4237 }
0x2494   :  { %5672 = vrcp.f32 %v4238_v11  ;;  %v4265_v62 = vand.u32 2147483648, %v4238_v11  ;;  %v4263_v29 = vand.u32 2147483647, %v4238_v11  ;;  %vm4259_vm10 = vweird.f32 %v4238_v11 }
0x2496   :  { %v4266_v3 = vor.u32 1.1754944e-38, %v4265_v62  ;;  %vm4264_vm12 = vcmp.eq.f32.partialorder %v4263_v29, 8.507059e+37  ;;  %v4163_v62 = vld [vmem:[%s8234_s11 + $0x10] sm:$0xff] }
0x2497   :  { %4716 = vmatpush.msra.mxu1 %v4163_v62 }
0x249a   :  { %v5673_v55 = vpop.eup %5672 }
0x249b   :  { %v4255_v60 = vmul.f32 %v5673_v55, %v4238_v11  ;;  %vm4260_vm7 = vweird.f32 %v5673_v55 }
0x249c   :  { %vm4261_vm11 = vmor %vm4259_vm10, %vm4260_vm7 }
0x249d   :  { %v4256_v61 = vsub.f32 1.0, %v4255_v60 }
0x249f   :  { %v4257_v63 = vmul.f32 %v5673_v55, %v4256_v61 }
0x24a1   :  { %v4258_v16 = vadd.f32 %v5673_v55, %v4257_v63 }
0x24a3   :  { %v4262_v51 = vsel %vm4261_vm11, %v5673_v55, %v4258_v16 }
0x24a4   :  { %v4267_v38 = vsel %vm4264_vm12, %v4266_v3, %v4262_v51 }
0x24a5   :  { %v4268_v59 = vmul.f32 %v5671_v44, %v4267_v38 }
0x24a7   :  { %5344 = vmatmul.msk.f32.vlgmr.msra.gmra.mxu0 %vm985_vm8, %v4268_v59 }
0x24ab   :  { %v4566_v1 = vpop.permute.xlu1 %4565 }
0x24ac   :  { %5357 = vmatpush.xpose.msk.msra.mxu0 %vm985_vm8, %v4566_v1 }
0x24b3   :  { %v4755_v61 = vpop.permute.xlu1 %4754 }
0x24d9   :  { %v4380_v5 = vpop.xlane.xlu0 %4379 }
0x24da   :  { %v4382_v6 = vsub.f32 %v4374_v13, %v4380_v5 }
0x24dc   :  { %v4385_v27 = vmul.f32 1.442695, %v4382_v6 }
0x24de   :  { %5674 = vpow2.f32 %v4385_v27 }
0x24e4   :  { %v5675_v2 = vpop.eup %5674 }
0x24e5   :  { %v4390_v12 = vsel %vm985_vm8, %v5675_v2, 0.0 }
0x24e6   :  { %4391 = vadd.xlane.f32.xlu0 %v4390_v12 }
0x24ec   :  { %v4644_v24 = vpop.permute.xlu0 %4643 }
0x24ed   :  { %4664 = vmatpush.msrb.mxu3 %v4644_v24  ;;  %v8002_v63 = vpop.f32.mrf.mxu2 }
0x24ee   :  { %4596 = vmax.xlane.f32.xlu0 %v4595_v0 }
0x24ef   :  { %5365 = vmatpush.xpose.msk.msra.mxu3 %vm985_vm8, %v4757_v15 }
0x2502   :  { %4563 = vrot.lane.b32.xlu0 %v7925_v43, %s6710_s28 }
0x2524   :  { %v4312_v45 = vpop.f32.mrf.mxu0 }
0x2525   :  { %5354 = vmatmul.msk.f32.gmra.mxu2 %vm985_vm8, %v4312_v45 }
0x2559   :  { %v4392_v57 = vpop.xlane.xlu0 %4391 }
0x255a   :  { %5676 = vrcp.f32 %v4392_v57  ;;  %v4419_v58 = vand.u32 2147483648, %v4392_v57  ;;  %v4417_v10 = vand.u32 2147483647, %v4392_v57  ;;  %vm4413_vm14 = vweird.f32 %v4392_v57 }
0x255c   :  { %v4420_v43 = vor.u32 1.1754944e-38, %v4419_v58  ;;  %vm4418_vm1 = vcmp.eq.f32.partialorder %v4417_v10, 8.507059e+37 }
0x2560   :  { %v5677_v47 = vpop.eup %5676 }
0x2561   :  { %v4409_v53 = vmul.f32 %v5677_v47, %v4392_v57  ;;  %v4597_v17 = vpop.xlane.xlu0 %4596  ;;  %vm4414_vm13 = vweird.f32 %v5677_v47 }
0x2562   :  { %v4601_v34 = vsub.f32 %v4593_v56, %v4597_v17  ;;  %vm4415_vm15 = vmor %vm4413_vm14, %vm4414_vm13 }
0x2563   :  { %v4410_v18 = vsub.f32 1.0, %v4409_v53 }
0x2564   :  { %v4603_v30 = vmul.f32 1.442695, %v4601_v34 }
0x2565   :  { %v4411_v31 = vmul.f32 %v5677_v47, %v4410_v18 }
0x2566   :  { %5678 = vpow2.f32 %v4603_v30 }
0x2567   :  { %v4412_v20 = vadd.f32 %v5677_v47, %v4411_v31 }
0x2569   :  { %v4416_v37 = vsel %vm4415_vm15, %v5677_v47, %v4412_v20 }
0x256a   :  { %v4421_v21 = vsel %vm4418_vm1, %v4420_v43, %v4416_v37 }
0x256b   :  { %v4422_v22 = vmul.f32 %v5675_v2, %v4421_v21 }
0x256c   :  { %v5679_v23 = vpop.eup %5678 }
0x256d   :  { %5350 = vmatmul.msk.f32.vlgmr.msrb.gmra.mxu0 %vm985_vm8, %v4422_v22  ;;  %v4607_v26 = vsel %vm985_vm8, %v5679_v23, 0.0 }
0x256e   :  { %4608 = vadd.xlane.f32.xlu0 %v4607_v26 }
0x2574   :  { %v4564_v28 = vpop.permute.xlu0 %4563 }
0x2575   :  { %5358 = vmatmul.msk.f32.vlgmr.msra.gmra.mxu0 %vm985_vm8, %v4564_v28 }
0x2582   :  { %4726 = vrot.lane.b32.xlu0 %v7905_v33, %s6711_s21 }
0x25a8   :  { %v8004_v51 = vpop.f32.mrf.mxu2 }
0x25e1   :  { %v4609_v32 = vpop.xlane.xlu0 %4608 }
0x25e2   :  { %5680 = vrcp.f32 %v4609_v32  ;;  %v4624_v46 = vand.u32 2147483648, %v4609_v32  ;;  %v4622_v48 = vand.u32 2147483647, %v4609_v32  ;;  %vm4618_vm4 = vweird.f32 %v4609_v32 }
0x25e4   :  { %v4625_v14 = vor.u32 1.1754944e-38, %v4624_v46  ;;  %vm4623_vm6 = vcmp.eq.f32.partialorder %v4622_v48, 8.507059e+37 }
0x25e8   :  { %v5681_v19 = vpop.eup %5680 }
0x25e9   :  { %v4614_v42 = vmul.f32 %v5681_v19, %v4609_v32  ;;  %vm4619_vm3 = vweird.f32 %v5681_v19  ;;  %v5490_v32 = vpack.i.bf16 %v7922_v41, %v7893_v9 }
0x25ea   :  { %v4474_v40 = vpop.f32.mrf.mxu0  ;;  %vm4620_vm5 = vmor %vm4618_vm4, %vm4619_vm3 }
0x25eb   :  { %v4615_v44 = vsub.f32 1.0, %v4614_v42  ;;  %5352 = vmatmul.msk.f32.gmra.mxu1 %vm985_vm8, %v4474_v40 }
0x25ed   :  { %v4616_v36 = vmul.f32 %v5681_v19, %v4615_v44 }
0x25ef   :  { %v4617_v49 = vadd.f32 %v5681_v19, %v4616_v36 }
0x25f1   :  { %v4621_v13 = vsel %vm4620_vm5, %v5681_v19, %v4617_v49 }
0x25f2   :  { %v4626_v33 = vsel %vm4623_vm6, %v4625_v14, %v4621_v13  ;;  %v4588_v50 = vpop.f32.mrf.mxu0 }
0x25f3   :  { %v4627_v52 = vmul.f32 %v5679_v23, %v4626_v33  ;;  %v4592_v54 = vmul.f32 0.17677669, %v4588_v50 }
0x25f4   :  { %v4727_v11 = vpop.permute.xlu0 %4726 }
0x25f5   :  { %5359 = vmatmul.msk.f32.vlgmr.msrb.gmra.mxu3 %vm985_vm8, %v4627_v52  ;;  %5364 = vmatmul.msk.f32.vlgmr.msrb.gmra.mxu2 %vm985_vm8, %v4727_v11  ;;  %v4594_v55 = vsel %vm7250_vm9, %v4592_v54, -1e+30 }
0x25f6   :  { %v4598_v60 = vsel %vm985_vm8, %v4594_v55, -inf }
0x25f7   :  { %4599 = vmax.xlane.f32.xlu2 %v4598_v60 }
0x25fd   :  { %5366 = vmatmul.msk.f32.vlgmr.msra.gmra.mxu3 %vm985_vm8, %v4755_v61 }
0x266a   :  { %v4600_v29 = vpop.xlane.xlu2 %4599 }
0x266b   :  { %v4602_v16 = vsub.f32 %v4594_v55, %v4600_v29 }
0x266d   :  { %v4605_v3 = vmul.f32 1.442695, %v4602_v16 }
0x266f   :  { %5682 = vpow2.f32 %v4605_v3 }
0x2675   :  { %v5683_v38 = vpop.eup %5682 }
0x2676   :  { %v4610_v59 = vsel %vm985_vm8, %v5683_v38, 0.0 }
0x2677   :  { %4611 = vadd.xlane.f32.xlu2 %v4610_v59 }
0x2678   :  { %v4666_v1 = vpop.f32.mrf.mxu3  ;;  %v4751_v5 = vpop.f32.mrf.mxu2 }
0x2679   :  { %v4782_v6 = vmul.f32 0.17677669, %v4751_v5  ;;  %5361 = vmatmul.msk.f32.vlgmr.msra.gmra.mxu1 %vm985_vm8, %v4666_v1 }
0x267b   :  { %v4784_v27 = vsel %vm7250_vm9, %v4782_v6, -1e+30  ;;  %v4164_v6 = vld [vmem:[%s8234_s11 + $0x18] sm:$0xff] }
0x267c   :  { %v4786_v7 = vsel %vm985_vm8, %v4784_v27, -inf  ;;  %4907 = vmatpush.msrb.mxu3 %v4164_v6 }
0x267d   :  { %4787 = vmax.xlane.f32.xlu0 %v4786_v7 }
0x2680   :  { %v4779_v2 = vpop.f32.mrf.mxu3 }
0x2681   :  { %v4783_v12 = vmul.f32 0.17677669, %v4779_v2  ;;  %v4500_v2 = vpop.f32.mrf.mxu1 }
0x2683   :  { %v4785_v35 = vsel %vm7250_vm9, %v4783_v12, -1e+30 }
0x2684   :  { %v4789_v56 = vsel %vm985_vm8, %v4785_v35, -inf }
0x2685   :  { %4790 = vmax.xlane.f32.xlu1 %v4789_v56  ;;  %v4530_v56 = vadd.f32 %v8002_v63, %v4500_v2 }
0x2689   :  { %v4503_v12 = vpop.f32.mrf.mxu1 }
0x268f   :  { %4669 = vrot.lane.b32.xlu2 %v7922_v41, %s6710_s28 }
0x26ea   :  { %v4612_v24 = vpop.xlane.xlu2 %4611 }
0x26eb   :  { %5684 = vrcp.f32 %v4612_v24  ;;  %v4639_v34 = vand.u32 2147483648, %v4612_v24  ;;  %v4637_v18 = vand.u32 2147483647, %v4612_v24  ;;  %vm4633_vm7 = vweird.f32 %v4612_v24 }
0x26ed   :  { %v4640_v31 = vor.u32 1.1754944e-38, %v4639_v34  ;;  %vm4638_vm11 = vcmp.eq.f32.partialorder %v4637_v18, 8.507059e+37  ;;  %v4533_v34 = vadd.f32 %v8004_v51, %v4503_v12 }
0x26f0   :  { %v4788_v15 = vpop.xlane.xlu0 %4787 }
0x26f1   :  { %v5685_v0 = vpop.eup %5684  ;;  %v4792_v45 = vsub.f32 %v4784_v27, %v4788_v15  ;;  %v5530_v15 = vld [vmem:[#allocation52] ss:$0 sm:$0xff] }
0x26f2   :  { %v4629_v57 = vmul.f32 %v5685_v0, %v4612_v24  ;;  %v4670_v47 = vpop.permute.xlu2 %4669  ;;  %vm4634_vm9 = vweird.f32 %v5685_v0 }
0x26f3   :  { %v4794_v53 = vmul.f32 1.442695, %v4792_v45  ;;  %4690 = vmatpush.msrb.mxu0 %v4670_v47  ;;  %vm4635_vm10 = vmor %vm4633_vm7, %vm4634_vm9 }
0x26f4   :  { %v4630_v17 = vsub.f32 1.0, %v4629_v57 }
0x26f5   :  { %5686 = vpow2.f32 %v4794_v53 }
0x26f6   :  { %v4631_v8 = vmul.f32 %v5685_v0, %v4630_v17 }
0x26f8   :  { %v4632_v58 = vadd.f32 %v5685_v0, %v4631_v8  ;;  %v4791_v30 = vpop.xlane.xlu1 %4790 }
0x26f9   :  { %v4793_v10 = vsub.f32 %v4785_v35, %v4791_v30  ;;  %v4718_v35 = vpop.f32.mrf.mxu1 }
0x26fa   :  { %v4636_v20 = vsel %vm4635_vm10, %v5685_v0, %v4632_v58  ;;  %v4724_v24 = vadd.f32 %v4718_v35, %v4530_v56  ;;  %v5024_v35 = vld [vmem:[%s8236_s17 + $0x20] sm:$0xff] }
0x26fb   :  { %v5687_v43 = vpop.eup %5686  ;;  %v4641_v37 = vsel %vm4638_vm11, %v4640_v31, %v4636_v20  ;;  %v4796_v21 = vmul.f32 1.442695, %v4793_v10 }
0x26fc   :  { %v4642_v22 = vmul.f32 %v5683_v38, %v4641_v37  ;;  %v4798_v23 = vsel %vm985_vm8, %v5687_v43, 0.0 }
0x26fd   :  { %5688 = vpow2.f32 %v4796_v21  ;;  %4799 = vadd.xlane.f32.xlu0 %v4798_v23 }
0x26fe   :  { %5360 = vmatmul.msk.f32.vlgmr.msrb.gmra.mxu0 %vm985_vm8, %v4642_v22 }
0x2703   :  { %v5689_v26 = vpop.eup %5688 }
0x2704   :  { %v4801_v28 = vsel %vm985_vm8, %v5689_v26, 0.0 }
0x2705   :  { %4802 = vadd.xlane.f32.xlu1 %v4801_v28  ;;  %v4983_v28 = vld [vmem:[%s8235_s3 + $0x10] sm:$0xff] }
0x2711   :  { %5491 = vrot.lane.b32.xlu0 %v5490_v32, %s6711_s21  ;;  %v4982_v32 = vld [vmem:[%s8235_s3 + $0x8] sm:$0xff] }
0x2770   :  { %v4800_v19 = vpop.xlane.xlu0 %4799 }
0x2771   :  { %5690 = vrcp.f32 %v4800_v19  ;;  %v4815_v49 = vand.u32 2147483648, %v4800_v19  ;;  %v4813_v14 = vand.u32 2147483647, %v4800_v19  ;;  %vm4809_vm13 = vweird.f32 %v4800_v19 }
0x2773   :  { %v4816_v41 = vor.u32 1.1754944e-38, %v4815_v49  ;;  %vm4814_vm15 = vcmp.eq.f32.partialorder %v4813_v14, 8.507059e+37 }
0x2777   :  { %v5691_v42 = vpop.eup %5690 }
0x2778   :  { %v4805_v40 = vmul.f32 %v5691_v42, %v4800_v19  ;;  %v4803_v44 = vpop.xlane.xlu1 %4802  ;;  %vm4810_vm12 = vweird.f32 %v5691_v42  ;;  %v4981_v19 = vld [vmem:[%s8235_s3] sm:$0xff] }
0x2779   :  { %5692 = vrcp.f32 %v4803_v44  ;;  %vm4811_vm14 = vmor %vm4809_vm13, %vm4810_vm12  ;;  %v4828_v11 = vand.u32 2147483647, %v4803_v44  ;;  %v4830_v55 = vand.u32 2147483648, %v4803_v44  ;;  %vm4824_vm3 = vweird.f32 %v4803_v44 }
0x277a   :  { %v4806_v46 = vsub.f32 1.0, %v4805_v40 }
0x277b   :  { %v4692_v36 = vpop.f32.mrf.mxu0  ;;  %v4831_v38 = vor.u32 1.1754944e-38, %v4830_v55  ;;  %vm4829_vm5 = vcmp.eq.f32.partialorder %v4828_v11, 8.507059e+37  ;;  %v5030_v11 = vld [vmem:[%s8236_s17 + $0x50] sm:$0xff] }
0x277c   :  { %v4807_v48 = vmul.f32 %v5691_v42, %v4806_v46  ;;  %5362 = vmatmul.msk.f32.gmra.mxu1 %vm985_vm8, %v4692_v36  ;;  %v5035_v46 = vld [vmem:[%s8236_s17 + $0x78] sm:$0xff]  ;;  %v5034_v36 = vld [vmem:[%s8236_s17 + $0x70] sm:$0xff] }
0x277d   :  { %5040 = vmatpush.msrb.mxu1 %v5035_v46 }
0x277e   :  { %v4808_v13 = vadd.f32 %v5691_v42, %v4807_v48  ;;  %v5033_v48 = vld [vmem:[%s8236_s17 + $0x68] sm:$0xff] }
0x277f   :  { %v5693_v33 = vpop.eup %5692  ;;  %5041 = vmatpush.msrb.mxu1 %v5034_v36 }
0x2780   :  { %v4812_v9 = vsel %vm4811_vm14, %v5691_v42, %v4808_v13  ;;  %v4820_v50 = vmul.f32 %v5693_v33, %v4803_v44  ;;  %vm4825_vm1 = vweird.f32 %v5693_v33 }
0x2781   :  { %v4817_v52 = vsel %vm4814_vm15, %v4816_v41, %v4812_v9  ;;  %vm4826_vm4 = vmor %vm4824_vm3, %vm4825_vm1  ;;  %v5032_v9 = vld [vmem:[%s8236_s17 + $0x60] sm:$0xff]  ;;  %5042 = vmatpush.msrb.mxu1 %v5033_v48 }
0x2782   :  { %v4821_v54 = vsub.f32 1.0, %v4820_v50  ;;  %v4818_v16 = vmul.f32 %v5687_v43, %v4817_v52  ;;  %v5031_v52 = vld [vmem:[%s8236_s17 + $0x58] sm:$0xff] }
0x2783   :  { %v5492_v60 = vpop.permute.xlu0 %5491  ;;  %5043 = vmatpush.msrb.mxu1 %v5032_v9 }
0x2784   :  { %v4822_v61 = vmul.f32 %v5693_v33, %v4821_v54  ;;  %v5494_v62 = vunpack.i.h.bf16 %v5492_v60  ;;  %v5493_v29 = vunpack.i.l.bf16 %v5492_v60  ;;  %v5029_v60 = vld [vmem:[%s8236_s17 + $0x48] sm:$0xff] }
0x2785   :  { %5044 = vmatpush.msrb.mxu1 %v5031_v52 }
0x2786   :  { %v4823_v3 = vadd.f32 %v5693_v33, %v4822_v61  ;;  %4855 = vmatpush.msra.mxu0 %v5493_v29  ;;  %4881 = vmatpush.msra.mxu2 %v5494_v62  ;;  %v5531_v62 = vld [vmem:[#allocation53] ss:$0 sm:$0xff] }
0x2787   :  { %5367 = vmatmul.msk.f32.vlgmr.msra.gmra.mxu0 %vm985_vm8, %v4818_v16  ;;  %5045 = vmatpush.msrb.mxu1 %v5030_v11 }
0x2788   :  { %v4827_v59 = vsel %vm4826_vm4, %v5693_v33, %v4823_v3  ;;  %v5027_v3 = vld [vmem:[%s8236_s17 + $0x38] sm:$0xff] }
0x2789   :  { %v4832_v1 = vsel %vm4829_vm5, %v4831_v38, %v4827_v59  ;;  %5046 = vmatpush.msrb.mxu1 %v5029_v60  ;;  %v5532_v38 = vld [vmem:[#allocation55] ss:$0 sm:$0xff] }
0x278a   :  { %v4833_v5 = vmul.f32 %v5689_v26, %v4832_v1  ;;  %v4984_v26 = vld [vmem:[%s8235_s3 + $0x18] sm:$0xff] }
0x278b   :  { %5007 = vmatpush.msrb.mxu0 %v4984_v26 }
0x278c   :  { %5368 = vmatmul.msk.f32.vlgmr.msra.gmra.mxu2 %vm985_vm8, %v4833_v5  ;;  %v5026_v5 = vld [vmem:[%s8236_s17 + $0x30] sm:$0xff] }
0x278d   :  { %5008 = vmatpush.msrb.mxu0 %v4983_v28 }
0x278f   :  { %5009 = vmatpush.msrb.mxu0 %v4982_v32  ;;  %v5535_v32 = vld [vmem:[%s7061_s8] ss:$0 sm:$0xff]  ;;  %s6554_s8 = scalar_lea.hbm %s7066_s30, 16 }
0x2791   :  { %5010 = vmatpush.msrb.mxu0 %v4981_v19 }
0x27f9   :  { %v4721_v53 = vpop.f32.mrf.mxu1 }
0x27fa   :  { %v4725_v8 = vadd.f32 %v4721_v53, %v4533_v34  ;;  %v5022_v53 = vld [vmem:[%s8236_s17 + $0x10] sm:$0xff]  ;;  %v5020_v34 = vld [vmem:[%s8236_s17] sm:$0xff] }
0x2804   :  { %v4857_v27 = vpop.f32.mrf.mxu0 }
0x2805   :  { %5369 = vmatmul.msk.f32.vlgmr.msrb.gmra.mxu3 %vm985_vm8, %v4857_v27 }
0x280f   :  { %v4883_v7 = vpop.f32.mrf.mxu2 }
0x2810   :  { %5370 = vmatmul.msk.f32.gmra.mxu3 %vm985_vm8, %v4883_v7  ;;  %v5025_v7 = vld [vmem:[%s8236_s17 + $0x28] sm:$0xff] }
0x2888   :  { %v4909_v0 = vpop.f32.mrf.mxu3 }
0x2889   :  { %v4915_v45 = vadd.f32 %v4909_v0, %v4724_v24  ;;  %v5023_v24 = vld [vmem:[%s8236_s17 + $0x18] sm:$0xff] }
0x288b   :  { %v4921_v57 = vadd.f32 %v5530_v15, %v4915_v45 }
0x288d   :  { %v4923_v47 = vadd.f32 %v4921_v57, %v7882_v4 }
0x288f   :  { %v4927_v17 = vsel %vm820_vm2, %v4923_v47, 0.0 }
0x2890   :  { %4928 = vadd.xlane.f32.xlu1 %v4927_v17  ;;  %v5021_v17 = vld [vmem:[%s8236_s17 + $0x8] sm:$0xff] }
0x2893   :  { %v4912_v18 = vpop.f32.mrf.mxu3 }
0x2894   :  { %v4916_v58 = vadd.f32 %v4912_v18, %v4725_v8  ;;  %v5068_v8 = vld [vmem:[%s7056_s13 + $0x18] sm:$0xff]  ;;  %v5533_v18 = vld [vmem:[%s8237_s23] ss:$0 sm:$0xff] }
0x2895   :  { %5091 = vmatpush.msrb.mxu2 %v5068_v8 }
0x2896   :  { %v4922_v30 = vadd.f32 %v5530_v15, %v4916_v58 }
0x2898   :  { %v4924_v63 = vadd.f32 %v4922_v30, %v7912_v39 }
0x289a   :  { %v4930_v31 = vsel %vm820_vm2, %v4924_v63, 0.0 }
0x289b   :  { %4931 = vadd.xlane.f32.xlu1 %v4930_v31 }
0x2903   :  { %v4929_v10 = vpop.xlane.xlu1 %4928 }
0x2904   :  { %v4933_v4 = vmul.f32 %v4929_v10, %v7198_v25 }
0x2906   :  { %v4935_v20 = vsub.f32 %v4923_v47, %v4933_v4 }
0x2908   :  { %v4937_v43 = vmul.f32 %v4935_v20, %v4935_v20 }
0x290a   :  { %v4939_v51 = vsel %vm820_vm2, %v4937_v43, 0.0  ;;  %v5066_v43 = vld [vmem:[%s7056_s13 + $0x8] sm:$0xff] }
0x290b   :  { %4940 = vadd.xlane.f32.xlu1 %v4939_v51  ;;  %v5065_v51 = vld [vmem:[%s7056_s13] sm:$0xff] }
0x290e   :  { %v4932_v37 = vpop.xlane.xlu1 %4931 }
0x290f   :  { %v4934_v21 = vmul.f32 %v4932_v37, %v7198_v25  ;;  %v5534_v37 = vld [vmem:[%s7051_s12] ss:$0 sm:$0xff]  ;;  %s5110_s12 = sshll.u32 %s7066_s30, 4  ;;  %s5111_s12 = int_to_ptr.hbm [resolvable:$true] %s5110_s12 }
0x2910   :  { %s6550_s21 = sshra.s32 %s5111_s12, 4  ;;  %s6551_s21 = int_to_ptr.hbm [resolvable:$true] %s6550_s21 }
0x2911   :  { %v8037_v22 = vsub.f32 %v4924_v63, %v4934_v21  ;;  %s6552_s6 = scalar_lea.hbm %s6551_s21, 16  ;;  %p6555_p8 = scmp.lt.s32.totalorder %s6551_s21, %s7066_s30 }
0x2912   :  { %p6553_p7 = scmp.ne.s32.totalorder %s6551_s21, %s6552_s6  ;;  %p6556_p9 = scmp.lt.s32.totalorder %s6554_s8, %s6552_s6 }
0x2913   :  { %v4938_v39 = vmul.f32 %v8037_v22, %v8037_v22 }
0x2914   :  { %p6557_p10 = por %p6556_p9, %p6555_p8 }
0x2915   :  { %v4942_v23 = vsel %vm820_vm2, %v4938_v39, 0.0 }
0x2916   :  { %4943 = vadd.xlane.f32.xlu0 %v4942_v23  ;;  %p6558_p11 = pnand %p6557_p10, %p6553_p7 }
0x297e   :  { %v4941_v42 = vpop.xlane.xlu1 %4940 }
0x297f   :  { %v4945_v40 = vmul.f32 %v4941_v42, %v7198_v25 }
0x2981   :  { %v4947_v44 = vadd.f32 1e-05, %v4945_v40 }
0x2983   :  { %5694 = vrsqrt.f32 %v4947_v44  ;;  %vm4955_vm6 = vweird.f32 %v4947_v44 }
0x2989   :  { %v5695_v49 = vpop.eup %5694  ;;  %v4944_v14 = vpop.xlane.xlu0 %4943 }
0x298a   :  { %v4950_v13 = vmul.f32 %v5695_v49, %v4947_v44  ;;  %v4946_v33 = vmul.f32 %v4944_v14, %v7198_v25  ;;  %vm4956_vm8 = vweird.f32 %v5695_v49  ;;  %v5028_v25 = vld [vmem:[%s8236_s17 + $0x40] sm:$0xff] }
0x298b   :  { %vm4957_vm9 = vmor %vm4955_vm6, %vm4956_vm8  ;;  %5047 = vmatpush.msrb.mxu1 %v5028_v25 }
0x298c   :  { %v4951_v41 = vmul.f32 %v5695_v49, %v4950_v13  ;;  %v4948_v50 = vadd.f32 1e-05, %v4946_v33 }
0x298d   :  { %5048 = vmatpush.msrb.mxu1 %v5027_v3 }
0x298e   :  { %v4952_v54 = vmul.f32 0.5, %v4951_v41  ;;  %5696 = vrsqrt.f32 %v4948_v50  ;;  %vm4965_vm10 = vweird.f32 %v4948_v50 }
0x298f   :  { %5049 = vmatpush.msrb.mxu1 %v5026_v5 }
0x2990   :  { %v4953_v55 = vsub.f32 1.5, %v4952_v54 }
0x2991   :  { %5050 = vmatpush.msrb.mxu1 %v5025_v7 }
0x2992   :  { %v4954_v61 = vmul.f32 %v5695_v49, %v4953_v55 }
0x2993   :  { %5051 = vmatpush.msrb.mxu1 %v5024_v35 }
0x2994   :  { %v5697_v29 = vpop.eup %5696  ;;  %v4958_v16 = vsel %vm4957_vm9, %v5695_v49, %v4954_v61 }
0x2995   :  { %v4969_v59 = vmul.f32 %v4958_v16, %v4935_v20  ;;  %v4960_v1 = vmul.f32 %v5697_v29, %v4948_v50  ;;  %vm4966_vm7 = vweird.f32 %v5697_v29  ;;  %5052 = vmatpush.msrb.mxu1 %v5023_v24  ;;  %v5067_v20 = vld [vmem:[%s7056_s13 + $0x10] sm:$0xff]  ;;  %s6712_s13 = smov [#allocation56]  }
0x2996   :  { %vm4967_vm11 = vmor %vm4965_vm10, %vm4966_vm7  ;;  %5092 = vmatpush.msrb.mxu2 %v5067_v20  ;;  %s5108_s28 = sshll.u32 %s6712_s13, 4  ;;  %s5109_s28 = int_to_ptr.vmem [resolvable:$true] %s5108_s28 }
0x2997   :  { %v4974_v6 = vmul.f32 %v5531_v62, %v4969_v59  ;;  %v4961_v27 = vmul.f32 %v5697_v29, %v4960_v1  ;;  %5053 = vmatpush.msrb.mxu1 %v5022_v53 }
0x2998   :  { %5093 = vmatpush.msrb.mxu2 %v5066_v43 }
0x2999   :  { %v4979_v2 = vadd.f32 %v5532_v38, %v4974_v6  ;;  %v4962_v12 = vmul.f32 0.5, %v4961_v27  ;;  %5054 = vmatpush.msrb.mxu1 %v5021_v17 }
0x299a   :  { %5094 = vmatpush.msrb.mxu2 %v5065_v51 }
0x299b   :  { %v4963_v56 = vsub.f32 1.5, %v4962_v12  ;;  %5371 = vmatmul.msk.f32.vlgmr.msrb.gmra.mxu0 %vm820_vm2, %v4979_v2  ;;  %5055 = vmatpush.msrb.mxu1 %v5020_v34 }
0x299d   :  { %v4964_v15 = vmul.f32 %v5697_v29, %v4963_v56 }
0x299f   :  { %v4968_v0 = vsel %vm4967_vm11, %v5697_v29, %v4964_v15 }
0x29a0   :  { %v4970_v45 = vmul.f32 %v4968_v0, %v8037_v22 }
0x29a2   :  { %v4975_v57 = vmul.f32 %v5531_v62, %v4970_v45 }
0x29a4   :  { %v4980_v47 = vadd.f32 %v5532_v38, %v4975_v57 }
0x29a6   :  { %5372 = vmatmul.msk.f32.gmra.mxu0 %vm820_vm2, %v4980_v47 }
0x2a18   :  { %v5012_v58 = vpop.f32.mrf.mxu0 }
0x2a19   :  { %v5013_v30 = vadd.f32 %v5533_v18, %v5012_v58 }
0x2a1b   :  { %v5018_v63 = vmax.f32 %v5013_v30, 0.0 }
0x2a1d   :  { %5056 = vmatmul.f32.vlgmr.msrb.gmra.mxu1 %v5018_v63 }
0x2a23   :  { %v5015_v31 = vpop.f32.mrf.mxu0 }
0x2a24   :  { %v5016_v10 = vadd.f32 %v5533_v18, %v5015_v31 }
0x2a26   :  { %v5019_v4 = vmax.f32 %v5016_v10, 0.0 }
0x2a28   :  { %5059 = vmatmul.f32.gmra.mxu1 %v5019_v4 }
0x2a9a   :  { %v5057_v21 = vpop.f32.mrf.mxu1 }
0x2a9b   :  { %v5058_v22 = vadd.f32 %v5534_v37, %v5057_v21 }
0x2a9d   :  { %v5063_v39 = vadd.f32 %v5058_v22, %v4979_v2 }
0x2a9f   :  { %5373 = vmatmul.msk.f32.vlgmr.msrb.gmra.mxu2 %vm820_vm2, %v5063_v39 }
0x2aa5   :  { %v5060_v23 = vpop.f32.mrf.mxu1 }
0x2aa6   :  { %v5061_v26 = vadd.f32 %v5534_v37, %v5060_v23 }
0x2aa8   :  { %v5064_v28 = vadd.f32 %v5061_v26, %v4980_v47 }
0x2aaa   :  { %5374 = vmatmul.msk.f32.gmra.mxu2 %vm820_vm2, %v5064_v28 }
0x2b22   :  { %v5096_v19 = vpop.f32.mrf.mxu2 }
0x2b23   :  { %v5097_v42 = vadd.f32 %v5535_v32, %v5096_v19 }
0x2b25   :  { %5102 = vst.msk [vmem:[#allocation56] sm:$0xff] %vm782_vm0, %v5097_v42 }
0x2b2d   :  { %v5099_v40 = vpop.f32.mrf.mxu2 }
0x2b2e   :  { %v5100_v44 = vadd.f32 %v5535_v32, %v5099_v40 }
0x2b30   :  { %5103 = vst.msk [vmem:[#allocation56 + $0x8] sm:$0xff] %vm782_vm0, %v5100_v44 }
0x2b31   :  { %6561 = shalt.err (!%p6558_p11)
}
0x2b32   :  { %5116 = dma.vmem_to_hbm [thread:$0]  %s5109_s28, 256, %s5111_s12, [#allocation4], %s6687_s18, %s6687_s18, %s6688_s22  }
0x2b33   :  { %6598 = dma.done.wait [#allocation4], 256  }
0x2b34   :  { %6599 = vsyncadd [#allocation4], 4294967040 }
0x2b35   :  { %5121 = vsyncpa [#allocation3], 1 }
0x2b36   :  { %5122 = vsyncpa [#allocation6], 1 }
0x2b37   :  { %5123 = vsyncpa [#allocation9], 1 }
0x2b38   :  { %5124 = vsyncpa [#allocation12], 1 }
0x2b39   :  { %5125 = vsyncpa [#allocation15], 1 }
0x2b3a   :  { %5126 = vsyncpa [#allocation18], 1 }
0x2b3b   :  { %5127 = vsyncpa [#allocation21], 1 }
0x2b3c   :  { %5128 = vsyncpa [#allocation24], 1 }
0x2b3d   :  { %5129 = vsyncpa [#allocation27], 1 }
0x2b3e   :  { %5130 = vsyncpa [#allocation30], 1 }
0x2b3f   :  { %5131 = vsyncpa [#allocation33], 1 }
0x2b40   :  { %5132 = vsyncpa [#allocation36], 1 }
0x2b41   :  { %5133 = vsyncpa [#allocation39], 1 }
0x2b42   :  { %5134 = vsyncpa [#allocation42], 1 }
0x2b43   :  { %5135 = vsyncpa [#allocation45], 1 }
0x2b44   :  { %5136 = vsyncpa [#allocation48], 1 }
0x2b45   :  { %5137 = vsyncpa [#allocation51], 1 }
0x2b46   :  { %5138 = vsyncpa [#allocation54], 1 }
0x2b47   :  { %5139 = vsyncpa [#allocation4], 1 }

</bundles_post_ra>
